<compile_context>
chip_gen: v6e
topology: v6e:2x2x1
jax: 0.10.0
libtpu: 0.0.40
codegen_flags: <defaults>
</compile_context>

<pallas_src>
import functools

import numpy as np
import jax
import jax.numpy as jnp
from jax.experimental import pallas as pl
from jax.experimental.pallas import tpu as pltpu

NUM_HEADS = 4


def pifold_attn_kernel(hE_ref, hVd_ref, hV_ref,
                       w1e_ref, w1d_ref, w1s_ref, b1_ref,
                       wb2_ref, bb2_ref, wb3_ref, bb3_ref,
                       expand_ref, wog_ref, bog_ref,
                       out_ref, *, K, num_hidden, num_V):
    H = num_hidden
    d = H // NUM_HEADS
    scale = jnp.float32(1.0 / np.sqrt(d))
    f32 = jnp.float32
    bf16 = jnp.bfloat16

    TE = hE_ref.shape[0]
    TN = TE // K

    hV_tile = hV_ref[...]                                     # [TN, num_V] f32

    # ---- fused first matmul: Bias-MLP layer 1 + W_V in one f32-accum pass ----------
    # The h_V[src] slab of the original concat is redundant with the resident node
    # tile (edge e's src is node e // K), so its contribution is computed once per
    # node and sublane-repeated K times instead of being shipped from HBM.
    src_part = jnp.dot(hV_tile.astype(bf16), w1s_ref[...],
                       preferred_element_type=f32)            # [TN, 2H]
    src_rep = jnp.broadcast_to(src_part[:, None, :],
                               (TN, K, 2 * H)).reshape(TE, 2 * H)
    t0 = (jnp.dot(hE_ref[...], w1e_ref[...], preferred_element_type=f32)
          + jnp.dot(hVd_ref[...], w1d_ref[...], preferred_element_type=f32)
          + src_rep + b1_ref[...])                            # [TE, 2H]
    t = jnp.maximum(t0[:, :H], 0.0)                           # Bias layer-1 ReLU branch
    V = jax.nn.gelu(t0[:, H:], approximate=True)              # W_V branch (tanh GELU -> EUP)

    # ---- remaining Bias MLP: Linear -> ReLU -> Linear -------------------------------
    t = jnp.dot(t.astype(bf16), wb2_ref[...], preferred_element_type=f32) + bb2_ref[...]
    t = jnp.maximum(t, 0.0)
    logits = (jnp.dot(t.astype(bf16), wb3_ref[...], preferred_element_type=f32)
              + bb3_ref[...]) * scale                         # [TE, 4]

    # ---- exact per-src-group scatter-softmax via the fixed-K layout -----------------
    lg = logits.reshape(TN, K, NUM_HEADS)
    m = jnp.max(lg, axis=1, keepdims=True)                    # per-group max [TN, 1, 4]
    p = jnp.exp(lg - m)                                       # [TN, K, 4]
    denom = jnp.sum(p, axis=1, keepdims=True)                 # [TN, 1, 4]  (>= 1)
    attend = (p * pl.reciprocal(denom, approx=True)).reshape(TE, NUM_HEADS)

    # ---- expand heads [TE,4] -> [TE,H] with a tiny 0/1 matmul, weight V -------------
    attend_rep = jnp.dot(attend.astype(bf16), expand_ref[...],
                         preferred_element_type=f32)          # [TE, H]
    AV = attend_rep * V                                       # [TE, H] f32

    # ---- scatter-sum over src: fixed-K sublane reduction -> [TN, H] -----------------
    h_agg = jnp.sum(AV.reshape(TN, K, H), axis=1)

    # ---- fused gate + output projection: one [H, 2*num_V] matmul, then split --------
    go = jnp.dot(h_agg.astype(bf16), wog_ref[...],
                 preferred_element_type=f32) + bog_ref[...]   # [TN, 2*num_V]
    gate = jax.nn.sigmoid(go[:, :num_V])
    dh = go[:, num_V:] * gate
    out_ref[...] = (hV_tile + dh).astype(out_ref.dtype)


def pack_attn_params(params):
    """One-time weight packing / fusion (hoisted out of the per-call path)."""
    bf = jnp.bfloat16
    num_E, H = params['wv'].shape
    num_V = params['wo'].shape[1]
    assert params['wb1'].shape[0] == 2 * num_V + num_E
    wb1_src = params['wb1'][:num_V]
    wb1_e = params['wb1'][num_V:num_V + num_E]
    wb1_dst = params['wb1'][num_V + num_E:]
    zeros_V = jnp.zeros((num_V, H), jnp.float32)
    d = H // NUM_HEADS
    return {
        # Bias layer 1 split by concat slab, with W_V fused into the h_E slab's
        # extra H output columns (zero rows everywhere else).
        'w1e': jnp.concatenate([wb1_e, params['wv']], axis=1).astype(bf),    # [num_E, 2H]
        'w1d': jnp.concatenate([wb1_dst, zeros_V], axis=1).astype(bf),       # [num_V, 2H]
        'w1s': jnp.concatenate([wb1_src, zeros_V], axis=1).astype(bf),       # [num_V, 2H]
        'b1': jnp.concatenate([params['bb1'], params['bv']], axis=1),        # [1, 2H] f32
        'wb2': params['wb2'].astype(bf), 'bb2': params['bb2'],
        'wb3': params['wb3'].astype(bf), 'bb3': params['bb3'],
        # 0/1 head-expansion matrix: expand[h, j] = (j // d == h)
        'expand': (jnp.arange(H)[None, :] // d
                   == jnp.arange(NUM_HEADS)[:, None]).astype(bf),            # [4, H]
        # gate and W_O fused into a single output projection
        'wog': jnp.concatenate([params['wg'], params['wo']], axis=1).astype(bf),
        'bog': jnp.concatenate([params['bg'],
                                jnp.zeros((1, num_V), jnp.float32)], axis=1),
    }


def validate_knn_layout(edge_idx, num_nodes):
    """Host-side check of the layout the kernel relies on: edges sorted by src with
    exactly K edges per node (so edge e's src is e // K)."""
    src = np.asarray(edge_idx[0])
    E = src.shape[0]
    K = E // num_nodes
    if E != num_nodes * K or not np.array_equal(src, np.repeat(np.arange(num_nodes), K)):
        raise ValueError("edge_idx must be kNN-style: sorted by src, fixed K edges/node")


@functools.partial(jax.jit, static_argnames=("nodes_per_tile",))
def pifold_attn(h_V, h_E, edge_idx, packed, *, nodes_per_tile=128):
    """edge_idx: [2, E] int32. Assumes K = E // N edges per node, sorted by src
    (kNN-graph layout), so each node tile owns a contiguous block of edges and all
    grid steps are independent ("parallel")."""
    N, num_V = h_V.shape
    E, num_E = h_E.shape
    H = packed['wb2'].shape[0]
    K = E // N
    assert E == N * K, "expect a fixed number of edges per node (kNN graph)"
    TN = min(nodes_per_tile, N)
    assert N % TN == 0, "N must be divisible by the node tile size"
    assert TN % 8 == 0 or TN == N, "node tile must be sublane-aligned"
    TE = TN * K
    assert TE % 8 == 0, "edge tile must be sublane-aligned"
    bf = jnp.bfloat16

    # Edge stream: only [h_E | h_V[dst]] (the h_V[src] slab is rebuilt in-kernel).
    hE_bf = h_E.astype(bf)
    hVdst_bf = h_V[edge_idx[1]].astype(bf)

    grid = (N // TN,)

    def full(arr):
        return pl.BlockSpec(arr.shape, lambda i: (0, 0))

    in_specs = [
        pl.BlockSpec((TE, num_E), lambda i: (i, 0)),   # h_E edge tile (bf16)
        pl.BlockSpec((TE, num_V), lambda i: (i, 0)),   # h_V[dst] edge tile (bf16)
        pl.BlockSpec((TN, num_V), lambda i: (i, 0)),   # h_V node tile (skip + src part)
        full(packed['w1e']), full(packed['w1d']), full(packed['w1s']), full(packed['b1']),
        full(packed['wb2']), full(packed['bb2']), full(packed['wb3']), full(packed['bb3']),
        full(packed['expand']), full(packed['wog']), full(packed['bog']),
    ]
    out_spec = pl.BlockSpec((TN, num_V), lambda i: (i, 0))

    kernel = functools.partial(pifold_attn_kernel, K=K, num_hidden=H, num_V=num_V)
    return pl.pallas_call(
        kernel,
        out_shape=jax.ShapeDtypeStruct((N, num_V), h_V.dtype),
        grid_spec=pltpu.PrefetchScalarGridSpec(
            num_scalar_prefetch=0, grid=grid,
            in_specs=in_specs, out_specs=out_spec),
        compiler_params=pltpu.CompilerParams(
            dimension_semantics=("parallel",)),
    )(hE_bf, hVdst_bf, h_V,
      packed['w1e'], packed['w1d'], packed['w1s'], packed['b1'],
      packed['wb2'], packed['bb2'], packed['wb3'], packed['bb3'],
      packed['expand'], packed['wog'], packed['bog'])


def init_params(key, num_hidden, num_V, num_E):
    """Deterministic synthetic params. Weights stored pre-transposed as
    [in_features, out_features] so kernels compute x @ W; biases are [1, out]."""
    ks = jax.random.split(key, 8)

    def lin_w(k, fan_in, fan_out):
        return (jax.random.normal(k, (fan_in, fan_out), jnp.float32)
                * (1.0 / np.sqrt(fan_in)))

    cat_dim = 2 * num_V + num_E
    return {
        # W_V : Linear(num_E, num_hidden) + GELU
        'wv': lin_w(ks[0], num_E, num_hidden),
        'bv': jnp.zeros((1, num_hidden), jnp.float32) + 0.01,
        # Bias : Linear(cat, H) ReLU Linear(H, H) ReLU Linear(H, 4)
        'wb1': lin_w(ks[1], cat_dim, num_hidden),
        'bb1': jnp.zeros((1, num_hidden), jnp.float32) + 0.02,
        'wb2': lin_w(ks[2], num_hidden, num_hidden),
        'bb2': jnp.zeros((1, num_hidden), jnp.float32) - 0.01,
        'wb3': lin_w(ks[3], num_hidden, NUM_HEADS),
        'bb3': jnp.zeros((1, NUM_HEADS), jnp.float32),
        # W_O : Linear(H, num_V, bias=False)
        'wo': lin_w(ks[4], num_hidden, num_V),
        # gate : Linear(H, num_V)
        'wg': lin_w(ks[5], num_hidden, num_V),
        'bg': jnp.zeros((1, num_V), jnp.float32) + 0.03,
    }


def pifold_attn_ref(h_V, h_E, edge_idx, params):
    """Pure-JAX f32 reference mirroring the PyTorch forward (for validation)."""
    src, dst = edge_idx[0], edge_idx[1]
    N = h_V.shape[0]
    E = h_E.shape[0]
    H = params['wv'].shape[1]
    d = H // NUM_HEADS

    x = jnp.concatenate([h_V[src], h_E, h_V[dst]], axis=-1)
    t = jax.nn.relu(x @ params['wb1'] + params['bb1'])
    t = jax.nn.relu(t @ params['wb2'] + params['bb2'])
    logits = (t @ params['wb3'] + params['bb3']) / np.sqrt(d)            # [E, 4]

    V = jax.nn.gelu(h_E @ params['wv'] + params['bv'], approximate=False)
    V = V.reshape(E, NUM_HEADS, d)

    mx = jax.ops.segment_max(logits, src, num_segments=N)                # [N, 4]
    p = jnp.exp(logits - mx[src])
    den = jax.ops.segment_sum(p, src, num_segments=N)
    attend = p / den[src]                                                # [E, 4]

    agg = jax.ops.segment_sum(attend[:, :, None] * V, src,
                              num_segments=N).reshape(N, H)
    gate = jax.nn.sigmoid(agg @ params['wg'] + params['bg'])
    dh = (agg @ params['wo']) * gate
    return h_V + dh


if __name__ == "__main__":
    key = jax.random.PRNGKey(0)
    # PiFold-style sizes: hidden = 128 (lane-dense), kNN graph with K neighbors/node.
    N, K = 128, 8                               # 128 nodes, 8 neighbors -> 1024 edges
    num_hidden = num_V = num_E = 128
    E = N * K

    k1, k2, k3, kp = jax.random.split(key, 4)
    h_V = jax.random.normal(k1, (N, num_V), jnp.float32)
    h_E = jax.random.normal(k2, (E, num_E), jnp.float32)
    src = jnp.repeat(jnp.arange(N, dtype=jnp.int32), K)      # sorted by src, K per node
    dst = jax.random.randint(k3, (E,), 0, N, dtype=jnp.int32)
    edge_idx = jnp.stack([src, dst], axis=0)

    params = init_params(kp, num_hidden, num_V, num_E)
    packed = pack_attn_params(params)           # one-time packing (outside the call path)
    validate_knn_layout(edge_idx, N)

    # TN=64, K=8 -> TE=512 edge rows per grid step; grid=(2,) "parallel" steps.
    out = pifold_attn(h_V, h_E, edge_idx, packed, nodes_per_tile=64)
    out = jax.block_until_ready(out)

    ref = pifold_attn_ref(h_V, h_E, edge_idx, params)
    # bf16 MXU operands + tanh-GELU + approx reciprocal -> loosened tolerance vs f32 ref.
    np.testing.assert_allclose(np.asarray(out), np.asarray(ref),
                               rtol=5e-2, atol=5e-2)
    print("KERNEL_OK")
</pallas_src>

<mosaic_0001>
module attributes {stable_mosaic.version = 11 : i64} {
  func.func @pifold_attn_kernel(%arg0: i32, %arg1: memref<512x128xbf16, #tpu.memory_space<vmem>>, %arg2: memref<512x128xbf16, #tpu.memory_space<vmem>>, %arg3: memref<64x128xf32, #tpu.memory_space<vmem>>, %arg4: memref<128x256xbf16, #tpu.memory_space<vmem>>, %arg5: memref<128x256xbf16, #tpu.memory_space<vmem>>, %arg6: memref<128x256xbf16, #tpu.memory_space<vmem>>, %arg7: memref<1x256xf32, #tpu.memory_space<vmem>>, %arg8: memref<128x128xbf16, #tpu.memory_space<vmem>>, %arg9: memref<1x128xf32, #tpu.memory_space<vmem>>, %arg10: memref<128x4xbf16, #tpu.memory_space<vmem>>, %arg11: memref<1x4xf32, #tpu.memory_space<vmem>>, %arg12: memref<4x128xbf16, #tpu.memory_space<vmem>>, %arg13: memref<128x256xbf16, #tpu.memory_space<vmem>>, %arg14: memref<1x256xf32, #tpu.memory_space<vmem>>, %arg15: memref<64x128xf32, #tpu.memory_space<vmem>>) attributes {dimension_semantics = [#tpu.dimension_semantics<parallel>], iteration_bounds = array<i64: 2>, scalar_prefetch = 0 : i64, scratch_operands = 0 : i64, tpu.core_type = #tpu.core_type<tc>, window_params = [{transform_indices = @transform_0, window_bounds = array<i64: 512, 128>}, {transform_indices = @transform_1, window_bounds = array<i64: 512, 128>}, {transform_indices = @transform_2, window_bounds = array<i64: 64, 128>}, {pipeline_mode = #tpu.pipeline_mode<synchronous>, transform_indices = @transform_3, window_bounds = array<i64: 128, 256>}, {pipeline_mode = #tpu.pipeline_mode<synchronous>, transform_indices = @transform_4, window_bounds = array<i64: 128, 256>}, {pipeline_mode = #tpu.pipeline_mode<synchronous>, transform_indices = @transform_5, window_bounds = array<i64: 128, 256>}, {pipeline_mode = #tpu.pipeline_mode<synchronous>, transform_indices = @transform_6, window_bounds = array<i64: 1, 256>}, {pipeline_mode = #tpu.pipeline_mode<synchronous>, transform_indices = @transform_7, window_bounds = array<i64: 128, 128>}, {pipeline_mode = #tpu.pipeline_mode<synchronous>, transform_indices = @transform_8, window_bounds = array<i64: 1, 128>}, {pipeline_mode = #tpu.pipeline_mode<synchronous>, transform_indices = @transform_9, window_bounds = array<i64: 128, 4>}, {pipeline_mode = #tpu.pipeline_mode<synchronous>, transform_indices = @transform_10, window_bounds = array<i64: 1, 4>}, {pipeline_mode = #tpu.pipeline_mode<synchronous>, transform_indices = @transform_11, window_bounds = array<i64: 4, 128>}, {pipeline_mode = #tpu.pipeline_mode<synchronous>, transform_indices = @transform_12, window_bounds = array<i64: 128, 256>}, {pipeline_mode = #tpu.pipeline_mode<synchronous>, transform_indices = @transform_13, window_bounds = array<i64: 1, 256>}, {transform_indices = @transform_14, window_bounds = array<i64: 64, 128>}]} {
    %c0 = arith.constant 0 : index
    %c0_0 = arith.constant 0 : index
    %0 = vector.load %arg3[%c0, %c0_0] : memref<64x128xf32, #tpu.memory_space<vmem>>, vector<64x128xf32>
    %1 = arith.truncf %0 : vector<64x128xf32> to vector<64x128xbf16>
    %c0_1 = arith.constant 0 : index
    %c0_2 = arith.constant 0 : index
    %2 = vector.load %arg6[%c0_1, %c0_2] : memref<128x256xbf16, #tpu.memory_space<vmem>>, vector<128x256xbf16>
    %cst = arith.constant dense<0.000000e+00> : vector<64x256xf32>
    %3 = tpu.matmul %1, %2, %cst {dimension_numbers = #tpu.dot_dimension_numbers<[1], [0], [0], [1], [0, 0, 1, 1], [], []>} : vector<64x128xbf16>, vector<128x256xbf16>, vector<64x256xf32> -> vector<64x256xf32>
    %4 = vector.shape_cast %3 : vector<64x256xf32> to vector<64x1x256xf32>
    %5 = vector.shape_cast %4 : vector<64x1x256xf32> to vector<64x1x256xf32>
    %6 = vector.broadcast %5 : vector<64x1x256xf32> to vector<64x8x256xf32>
    %7 = vector.shape_cast %6 : vector<64x8x256xf32> to vector<512x256xf32>
    %c0_3 = arith.constant 0 : index
    %c0_4 = arith.constant 0 : index
    %8 = vector.load %arg1[%c0_3, %c0_4] : memref<512x128xbf16, #tpu.memory_space<vmem>>, vector<512x128xbf16>
    %c0_5 = arith.constant 0 : index
    %c0_6 = arith.constant 0 : index
    %9 = vector.load %arg4[%c0_5, %c0_6] : memref<128x256xbf16, #tpu.memory_space<vmem>>, vector<128x256xbf16>
    %cst_7 = arith.constant dense<0.000000e+00> : vector<512x256xf32>
    %10 = tpu.matmul %8, %9, %cst_7 {dimension_numbers = #tpu.dot_dimension_numbers<[1], [0], [0], [1], [0, 0, 1, 1], [], []>} : vector<512x128xbf16>, vector<128x256xbf16>, vector<512x256xf32> -> vector<512x256xf32>
    %c0_8 = arith.constant 0 : index
    %c0_9 = arith.constant 0 : index
    %11 = vector.load %arg2[%c0_8, %c0_9] : memref<512x128xbf16, #tpu.memory_space<vmem>>, vector<512x128xbf16>
    %c0_10 = arith.constant 0 : index
    %c0_11 = arith.constant 0 : index
    %12 = vector.load %arg5[%c0_10, %c0_11] : memref<128x256xbf16, #tpu.memory_space<vmem>>, vector<128x256xbf16>
    %cst_12 = arith.constant dense<0.000000e+00> : vector<512x256xf32>
    %13 = tpu.matmul %11, %12, %cst_12 {dimension_numbers = #tpu.dot_dimension_numbers<[1], [0], [0], [1], [0, 0, 1, 1], [], []>} : vector<512x128xbf16>, vector<128x256xbf16>, vector<512x256xf32> -> vector<512x256xf32>
    %14 = arith.addf %10, %13 : vector<512x256xf32>
    %15 = arith.addf %14, %7 : vector<512x256xf32>
    %c0_13 = arith.constant 0 : index
    %c0_14 = arith.constant 0 : index
    %16 = vector.load %arg7[%c0_13, %c0_14] : memref<1x256xf32, #tpu.memory_space<vmem>>, vector<1x256xf32>
    %17 = vector.broadcast %16 : vector<1x256xf32> to vector<512x256xf32>
    %18 = arith.addf %15, %17 : vector<512x256xf32>
    %19 = vector.extract_strided_slice %18 {offsets = [0, 0], sizes = [512, 128], strides = [1, 1]} : vector<512x256xf32> to vector<512x128xf32>
    %cst_15 = arith.constant 0.000000e+00 : f32
    %20 = vector.broadcast %cst_15 : f32 to vector<512x128xf32>
    %21 = arith.maximumf %19, %20 : vector<512x128xf32>
    %22 = vector.extract_strided_slice %18 {offsets = [0, 128], sizes = [512, 128], strides = [1, 1]} : vector<512x256xf32> to vector<512x128xf32>
    %23 = arith.mulf %22, %22 : vector<512x128xf32>
    %24 = arith.mulf %22, %23 : vector<512x128xf32>
    %cst_16 = arith.constant 4.471500e-02 : f32
    %25 = vector.broadcast %cst_16 : f32 to vector<512x128xf32>
    %26 = arith.mulf %25, %24 : vector<512x128xf32>
    %27 = arith.addf %22, %26 : vector<512x128xf32>
    %cst_17 = arith.constant 0.797884583 : f32
    %28 = vector.broadcast %cst_17 : f32 to vector<512x128xf32>
    %29 = arith.mulf %28, %27 : vector<512x128xf32>
    %30 = math.tanh %29 : vector<512x128xf32>
    %cst_18 = arith.constant 1.000000e+00 : f32
    %31 = vector.broadcast %cst_18 : f32 to vector<512x128xf32>
    %32 = arith.addf %31, %30 : vector<512x128xf32>
    %cst_19 = arith.constant 5.000000e-01 : f32
    %33 = vector.broadcast %cst_19 : f32 to vector<512x128xf32>
    %34 = arith.mulf %33, %32 : vector<512x128xf32>
    %35 = arith.mulf %22, %34 : vector<512x128xf32>
    %36 = arith.truncf %21 : vector<512x128xf32> to vector<512x128xbf16>
    %c0_20 = arith.constant 0 : index
    %c0_21 = arith.constant 0 : index
    %37 = vector.load %arg8[%c0_20, %c0_21] : memref<128x128xbf16, #tpu.memory_space<vmem>>, vector<128x128xbf16>
    %cst_22 = arith.constant dense<0.000000e+00> : vector<512x128xf32>
    %38 = tpu.matmul %36, %37, %cst_22 {dimension_numbers = #tpu.dot_dimension_numbers<[1], [0], [0], [1], [0, 0, 1, 1], [], []>} : vector<512x128xbf16>, vector<128x128xbf16>, vector<512x128xf32> -> vector<512x128xf32>
    %c0_23 = arith.constant 0 : index
    %c0_24 = arith.constant 0 : index
    %39 = vector.load %arg9[%c0_23, %c0_24] : memref<1x128xf32, #tpu.memory_space<vmem>>, vector<1x128xf32>
    %40 = vector.broadcast %39 : vector<1x128xf32> to vector<512x128xf32>
    %41 = arith.addf %38, %40 : vector<512x128xf32>
    %cst_25 = arith.constant 0.000000e+00 : f32
    %42 = vector.broadcast %cst_25 : f32 to vector<512x128xf32>
    %43 = arith.maximumf %41, %42 : vector<512x128xf32>
    %44 = arith.truncf %43 : vector<512x128xf32> to vector<512x128xbf16>
    %c0_26 = arith.constant 0 : index
    %c0_27 = arith.constant 0 : index
    %45 = vector.load %arg10[%c0_26, %c0_27] : memref<128x4xbf16, #tpu.memory_space<vmem>>, vector<128x4xbf16>
    %cst_28 = arith.constant dense<0.000000e+00> : vector<512x4xf32>
    %46 = tpu.matmul %44, %45, %cst_28 {dimension_numbers = #tpu.dot_dimension_numbers<[1], [0], [0], [1], [0, 0, 1, 1], [], []>} : vector<512x128xbf16>, vector<128x4xbf16>, vector<512x4xf32> -> vector<512x4xf32>
    %c0_29 = arith.constant 0 : index
    %c0_30 = arith.constant 0 : index
    %47 = vector.load %arg11[%c0_29, %c0_30] : memref<1x4xf32, #tpu.memory_space<vmem>>, vector<1x4xf32>
    %48 = vector.broadcast %47 : vector<1x4xf32> to vector<512x4xf32>
    %49 = arith.addf %46, %48 : vector<512x4xf32>
    %cst_31 = arith.constant 0.176776692 : f32
    %50 = vector.broadcast %cst_31 : f32 to vector<512x4xf32>
    %51 = arith.mulf %49, %50 : vector<512x4xf32>
    %52 = vector.shape_cast %51 : vector<512x4xf32> to vector<64x8x4xf32>
    %cst_32 = arith.constant dense<0xFF800000> : vector<64x4xf32>
    %53 = vector.multi_reduction <maximumf>, %52, %cst_32 [1] : vector<64x8x4xf32> to vector<64x4xf32>
    %54 = vector.shape_cast %53 : vector<64x4xf32> to vector<64x1x4xf32>
    %55 = vector.broadcast %54 : vector<64x1x4xf32> to vector<64x8x4xf32>
    %56 = arith.subf %52, %55 : vector<64x8x4xf32>
    %57 = math.exp %56 : vector<64x8x4xf32>
    %cst_33 = arith.constant dense<0.000000e+00> : vector<64x4xf32>
    %58 = vector.multi_reduction <add>, %57, %cst_33 [1] : vector<64x8x4xf32> to vector<64x4xf32>
    %59 = vector.shape_cast %58 : vector<64x4xf32> to vector<64x1x4xf32>
    %60 = tpu.reciprocal %59 {approx = true} : vector<64x1x4xf32> -> vector<64x1x4xf32>
    %61 = vector.broadcast %60 : vector<64x1x4xf32> to vector<64x8x4xf32>
    %62 = arith.mulf %57, %61 : vector<64x8x4xf32>
    %63 = vector.shape_cast %62 : vector<64x8x4xf32> to vector<512x4xf32>
    %64 = arith.truncf %63 : vector<512x4xf32> to vector<512x4xbf16>
    %c0_34 = arith.constant 0 : index
    %c0_35 = arith.constant 0 : index
    %65 = vector.load %arg12[%c0_34, %c0_35] : memref<4x128xbf16, #tpu.memory_space<vmem>>, vector<4x128xbf16>
    %cst_36 = arith.constant dense<0.000000e+00> : vector<512x128xf32>
    %66 = tpu.matmul %64, %65, %cst_36 {dimension_numbers = #tpu.dot_dimension_numbers<[1], [0], [0], [1], [0, 0, 1, 1], [], []>} : vector<512x4xbf16>, vector<4x128xbf16>, vector<512x128xf32> -> vector<512x128xf32>
    %67 = arith.mulf %66, %35 : vector<512x128xf32>
    %68 = vector.shape_cast %67 : vector<512x128xf32> to vector<64x8x128xf32>
    %cst_37 = arith.constant dense<0.000000e+00> : vector<64x128xf32>
    %69 = vector.multi_reduction <add>, %68, %cst_37 [1] : vector<64x8x128xf32> to vector<64x128xf32>
    %70 = arith.truncf %69 : vector<64x128xf32> to vector<64x128xbf16>
    %c0_38 = arith.constant 0 : index
    %c0_39 = arith.constant 0 : index
    %71 = vector.load %arg13[%c0_38, %c0_39] : memref<128x256xbf16, #tpu.memory_space<vmem>>, vector<128x256xbf16>
    %cst_40 = arith.constant dense<0.000000e+00> : vector<64x256xf32>
    %72 = tpu.matmul %70, %71, %cst_40 {dimension_numbers = #tpu.dot_dimension_numbers<[1], [0], [0], [1], [0, 0, 1, 1], [], []>} : vector<64x128xbf16>, vector<128x256xbf16>, vector<64x256xf32> -> vector<64x256xf32>
    %c0_41 = arith.constant 0 : index
    %c0_42 = arith.constant 0 : index
    %73 = vector.load %arg14[%c0_41, %c0_42] : memref<1x256xf32, #tpu.memory_space<vmem>>, vector<1x256xf32>
    %74 = vector.broadcast %73 : vector<1x256xf32> to vector<64x256xf32>
    %75 = arith.addf %72, %74 : vector<64x256xf32>
    %76 = vector.extract_strided_slice %75 {offsets = [0, 0], sizes = [64, 128], strides = [1, 1]} : vector<64x256xf32> to vector<64x128xf32>
    %77 = arith.negf %76 : vector<64x128xf32>
    %78 = math.exp %77 : vector<64x128xf32>
    %cst_43 = arith.constant 1.000000e+00 : f32
    %79 = vector.broadcast %cst_43 : f32 to vector<64x128xf32>
    %80 = arith.addf %79, %78 : vector<64x128xf32>
    %81 = arith.divf %79, %80 : vector<64x128xf32>
    %82 = vector.extract_strided_slice %75 {offsets = [0, 128], sizes = [64, 128], strides = [1, 1]} : vector<64x256xf32> to vector<64x128xf32>
    %83 = arith.mulf %82, %81 : vector<64x128xf32>
    %84 = arith.addf %0, %83 : vector<64x128xf32>
    %c0_44 = arith.constant 0 : index
    %c0_45 = arith.constant 0 : index
    %85 = vector.load %arg15[%c0_44, %c0_45] : memref<64x128xf32, #tpu.memory_space<vmem>>, vector<64x128xf32>
    tpu.vector_store %arg15[%c0_44, %c0_45], %84 {strides = array<i32>} : memref<64x128xf32, #tpu.memory_space<vmem>>, vector<64x128xf32>,
    return
  }
  func.func @transform_0(%arg0: i32) -> (i32, i32) {
    %c0_i32 = arith.constant 0 : i32
    %c0_i32_0 = arith.constant 0 : i32
    return %arg0, %c0_i32 : i32, i32
  }
  func.func @transform_1(%arg0: i32) -> (i32, i32) {
    %c0_i32 = arith.constant 0 : i32
    %c0_i32_0 = arith.constant 0 : i32
    return %arg0, %c0_i32 : i32, i32
  }
  func.func @transform_2(%arg0: i32) -> (i32, i32) {
    %c0_i32 = arith.constant 0 : i32
    %c0_i32_0 = arith.constant 0 : i32
    return %arg0, %c0_i32 : i32, i32
  }
  func.func @transform_3(%arg0: i32) -> (i32, i32) {
    %c0_i32 = arith.constant 0 : i32
    %c0_i32_0 = arith.constant 0 : i32
    %c0_i32_1 = arith.constant 0 : i32
    return %c0_i32, %c0_i32_0 : i32, i32
  }
  func.func @transform_4(%arg0: i32) -> (i32, i32) {
    %c0_i32 = arith.constant 0 : i32
    %c0_i32_0 = arith.constant 0 : i32
    %c0_i32_1 = arith.constant 0 : i32
    return %c0_i32, %c0_i32_0 : i32, i32
  }
  func.func @transform_5(%arg0: i32) -> (i32, i32) {
    %c0_i32 = arith.constant 0 : i32
    %c0_i32_0 = arith.constant 0 : i32
    %c0_i32_1 = arith.constant 0 : i32
    return %c0_i32, %c0_i32_0 : i32, i32
  }
  func.func @transform_6(%arg0: i32) -> (i32, i32) {
    %c0_i32 = arith.constant 0 : i32
    %c0_i32_0 = arith.constant 0 : i32
    %c0_i32_1 = arith.constant 0 : i32
    return %c0_i32, %c0_i32_0 : i32, i32
  }
  func.func @transform_7(%arg0: i32) -> (i32, i32) {
    %c0_i32 = arith.constant 0 : i32
    %c0_i32_0 = arith.constant 0 : i32
    %c0_i32_1 = arith.constant 0 : i32
    return %c0_i32, %c0_i32_0 : i32, i32
  }
  func.func @transform_8(%arg0: i32) -> (i32, i32) {
    %c0_i32 = arith.constant 0 : i32
    %c0_i32_0 = arith.constant 0 : i32
    %c0_i32_1 = arith.constant 0 : i32
    return %c0_i32, %c0_i32_0 : i32, i32
  }
  func.func @transform_9(%arg0: i32) -> (i32, i32) {
    %c0_i32 = arith.constant 0 : i32
    %c0_i32_0 = arith.constant 0 : i32
    %c0_i32_1 = arith.constant 0 : i32
    return %c0_i32, %c0_i32_0 : i32, i32
  }
  func.func @transform_10(%arg0: i32) -> (i32, i32) {
    %c0_i32 = arith.constant 0 : i32
    %c0_i32_0 = arith.constant 0 : i32
    %c0_i32_1 = arith.constant 0 : i32
    return %c0_i32, %c0_i32_0 : i32, i32
  }
  func.func @transform_11(%arg0: i32) -> (i32, i32) {
    %c0_i32 = arith.constant 0 : i32
    %c0_i32_0 = arith.constant 0 : i32
    %c0_i32_1 = arith.constant 0 : i32
    return %c0_i32, %c0_i32_0 : i32, i32
  }
  func.func @transform_12(%arg0: i32) -> (i32, i32) {
    %c0_i32 = arith.constant 0 : i32
    %c0_i32_0 = arith.constant 0 : i32
    %c0_i32_1 = arith.constant 0 : i32
    return %c0_i32, %c0_i32_0 : i32, i32
  }
  func.func @transform_13(%arg0: i32) -> (i32, i32) {
    %c0_i32 = arith.constant 0 : i32
    %c0_i32_0 = arith.constant 0 : i32
    %c0_i32_1 = arith.constant 0 : i32
    return %c0_i32, %c0_i32_0 : i32, i32
  }
  func.func @transform_14(%arg0: i32) -> (i32, i32) {
    %c0_i32 = arith.constant 0 : i32
    %c0_i32_0 = arith.constant 0 : i32
    return %arg0, %c0_i32 : i32, i32
  }
}

</mosaic_0001>

<bundles_post_ra>
// kernel: pifold_attn.1
= control target key start
LH: loop header
LB: loop body
LE: loop exit
PB: predicated region body
PF: predicated region fallthrough
CT: control target
= control target key end

     0   :  { %19 = vsyncpa [#allocation3], 0  ;;  %s12759_s0 = inlined_call_operand.vmem [shape: bf16[1024,128], index: 0, kind: input, shape index: {}]   ;;  %s12760_s1 = inlined_call_operand.vmem [shape: bf16[1024,128], index: 1, kind: input, shape index: {}]   ;;  %s12761_s2 = inlined_call_operand.vmem [shape: f32[128,128], index: 2, kind: input, shape index: {}]   ;;  %s12762_s3 = inlined_call_operand.vmem [shape: bf16[128,256], index: 3, kind: input, shape index: {}]   ;;  %s12763_s4 = inlined_call_operand.vmem [shape: bf16[128,256], index: 4, kind: input, shape index: {}]   ;;  %s12764_s5 = inlined_call_operand.vmem [shape: bf16[128,256], index: 5, kind: input, shape index: {}]   ;;  %s12765_s6 = inlined_call_operand.vmem [shape: f32[1,256], index: 6, kind: input, shape index: {}]   ;;  %s12766_s7 = inlined_call_operand.vmem [shape: bf16[128,128], index: 7, kind: input, shape index: {}]   ;;  %s12767_s8 = inlined_call_operand.vmem [shape: f32[1,128], index: 8, kind: input, shape index: {}]   ;;  %s12768_s9 = inlined_call_operand.vmem [shape: bf16[128,4], index: 9, kind: input, shape index: {}]   ;;  %s12769_s10 = inlined_call_operand.vmem [shape: f32[1,4], index: 10, kind: input, shape index: {}]   ;;  %s12770_s11 = inlined_call_operand.vmem [shape: bf16[4,128], index: 11, kind: input, shape index: {}]   ;;  %s12771_s12 = inlined_call_operand.vmem [shape: bf16[128,256], index: 12, kind: input, shape index: {}]   ;;  %s12772_s13 = inlined_call_operand.vmem [shape: f32[1,256], index: 13, kind: input, shape index: {}]   ;;  %s12773_s14 = inlined_call_operand.hbm [shape: f32[128,128], index: 14, kind: output, shape index: {}]  }
   0x1   :  { %21 = vsyncpa [#allocation3 + $0x1], 0  ;;  %s9032_s29 = smov 0   ;;  %s9034_s30 = smov 0  }
   0x2   :  { %s9036_s15 = smov 0   ;;  %s9038_s16 = smov 0  }
   0x3 LB: > { %12845 = sst [smem:[#allocation5_spill]] %s8938_s29  ;;  %s9053_s17 = sadd.s32 4294967295, %s8950_s16   ;;  %s8950_s16 = sphi %s9038_s16, %s13214_s16   ;;  %s8946_s15 = sphi %s9036_s15, %s13216_s15   ;;  %s8942_s30 = sphi %s9034_s30, %s13218_s30   ;;  %s8938_s29 = sphi %s9032_s29, %s13217_s29  }
   0x4   : > { %12846 = sst [smem:[#allocation6_spill]] %s8946_s15  ;;  %s7684_s18 = sadd.s32 4294967294, %s8950_s16  }
   0x5   : > { %12847 = sst [smem:[#allocation7_spill]] %s8950_s16  ;;  %s9057_s19 = sadd.s32 1, %s8950_s16  }
   0x6   : > { %12848 = sst [smem:[#allocation8_spill]] %s9057_s19  ;;  %s343_s20 = sadd.s32 1, %s8946_s15 }
   0x7   : > { %s340_s21 = ssub.s32 %s8950_s16, %s9057_s19  ;;  %p353_p0 = scmp.ne.s32.totalorder %s8946_s15, %s8942_s30 }
   0x8   : > { %p341_p1 = scmp.eq.s32.totalorder %s340_s21, 0  ;;  %p354_p2 = scmp.eq.s32.totalorder %s9053_s17, 1 }
   0x9   : > { %p359_p3 = scmp.ne.s32.totalorder %s8942_s30, %s8938_s29  ;;  %p360_p4 = scmp.eq.s32.totalorder %s7684_s18, 1 }
   0xa   : > { %s9068_s22 = scalar_select %p341_p1, %s8946_s15, %s343_s20  }
   0xb   : > { %p9070_p5 = por %p354_p2, %p353_p0  ;;  %p9074_p6 = por %p360_p4, %p359_p3 }
   0xc   : > { %12849 = sst [smem:[#allocation9_spill]] %s9068_s22  ;;  %p7687_p7 = scmp.ge.s32.totalorder %s8950_s16, 1 }
   0xd   : > { %s12851_s24 = scalar_select %p9074_p6, 1, 0 }
   0xe   : > { %p438_p8 = scmp.lt.s32.totalorder %s8950_s16, 3 }
   0xf   : > { %12852 = sst [smem:[#allocation10_spill]] %s12851_s24 }
  0x10   : > { %p439_p9 = pnand %p7687_p7, %p438_p8 }
  0x12   : > { %442 = sbr.rel (%p439_p9) target bundleno = 1608 (0x648), region = 76 }
  0x17   : > { %v8286_v0 = vld [vmem:[%s12764_s5 + $0x74] ss:$8 sps:$4 sm:$0xff]   ;;  %v8288_v1 = vld [vmem:[%s12764_s5 + $0x70] ss:$8 sps:$4 sm:$0xff]   ;;  %v12781_v2 = vmov 0   ;;  %s7689_s18 = sshll.u32 %s9053_s17, 6 }
  0x18   : > { %654 = vmatprep.mubr.bf16.mxu0 %v12781_v2  ;;  %2255 = vmatprep.mubr.bf16.mxu1 %v12781_v2  ;;  %v8289_v3 = vld [vmem:[%s12764_s5 + $0x64] ss:$8 sps:$4 sm:$0xff]   ;;  %v8291_v4 = vld [vmem:[%s12764_s5 + $0x60] ss:$8 sps:$4 sm:$0xff]   ;;  %v8292_v5 = vld [vmem:[%s12764_s5 + $0x54] ss:$8 sps:$4 sm:$0xff]  }
  0x19   : > { %622 = vmatprep.subr.bf16.mxu0 %v8286_v0  ;;  %v8294_v6 = vld [vmem:[%s12764_s5 + $0x50] ss:$8 sps:$4 sm:$0xff]   ;;  %v8295_v7 = vld [vmem:[%s12764_s5 + $0x44] ss:$8 sps:$4 sm:$0xff]   ;;  %s7693_s20 = sshll.u32 %s9053_s17, 3  ;;  %p495_p10 = scmp.lt.s32.totalorder %s7689_s18, 127 }
  0x1a   : > { %623 = vmatpush1.bf16.msra.mxu0 %v8288_v1  ;;  %v8297_v8 = vld [vmem:[%s12764_s5 + $0x40] ss:$8 sps:$4 sm:$0xff]   ;;  %v8298_v9 = vld [vmem:[%s12764_s5 + $0x34] ss:$8 sps:$4 sm:$0xff]   ;;  %p507_p11 = scmp.lt.s32.totalorder %s7693_s20, 15  ;;  %vm6327_vm0 = vcmask 1041408  }
  0x1b   : > { %624 = vmatprep.subr.bf16.mxu0 %v8289_v3  ;;  %v8312_v10 = vld [vmem:[%s12763_s4 + $0x74] ss:$8 sps:$4 sm:$0xff]   ;;  %v8310_v11 = vld [vmem:[%s12763_s4 + $0x70] ss:$8 sps:$4 sm:$0xff]   ;;  %v8315_v12 = vld [vmem:[%s12763_s4 + $0x64] ss:$8 sps:$4 sm:$0xff]  }
  0x1c   : > { %8226 = vmatprep.subr.bf16.mxu1 %v8312_v10  ;;  %v8300_v13 = vld [vmem:[%s12764_s5 + $0x30] ss:$8 sps:$4 sm:$0xff]   ;;  %v8301_v14 = vld [vmem:[%s12764_s5 + $0x24] ss:$8 sps:$4 sm:$0xff]   ;;  %s13220_s18 = smov (!%p495_p10, %s7689_s18), 127  ;;  %s13222_s20 = smov (!%p507_p11, %s7693_s20), 15 }
  0x1d   : > { %8234 = vmatpush1.bf16.msra.mxu1 %v8310_v11  ;;  %v8313_v15 = vld [vmem:[%s12763_s4 + $0x60] ss:$8 sps:$4 sm:$0xff]   ;;  %v8318_v16 = vld [vmem:[%s12763_s4 + $0x54] ss:$8 sps:$4 sm:$0xff]   ;;  %s12780_s24 = sshll.u32 %s13220_s18, 2  ;;  %s7694_s26 = sshll.u32 %s13222_s20, 3 }
  0x1e   : > { %625 = vmatpush1.bf16.msra.mxu0 %v8291_v4  ;;  %8227 = vmatprep.subr.bf16.mxu1 %v8315_v12  ;;  %v8303_v17 = vld [vmem:[%s12764_s5 + $0x20] ss:$8 sps:$4 sm:$0xff]   ;;  %v8304_v18 = vld [vmem:[%s12764_s5 + $0x14] ss:$8 sps:$4 sm:$0xff]   ;;  %v8316_v19 = vld [vmem:[%s12763_s4 + $0x50] ss:$8 sps:$4 sm:$0xff]   ;;  %s9155_s16 = scalar_lea.vmem %s12760_s1, %s12780_s24  ;;  %s9163_s15 = scalar_lea.vmem %s12761_s2, %s7694_s26 }
  0x1f   : > { %626 = vmatprep.subr.bf16.mxu0 %v8292_v5  ;;  %v8321_v20 = vld [vmem:[%s12763_s4 + $0x44] ss:$8 sps:$4 sm:$0xff]   ;;  %v8306_v21 = vld [vmem:[%s12764_s5 + $0x10] ss:$8 sps:$4 sm:$0xff]   ;;  %v8309_v23 = vld [vmem:[%s12764_s5] ss:$8 sps:$4 sm:$0xff]  }
  0x20   : > { %v8307_v22 = vld [vmem:[%s12764_s5 + $0x4] ss:$8 sps:$4 sm:$0xff]   ;;  %v8319_v24 = vld [vmem:[%s12763_s4 + $0x40] ss:$8 sps:$4 sm:$0xff]   ;;  %v8324_v25 = vld [vmem:[%s12763_s4 + $0x34] ss:$8 sps:$4 sm:$0xff]  }
  0x21   : > { %8235 = vmatpush1.bf16.msra.mxu1 %v8313_v15  ;;  %v514_v26 = vld [vmem:[%s9163_s15] sm:$0xff]  ;;  %v515_v27 = vld [vmem:[%s9163_s15 + $0x8] sm:$0xff]  ;;  %v8322_v28 = vld [vmem:[%s12763_s4 + $0x30] ss:$8 sps:$4 sm:$0xff]   ;;  %s12853_s29 = sshll.u32 %s13220_s18, 2  ;;  %vm4981_vm1 = vcmask 31744  }
  0x22   : > { %627 = vmatpush1.bf16.msra.mxu0 %v8294_v6  ;;  %8228 = vmatprep.subr.bf16.mxu1 %v8318_v16  ;;  %v522_v29 = vpack.c.bf16 %v515_v27, %v514_v26  ;;  %v8327_v30 = vld [vmem:[%s12763_s4 + $0x24] ss:$8 sps:$4 sm:$0xff]   ;;  %v516_v31 = vld [vmem:[%s9163_s15 + $0x10] sm:$0xff]  ;;  %v517_v32 = vld [vmem:[%s9163_s15 + $0x18] sm:$0xff]  ;;  %s9202_s19 = scalar_lea.vmem %s12759_s0, %s12853_s29  ;;  %vm7288_vm2 = vcmask 1041409   ;;  %vm7290_vm3 = vcmask 1042434  }
  0x23   : > { %628 = vmatprep.subr.bf16.mxu0 %v8295_v7  ;;  %v8325_v33 = vld [vmem:[%s12763_s4 + $0x20] ss:$8 sps:$4 sm:$0xff]   ;;  %v8330_v34 = vld [vmem:[%s12763_s4 + $0x14] ss:$8 sps:$4 sm:$0xff]   ;;  %v523_v35 = vpack.c.bf16 %v517_v32, %v516_v31  ;;  %v8328_v36 = vld [vmem:[%s12763_s4 + $0x10] ss:$8 sps:$4 sm:$0xff]  }
  0x24   : > { %v8333_v37 = vld [vmem:[%s12763_s4 + $0x4] ss:$8 sps:$4 sm:$0xff]   ;;  %v8331_v40 = vld [vmem:[%s12763_s4] ss:$8 sps:$4 sm:$0xff]   ;;  %v520_v43 = vld [vmem:[%s9163_s15 + $0x30] sm:$0xff]  ;;  %vm7292_vm4 = vcmask 1043459  }
  0x25   : > { %8236 = vmatpush1.bf16.msra.mxu1 %v8316_v19  ;;  %v518_v38 = vld [vmem:[%s9163_s15 + $0x20] sm:$0xff]  ;;  %v519_v39 = vld [vmem:[%s9163_s15 + $0x28] sm:$0xff]  ;;  %v521_v44 = vld [vmem:[%s9163_s15 + $0x38] sm:$0xff]  ;;  %vm7294_vm5 = vcmask 1044484   ;;  %vm7296_vm6 = vcmask 1045509   ;;  %vm7298_vm7 = vcmask 1046534  }
  0x26   : > { %629 = vmatpush1.bf16.msra.mxu0 %v8297_v8  ;;  %8229 = vmatprep.subr.bf16.mxu1 %v8321_v20  ;;  %v8355_v41 = vld [vmem:[%s9155_s16 + $0x20] sm:$0xff]   ;;  %v524_v42 = vpack.c.bf16 %v519_v39, %v518_v38  ;;  %v8363_v45 = vld [vmem:[%s9155_s16 + $0x28] sm:$0xff]   ;;  %v525_v46 = vpack.c.bf16 %v521_v44, %v520_v43  ;;  %v8365_v47 = vld [vmem:[%s9155_s16 + $0x30] sm:$0xff]   ;;  %vm7300_vm8 = vcmask 1047559   ;;  %s491_s26 = sand.u32 1, %s8942_s30   ;;  %s7886_s29 = sshll.u32 %s9053_s17, 10 }
  0x27   : > { %630 = vmatprep.subr.bf16.mxu0 %v8298_v9  ;;  %v8337_v48 = vld [vmem:[%s12762_s3 + $0x74] ss:$8 sps:$4 sm:$0xff]   ;;  %v8334_v49 = vld [vmem:[%s9155_s16] sm:$0xff]   ;;  %v8335_v50 = vld [vmem:[%s12762_s3 + $0x70] ss:$8 sps:$4 sm:$0xff]   ;;  %s7688_s27 = sshll.u32 %s491_s26, 6  ;;  %s12711_s28 = scalar_lea.hbm %s12773_s14, %s7886_s29 }
  0x28   : > { %v8340_v51 = vld [vmem:[%s12762_s3 + $0x64] ss:$8 sps:$4 sm:$0xff]   ;;  %v8338_v52 = vld [vmem:[%s12762_s3 + $0x60] ss:$8 sps:$4 sm:$0xff]   ;;  %v8344_v53 = vld [vmem:[%s12762_s3 + $0x54] ss:$8 sps:$4 sm:$0xff]  }
  0x29   : > { %8237 = vmatpush1.bf16.msra.mxu1 %v8319_v24  ;;  %v8367_v54 = vld [vmem:[%s9155_s16 + $0x38] sm:$0xff]   ;;  %v8341_v55 = vld [vmem:[%s9155_s16 + $0x8] sm:$0xff]   ;;  %v8369_v60 = vld [vmem:[%s9155_s16 + $0x40] sm:$0xff]   ;;  %s12719_s21 = scalar_lea.sflag [#allocation3], %s491_s26  ;;  %s8954_s18 = smov [#allocation2]  }
  0x2a   : > { %631 = vmatpush1.bf16.msra.mxu0 %v8300_v13  ;;  %8230 = vmatprep.subr.bf16.mxu1 %v8324_v25  ;;  %v8342_v56 = vld [vmem:[%s12762_s3 + $0x50] ss:$8 sps:$4 sm:$0xff]   ;;  %v8347_v57 = vld [vmem:[%s12762_s3 + $0x44] ss:$8 sps:$4 sm:$0xff]   ;;  %v8345_v58 = vld [vmem:[%s12762_s3 + $0x40] ss:$8 sps:$4 sm:$0xff]  }
  0x2b   : > { %632 = vmatprep.subr.bf16.mxu0 %v8301_v14  ;;  %v8351_v59 = vld [vmem:[%s12762_s3 + $0x34] ss:$8 sps:$4 sm:$0xff]   ;;  %v8349_v63 = vld [vmem:[%s12762_s3 + $0x30] ss:$8 sps:$4 sm:$0xff]   ;;  %v8354_v0 = vld [vmem:[%s12762_s3 + $0x24] ss:$8 sps:$4 sm:$0xff]  }
  0x2c   : > { %v8392_v61 = vld [vmem:[%s12766_s7 + $0x38] sm:$0xff]   ;;  %v8348_v62 = vld [vmem:[%s9155_s16 + $0x10] sm:$0xff]   ;;  %v8352_v1 = vld [vmem:[%s12762_s3 + $0x20] ss:$8 sps:$4 sm:$0xff]   ;;  %s8894_s25 = sshll.u32 %s8954_s18, 4  ;;  %s8895_s25 = int_to_ptr.vmem [resolvable:$false] %s8894_s25 }
  0x2d   : > { %8238 = vmatpush1.bf16.msra.mxu1 %v8322_v28  ;;  %v8359_v3 = vld [vmem:[%s12762_s3 + $0x14] ss:$8 sps:$4 sm:$0xff]   ;;  %v8371_v4 = vld [vmem:[%s9155_s16 + $0x48] sm:$0xff]   ;;  %v8357_v6 = vld [vmem:[%s12762_s3 + $0x10] ss:$8 sps:$4 sm:$0xff]   ;;  %s8896_s20 = scalar_lea.vmem %s8895_s25, 2048 }
  0x2e   : > { %633 = vmatpush1.bf16.msra.mxu0 %v8303_v17  ;;  %8231 = vmatprep.subr.bf16.mxu1 %v8327_v30  ;;  %v8356_v5 = vld [vmem:[%s9155_s16 + $0x18] sm:$0xff]   ;;  %v8362_v7 = vld [vmem:[%s12762_s3 + $0x4] ss:$8 sps:$4 sm:$0xff]   ;;  %v8360_v8 = vld [vmem:[%s12762_s3] ss:$8 sps:$4 sm:$0xff]  }
  0x2f   : > { %634 = vmatprep.subr.bf16.mxu0 %v8304_v18  ;;  %v8373_v9 = vld [vmem:[%s9155_s16 + $0x50] sm:$0xff]   ;;  %v8377_v13 = vld [vmem:[%s9155_s16 + $0x60] sm:$0xff]   ;;  %v8370_v17 = vld [vmem:[%s9202_s19 + $0x18] sm:$0xff]  }
  0x30   : > { %v8368_v14 = vld [vmem:[%s9202_s19 + $0x10] sm:$0xff]   ;;  %v8378_v26 = vld [vmem:[%s9202_s19 + $0x38] sm:$0xff]   ;;  %v8382_v31 = vld [vmem:[%s9202_s19 + $0x48] sm:$0xff]  }
  0x31   : > { %8239 = vmatpush1.bf16.msra.mxu1 %v8325_v33  ;;  %v8381_v18 = vld [vmem:[%s9155_s16 + $0x70] sm:$0xff]   ;;  %v8418_v32 = vld [vmem:[%s12766_s7 + $0x18] sm:$0xff]   ;;  %v8424_v39 = vld [vmem:[%s12766_s7] sm:$0xff]  }
  0x32   : > { %635 = vmatpush1.bf16.msra.mxu0 %v8306_v21  ;;  %8232 = vmatprep.subr.bf16.mxu1 %v8330_v34  ;;  %v8374_v21 = vld [vmem:[%s9202_s19 + $0x28] sm:$0xff]   ;;  %v8389_v27 = vld [vmem:[%s9155_s16 + $0x90] sm:$0xff]   ;;  %v8386_v38 = vld [vmem:[%s9202_s19 + $0x58] sm:$0xff]  }
  0x33   : > { %636 = vmatprep.subr.bf16.mxu0 %v8307_v22  ;;  %v8408_v22 = vld [vmem:[%s12766_s7 + $0x28] sm:$0xff]   ;;  %v8403_v44 = vld [vmem:[%s9155_s16 + $0xc0] sm:$0xff]  }
  0x34   : > { %v8390_v43 = vld [vmem:[%s9202_s19 + $0x68] sm:$0xff]  }
  0x35   : > { %8240 = vmatpush1.bf16.msra.mxu1 %v8328_v36 }
  0x36   : > { %637 = vmatpush1.bf16.msra.mxu0 %v8309_v23  ;;  %8233 = vmatprep.subr.bf16.mxu1 %v8333_v37  ;;  %v8385_v23 = vld [vmem:[%s9155_s16 + $0x80] sm:$0xff]  }
  0x37   : > { %2183 = vmatprep.subr.bf16.mxu0 %v8312_v10  ;;  %v8364_v10 = vld [vmem:[%s9202_s19] sm:$0xff]  }
  0x39   : > { %655 = vmatmul.mubr.bf16.vlgmr.msra.gmra.mxu0 %v522_v29  ;;  %8241 = vmatpush1.bf16.msra.mxu1 %v8331_v40  ;;  %v8391_v29 = vld [vmem:[%s9155_s16 + $0x98] sm:$0xff]  }
  0x3a   : > { %2184 = vmatpush1.bf16.msra.mxu0 %v8310_v11  ;;  %664 = vmatprep.mubr.bf16.mxu0 %v12781_v2  ;;  %v8375_v11 = vld [vmem:[%s9155_s16 + $0x58] sm:$0xff]  }
  0x3b   : > { %2185 = vmatprep.subr.bf16.mxu0 %v8315_v12  ;;  %8000 = vmatprep.subr.bf16.mxu1 %v8392_v61  ;;  %v8366_v12 = vld [vmem:[%s9202_s19 + $0x8] sm:$0xff]  }
  0x3c   : > { %2256 = vmatmul.mubr.bf16.vlgmr.msra.gmra.mxu1 %v8355_v41  ;;  %v8388_v41 = vld [vmem:[%s9202_s19 + $0x60] sm:$0xff]  }
  0x3d   : > { %2265 = vmatprep.mubr.bf16.mxu1 %v12781_v2  ;;  %8001 = vmatpush3.bf16.msra.mxu1 %v8392_v61 }
  0x3e   : > { %2186 = vmatpush1.bf16.msra.mxu0 %v8313_v15  ;;  %v8379_v15 = vld [vmem:[%s9155_s16 + $0x68] sm:$0xff]  }
  0x3f   : > { %2187 = vmatprep.subr.bf16.mxu0 %v8318_v16  ;;  %v8400_v16 = vld [vmem:[%s12766_s7 + $0x30] sm:$0xff]  }
  0x40   : > { %8002 = vmatprep.subr.bf16.mxu1 %v8400_v16 }
  0x41   : > { %665 = vmatmul.mubr.bf16.gmra.mxu0 %v523_v35  ;;  %8003 = vmatpush3.bf16.msra.mxu1 %v8400_v16  ;;  %v8384_v35 = vld [vmem:[%s9202_s19 + $0x50] sm:$0xff]  }
  0x42   : > { %2188 = vmatpush1.bf16.msra.mxu0 %v8316_v19  ;;  %674 = vmatprep.mubr.bf16.mxu0 %v12781_v2  ;;  %v8372_v19 = vld [vmem:[%s9202_s19 + $0x20] sm:$0xff]  }
  0x43   : > { %2189 = vmatprep.subr.bf16.mxu0 %v8321_v20  ;;  %v8383_v20 = vld [vmem:[%s9155_s16 + $0x78] sm:$0xff]   ;;  %8004 = vmatprep.subr.bf16.mxu1 %v8408_v22 }
  0x44   : > { %2266 = vmatmul.mubr.bf16.gmra.mxu1 %v8363_v45  ;;  %v8393_v45 = vld [vmem:[%s9202_s19 + $0x70] sm:$0xff]  }
  0x45   : > { %2275 = vmatprep.mubr.bf16.mxu1 %v12781_v2  ;;  %8005 = vmatpush3.bf16.msra.mxu1 %v8408_v22 }
  0x46   : > { %2190 = vmatpush1.bf16.msra.mxu0 %v8319_v24  ;;  %v8376_v24 = vld [vmem:[%s9202_s19 + $0x30] sm:$0xff]  }
  0x47   : > { %2191 = vmatprep.subr.bf16.mxu0 %v8324_v25  ;;  %v8387_v25 = vld [vmem:[%s9155_s16 + $0x88] sm:$0xff]  }
  0x49   : > { %675 = vmatmul.mubr.bf16.gmra.mxu0 %v524_v42  ;;  %v8401_v42 = vld [vmem:[%s9155_s16 + $0xb8] sm:$0xff]  }
  0x4a   : > { %2192 = vmatpush1.bf16.msra.mxu0 %v8322_v28  ;;  %684 = vmatprep.mubr.bf16.mxu0 %v12781_v2  ;;  %v8380_v28 = vld [vmem:[%s9202_s19 + $0x40] sm:$0xff]  }
  0x4b   : > { %2193 = vmatprep.subr.bf16.mxu0 %v8327_v30  ;;  %v8416_v30 = vld [vmem:[%s12766_s7 + $0x20] sm:$0xff]  }
  0x4c   : > { %2276 = vmatmul.mubr.bf16.gmra.mxu1 %v8365_v47  ;;  %8006 = vmatprep.subr.bf16.mxu1 %v8416_v30  ;;  %v8395_v47 = vld [vmem:[%s9202_s19 + $0x78] sm:$0xff]  }
  0x4d   : > { %2285 = vmatprep.mubr.bf16.mxu1 %v12781_v2  ;;  %8007 = vmatpush3.bf16.msra.mxu1 %v8416_v30 }
  0x4e   : > { %2194 = vmatpush1.bf16.msra.mxu0 %v8325_v33  ;;  %8008 = vmatprep.subr.bf16.mxu1 %v8418_v32  ;;  %v8394_v33 = vld [vmem:[%s9155_s16 + $0xa0] sm:$0xff]  }
  0x4f   : > { %2195 = vmatprep.subr.bf16.mxu0 %v8330_v34  ;;  %v8420_v34 = vld [vmem:[%s12766_s7 + $0x10] sm:$0xff]  }
  0x51   : > { %685 = vmatmul.mubr.bf16.gmra.mxu0 %v525_v46  ;;  %8009 = vmatpush3.bf16.msra.mxu1 %v8418_v32  ;;  %v8405_v46 = vld [vmem:[%s9155_s16 + $0xc8] sm:$0xff]  }
  0x52   : > { %2196 = vmatpush1.bf16.msra.mxu0 %v8328_v36  ;;  %2215 = vmatprep.mubr.bf16.mxu0 %v12781_v2  ;;  %v8422_v36 = vld [vmem:[%s12766_s7 + $0x8] sm:$0xff]  }
  0x53   : > { %2197 = vmatprep.subr.bf16.mxu0 %v8333_v37  ;;  %8010 = vmatprep.subr.bf16.mxu1 %v8420_v34  ;;  %v8396_v37 = vld [vmem:[%s9155_s16 + $0xa8] sm:$0xff]  }
  0x54   : > { %2286 = vmatmul.mubr.bf16.gmra.mxu1 %v8367_v54  ;;  %v8953_v54 = vmov 1966171168  }
  0x55   : > { %2295 = vmatprep.mubr.bf16.mxu1 %v12781_v2  ;;  %8011 = vmatpush3.bf16.msra.mxu1 %v8420_v34  ;;  %v8404_v34 = vld [vmem:[%s9202_s19 + $0x98] sm:$0xff]  }
  0x56   : > { %2198 = vmatpush1.bf16.msra.mxu0 %v8331_v40  ;;  %8012 = vmatprep.subr.bf16.mxu1 %v8422_v36  ;;  %v8398_v40 = vld [vmem:[%s9155_s16 + $0xb0] sm:$0xff]  }
  0x57   : > { %2808 = vmatprep.subr.bf16.mxu0 %v8337_v48  ;;  %v8407_v48 = vld [vmem:[%s9155_s16 + $0xd0] sm:$0xff]  }
  0x59   : > { %2216 = vmatmul.mubr.bf16.vlgmr.msra.gmra.mxu0 %v8334_v49  ;;  %8013 = vmatpush3.bf16.msra.mxu1 %v8422_v36  ;;  %v8397_v49 = vld [vmem:[%s9202_s19 + $0x80] sm:$0xff]  }
  0x5a   : > { %2809 = vmatpush1.bf16.msra.mxu0 %v8335_v50  ;;  %2225 = vmatprep.mubr.bf16.mxu0 %v12781_v2 }
  0x5b   : > { %2810 = vmatprep.subr.bf16.mxu0 %v8340_v51  ;;  %8014 = vmatprep.subr.bf16.mxu1 %v8424_v39  ;;  %v8410_v51 = vld [vmem:[%s9155_s16 + $0xd8] sm:$0xff]  }
  0x5c   : > { %2296 = vmatmul.mubr.bf16.gmra.mxu1 %v8369_v60 }
  0x5d   : > { %2305 = vmatprep.mubr.bf16.mxu1 %v12781_v2  ;;  %8015 = vmatpush3.bf16.msra.mxu1 %v8424_v39 }
  0x5e   : > { %2811 = vmatpush1.bf16.msra.mxu0 %v8338_v52 }
  0x5f   : > { %2812 = vmatprep.subr.bf16.mxu0 %v8344_v53 }
  0x61   : > { %2226 = vmatmul.mubr.bf16.gmra.mxu0 %v8341_v55  ;;  %v714_v55 = vunpack.c.l.s4 %v8953_v54 }
  0x62   : > { %2813 = vmatpush1.bf16.msra.mxu0 %v8342_v56  ;;  %2235 = vmatprep.mubr.bf16.mxu0 %v12781_v2  ;;  %v716_v56 = vlaneseq }
  0x63   : > { %2814 = vmatprep.subr.bf16.mxu0 %v8347_v57  ;;  %v715_v60 = vunpack.c.0.s8 %v714_v55 }
  0x64   : > { %2306 = vmatmul.mubr.bf16.gmra.mxu1 %v8371_v4  ;;  %v9387_v61 = vshrl.u32 %v716_v56, 7 }
  0x65   : > { %2315 = vmatprep.mubr.bf16.mxu1 %v12781_v2 }
  0x66   : > { %2815 = vmatpush1.bf16.msra.mxu0 %v8345_v58  ;;  %v8399_v58 = vld [vmem:[%s9202_s19 + $0x88] sm:$0xff]   ;;  %v9396_v4 = vsub.s32 %v715_v60, %v9387_v61 }
  0x67   : > { %2816 = vmatprep.subr.bf16.mxu0 %v8351_v59 }
  0x69   : > { %2236 = vmatmul.mubr.bf16.gmra.mxu0 %v8348_v62 }
  0x6a   : > { %2817 = vmatpush1.bf16.msra.mxu0 %v8349_v63  ;;  %2245 = vmatprep.mubr.bf16.mxu0 %v12781_v2 }
  0x6b   : > { %2818 = vmatprep.subr.bf16.mxu0 %v8354_v0 }
  0x6c   : > { %2316 = vmatmul.mubr.bf16.gmra.mxu1 %v8373_v9 }
  0x6d   : > { %2325 = vmatprep.mubr.bf16.mxu1 %v12781_v2 }
  0x6e   : > { %2819 = vmatpush1.bf16.msra.mxu0 %v8352_v1  ;;  %v8412_v1 = vld [vmem:[%s9155_s16 + $0xe0] sm:$0xff]  }
  0x6f   : > { %2820 = vmatprep.subr.bf16.mxu0 %v8359_v3 }
  0x71   : > { %2246 = vmatmul.mubr.bf16.gmra.mxu0 %v8356_v5 }
  0x72   : > { %2821 = vmatpush1.bf16.msra.mxu0 %v8357_v6  ;;  %2840 = vmatprep.mubr.bf16.mxu0 %v12781_v2 }
  0x73   : > { %2822 = vmatprep.subr.bf16.mxu0 %v8362_v7 }
  0x74   : > { %2326 = vmatmul.mubr.bf16.gmra.mxu1 %v8375_v11 }
  0x75   : > { %2335 = vmatprep.mubr.bf16.mxu1 %v12781_v2 }
  0x76   : > { %2823 = vmatpush1.bf16.msra.mxu0 %v8360_v8  ;;  %v8402_v8 = vld [vmem:[%s9202_s19 + $0x90] sm:$0xff]  }
  0x79   : > { %2841 = vmatmul.mubr.bf16.vlgmr.msra.gmra.mxu0 %v8364_v10 }
  0x7a   : > { %2850 = vmatprep.mubr.bf16.mxu0 %v12781_v2 }
  0x7c   : > { %2336 = vmatmul.mubr.bf16.gmra.mxu1 %v8377_v13 }
  0x7d   : > { %2345 = vmatprep.mubr.bf16.mxu1 %v12781_v2 }
  0x81   : > { %2851 = vmatmul.mubr.bf16.gmra.mxu0 %v8366_v12 }
  0x82   : > { %2860 = vmatprep.mubr.bf16.mxu0 %v12781_v2 }
  0x84   : > { %2346 = vmatmul.mubr.bf16.gmra.mxu1 %v8379_v15 }
  0x85   : > { %2355 = vmatprep.mubr.bf16.mxu1 %v12781_v2 }
  0x89   : > { %2861 = vmatmul.mubr.bf16.gmra.mxu0 %v8368_v14 }
  0x8a   : > { %2870 = vmatprep.mubr.bf16.mxu0 %v12781_v2 }
  0x8c   : > { %2356 = vmatmul.mubr.bf16.gmra.mxu1 %v8381_v18 }
  0x8d   : > { %2365 = vmatprep.mubr.bf16.mxu1 %v12781_v2 }
  0x91   : > { %2871 = vmatmul.mubr.bf16.gmra.mxu0 %v8370_v17 }
  0x92   : > { %2880 = vmatprep.mubr.bf16.mxu0 %v12781_v2 }
  0x94   : > { %2366 = vmatmul.mubr.bf16.gmra.mxu1 %v8383_v20 }
  0x95   : > { %2375 = vmatprep.mubr.bf16.mxu1 %v12781_v2 }
  0x99   : > { %2881 = vmatmul.mubr.bf16.gmra.mxu0 %v8372_v19 }
  0x9a   : > { %2890 = vmatprep.mubr.bf16.mxu0 %v12781_v2 }
  0x9c   : > { %2376 = vmatmul.mubr.bf16.gmra.mxu1 %v8385_v23 }
  0x9d   : > { %2385 = vmatprep.mubr.bf16.mxu1 %v12781_v2 }
  0xa1   : > { %2891 = vmatmul.mubr.bf16.gmra.mxu0 %v8374_v21 }
  0xa2   : > { %2900 = vmatprep.mubr.bf16.mxu0 %v12781_v2 }
  0xa4   : > { %2386 = vmatmul.mubr.bf16.gmra.mxu1 %v8387_v25 }
  0xa5   : > { %2395 = vmatprep.mubr.bf16.mxu1 %v12781_v2 }
  0xa9   : > { %2901 = vmatmul.mubr.bf16.gmra.mxu0 %v8376_v24  ;;  %v8414_v24 = vld [vmem:[%s9155_s16 + $0xe8] sm:$0xff]  }
  0xaa   : > { %2910 = vmatprep.mubr.bf16.mxu0 %v12781_v2 }
  0xac   : > { %2396 = vmatmul.mubr.bf16.gmra.mxu1 %v8389_v27 }
  0xad   : > { %2405 = vmatprep.mubr.bf16.mxu1 %v12781_v2 }
  0xb1   : > { %2911 = vmatmul.mubr.bf16.gmra.mxu0 %v8378_v26 }
  0xb2   : > { %2920 = vmatprep.mubr.bf16.mxu0 %v12781_v2 }
  0xb4   : > { %2406 = vmatmul.mubr.bf16.gmra.mxu1 %v8391_v29 }
  0xb5   : > { %2415 = vmatprep.mubr.bf16.mxu1 %v12781_v2 }
  0xb9   : > { %2921 = vmatmul.mubr.bf16.gmra.mxu0 %v8380_v28 }
  0xba   : > { %2930 = vmatprep.mubr.bf16.mxu0 %v12781_v2 }
  0xbc   : > { %2416 = vmatmul.mubr.bf16.gmra.mxu1 %v8394_v33 }
  0xbd   : > { %2425 = vmatprep.mubr.bf16.mxu1 %v12781_v2 }
  0xc1   : > { %2931 = vmatmul.mubr.bf16.gmra.mxu0 %v8382_v31 }
  0xc2   : > { %2940 = vmatprep.mubr.bf16.mxu0 %v12781_v2 }
  0xc4   : > { %2426 = vmatmul.mubr.bf16.gmra.mxu1 %v8396_v37 }
  0xc5   : > { %2435 = vmatprep.mubr.bf16.mxu1 %v12781_v2 }
  0xc9   : > { %2941 = vmatmul.mubr.bf16.gmra.mxu0 %v8384_v35 }
  0xca   : > { %2950 = vmatprep.mubr.bf16.mxu0 %v12781_v2 }
  0xcc   : > { %2436 = vmatmul.mubr.bf16.gmra.mxu1 %v8398_v40 }
  0xcd   : > { %2445 = vmatprep.mubr.bf16.mxu1 %v12781_v2 }
  0xd1   : > { %2951 = vmatmul.mubr.bf16.gmra.mxu0 %v8386_v38 }
  0xd2   : > { %2960 = vmatprep.mubr.bf16.mxu0 %v12781_v2 }
  0xd4   : > { %2446 = vmatmul.mubr.bf16.gmra.mxu1 %v8401_v42 }
  0xd5   : > { %2455 = vmatprep.mubr.bf16.mxu1 %v12781_v2 }
  0xd9   : > { %2961 = vmatmul.mubr.bf16.gmra.mxu0 %v8388_v41 }
  0xda   : > { %2970 = vmatprep.mubr.bf16.mxu0 %v12781_v2 }
  0xdc   : > { %2456 = vmatmul.mubr.bf16.gmra.mxu1 %v8403_v44 }
  0xdd   : > { %2465 = vmatprep.mubr.bf16.mxu1 %v12781_v2 }
  0xe1   : > { %2971 = vmatmul.mubr.bf16.gmra.mxu0 %v8390_v43 }
  0xe2   : > { %2980 = vmatprep.mubr.bf16.mxu0 %v12781_v2 }
  0xe4   : > { %2466 = vmatmul.mubr.bf16.gmra.mxu1 %v8405_v46 }
  0xe5   : > { %2475 = vmatprep.mubr.bf16.mxu1 %v12781_v2 }
  0xe9   : > { %2981 = vmatmul.mubr.bf16.gmra.mxu0 %v8393_v45 }
  0xea   : > { %2990 = vmatprep.mubr.bf16.mxu0 %v12781_v2 }
  0xec   : > { %2476 = vmatmul.mubr.bf16.gmra.mxu1 %v8407_v48 }
  0xed   : > { %2485 = vmatprep.mubr.bf16.mxu1 %v12781_v2 }
  0xf1   : > { %2991 = vmatmul.mubr.bf16.gmra.mxu0 %v8395_v47 }
  0xf2   : > { %3000 = vmatprep.mubr.bf16.mxu0 %v12781_v2 }
  0xf4   : > { %2486 = vmatmul.mubr.bf16.gmra.mxu1 %v8410_v51  ;;  %v8417_v51 = vld [vmem:[%s9155_s16 + $0xf0] sm:$0xff]  }
  0xf5   : > { %2495 = vmatprep.mubr.bf16.mxu1 %v12781_v2 }
  0xf9   : > { %v9373_v50 = vpop.f32.mrf.mxu0  ;;  %3001 = vmatmul.mubr.bf16.gmra.mxu0 %v8397_v49 }
  0xfa   : > { %3010 = vmatprep.mubr.bf16.mxu0 %v12781_v2 }
  0xfb   : > { %v9377_v52 = vpop.f32.mrf.mxu0 }
  0xfc   : > { %2496 = vmatmul.mubr.bf16.gmra.mxu1 %v8412_v1  ;;  %v9401_v11 = vpop.f32.mrf.mxu1 }
  0xfd   : > { %v9381_v57 = vpop.f32.mrf.mxu0  ;;  %2505 = vmatprep.mubr.bf16.mxu1 %v12781_v2 }
  0xfe   : > { %v9410_v17 = vpop.f32.mrf.mxu1 }
  0xff   : > { %v9384_v59 = vpop.f32.mrf.mxu0 }
 0x100   : > { %v9419_v23 = vpop.f32.mrf.mxu1 }
 0x101   : > { %v666_v0 = vpop.f32.mrf.mxu0  ;;  %3011 = vmatmul.mubr.bf16.gmra.mxu0 %v8399_v58 }
 0x102   : > { %3020 = vmatprep.mubr.bf16.mxu0 %v12781_v2  ;;  %v9428_v30 = vpop.f32.mrf.mxu1 }
 0x103   : > { %v668_v3 = vpop.f32.mrf.mxu0  ;;  %12856 = vst [vmem:[#allocation13_spill] sm:$0xff] %v9428_v30 }
 0x104   : > { %v811_v5 = vcombine.low %v666_v0, %v668_v3  ;;  %v812_v6 = vcombine.high %v666_v0, %v668_v3  ;;  %2506 = vmatmul.mubr.bf16.gmra.mxu1 %v8414_v24  ;;  %v9441_v37 = vpop.f32.mrf.mxu1 }
 0x105   : > { %v670_v7 = vpop.f32.mrf.mxu0  ;;  %2515 = vmatprep.mubr.bf16.mxu1 %v12781_v2 }
 0x106   : > { %v819_v9 = vrot.slane %v811_v5, %v9396_v4  ;;  %v826_v10 = vrot.slane %v812_v6, %v9396_v4  ;;  %v9450_v43 = vpop.f32.mrf.mxu1  ;;  %v8406_v6 = vld [vmem:[%s9202_s19 + $0xa0] sm:$0xff]  }
 0x107   : > { %v672_v12 = vpop.f32.mrf.mxu0 }
 0x108   : > { %v827_v13 = vcombine.high %v819_v9, %v819_v9  ;;  %v828_v14 = vcombine.high %v826_v10, %v826_v10  ;;  %v9405_v15 = vrot.slane %v819_v9, %v9396_v4  ;;  %v9408_v16 = vrot.slane %v826_v10, %v9396_v4  ;;  %v9459_v49 = vpop.f32.mrf.mxu1 }
 0x109   : > { %v861_v18 = vcombine.low %v670_v7, %v672_v12  ;;  %v862_v19 = vcombine.high %v670_v7, %v672_v12  ;;  %v676_v20 = vpop.f32.mrf.mxu0  ;;  %3021 = vmatmul.mubr.bf16.gmra.mxu0 %v8402_v8 }
 0x10a   : > { %v9413_v21 = vrot.slane %v827_v13, %v9396_v4  ;;  %v9416_v22 = vrot.slane %v828_v14, %v9396_v4  ;;  %3030 = vmatprep.mubr.bf16.mxu0 %v12781_v2  ;;  %v9468_v0 = vpop.f32.mrf.mxu1 }
 0x10b   : > { %v9423_v25 = vrot.slane %v861_v18, %v9396_v4  ;;  %v9426_v26 = vrot.slane %v862_v19, %v9396_v4  ;;  %v678_v27 = vpop.f32.mrf.mxu0  ;;  %12863 = vst [vmem:[#allocation20_spill] sm:$0xff] %v9468_v0 }
 0x10c   : > { %12854 = vst [vmem:[#allocation11_spill] sm:$0xff] %v9413_v21  ;;  %12855 = vst [vmem:[#allocation12_spill] sm:$0xff] %v9416_v22  ;;  %v911_v28 = vcombine.low %v676_v20, %v678_v27  ;;  %v912_v29 = vcombine.high %v676_v20, %v678_v27  ;;  %2516 = vmatmul.mubr.bf16.gmra.mxu1 %v8417_v51  ;;  %v9481_v9 = vpop.f32.mrf.mxu1  ;;  %v8409_v51 = vld [vmem:[%s9202_s19 + $0xa8] sm:$0xff]  }
 0x10d   : > { %v9432_v31 = vrot.slane %v9423_v25, %v9396_v4  ;;  %v9436_v32 = vrot.slane %v9426_v26, %v9396_v4  ;;  %v680_v33 = vpop.f32.mrf.mxu0  ;;  %2525 = vmatprep.mubr.bf16.mxu1 %v12781_v2 }
 0x10e   : > { %v919_v35 = vrot.slane %v911_v28, %v9396_v4  ;;  %v926_v36 = vrot.slane %v912_v29, %v9396_v4  ;;  %v9490_v19 = vpop.f32.mrf.mxu1 }
 0x10f   : > { %12857 = vst [vmem:[#allocation14_spill] sm:$0xff] %v9432_v31  ;;  %12858 = vst [vmem:[#allocation15_spill] sm:$0xff] %v9436_v32  ;;  %v682_v38 = vpop.f32.mrf.mxu0  ;;  %v8419_v32 = vld [vmem:[%s9202_s19 + $0xc8] sm:$0xff]  }
 0x110   : > { %v927_v39 = vcombine.high %v919_v35, %v919_v35  ;;  %v928_v40 = vcombine.high %v926_v36, %v926_v36  ;;  %v9445_v41 = vrot.slane %v919_v35, %v9396_v4  ;;  %v9448_v42 = vrot.slane %v926_v36, %v9396_v4 }
 0x111   : > { %v961_v44 = vcombine.low %v680_v33, %v682_v38  ;;  %v962_v45 = vcombine.high %v680_v33, %v682_v38  ;;  %v686_v46 = vpop.f32.mrf.mxu0  ;;  %3031 = vmatmul.mubr.bf16.gmra.mxu0 %v8404_v34  ;;  %v9501_v33 = vpop.f32.mrf.mxu1  ;;  %v8421_v34 = vld [vmem:[%s9155_s16 + $0xf8] sm:$0xff]  }
 0x112   : > { %12859 = vst [vmem:[#allocation16_spill] sm:$0xff] %v9445_v41  ;;  %12860 = vst [vmem:[#allocation17_spill] sm:$0xff] %v9448_v42  ;;  %v9453_v47 = vrot.slane %v927_v39, %v9396_v4  ;;  %v9456_v48 = vrot.slane %v928_v40, %v9396_v4  ;;  %3040 = vmatprep.mubr.bf16.mxu0 %v12781_v2  ;;  %v877_v39 = vcombine.high %v9423_v25, %v9423_v25  ;;  %v8430_v25 = vld [vmem:[%s12768_s9 + $0x38] sm:$0xff]  }
 0x113   : > { %v9463_v54 = vrot.slane %v961_v44, %v9396_v4  ;;  %v9466_v55 = vrot.slane %v962_v45, %v9396_v4  ;;  %v688_v56 = vpop.f32.mrf.mxu0  ;;  %v9512_v40 = vpop.f32.mrf.mxu1  ;;  %8080 = vmatprep.subr.bf16.mxu0 %v8430_v25 }
 0x114   : > { %12861 = vst [vmem:[#allocation18_spill] sm:$0xff] %v9453_v47  ;;  %12862 = vst [vmem:[#allocation19_spill] sm:$0xff] %v9456_v48  ;;  %v1011_v58 = vcombine.low %v686_v46, %v688_v56  ;;  %v1012_v60 = vcombine.high %v686_v46, %v688_v56  ;;  %2526 = vmatmul.mubr.bf16.gmra.mxu1 %v8421_v34  ;;  %8081 = vmatpush3.bf16.msra.mxu0 %v8430_v25 }
 0x115   : > { %v9472_v1 = vrot.slane %v9463_v54, %v9396_v4  ;;  %v9476_v3 = vrot.slane %v9466_v55, %v9396_v4  ;;  %v690_v5 = vpop.f32.mrf.mxu0  ;;  %12870 = vst [vmem:[#allocation27_spill] sm:$0xff] %v9512_v40  ;;  %v9524_v56 = vpop.f32.mrf.mxu1  ;;  %v977_v34 = vcombine.high %v9463_v54, %v9463_v54 }
 0x116   : > { %v1019_v7 = vrot.slane %v1011_v58, %v9396_v4  ;;  %v1026_v8 = vrot.slane %v1012_v60, %v9396_v4  ;;  %v878_v60 = vcombine.high %v9426_v26, %v9426_v26 }
 0x117   : > { %12864 = vst [vmem:[#allocation21_spill] sm:$0xff] %v9472_v1  ;;  %12865 = vst [vmem:[#allocation22_spill] sm:$0xff] %v9476_v3  ;;  %v692_v10 = vpop.f32.mrf.mxu0  ;;  %v9571_v53 = vrot.slane %v977_v34, %v9396_v4  ;;  %v9613_v1 = vsub.s32 0, %v9387_v61 }
 0x118   : > { %v1027_v12 = vcombine.high %v1019_v7, %v1019_v7  ;;  %v1028_v13 = vcombine.high %v1026_v8, %v1026_v8  ;;  %v9485_v14 = vrot.slane %v1019_v7, %v9396_v4  ;;  %v9488_v18 = vrot.slane %v1026_v8, %v9396_v4 }
 0x119   : > { %v1061_v20 = vcombine.low %v690_v5, %v692_v10  ;;  %v1062_v24 = vcombine.high %v690_v5, %v692_v10  ;;  %v9492_v27 = vpop.f32.mrf.mxu0  ;;  %3041 = vmatmul.mubr.bf16.gmra.mxu0 %v8406_v6  ;;  %v9533_v5 = vpop.f32.mrf.mxu1  ;;  %v9536_v6 = vrot.slane %v877_v39, %v9396_v4  ;;  %v9548_v26 = vrot.slane %v878_v60, %v9396_v4 }
 0x11a   : > { %12866 = vst [vmem:[#allocation23_spill] sm:$0xff] %v9485_v14  ;;  %12867 = vst [vmem:[#allocation24_spill] sm:$0xff] %v9488_v18  ;;  %v9495_v28 = vrot.slane %v1027_v12, %v9396_v4  ;;  %v9498_v29 = vrot.slane %v1028_v13, %v9396_v4  ;;  %3050 = vmatprep.mubr.bf16.mxu0 %v12781_v2 }
 0x11b   : > { %v1069_v35 = vrot.slane %v1061_v20, %v9396_v4  ;;  %v9506_v36 = vrot.slane %v1062_v24, %v9396_v4  ;;  %v9508_v38 = vpop.f32.mrf.mxu0  ;;  %12873 = vst [vmem:[#allocation30_spill] sm:$0xff] %v9536_v6  ;;  %v9541_v8 = vpop.f32.mrf.mxu1  ;;  %12875 = vst [vmem:[#allocation32_spill] sm:$0xff] %v9548_v26  ;;  %v8411_v20 = vld [vmem:[%s9202_s19 + $0xb0] sm:$0xff]  }
 0x11c   : > { %12868 = vst [vmem:[#allocation25_spill] sm:$0xff] %v9495_v28  ;;  %12869 = vst [vmem:[#allocation26_spill] sm:$0xff] %v9498_v29 }
 0x11d   : > { %v9515_v44 = vrot.slane %v1069_v35, %v9396_v4  ;;  %v9519_v45 = vrot.slane %v9506_v36, %v9396_v4  ;;  %v9521_v46 = vpop.f32.mrf.mxu0  ;;  %v9545_v12 = vpop.f32.mrf.mxu1  ;;  %12876 = vst [vmem:[#allocation33_spill] sm:$0xff] %v9571_v53  ;;  %v1078_v29 = vcombine.high %v9506_v36, %v9506_v36  ;;  %12882 = vst [vmem:[#allocation38_spill] sm:$0xff] %v9613_v1 }
 0x11e   : > { %12874 = vst [vmem:[#allocation31_spill] sm:$0xff] %v9545_v12  ;;  %v8413_v12 = vld [vmem:[%s9202_s19 + $0xb8] sm:$0xff]  }
 0x11f   : > { %12871 = vst [vmem:[#allocation28_spill] sm:$0xff] %v9515_v44  ;;  %12872 = vst [vmem:[#allocation29_spill] sm:$0xff] %v9519_v45  ;;  %v9529_v58 = vpop.f32.mrf.mxu0  ;;  %v9553_v24 = vpop.f32.mrf.mxu1  ;;  %v12879_v45 = vmov 0   ;;  %v9616_v36 = vrot.slane %v1078_v29, %v9396_v4 }
 0x121   : > { %v9538_v7 = vpop.f32.mrf.mxu0  ;;  %3051 = vmatmul.mubr.bf16.gmra.mxu0 %v8409_v51  ;;  %v978_v51 = vcombine.high %v9466_v55, %v9466_v55  ;;  %v9561_v25 = vpop.f32.mrf.mxu1  ;;  %12883 = vst [vmem:[#allocation39_spill] sm:$0xff] %v9616_v36 }
 0x122   : > { %3060 = vmatprep.mubr.bf16.mxu0 %v12781_v2 }
 0x123   : > { %v9543_v10 = vpop.f32.mrf.mxu0  ;;  %v9566_v60 = vpop.f32.mrf.mxu1  ;;  %v9576_v40 = vrot.slane %v978_v51, %v9396_v4  ;;  %v1077_v51 = vcombine.high %v1069_v35, %v1069_v35 }
 0x125   : > { %v9550_v13 = vpop.f32.mrf.mxu0  ;;  %v9573_v54 = vpop.f32.mrf.mxu1  ;;  %12878 = vst [vmem:[#allocation35_spill] sm:$0xff] %v9576_v40  ;;  %v8415_v40 = vld [vmem:[%s9202_s19 + $0xc0] sm:$0xff]  }
 0x126   : > { %12877 = vst [vmem:[#allocation34_spill] sm:$0xff] %v9573_v54 }
 0x127   : > { %v9557_v39 = vpop.f32.mrf.mxu0 }
 0x129   : > { %v9563_v63 = vpop.f32.mrf.mxu0  ;;  %3061 = vmatmul.mubr.bf16.gmra.mxu0 %v8411_v20  ;;  %v711_v20 = vcombine.low %v9373_v50, %v9377_v52 }
 0x12a   : > { %3070 = vmatprep.mubr.bf16.mxu0 %v12781_v2  ;;  %v9583_v2 = vpop.f32.mrf.mxu1 }
 0x12b   : > { %v9568_v62 = vpop.f32.mrf.mxu0  ;;  %v719_v54 = vrot.slane %v711_v20, %v9396_v4 }
 0x12c   : > { %v9587_v30 = vpop.f32.mrf.mxu1 }
 0x12d   : > { %v9578_v55 = vpop.f32.mrf.mxu0  ;;  %v727_v3 = vcombine.high %v719_v54, %v719_v54  ;;  %v735_v35 = vrot.slane %v719_v54, %v9396_v4 }
 0x12e   : > { %v9593_v44 = vpop.f32.mrf.mxu1 }
 0x12f   : > { %v9585_v0 = vpop.f32.mrf.mxu0  ;;  %v757_v26 = vcombine.high %v735_v35, %v735_v35 }
 0x130   : > { %v9599_v28 = vpop.f32.mrf.mxu1 }
 0x131   : > { %v9589_v34 = vpop.f32.mrf.mxu0  ;;  %3071 = vmatmul.mubr.bf16.gmra.mxu0 %v8413_v12  ;;  %12880 = vst [vmem:[#allocation36_spill] sm:$0xff] %v9599_v28  ;;  %v9607_v12 = vrot.slane %v1077_v51, %v9396_v4  ;;  %v9619_v28 = vsub.s32 1, %v9387_v61  ;;  %v749_v51 = vrot.slane %v727_v3, %v9396_v4  ;;  %v1114_v61 = vrot.slane %v735_v35, %v9613_v1 }
 0x132   : > { %3080 = vmatprep.mubr.bf16.mxu0 %v12879_v45  ;;  %v9604_v53 = vpop.f32.mrf.mxu1 }
 0x133   : > { %v9597_v18 = vpop.f32.mrf.mxu0  ;;  %12881 = vst [vmem:[#allocation37_spill] sm:$0xff] %v9607_v12  ;;  %12884 = vst [vmem:[#allocation40_spill] sm:$0xff] %v9619_v28  ;;  %v3289_v12 = vld [vmem:[%s12765_s6] sm:$0x3]  ;;  %v1118_v47 = vrot.slane %v735_v35, %v9619_v28  ;;  %v1122_v31 = vrot.slane %v749_v51, %v9613_v1 }
 0x134   : > { %v9621_v48 = vpop.f32.mrf.mxu1 }
 0x135   : > { %v9601_v14 = vpop.f32.mrf.mxu0 }
 0x136   : > { %v9629_v29 = vpop.f32.mrf.mxu1 }
 0x137   : > { %v9610_v20 = vpop.f32.mrf.mxu0  ;;  %12885 = vst [vmem:[#allocation41_spill] sm:$0xff] %v9629_v29 }
 0x139   : > { %v2842_v42 = vpop.f32.mrf.mxu0  ;;  %3081 = vmatmul.mubr.bf16.gmra.mxu0 %v8415_v40  ;;  %v9634_v40 = vpop.f32.mrf.mxu1 }
 0x13a   : > { %v2843_v54 = vadd.f32 %v2842_v42, %v9492_v27  ;;  %3090 = vmatprep.mubr.bf16.mxu0 %v12879_v45  ;;  %12886 = vst [vmem:[#allocation42_spill] sm:$0xff] %v9634_v40  ;;  %v9637_v42 = vrot.slane %v3289_v12, %v9613_v1  ;;  %v1126_v12 = vrot.slane %v749_v51, %v9619_v28 }
 0x13b   : > { %v2844_v36 = vpop.f32.mrf.mxu0  ;;  %v9644_v22 = vpop.f32.mrf.mxu1 }
 0x13c   : > { %v2845_v41 = vadd.f32 %v2844_v36, %v9508_v38  ;;  %v3161_v3 = vadd.f32 %v2843_v54, %v1114_v61  ;;  %v8431_v38 = vld [vmem:[%s12768_s9 + $0x30] sm:$0xff]  }
 0x13d   : > { %v2846_v27 = vpop.f32.mrf.mxu0  ;;  %v9651_v35 = vpop.f32.mrf.mxu1  ;;  %8082 = vmatprep.subr.bf16.mxu0 %v8431_v38 }
 0x13e   : > { %v9640_v6 = vadd.f32 %v2845_v41, %v1118_v47  ;;  %v2847_v29 = vadd.f32 %v2846_v27, %v9521_v46  ;;  %12888 = vst [vmem:[#allocation44_spill] sm:$0xff] %v9651_v35  ;;  %v3301_v41 = vadd.f32 %v9637_v42, %v3161_v3  ;;  %v1130_v47 = vrot.slane %v757_v26, %v9613_v1 }
 0x13f   : > { %v2848_v36 = vpop.f32.mrf.mxu0  ;;  %v12891_v3 = vcombine.high %v9373_v50, %v9377_v52  ;;  %8083 = vmatpush3.bf16.msra.mxu0 %v8431_v38 }
 0x140   : > { %12887 = vst [vmem:[#allocation43_spill] sm:$0xff] %v9640_v6  ;;  %v3163_v54 = vadd.f32 %v2847_v29, %v1122_v31  ;;  %v2849_v61 = vadd.f32 %v2848_v36, %v9529_v58  ;;  %v759_v29 = vcombine.high %v749_v51, %v749_v51  ;;  %v9660_v58 = vpop.f32.mrf.mxu1 }
 0x141   : > { %v2852_v46 = vpop.f32.mrf.mxu0  ;;  %3091 = vmatmul.mubr.bf16.gmra.mxu0 %v8419_v32  ;;  %12890 = vst [vmem:[#allocation46_spill] sm:$0xff] %v9660_v58  ;;  %v726_v36 = vrot.slane %v12891_v3, %v9396_v4 }
 0x142   : > { %v3303_v27 = vadd.f32 %v9637_v42, %v3163_v54  ;;  %v9656_v40 = vadd.f32 %v2849_v61, %v1126_v12  ;;  %v2853_v31 = vadd.f32 %v2852_v46, %v9538_v7  ;;  %3100 = vmatprep.mubr.bf16.mxu0 %v12879_v45  ;;  %v1134_v54 = vrot.slane %v757_v26, %v9619_v28  ;;  %v9668_v61 = vpop.f32.mrf.mxu1  ;;  %v8423_v46 = vld [vmem:[%s9202_s19 + $0xd0] sm:$0xff]  }
 0x143   : > { %v2854_v6 = vpop.f32.mrf.mxu0  ;;  %12892 = vst [vmem:[#allocation47_spill] sm:$0xff] %v9668_v61  ;;  %v3429_v7 = vmax.f32 %v3301_v41, 0.0  ;;  %v1138_v58 = vrot.slane %v759_v29, %v9613_v1  ;;  %v728_v38 = vcombine.high %v726_v36, %v726_v36  ;;  %v1142_v41 = vrot.slane %v759_v29, %v9619_v28 }
 0x144   : > { %12889 = vst [vmem:[#allocation45_spill] sm:$0xff] %v9656_v40  ;;  %v3430_v32 = vmax.f32 %v3303_v27, 0.0  ;;  %v3165_v35 = vadd.f32 %v2853_v31, %v1130_v47  ;;  %v2855_v12 = vadd.f32 %v2854_v6, %v9543_v10  ;;  %v9675_v52 = vpop.f32.mrf.mxu1  ;;  %v742_v47 = vrot.slane %v726_v36, %v9396_v4 }
 0x145   : > { %v2856_v51 = vpop.f32.mrf.mxu0  ;;  %v756_v29 = vrot.slane %v728_v38, %v9396_v4 }
 0x146   : > { %v9671_v40 = vadd.f32 %v2855_v12, %v1134_v54  ;;  %v2857_v50 = vadd.f32 %v2856_v51, %v9550_v13  ;;  %v4069_v26 = vpack.c.bf16 %v3430_v32, %v3429_v7  ;;  %v3305_v6 = vadd.f32 %v9637_v42, %v3165_v35  ;;  %v9681_v3 = vpop.f32.mrf.mxu1 }
 0x147   : > { %v2858_v27 = vpop.f32.mrf.mxu0  ;;  %v1150_v51 = vrot.slane %v742_v47, %v9619_v28  ;;  %v1154_v38 = vrot.slane %v756_v29, %v9613_v1  ;;  %v1158_v61 = vrot.slane %v756_v29, %v9619_v28 }
 0x148   : > { %v3167_v10 = vadd.f32 %v2857_v50, %v1138_v58  ;;  %v2859_v31 = vadd.f32 %v2858_v27, %v9557_v39  ;;  %8016 = vmatprep.mubr.bf16.mxu1 %v4069_v26  ;;  %v9688_v35 = vpop.f32.mrf.mxu1  ;;  %v1146_v39 = vrot.slane %v742_v47, %v9613_v1  ;;  %v3431_v32 = vmax.f32 %v3305_v6, 0.0 }
 0x149   : > { %v2862_v54 = vpop.f32.mrf.mxu0  ;;  %3101 = vmatmul.mubr.bf16.gmra.mxu0 %v8423_v46 }
 0x14a   : > { %v3307_v13 = vadd.f32 %v9637_v42, %v3167_v10  ;;  %v9684_v12 = vadd.f32 %v2859_v31, %v1142_v41  ;;  %v2863_v36 = vadd.f32 %v2862_v54, %v9563_v63  ;;  %3110 = vmatprep.mubr.bf16.mxu0 %v12879_v45  ;;  %v9694_v50 = vpop.f32.mrf.mxu1  ;;  %v8425_v63 = vld [vmem:[%s9202_s19 + $0xd8] sm:$0xff]   ;;  %v758_v31 = vcombine.high %v742_v47, %v742_v47 }
 0x14b   : > { %v2864_v58 = vpop.f32.mrf.mxu0  ;;  %12893 = vst [vmem:[#allocation48_spill] sm:$0xff] %v9694_v50 }
 0x14c   : > { %v3432_v7 = vmax.f32 %v3307_v13, 0.0  ;;  %v2865_v46 = vadd.f32 %v2864_v58, %v9568_v62  ;;  %v3169_v27 = vadd.f32 %v2863_v36, %v1146_v39  ;;  %v9699_v54 = vpop.f32.mrf.mxu1 }
 0x14d   : > { %v2866_v26 = vpop.f32.mrf.mxu0 }
 0x14e   : > { %v4070_v10 = vpack.c.bf16 %v3432_v7, %v3431_v32  ;;  %v9697_v41 = vadd.f32 %v2865_v46, %v1150_v51  ;;  %v2867_v6 = vadd.f32 %v2866_v26, %v9578_v55  ;;  %v9705_v58 = vpop.f32.mrf.mxu1  ;;  %v3309_v36 = vadd.f32 %v9637_v42, %v3169_v27 }
 0x14f   : > { %v2868_v13 = vpop.f32.mrf.mxu0  ;;  %v1162_v7 = vrot.slane %v758_v31, %v9613_v1  ;;  %v760_v51 = vcombine.high %v756_v29, %v756_v29 }
 0x150   : > { %v2869_v62 = vadd.f32 %v2868_v13, %v9585_v0  ;;  %8017 = vmatmul.mubr.bf16.vlgmr.msra.gmra.mxu1 %v4070_v10  ;;  %v3171_v39 = vadd.f32 %v2867_v6, %v1154_v38  ;;  %v9713_v46 = vpop.f32.mrf.mxu1  ;;  %v12895_v0 = vcombine.low %v9381_v57, %v9384_v59  ;;  %v1166_v10 = vrot.slane %v758_v31, %v9619_v28 }
 0x151   : > { %v2872_v32 = vpop.f32.mrf.mxu0  ;;  %3111 = vmatmul.mubr.bf16.gmra.mxu0 %v8425_v63  ;;  %v1170_v50 = vrot.slane %v760_v51, %v9613_v1 }
 0x152   : > { %v9708_v47 = vadd.f32 %v2869_v62, %v1158_v61  ;;  %v2873_v55 = vadd.f32 %v2872_v32, %v9589_v34  ;;  %3120 = vmatprep.mubr.bf16.mxu0 %v12879_v45  ;;  %v769_v27 = vrot.slane %v12895_v0, %v9396_v4  ;;  %v3311_v26 = vadd.f32 %v9637_v42, %v3171_v39  ;;  %v9722_v6 = vpop.f32.mrf.mxu1  ;;  %v8426_v62 = vld [vmem:[%s9202_s19 + $0xe0] sm:$0xff]  }
 0x153   : > { %v2874_v63 = vpop.f32.mrf.mxu0  ;;  %12896 = vst [vmem:[#allocation50_spill] sm:$0xff] %v9722_v6  ;;  %v3433_v34 = vmax.f32 %v3309_v36, 0.0  ;;  %v1174_v36 = vrot.slane %v760_v51, %v9619_v28 }
 0x154   : > { %12894 = vst [vmem:[#allocation49_spill] sm:$0xff] %v9708_v47  ;;  %v3173_v61 = vadd.f32 %v2873_v55, %v1162_v7  ;;  %v2875_v38 = vadd.f32 %v2874_v63, %v9597_v18  ;;  %v3434_v29 = vmax.f32 %v3311_v26, 0.0  ;;  %v9729_v47 = vpop.f32.mrf.mxu1  ;;  %v777_v39 = vcombine.high %v769_v27, %v769_v27 }
 0x155   : > { %v2876_v13 = vpop.f32.mrf.mxu0  ;;  %v785_v7 = vrot.slane %v769_v27, %v9396_v4 }
 0x156   : > { %v9725_v32 = vadd.f32 %v2875_v38, %v1166_v10  ;;  %v2877_v0 = vadd.f32 %v2876_v13, %v9601_v14  ;;  %v4071_v55 = vpack.c.bf16 %v3434_v29, %v3433_v34  ;;  %v3313_v18 = vadd.f32 %v9637_v42, %v3173_v61  ;;  %v9735_v10 = vpop.f32.mrf.mxu1 }
 0x157   : > { %v2878_v31 = vpop.f32.mrf.mxu0 }
 0x158   : > { %v3175_v63 = vadd.f32 %v2877_v0, %v1170_v50  ;;  %v2879_v26 = vadd.f32 %v2878_v31, %v9610_v20  ;;  %8020 = vmatprep.mubr.bf16.mxu1 %v4071_v55  ;;  %v9742_v61 = vpop.f32.mrf.mxu1  ;;  %v1178_v50 = vrot.slane %v785_v7, %v9613_v1  ;;  %v9746_v20 = vrot.slane %v777_v39, %v9396_v4  ;;  %v8432_v39 = vld [vmem:[%s12768_s9 + $0x28] sm:$0xff]  }
 0x159   : > { %v2882_v38 = vpop.f32.mrf.mxu0  ;;  %3121 = vmatmul.mubr.bf16.gmra.mxu0 %v8426_v62  ;;  %v3435_v34 = vmax.f32 %v3313_v18, 0.0  ;;  %v1182_v62 = vrot.slane %v785_v7, %v9619_v28  ;;  %8084 = vmatprep.subr.bf16.mxu0 %v8432_v39 }
 0x15a   : > { %v3315_v14 = vadd.f32 %v9637_v42, %v3175_v63  ;;  %v9738_v13 = vadd.f32 %v2879_v26, %v1174_v36  ;;  %v2883_v27 = vadd.f32 %v2882_v38, %v9401_v11  ;;  %3130 = vmatprep.mubr.bf16.mxu0 %v12879_v45  ;;  %v9750_v31 = vpop.f32.mrf.mxu1  ;;  %v8427_v63 = vld [vmem:[%s9202_s19 + $0xe8] sm:$0xff]   ;;  %v807_v38 = vcombine.high %v785_v7, %v785_v7 }
 0x15b   : > { %v2884_v51 = vpop.f32.mrf.mxu0  ;;  %12897 = vst [vmem:[#allocation51_spill] sm:$0xff] %v9750_v31  ;;  %v1186_v18 = vrot.slane %v9746_v20, %v9613_v1  ;;  %8085 = vmatpush3.bf16.msra.mxu0 %v8432_v39 }
 0x15c   : > { %v3436_v29 = vmax.f32 %v3315_v14, 0.0  ;;  %v2885_v0 = vadd.f32 %v2884_v51, %v9410_v17  ;;  %v3177_v55 = vadd.f32 %v2883_v27, %v1178_v50  ;;  %v9755_v6 = vpop.f32.mrf.mxu1 }
 0x15d   : > { %v2886_v11 = vpop.f32.mrf.mxu0 }
 0x15e   : > { %v4072_v36 = vpack.c.bf16 %v3436_v29, %v3435_v34  ;;  %v9753_v26 = vadd.f32 %v2885_v0, %v1182_v62  ;;  %v2887_v17 = vadd.f32 %v2886_v11, %v9419_v23  ;;  %v9765_v27 = vpop.f32.mrf.mxu1  ;;  %v3317_v50 = vadd.f32 %v9637_v42, %v3177_v55 }
 0x15f   : > { %v9763_v14 = vpop.f32.mrf.mxu0  ;;  %v1194_v34 = vrot.slane %v807_v38, %v9613_v1  ;;  %v9772_v62 = vcombine.high %v9746_v20, %v9746_v20  ;;  %v12900_v0 = vcombine.high %v9381_v57, %v9384_v59 }
 0x160   : > { %12898 = vst [vmem:[#allocation52_spill] sm:$0xff] %v9753_v26  ;;  %12899 = vst [vmem:[#allocation53_spill] sm:$0xff] %v9763_v14  ;;  %8021 = vmatmul.mubr.bf16.gmra.mxu1 %v4072_v36  ;;  %v3179_v7 = vadd.f32 %v2887_v17, %v1186_v18  ;;  %v9775_v23 = vpop.f32.mrf.mxu1  ;;  %v8428_v14 = vld [vmem:[%s9202_s19 + $0xf0] sm:$0xff]  }
 0x161   : > { %v2892_v51 = vpop.f32.mrf.mxu0  ;;  %3131 = vmatmul.mubr.bf16.gmra.mxu0 %v8427_v63  ;;  %v776_v55 = vrot.slane %v12900_v0, %v9396_v4  ;;  %v1202_v57 = vrot.slane %v9772_v62, %v9613_v1 }
 0x162   : > { %v2893_v29 = vadd.f32 %v2892_v51, %v9441_v37  ;;  %3140 = vmatprep.mubr.bf16.mxu0 %v12879_v45  ;;  %v3319_v11 = vadd.f32 %v9637_v42, %v3179_v7  ;;  %v1198_v37 = vrot.slane %v807_v38, %v9619_v28  ;;  %v9784_v17 = vpop.f32.mrf.mxu1  ;;  %v3437_v51 = vmax.f32 %v3317_v50, 0.0 }
 0x163   : > { %v2894_v63 = vpop.f32.mrf.mxu0  ;;  %12901 = vst [vmem:[#allocation54_spill] sm:$0xff] %v9784_v17  ;;  %v792_v38 = vrot.slane %v776_v55, %v9396_v4 }
 0x164   : > { %v3181_v36 = vadd.f32 %v2893_v29, %v1194_v34  ;;  %v2895_v18 = vadd.f32 %v2894_v63, %v9450_v43  ;;  %v3438_v31 = vmax.f32 %v3319_v11, 0.0  ;;  %v9792_v7 = vpop.f32.mrf.mxu1  ;;  %v778_v34 = vcombine.high %v776_v55, %v776_v55 }
 0x165   : > { %v2896_v26 = vpop.f32.mrf.mxu0  ;;  %v1210_v55 = vrot.slane %v792_v38, %v9613_v1  ;;  %v808_v17 = vcombine.high %v792_v38, %v792_v38 }
 0x166   : > { %v9787_v39 = vadd.f32 %v2895_v18, %v1198_v37  ;;  %v2897_v59 = vadd.f32 %v2896_v26, %v9459_v49  ;;  %v4073_v43 = vpack.c.bf16 %v3438_v31, %v3437_v51  ;;  %v3321_v50 = vadd.f32 %v9637_v42, %v3181_v36  ;;  %v9798_v11 = vpop.f32.mrf.mxu1 }
 0x167   : > { %v9795_v29 = vpop.f32.mrf.mxu0  ;;  %v9807_v36 = vrot.slane %v778_v34, %v9396_v4 }
 0x168   : > { %12902 = vst [vmem:[#allocation55_spill] sm:$0xff] %v9787_v39  ;;  %12903 = vst [vmem:[#allocation56_spill] sm:$0xff] %v9795_v29  ;;  %v3183_v0 = vadd.f32 %v2897_v59, %v1202_v57  ;;  %8024 = vmatprep.mubr.bf16.mxu1 %v4073_v43  ;;  %v9803_v26 = vpop.f32.mrf.mxu1  ;;  %v3439_v18 = vmax.f32 %v3321_v50, 0.0  ;;  %v1214_v57 = vrot.slane %v792_v38, %v9619_v28  ;;  %v12927_v29 = vld [vmem:[#allocation46_spill] sm:$0xff] }
 0x169   : > { %v2902_v63 = vpop.f32.mrf.mxu0  ;;  %3141 = vmatmul.mubr.bf16.gmra.mxu0 %v8428_v14  ;;  %v1218_v4 = vrot.slane %v9807_v36, %v9613_v1 }
 0x16a   : > { %v3323_v37 = vadd.f32 %v9637_v42, %v3183_v0  ;;  %v2903_v49 = vadd.f32 %v2902_v63, %v9481_v9  ;;  %3150 = vmatprep.mubr.bf16.mxu0 %v12879_v45  ;;  %v9811_v59 = vpop.f32.mrf.mxu1  ;;  %v8429_v0 = vld [vmem:[%s9202_s19 + $0xf8] sm:$0xff]   ;;  %s12679_s19 = scalar_lea.vmem [#allocation2], %s7688_s27 }
 0x16b   : > { %v2904_v31 = vpop.f32.mrf.mxu0  ;;  %12904 = vst [vmem:[#allocation57_spill] sm:$0xff] %v9811_v59  ;;  %s7598_s22 = sshll.u32 %s12679_s19, 4  ;;  %s12713_s22 = int_to_ptr.vmem [resolvable:$true] %s7598_s22 }
 0x16c   : > { %v3440_v51 = vmax.f32 %v3323_v37, 0.0  ;;  %v2905_v14 = vadd.f32 %v2904_v31, %v9490_v19  ;;  %v3185_v43 = vadd.f32 %v2903_v49, %v1210_v55  ;;  %v9816_v39 = vpop.f32.mrf.mxu1  ;;  %v1226_v31 = vrot.slane %v808_v17, %v9613_v1  ;;  %s8890_s17 = scalar_lea.vmem %s12713_s22, 1024  ;;  %p8897_p1 = scmp.lt.s32.totalorder %s12713_s22, %s8895_s25 }
 0x16d   : > { %v2906_v9 = vpop.f32.mrf.mxu0  ;;  %p8891_p12 = scmp.ne.s32.totalorder %s12713_s22, %s8890_s17  ;;  %p8898_p2 = scmp.lt.s32.totalorder %s8896_s20, %s8890_s17 }
 0x16e   : > { %v4074_v63 = vpack.c.bf16 %v3440_v51, %v3439_v18  ;;  %v9814_v45 = vadd.f32 %v2905_v14, %v1214_v57  ;;  %v2907_v34 = vadd.f32 %v2906_v9, %v9501_v33  ;;  %v9823_v19 = vpop.f32.mrf.mxu1  ;;  %v3325_v37 = vadd.f32 %v9637_v42, %v3185_v43 }
 0x16f   : > { %v9821_v50 = vpop.f32.mrf.mxu0  ;;  %v9830_v18 = vcombine.high %v9807_v36, %v9807_v36  ;;  %v1230_v9 = vrot.slane %v808_v17, %v9619_v28  ;;  %p8892_p13 = pnand %p8891_p12, %p9070_p5  ;;  %p8899_p3 = por %p8898_p2, %p8897_p1 }
 0x170   : > { %12905 = vst [vmem:[#allocation58_spill] sm:$0xff] %v9814_v45  ;;  %12906 = vst [vmem:[#allocation59_spill] sm:$0xff] %v9821_v50  ;;  %8025 = vmatmul.mubr.bf16.gmra.mxu1 %v4074_v63  ;;  %v3187_v49 = vadd.f32 %v2907_v34, %v1218_v4  ;;  %v9832_v51 = vpop.f32.mrf.mxu1 }
 0x171   : > { %v2912_v55 = vpop.f32.mrf.mxu0  ;;  %3151 = vmatmul.mubr.bf16.gmra.mxu0 %v8429_v0  ;;  %12907 = vst [vmem:[#allocation60_spill] sm:$0xff] %v9830_v18  ;;  %v3441_v0 = vmax.f32 %v3325_v37, 0.0  ;;  %p8893_p0 = pneg %p8892_p13 }
 0x172   : > { %v2913_v38 = vadd.f32 %v2912_v55, %v9524_v56  ;;  %v3327_v33 = vadd.f32 %v9637_v42, %v3187_v49  ;;  %v9837_v63 = vpop.f32.mrf.mxu1  ;;  %v1234_v55 = vrot.slane %v9830_v18, %v9613_v1 }
 0x173   : > { %v2914_v57 = vpop.f32.mrf.mxu0  ;;  %12908 = vst [vmem:[#allocation61_spill] sm:$0xff] %v9837_v63  ;;  %p8900_p4 = pnand %p8899_p3, %p8893_p0 }
 0x174   : > { %v3189_v14 = vadd.f32 %v2913_v38, %v1226_v31  ;;  %v2915_v43 = vadd.f32 %v2914_v57, %v9533_v5  ;;  %v3442_v4 = vmax.f32 %v3327_v33, 0.0  ;;  %v9844_v45 = vpop.f32.mrf.mxu1 }
 0x175   : > { %v2916_v34 = vpop.f32.mrf.mxu0 }
 0x176   : > { %v9839_v56 = vadd.f32 %v2915_v43, %v1230_v9  ;;  %v2917_v59 = vadd.f32 %v2916_v34, %v9541_v8  ;;  %v4075_v31 = vpack.c.bf16 %v3442_v4, %v3441_v0  ;;  %v3329_v17 = vadd.f32 %v9637_v42, %v3189_v14  ;;  %v9849_v38 = vpop.f32.mrf.mxu1 }
 0x177   : > { %v9846_v49 = vpop.f32.mrf.mxu0  ;;  %v1242_v8 = vrot.slane %v9405_v15, %v9613_v1  ;;  %v1246_v14 = vrot.slane %v9405_v15, %v9619_v28 }
 0x178   : > { %12909 = vst [vmem:[#allocation62_spill] sm:$0xff] %v9839_v56  ;;  %12910 = vst [vmem:[#allocation63_spill] sm:$0xff] %v9846_v49  ;;  %v3191_v5 = vadd.f32 %v2917_v59, %v1234_v55  ;;  %8028 = vmatprep.mubr.bf16.mxu1 %v4075_v31  ;;  %v9853_v9 = vpop.f32.mrf.mxu1  ;;  %v3443_v34 = vmax.f32 %v3329_v17, 0.0  ;;  %v8433_v17 = vld [vmem:[%s12768_s9 + $0x20] sm:$0xff]  }
 0x179   : > { %v2922_v37 = vpop.f32.mrf.mxu0  ;;  %8086 = vmatprep.subr.bf16.mxu0 %v8433_v17 }
 0x17a   : > { %v3331_v33 = vadd.f32 %v9637_v42, %v3191_v5  ;;  %v2923_v57 = vadd.f32 %v2922_v37, %v9553_v24  ;;  %v9860_v0 = vpop.f32.mrf.mxu1  ;;  %v857_v24 = vcombine.high %v9405_v15, %v9405_v15  ;;  %8087 = vmatpush3.bf16.msra.mxu0 %v8433_v17 }
 0x17b   : > { %v2924_v43 = vpop.f32.mrf.mxu0  ;;  %12911 = vst [vmem:[#allocation64_spill] sm:$0xff] %v9860_v0 }
 0x17c   : > { %v3444_v63 = vmax.f32 %v3331_v33, 0.0  ;;  %v2925_v59 = vadd.f32 %v2924_v43, %v9561_v25  ;;  %v3193_v4 = vadd.f32 %v2923_v57, %v1242_v8  ;;  %v9866_v37 = vpop.f32.mrf.mxu1  ;;  %v1250_v33 = vrot.slane %v9413_v21, %v9613_v1 }
 0x17d   : > { %v2926_v55 = vpop.f32.mrf.mxu0 }
 0x17e   : > { %v4076_v31 = vpack.c.bf16 %v3444_v63, %v3443_v34  ;;  %v9862_v5 = vadd.f32 %v2925_v59, %v1246_v14  ;;  %v2927_v25 = vadd.f32 %v2926_v55, %v9566_v60  ;;  %v9876_v63 = vpop.f32.mrf.mxu1  ;;  %v3333_v57 = vadd.f32 %v9637_v42, %v3193_v4 }
 0x17f   : > { %v9874_v43 = vpop.f32.mrf.mxu0  ;;  %v1258_v34 = vrot.slane %v857_v24, %v9613_v1  ;;  %v9883_v59 = vcombine.high %v9413_v21, %v9413_v21 }
 0x180   : > { %12912 = vst [vmem:[#allocation65_spill] sm:$0xff] %v9862_v5  ;;  %12913 = vst [vmem:[#allocation66_spill] sm:$0xff] %v9874_v43  ;;  %8029 = vmatmul.mubr.bf16.gmra.mxu1 %v4076_v31  ;;  %v3195_v15 = vadd.f32 %v2927_v25, %v1250_v33  ;;  %v9885_v60 = vpop.f32.mrf.mxu1  ;;  %v1262_v5 = vrot.slane %v857_v24, %v9619_v28  ;;  %v3445_v17 = vmax.f32 %v3333_v57, 0.0 }
 0x181   : > { %v2932_v8 = vpop.f32.mrf.mxu0  ;;  %12914 = vst [vmem:[#allocation67_spill] sm:$0xff] %v9883_v59 }
 0x182   : > { %v2933_v14 = vadd.f32 %v2932_v8, %v9583_v2  ;;  %v3335_v55 = vadd.f32 %v9637_v42, %v3195_v15  ;;  %v9890_v33 = vpop.f32.mrf.mxu1  ;;  %v1266_v8 = vrot.slane %v9883_v59, %v9613_v1 }
 0x183   : > { %v2934_v31 = vpop.f32.mrf.mxu0  ;;  %12915 = vst [vmem:[#allocation68_spill] sm:$0xff] %v9890_v33 }
 0x184   : > { %v3197_v0 = vadd.f32 %v2933_v14, %v1258_v34  ;;  %v2935_v4 = vadd.f32 %v2934_v31, %v9587_v30  ;;  %v3446_v25 = vmax.f32 %v3335_v55, 0.0  ;;  %v9897_v50 = vpop.f32.mrf.mxu1 }
 0x185   : > { %v2936_v43 = vpop.f32.mrf.mxu0 }
 0x186   : > { %v9892_v2 = vadd.f32 %v2935_v4, %v1262_v5  ;;  %v2937_v56 = vadd.f32 %v2936_v43, %v9593_v44  ;;  %v4077_v34 = vpack.c.bf16 %v3446_v25, %v3445_v17  ;;  %v3337_v24 = vadd.f32 %v9637_v42, %v3197_v0  ;;  %v9902_v14 = vpop.f32.mrf.mxu1 }
 0x187   : > { %v9899_v15 = vpop.f32.mrf.mxu0  ;;  %v1274_v44 = vrot.slane %v9408_v16, %v9613_v1  ;;  %v1278_v0 = vrot.slane %v9408_v16, %v9619_v28 }
 0x188   : > { %12916 = vst [vmem:[#allocation69_spill] sm:$0xff] %v9892_v2  ;;  %12917 = vst [vmem:[#allocation70_spill] sm:$0xff] %v9899_v15  ;;  %v3199_v30 = vadd.f32 %v2937_v56, %v1266_v8  ;;  %8032 = vmatprep.mubr.bf16.mxu1 %v4077_v34  ;;  %v9906_v31 = vpop.f32.mrf.mxu1  ;;  %v3447_v4 = vmax.f32 %v3337_v24, 0.0  ;;  %v12920_v24 = vld [vmem:[#allocation12_spill] sm:$0xff]  ;;  %v12921_v2 = vld [vmem:[#allocation41_spill] sm:$0xff] }
 0x189   : > { %v2942_v57 = vpop.f32.mrf.mxu0 }
 0x18a   : > { %v3339_v5 = vadd.f32 %v9637_v42, %v3199_v30  ;;  %v2943_v55 = vadd.f32 %v2942_v57, %v9604_v53  ;;  %v9913_v17 = vpop.f32.mrf.mxu1  ;;  %v858_v53 = vcombine.high %v9408_v16, %v9408_v16 }
 0x18b   : > { %v2944_v43 = vpop.f32.mrf.mxu0  ;;  %12918 = vst [vmem:[#allocation71_spill] sm:$0xff] %v9913_v17  ;;  %v12924_v17 = vld [vmem:[#allocation44_spill] sm:$0xff] }
 0x18c   : > { %v3448_v33 = vmax.f32 %v3339_v5, 0.0  ;;  %v2945_v56 = vadd.f32 %v2944_v43, %v9621_v48  ;;  %v3201_v25 = vadd.f32 %v2943_v55, %v1274_v44  ;;  %v9919_v57 = vpop.f32.mrf.mxu1  ;;  %v1282_v5 = vrot.slane %v12920_v24, %v9613_v1 }
 0x18d   : > { %v2946_v8 = vpop.f32.mrf.mxu0  ;;  %v1290_v43 = vrot.slane %v858_v53, %v9613_v1 }
 0x18e   : > { %v4078_v34 = vpack.c.bf16 %v3448_v33, %v3447_v4  ;;  %v9915_v30 = vadd.f32 %v2945_v56, %v1278_v0  ;;  %v2947_v15 = vadd.f32 %v2946_v8, %v12921_v2  ;;  %v9926_v48 = vpop.f32.mrf.mxu1  ;;  %v3341_v55 = vadd.f32 %v9637_v42, %v3201_v25 }
 0x18f   : > { %v9924_v49 = vpop.f32.mrf.mxu0  ;;  %v9933_v4 = vcombine.high %v12920_v24, %v12920_v24 }
 0x190   : > { %12919 = vst [vmem:[#allocation72_spill] sm:$0xff] %v9915_v30  ;;  %12922 = vst [vmem:[#allocation41_spill] sm:$0xff] %v9924_v49  ;;  %8033 = vmatmul.mubr.bf16.gmra.mxu1 %v4078_v34  ;;  %v3203_v33 = vadd.f32 %v2947_v15, %v1282_v5  ;;  %v9935_v0 = vpop.f32.mrf.mxu1  ;;  %v1294_v34 = vrot.slane %v858_v53, %v9619_v28  ;;  %v3449_v5 = vmax.f32 %v3341_v55, 0.0 }
 0x191   : > { %v2952_v44 = vpop.f32.mrf.mxu0  ;;  %12923 = vst [vmem:[#allocation73_spill] sm:$0xff] %v9933_v4 }
 0x192   : > { %v2953_v16 = vadd.f32 %v2952_v44, %v9644_v22  ;;  %v3343_v2 = vadd.f32 %v9637_v42, %v3203_v33  ;;  %v9940_v15 = vpop.f32.mrf.mxu1  ;;  %v8434_v22 = vld [vmem:[%s12768_s9 + $0x18] sm:$0xff]   ;;  %v1298_v33 = vrot.slane %v9933_v4, %v9613_v1 }
 0x193   : > { %v2954_v56 = vpop.f32.mrf.mxu0  ;;  %12925 = vst [vmem:[#allocation44_spill] sm:$0xff] %v9940_v15  ;;  %8088 = vmatprep.subr.bf16.mxu0 %v8434_v22 }
 0x194   : > { %v3205_v8 = vadd.f32 %v2953_v16, %v1290_v43  ;;  %v2955_v25 = vadd.f32 %v2954_v56, %v12924_v17  ;;  %v3450_v30 = vmax.f32 %v3343_v2, 0.0  ;;  %v9950_v16 = vpop.f32.mrf.mxu1  ;;  %8089 = vmatpush3.bf16.msra.mxu0 %v8434_v22 }
 0x195   : > { %v2956_v49 = vpop.f32.mrf.mxu0 }
 0x196   : > { %v9945_v44 = vadd.f32 %v2955_v25, %v1294_v34  ;;  %v2957_v43 = vadd.f32 %v2956_v49, %v12927_v29  ;;  %v4079_v17 = vpack.c.bf16 %v3450_v30, %v3449_v5  ;;  %v3345_v55 = vadd.f32 %v9637_v42, %v3205_v8  ;;  %v9955_v56 = vpop.f32.mrf.mxu1  ;;  %v8435_v34 = vld [vmem:[%s12768_s9 + $0x10] sm:$0xff]   ;;  %v12929_v30 = vld [vmem:[#allocation14_spill] sm:$0xff] }
 0x197   : > { %v9952_v53 = vpop.f32.mrf.mxu0  ;;  %8090 = vmatprep.subr.bf16.mxu0 %v8435_v34  ;;  %v1306_v8 = vrot.slane %v12929_v30, %v9613_v1  ;;  %v1310_v22 = vrot.slane %v12929_v30, %v9619_v28  ;;  %v907_v4 = vcombine.high %v12929_v30, %v12929_v30 }
 0x198   : > { %12926 = vst [vmem:[#allocation74_spill] sm:$0xff] %v9945_v44  ;;  %12928 = vst [vmem:[#allocation46_spill] sm:$0xff] %v9952_v53  ;;  %v3207_v2 = vadd.f32 %v2957_v43, %v1298_v33  ;;  %8036 = vmatprep.mubr.bf16.mxu1 %v4079_v17  ;;  %v9962_v15 = vpop.f32.mrf.mxu1  ;;  %v3451_v33 = vmax.f32 %v3345_v55, 0.0  ;;  %8091 = vmatpush3.bf16.msra.mxu0 %v8435_v34  ;;  %v8436_v55 = vld [vmem:[%s12768_s9 + $0x8] sm:$0xff]  }
 0x199   : > { %v2962_v25 = vpop.f32.mrf.mxu0  ;;  %8092 = vmatprep.subr.bf16.mxu0 %v8436_v55 }
 0x19a   : > { %v3347_v29 = vadd.f32 %v9637_v42, %v3207_v2  ;;  %v2963_v49 = vadd.f32 %v2962_v25, %v9675_v52  ;;  %v9969_v17 = vpop.f32.mrf.mxu1 }
 0x19b   : > { %v2964_v5 = vpop.f32.mrf.mxu0  ;;  %12930 = vst [vmem:[#allocation14_spill] sm:$0xff] %v9969_v17 }
 0x19c   : > { %v3452_v43 = vmax.f32 %v3347_v29, 0.0  ;;  %v2965_v44 = vadd.f32 %v2964_v5, %v9681_v3  ;;  %v3209_v2 = vadd.f32 %v2963_v49, %v1306_v8  ;;  %v9975_v24 = vpop.f32.mrf.mxu1  ;;  %v12932_v29 = vld [vmem:[#allocation30_spill] sm:$0xff]  ;;  %8093 = vmatpush3.bf16.msra.mxu0 %v8436_v55 }
 0x19d   : > { %v2966_v53 = vpop.f32.mrf.mxu0  ;;  %v1314_v3 = vrot.slane %v12932_v29, %v9613_v1 }
 0x19e   : > { %v4080_v52 = vpack.c.bf16 %v3452_v43, %v3451_v33  ;;  %v9971_v25 = vadd.f32 %v2965_v44, %v1310_v22  ;;  %v2967_v5 = vadd.f32 %v2966_v53, %v9688_v35  ;;  %v9985_v49 = vpop.f32.mrf.mxu1  ;;  %v8437_v44 = vld [vmem:[%s12768_s9] sm:$0xff]   ;;  %v3349_v30 = vadd.f32 %v9637_v42, %v3209_v2 }
 0x19f   : > { %v9983_v34 = vpop.f32.mrf.mxu0  ;;  %v1322_v43 = vrot.slane %v907_v4, %v9613_v1  ;;  %v9995_v35 = vcombine.high %v12932_v29, %v12932_v29  ;;  %8094 = vmatprep.subr.bf16.mxu0 %v8437_v44  ;;  %v1326_v2 = vrot.slane %v907_v4, %v9619_v28 }
 0x1a0   : > { %12931 = vst [vmem:[#allocation75_spill] sm:$0xff] %v9971_v25  ;;  %12933 = vst [vmem:[#allocation76_spill] sm:$0xff] %v9983_v34  ;;  %8037 = vmatmul.mubr.bf16.gmra.mxu1 %v4080_v52  ;;  %v3211_v8 = vadd.f32 %v2967_v5, %v1314_v3  ;;  %v9997_v53 = vpop.f32.mrf.mxu1  ;;  %v3453_v5 = vmax.f32 %v3349_v30, 0.0  ;;  %8095 = vmatpush3.bf16.msra.mxu0 %v8437_v44 }
 0x1a1   : > { %v2972_v33 = vpop.f32.mrf.mxu0  ;;  %12934 = vst [vmem:[#allocation77_spill] sm:$0xff] %v9995_v35  ;;  %v1330_v29 = vrot.slane %v9995_v35, %v9613_v1 }
 0x1a2   : > { %v2973_v22 = vadd.f32 %v2972_v33, %v9699_v54  ;;  %v3351_v52 = vadd.f32 %v9637_v42, %v3211_v8  ;;  %v10002_v55 = vpop.f32.mrf.mxu1 }
 0x1a3   : > { %v2974_v17 = vpop.f32.mrf.mxu0  ;;  %12935 = vst [vmem:[#allocation78_spill] sm:$0xff] %v10002_v55 }
 0x1a4   : > { %v3213_v34 = vadd.f32 %v2973_v22, %v1322_v43  ;;  %v2975_v3 = vadd.f32 %v2974_v17, %v9705_v58  ;;  %v3454_v25 = vmax.f32 %v3351_v52, 0.0  ;;  %v10009_v8 = vpop.f32.mrf.mxu1 }
 0x1a5   : > { %v2976_v54 = vpop.f32.mrf.mxu0 }
 0x1a6   : > { %v10004_v33 = vadd.f32 %v2975_v3, %v1326_v2  ;;  %v2977_v59 = vadd.f32 %v2976_v54, %v9713_v46  ;;  %v4081_v4 = vpack.c.bf16 %v3454_v25, %v3453_v5  ;;  %v3353_v58 = vadd.f32 %v9637_v42, %v3213_v34  ;;  %v10014_v22 = vpop.f32.mrf.mxu1  ;;  %v12938_v46 = vld [vmem:[#allocation15_spill] sm:$0xff] }
 0x1a7   : > { %v10011_v43 = vpop.f32.mrf.mxu0  ;;  %v1338_v3 = vrot.slane %v12938_v46, %v9613_v1  ;;  %v1342_v25 = vrot.slane %v12938_v46, %v9619_v28 }
 0x1a8   : > { %12936 = vst [vmem:[#allocation79_spill] sm:$0xff] %v10004_v33  ;;  %12937 = vst [vmem:[#allocation80_spill] sm:$0xff] %v10011_v43  ;;  %v3215_v17 = vadd.f32 %v2977_v59, %v1330_v29  ;;  %8040 = vmatprep.mubr.bf16.mxu1 %v4081_v4  ;;  %v10018_v2 = vpop.f32.mrf.mxu1  ;;  %v3455_v55 = vmax.f32 %v3353_v58, 0.0  ;;  %v12940_v58 = vld [vmem:[#allocation32_spill] sm:$0xff] }
 0x1a9   : > { %v2982_v30 = vpop.f32.mrf.mxu0 }
 0x1aa   : > { %v3355_v44 = vadd.f32 %v9637_v42, %v3215_v17  ;;  %v2983_v52 = vadd.f32 %v2982_v30, %v9729_v47  ;;  %v10025_v29 = vpop.f32.mrf.mxu1  ;;  %v908_v47 = vcombine.high %v12938_v46, %v12938_v46 }
 0x1ab   : > { %v2984_v54 = vpop.f32.mrf.mxu0 }
 0x1ac   : > { %v3456_v43 = vmax.f32 %v3355_v44, 0.0  ;;  %v2985_v59 = vadd.f32 %v2984_v54, %v9735_v10  ;;  %v3217_v34 = vadd.f32 %v2983_v52, %v1338_v3  ;;  %v10031_v30 = vpop.f32.mrf.mxu1  ;;  %v1346_v44 = vrot.slane %v12940_v58, %v9613_v1 }
 0x1ad   : > { %v2986_v5 = vpop.f32.mrf.mxu0  ;;  %v1354_v3 = vrot.slane %v908_v47, %v9613_v1  ;;  %v10045_v54 = vcombine.high %v12940_v58, %v12940_v58 }
 0x1ae   : > { %v4082_v4 = vpack.c.bf16 %v3456_v43, %v3455_v55  ;;  %v10027_v17 = vadd.f32 %v2985_v59, %v1342_v25  ;;  %v2987_v33 = vadd.f32 %v2986_v5, %v9742_v61  ;;  %v10038_v10 = vpop.f32.mrf.mxu1  ;;  %v3357_v52 = vadd.f32 %v9637_v42, %v3217_v34 }
 0x1af   : > { %v10036_v35 = vpop.f32.mrf.mxu0  ;;  %12942 = vst [vmem:[#allocation82_spill] sm:$0xff] %v10045_v54 }
 0x1b0   : > { %12939 = vst [vmem:[#allocation15_spill] sm:$0xff] %v10027_v17  ;;  %12941 = vst [vmem:[#allocation81_spill] sm:$0xff] %v10036_v35  ;;  %8041 = vmatmul.mubr.bf16.gmra.mxu1 %v4082_v4  ;;  %v3219_v55 = vadd.f32 %v2987_v33, %v1346_v44  ;;  %v10047_v25 = vpop.f32.mrf.mxu1  ;;  %v1358_v4 = vrot.slane %v908_v47, %v9619_v28  ;;  %v3457_v44 = vmax.f32 %v3357_v52, 0.0 }
 0x1b1   : > { %v2992_v43 = vpop.f32.mrf.mxu0 }
 0x1b2   : > { %v2993_v46 = vadd.f32 %v2992_v43, %v9755_v6  ;;  %v3359_v61 = vadd.f32 %v9637_v42, %v3219_v55  ;;  %v10052_v33 = vpop.f32.mrf.mxu1  ;;  %v1362_v43 = vrot.slane %v10045_v54, %v9613_v1 }
 0x1b3   : > { %v2994_v59 = vpop.f32.mrf.mxu0 }
 0x1b4   : > { %v3221_v5 = vadd.f32 %v2993_v46, %v1354_v3  ;;  %v2995_v34 = vadd.f32 %v2994_v59, %v9765_v27  ;;  %v3458_v17 = vmax.f32 %v3359_v61, 0.0  ;;  %v10059_v18 = vpop.f32.mrf.mxu1 }
 0x1b5   : > { %v2996_v35 = vpop.f32.mrf.mxu0 }
 0x1b6   : > { %v10054_v6 = vadd.f32 %v2995_v34, %v1358_v4  ;;  %v2997_v58 = vadd.f32 %v2996_v35, %v9775_v23  ;;  %v4083_v3 = vpack.c.bf16 %v3458_v17, %v3457_v44  ;;  %v3361_v47 = vadd.f32 %v9637_v42, %v3221_v5  ;;  %v10064_v46 = vpop.f32.mrf.mxu1  ;;  %v12945_v23 = vld [vmem:[#allocation16_spill] sm:$0xff] }
 0x1b7   : > { %v10061_v55 = vpop.f32.mrf.mxu0  ;;  %v1370_v35 = vrot.slane %v12945_v23, %v9613_v1  ;;  %v1374_v17 = vrot.slane %v12945_v23, %v9619_v28 }
 0x1b8   : > { %12943 = vst [vmem:[#allocation83_spill] sm:$0xff] %v10054_v6  ;;  %12944 = vst [vmem:[#allocation84_spill] sm:$0xff] %v10061_v55  ;;  %v3223_v27 = vadd.f32 %v2997_v58, %v1362_v43  ;;  %8044 = vmatprep.mubr.bf16.mxu1 %v4083_v3  ;;  %v10068_v4 = vpop.f32.mrf.mxu1  ;;  %v3459_v6 = vmax.f32 %v3361_v47, 0.0 }
 0x1b9   : > { %v3002_v52 = vpop.f32.mrf.mxu0 }
 0x1ba   : > { %v3363_v61 = vadd.f32 %v9637_v42, %v3223_v27  ;;  %v3003_v59 = vadd.f32 %v3002_v52, %v9792_v7  ;;  %v10075_v5 = vpop.f32.mrf.mxu1  ;;  %v957_v7 = vcombine.high %v12945_v23, %v12945_v23  ;;  %v12947_v52 = vld [vmem:[#allocation18_spill] sm:$0xff] }
 0x1bb   : > { %v3004_v34 = vpop.f32.mrf.mxu0  ;;  %v1378_v54 = vrot.slane %v12947_v52, %v9613_v1  ;;  %v10093_v23 = vcombine.high %v12947_v52, %v12947_v52 }
 0x1bc   : > { %v3460_v55 = vmax.f32 %v3363_v61, 0.0  ;;  %v3005_v58 = vadd.f32 %v3004_v34, %v9798_v11  ;;  %v3225_v44 = vadd.f32 %v3003_v59, %v1370_v35  ;;  %v10086_v21 = vpop.f32.mrf.mxu1 }
 0x1bd   : > { %v3006_v43 = vpop.f32.mrf.mxu0 }
 0x1be   : > { %v4084_v3 = vpack.c.bf16 %v3460_v55, %v3459_v6  ;;  %v10077_v27 = vadd.f32 %v3005_v58, %v1374_v17  ;;  %v3007_v47 = vadd.f32 %v3006_v43, %v9803_v26  ;;  %v3365_v11 = vadd.f32 %v9637_v42, %v3225_v44 }
 0x1bf   : > { %v10084_v61 = vpop.f32.mrf.mxu0  ;;  %v1386_v6 = vrot.slane %v957_v7, %v9613_v1  ;;  %v1390_v58 = vrot.slane %v957_v7, %v9619_v28 }
 0x1c0   : > { %12946 = vst [vmem:[#allocation16_spill] sm:$0xff] %v10077_v27  ;;  %12948 = vst [vmem:[#allocation18_spill] sm:$0xff] %v10084_v61  ;;  %8045 = vmatmul.mubr.bf16.gmra.mxu1 %v4084_v3  ;;  %v3227_v59 = vadd.f32 %v3007_v47, %v1378_v54  ;;  %v10098_v3 = vpop.f32.mrf.mxu1  ;;  %v3461_v54 = vmax.f32 %v3365_v11, 0.0 }
 0x1c1   : > { %v3012_v35 = vpop.f32.mrf.mxu0 }
 0x1c2   : > { %v3013_v55 = vadd.f32 %v3012_v35, %v9816_v39  ;;  %v3367_v34 = vadd.f32 %v9637_v42, %v3227_v59  ;;  %v1394_v39 = vrot.slane %v10093_v23, %v9613_v1 }
 0x1c3   : > { %v3014_v26 = vpop.f32.mrf.mxu0 }
 0x1c4   : > { %v3229_v17 = vadd.f32 %v3013_v55, %v1386_v6  ;;  %v3015_v43 = vadd.f32 %v3014_v26, %v9823_v19  ;;  %v3462_v44 = vmax.f32 %v3367_v34, 0.0  ;;  %v10108_v55 = vpop.f32.mrf.mxu1  ;;  %v12951_v26 = vld [vmem:[#allocation17_spill] sm:$0xff] }
 0x1c5   : > { %v3016_v47 = vpop.f32.mrf.mxu0 }
 0x1c6   : > { %v10100_v61 = vadd.f32 %v3015_v43, %v1390_v58  ;;  %v3017_v35 = vadd.f32 %v3016_v47, %v9832_v51  ;;  %v4085_v59 = vpack.c.bf16 %v3462_v44, %v3461_v54  ;;  %v3369_v6 = vadd.f32 %v9637_v42, %v3229_v17  ;;  %v10117_v44 = vpop.f32.mrf.mxu1 }
 0x1c7   : > { %v10105_v27 = vpop.f32.mrf.mxu0  ;;  %v1402_v58 = vrot.slane %v12951_v26, %v9613_v1  ;;  %v1406_v54 = vrot.slane %v12951_v26, %v9619_v28 }
 0x1c8   : > { %12949 = vst [vmem:[#allocation85_spill] sm:$0xff] %v10100_v61  ;;  %12950 = vst [vmem:[#allocation86_spill] sm:$0xff] %v10105_v27  ;;  %v3231_v7 = vadd.f32 %v3017_v35, %v1394_v39  ;;  %8048 = vmatprep.mubr.bf16.mxu1 %v4085_v59  ;;  %v3463_v61 = vmax.f32 %v3369_v6, 0.0  ;;  %v10128_v27 = vpop.f32.mrf.mxu1 }
 0x1c9   : > { %v3022_v19 = vpop.f32.mrf.mxu0 }
 0x1ca   : > { %v3371_v11 = vadd.f32 %v9637_v42, %v3231_v7  ;;  %v3023_v34 = vadd.f32 %v3022_v19, %v9844_v45  ;;  %v958_v45 = vcombine.high %v12951_v26, %v12951_v26  ;;  %v12953_v7 = vld [vmem:[#allocation19_spill] sm:$0xff] }
 0x1cb   : > { %v3024_v43 = vpop.f32.mrf.mxu0  ;;  %v1410_v19 = vrot.slane %v12953_v7, %v9613_v1  ;;  %v10135_v26 = vcombine.high %v12953_v7, %v12953_v7 }
 0x1cc   : > { %v3464_v51 = vmax.f32 %v3371_v11, 0.0  ;;  %v3025_v17 = vadd.f32 %v3024_v43, %v9849_v38  ;;  %v3233_v47 = vadd.f32 %v3023_v34, %v1402_v58 }
 0x1cd   : > { %v3026_v39 = vpop.f32.mrf.mxu0  ;;  %12955 = vst [vmem:[#allocation88_spill] sm:$0xff] %v10135_v26 }
 0x1ce   : > { %v4086_v35 = vpack.c.bf16 %v3464_v51, %v3463_v61  ;;  %v10119_v59 = vadd.f32 %v3025_v17, %v1406_v54  ;;  %v3027_v6 = vadd.f32 %v3026_v39, %v9853_v9  ;;  %v3373_v38 = vadd.f32 %v9637_v42, %v3233_v47 }
 0x1cf   : > { %v10126_v11 = vpop.f32.mrf.mxu0  ;;  %v1418_v61 = vrot.slane %v958_v45, %v9613_v1  ;;  %v1422_v17 = vrot.slane %v958_v45, %v9619_v28 }
 0x1d0   : > { %12952 = vst [vmem:[#allocation17_spill] sm:$0xff] %v10119_v59  ;;  %12954 = vst [vmem:[#allocation87_spill] sm:$0xff] %v10126_v11  ;;  %8049 = vmatmul.mubr.bf16.gmra.mxu1 %v4086_v35  ;;  %v3235_v34 = vadd.f32 %v3027_v6, %v1410_v19  ;;  %v10140_v35 = vpop.f32.mrf.mxu1  ;;  %v3465_v47 = vmax.f32 %v3373_v38, 0.0 }
 0x1d1   : > { %v3032_v58 = vpop.f32.mrf.mxu0 }
 0x1d2   : > { %v3033_v43 = vadd.f32 %v3032_v58, %v9866_v37  ;;  %v3375_v51 = vadd.f32 %v9637_v42, %v3235_v34  ;;  %v1426_v37 = vrot.slane %v10135_v26, %v9613_v1  ;;  %v13042_v26 = vld [vmem:[#allocation75_spill] sm:$0xff] }
 0x1d3   : > { %v3034_v9 = vpop.f32.mrf.mxu0 }
 0x1d4   : > { %v3237_v54 = vadd.f32 %v3033_v43, %v1418_v61  ;;  %v3035_v39 = vadd.f32 %v3034_v9, %v9876_v63  ;;  %v3466_v19 = vmax.f32 %v3375_v51, 0.0  ;;  %v10150_v43 = vpop.f32.mrf.mxu1  ;;  %v12958_v9 = vld [vmem:[#allocation21_spill] sm:$0xff] }
 0x1d5   : > { %v3036_v6 = vpop.f32.mrf.mxu0 }
 0x1d6   : > { %v10142_v59 = vadd.f32 %v3035_v39, %v1422_v17  ;;  %v3037_v58 = vadd.f32 %v3036_v6, %v9885_v60  ;;  %v4087_v34 = vpack.c.bf16 %v3466_v19, %v3465_v47  ;;  %v3377_v61 = vadd.f32 %v9637_v42, %v3237_v54  ;;  %v10159_v19 = vpop.f32.mrf.mxu1 }
 0x1d7   : > { %v10147_v11 = vpop.f32.mrf.mxu0  ;;  %v1434_v17 = vrot.slane %v12958_v9, %v9613_v1  ;;  %v1438_v47 = vrot.slane %v12958_v9, %v9619_v28 }
 0x1d8   : > { %12956 = vst [vmem:[#allocation89_spill] sm:$0xff] %v10142_v59  ;;  %12957 = vst [vmem:[#allocation90_spill] sm:$0xff] %v10147_v11  ;;  %v3239_v45 = vadd.f32 %v3037_v58, %v1426_v37  ;;  %8052 = vmatprep.mubr.bf16.mxu1 %v4087_v34  ;;  %v3467_v59 = vmax.f32 %v3377_v61, 0.0  ;;  %v10170_v11 = vpop.f32.mrf.mxu1 }
 0x1d9   : > { %v3042_v63 = vpop.f32.mrf.mxu0 }
 0x1da   : > { %v3379_v38 = vadd.f32 %v9637_v42, %v3239_v45  ;;  %v3043_v51 = vadd.f32 %v3042_v63, %v9897_v50  ;;  %v1007_v50 = vcombine.high %v12958_v9, %v12958_v9  ;;  %v12960_v45 = vld [vmem:[#allocation33_spill] sm:$0xff] }
 0x1db   : > { %v3044_v39 = vpop.f32.mrf.mxu0  ;;  %v1442_v63 = vrot.slane %v12960_v45, %v9613_v1  ;;  %v10177_v9 = vcombine.high %v12960_v45, %v12960_v45 }
 0x1dc   : > { %v3468_v60 = vmax.f32 %v3379_v38, 0.0  ;;  %v3045_v54 = vadd.f32 %v3044_v39, %v9902_v14  ;;  %v3241_v6 = vadd.f32 %v3043_v51, %v1434_v17 }
 0x1dd   : > { %v3046_v37 = vpop.f32.mrf.mxu0  ;;  %12962 = vst [vmem:[#allocation92_spill] sm:$0xff] %v10177_v9 }
 0x1de   : > { %v4088_v58 = vpack.c.bf16 %v3468_v60, %v3467_v59  ;;  %v10161_v34 = vadd.f32 %v3045_v54, %v1438_v47  ;;  %v3047_v61 = vadd.f32 %v3046_v37, %v9906_v31  ;;  %v3381_v14 = vadd.f32 %v9637_v42, %v3241_v6 }
 0x1df   : > { %v10168_v38 = vpop.f32.mrf.mxu0  ;;  %v1450_v59 = vrot.slane %v1007_v50, %v9613_v1  ;;  %v1454_v54 = vrot.slane %v1007_v50, %v9619_v28 }
 0x1e0   : > { %12959 = vst [vmem:[#allocation21_spill] sm:$0xff] %v10161_v34  ;;  %12961 = vst [vmem:[#allocation91_spill] sm:$0xff] %v10168_v38  ;;  %8053 = vmatmul.mubr.bf16.gmra.mxu1 %v4088_v58  ;;  %v3243_v51 = vadd.f32 %v3047_v61, %v1442_v63  ;;  %v10182_v58 = vpop.f32.mrf.mxu1  ;;  %v3469_v6 = vmax.f32 %v3381_v14, 0.0 }
 0x1e1   : > { %v3052_v17 = vpop.f32.mrf.mxu0 }
 0x1e2   : > { %v3053_v39 = vadd.f32 %v3052_v17, %v9919_v57  ;;  %v3383_v60 = vadd.f32 %v9637_v42, %v3243_v51  ;;  %v1458_v57 = vrot.slane %v10177_v9, %v9613_v1 }
 0x1e3   : > { %v3054_v31 = vpop.f32.mrf.mxu0 }
 0x1e4   : > { %v3245_v47 = vadd.f32 %v3053_v39, %v1450_v59  ;;  %v3055_v37 = vadd.f32 %v3054_v31, %v9926_v48  ;;  %v3470_v63 = vmax.f32 %v3383_v60, 0.0  ;;  %v10192_v39 = vpop.f32.mrf.mxu1  ;;  %v12965_v31 = vld [vmem:[#allocation22_spill] sm:$0xff] }
 0x1e5   : > { %v3056_v61 = vpop.f32.mrf.mxu0 }
 0x1e6   : > { %v10184_v38 = vadd.f32 %v3055_v37, %v1454_v54  ;;  %v3057_v17 = vadd.f32 %v3056_v61, %v9935_v0  ;;  %v4089_v51 = vpack.c.bf16 %v3470_v63, %v3469_v6  ;;  %v3385_v59 = vadd.f32 %v9637_v42, %v3245_v47  ;;  %v10201_v63 = vpop.f32.mrf.mxu1 }
 0x1e7   : > { %v10189_v34 = vpop.f32.mrf.mxu0  ;;  %v1466_v54 = vrot.slane %v12965_v31, %v9613_v1  ;;  %v1470_v6 = vrot.slane %v12965_v31, %v9619_v28 }
 0x1e8   : > { %12963 = vst [vmem:[#allocation93_spill] sm:$0xff] %v10184_v38  ;;  %12964 = vst [vmem:[#allocation94_spill] sm:$0xff] %v10189_v34  ;;  %v3247_v50 = vadd.f32 %v3057_v17, %v1458_v57  ;;  %8056 = vmatprep.mubr.bf16.mxu1 %v4089_v51  ;;  %v3471_v38 = vmax.f32 %v3385_v59, 0.0  ;;  %v10212_v34 = vpop.f32.mrf.mxu1 }
 0x1e9   : > { %v3062_v48 = vpop.f32.mrf.mxu0 }
 0x1ea   : > { %v3387_v14 = vadd.f32 %v9637_v42, %v3247_v50  ;;  %v3063_v60 = vadd.f32 %v3062_v48, %v9950_v16  ;;  %v1008_v16 = vcombine.high %v12965_v31, %v12965_v31  ;;  %v12967_v50 = vld [vmem:[#allocation35_spill] sm:$0xff] }
 0x1eb   : > { %v3064_v37 = vpop.f32.mrf.mxu0  ;;  %v1474_v48 = vrot.slane %v12967_v50, %v9613_v1  ;;  %v10219_v31 = vcombine.high %v12967_v50, %v12967_v50 }
 0x1ec   : > { %v3472_v0 = vmax.f32 %v3387_v14, 0.0  ;;  %v3065_v47 = vadd.f32 %v3064_v37, %v9955_v56  ;;  %v3249_v61 = vadd.f32 %v3063_v60, %v1466_v54 }
 0x1ed   : > { %v3066_v57 = vpop.f32.mrf.mxu0  ;;  %12969 = vst [vmem:[#allocation96_spill] sm:$0xff] %v10219_v31 }
 0x1ee   : > { %v4090_v17 = vpack.c.bf16 %v3472_v0, %v3471_v38  ;;  %v10203_v51 = vadd.f32 %v3065_v47, %v1470_v6  ;;  %v3067_v59 = vadd.f32 %v3066_v57, %v9962_v15  ;;  %v3389_v56 = vadd.f32 %v9637_v42, %v3249_v61 }
 0x1ef   : > { %v10210_v14 = vpop.f32.mrf.mxu0  ;;  %v1482_v38 = vrot.slane %v1008_v16, %v9613_v1  ;;  %v1486_v47 = vrot.slane %v1008_v16, %v9619_v28 }
 0x1f0   : > { %12966 = vst [vmem:[#allocation22_spill] sm:$0xff] %v10203_v51  ;;  %12968 = vst [vmem:[#allocation95_spill] sm:$0xff] %v10210_v14  ;;  %8057 = vmatmul.mubr.bf16.gmra.mxu1 %v4090_v17  ;;  %v3251_v60 = vadd.f32 %v3067_v59, %v1474_v48  ;;  %v10224_v17 = vpop.f32.mrf.mxu1  ;;  %v3473_v61 = vmax.f32 %v3389_v56, 0.0 }
 0x1f1   : > { %v3072_v54 = vpop.f32.mrf.mxu0 }
 0x1f2   : > { %v3073_v37 = vadd.f32 %v3072_v54, %v9975_v24  ;;  %v3391_v0 = vadd.f32 %v9637_v42, %v3251_v60  ;;  %v1490_v24 = vrot.slane %v10219_v31, %v9613_v1 }
 0x1f3   : > { %v3074_v15 = vpop.f32.mrf.mxu0 }
 0x1f4   : > { %v3253_v6 = vadd.f32 %v3073_v37, %v1482_v38  ;;  %v3075_v57 = vadd.f32 %v3074_v15, %v9985_v49  ;;  %v3474_v48 = vmax.f32 %v3391_v0, 0.0  ;;  %v10234_v37 = vpop.f32.mrf.mxu1  ;;  %v12972_v15 = vld [vmem:[#allocation23_spill] sm:$0xff] }
 0x1f5   : > { %v3076_v59 = vpop.f32.mrf.mxu0 }
 0x1f6   : > { %v10226_v14 = vadd.f32 %v3075_v57, %v1486_v47  ;;  %v3077_v54 = vadd.f32 %v3076_v59, %v9997_v53  ;;  %v4091_v60 = vpack.c.bf16 %v3474_v48, %v3473_v61  ;;  %v3393_v38 = vadd.f32 %v9637_v42, %v3253_v6  ;;  %v10243_v48 = vpop.f32.mrf.mxu1 }
 0x1f7   : > { %v10231_v51 = vpop.f32.mrf.mxu0  ;;  %v1498_v47 = vrot.slane %v12972_v15, %v9613_v1  ;;  %v1502_v61 = vrot.slane %v12972_v15, %v9619_v28 }
 0x1f8   : > { %12970 = vst [vmem:[#allocation97_spill] sm:$0xff] %v10226_v14  ;;  %12971 = vst [vmem:[#allocation98_spill] sm:$0xff] %v10231_v51  ;;  %v3255_v16 = vadd.f32 %v3077_v54, %v1490_v24  ;;  %8060 = vmatprep.mubr.bf16.mxu1 %v4091_v60  ;;  %v3475_v14 = vmax.f32 %v3393_v38, 0.0 }
 0x1f9   : > { %v3082_v49 = vpop.f32.mrf.mxu0 }
 0x1fa   : > { %v3395_v56 = vadd.f32 %v9637_v42, %v3255_v16  ;;  %v3083_v0 = vadd.f32 %v3082_v49, %v10009_v8  ;;  %v1057_v8 = vcombine.high %v12972_v15, %v12972_v15  ;;  %v12974_v16 = vld [vmem:[#allocation25_spill] sm:$0xff] }
 0x1fb   : > { %v3084_v57 = vpop.f32.mrf.mxu0  ;;  %v1506_v49 = vrot.slane %v12974_v16, %v9613_v1  ;;  %v1510_v51 = vrot.slane %v12974_v16, %v9619_v28 }
 0x1fc   : > { %v3476_v53 = vmax.f32 %v3395_v56, 0.0  ;;  %v3085_v6 = vadd.f32 %v3084_v57, %v10014_v22  ;;  %v3257_v59 = vadd.f32 %v3083_v0, %v1498_v47  ;;  %v10255_v0 = vpop.f32.mrf.mxu1  ;;  %v1514_v15 = vrot.slane %v1057_v8, %v9613_v1 }
 0x1fd   : > { %v3086_v24 = vpop.f32.mrf.mxu0 }
 0x1fe   : > { %v4092_v54 = vpack.c.bf16 %v3476_v53, %v3475_v14  ;;  %v10245_v60 = vadd.f32 %v3085_v6, %v1502_v61  ;;  %v3087_v38 = vadd.f32 %v3086_v24, %v10018_v2  ;;  %v3397_v14 = vadd.f32 %v9637_v42, %v3257_v59  ;;  %v10267_v59 = vpop.f32.mrf.mxu1 }
 0x1ff   : > { %v3088_v56 = vpop.f32.mrf.mxu0  ;;  %v1059_v2 = vcombine.high %v12974_v16, %v12974_v16 }
 0x200   : > { %12973 = vst [vmem:[#allocation23_spill] sm:$0xff] %v10245_v60  ;;  %v3089_v22 = vadd.f32 %v3088_v56, %v10025_v29  ;;  %8061 = vmatmul.mubr.bf16.gmra.mxu1 %v4092_v54  ;;  %v3259_v47 = vadd.f32 %v3087_v38, %v1506_v49  ;;  %v1518_v54 = vrot.slane %v1057_v8, %v9619_v28  ;;  %v3477_v49 = vmax.f32 %v3397_v14, 0.0 }
 0x201   : > { %v3092_v57 = vpop.f32.mrf.mxu0  ;;  %v1526_v8 = vrot.slane %v1059_v2, %v9619_v28 }
 0x202   : > { %v10258_v53 = vadd.f32 %v3089_v22, %v1510_v51  ;;  %v3093_v61 = vadd.f32 %v3092_v57, %v10031_v30  ;;  %v3399_v6 = vadd.f32 %v9637_v42, %v3259_v47  ;;  %v1522_v30 = vrot.slane %v1059_v2, %v9613_v1 }
 0x203   : > { %v3094_v24 = vpop.f32.mrf.mxu0 }
 0x204   : > { %12975 = vst [vmem:[#allocation25_spill] sm:$0xff] %v10258_v53  ;;  %v3261_v29 = vadd.f32 %v3093_v61, %v1514_v15  ;;  %v3095_v56 = vadd.f32 %v3094_v24, %v10038_v10  ;;  %v3478_v51 = vmax.f32 %v3399_v6, 0.0  ;;  %v10276_v61 = vpop.f32.mrf.mxu1 }
 0x205   : > { %v3096_v38 = vpop.f32.mrf.mxu0 }
 0x206   : > { %v10269_v22 = vadd.f32 %v3095_v56, %v1518_v54  ;;  %v3097_v57 = vadd.f32 %v3096_v38, %v10047_v25  ;;  %v4093_v53 = vpack.c.bf16 %v3478_v51, %v3477_v49  ;;  %v3401_v47 = vadd.f32 %v9637_v42, %v3261_v29  ;;  %v12978_v25 = vld [vmem:[#allocation24_spill] sm:$0xff]  ;;  %v10287_v38 = vpop.f32.mrf.mxu1 }
 0x207   : > { %v3098_v16 = vpop.f32.mrf.mxu0  ;;  %v1530_v56 = vrot.slane %v12978_v25, %v9613_v1  ;;  %v1534_v2 = vrot.slane %v12978_v25, %v9619_v28  ;;  %12979 = vst [vmem:[#allocation24_spill] sm:$0xff] %v10287_v38 }
 0x208   : > { %12976 = vst [vmem:[#allocation99_spill] sm:$0xff] %v10269_v22  ;;  %v3263_v15 = vadd.f32 %v3097_v57, %v1522_v30  ;;  %v3099_v10 = vadd.f32 %v3098_v16, %v10052_v33  ;;  %8064 = vmatprep.mubr.bf16.mxu1 %v4093_v53  ;;  %v3479_v29 = vmax.f32 %v3401_v47, 0.0 }
 0x209   : > { %v3102_v14 = vpop.f32.mrf.mxu0 }
 0x20a   : > { %v3403_v6 = vadd.f32 %v9637_v42, %v3263_v15  ;;  %v10279_v24 = vadd.f32 %v3099_v10, %v1526_v8  ;;  %v3103_v54 = vadd.f32 %v3102_v14, %v10059_v18  ;;  %v1058_v18 = vcombine.high %v12978_v25, %v12978_v25  ;;  %v12981_v15 = vld [vmem:[#allocation26_spill] sm:$0xff] }
 0x20b   : > { %v3104_v49 = vpop.f32.mrf.mxu0  ;;  %v1538_v8 = vrot.slane %v12981_v15, %v9613_v1  ;;  %v1542_v14 = vrot.slane %v12981_v15, %v9619_v28 }
 0x20c   : > { %12977 = vst [vmem:[#allocation100_spill] sm:$0xff] %v10279_v24  ;;  %v3480_v51 = vmax.f32 %v3403_v6, 0.0  ;;  %v3105_v33 = vadd.f32 %v3104_v49, %v10064_v46  ;;  %v3265_v53 = vadd.f32 %v3103_v54, %v1530_v56  ;;  %v1546_v25 = vrot.slane %v1058_v18, %v9613_v1 }
 0x20d   : > { %v3106_v30 = vpop.f32.mrf.mxu0 }
 0x20e   : > { %v4094_v57 = vpack.c.bf16 %v3480_v51, %v3479_v29  ;;  %v10289_v16 = vadd.f32 %v3105_v33, %v1534_v2  ;;  %v3107_v47 = vadd.f32 %v3106_v30, %v10068_v4  ;;  %v3405_v54 = vadd.f32 %v9637_v42, %v3265_v53 }
 0x20f   : > { %v3108_v10 = vpop.f32.mrf.mxu0  ;;  %v1060_v4 = vcombine.high %v12981_v15, %v12981_v15 }
 0x210   : > { %12980 = vst [vmem:[#allocation101_spill] sm:$0xff] %v10289_v16  ;;  %v3109_v46 = vadd.f32 %v3108_v10, %v10075_v5  ;;  %v8018_v6 = vpop.f32.mrf.mxu1  ;;  %8065 = vmatmul.mubr.bf16.gmra.mxu1 %v4094_v57  ;;  %v3267_v56 = vadd.f32 %v3107_v47, %v1538_v8  ;;  %v10310_v5 = vld [vmem:[%s12767_s8] ss:$0 sm:$0xff]  ;;  %v1550_v57 = vrot.slane %v1058_v18, %v9619_v28  ;;  %v3481_v10 = vmax.f32 %v3405_v54, 0.0 }
 0x211   : > { %v3112_v49 = vpop.f32.mrf.mxu0  ;;  %v1554_v38 = vrot.slane %v1060_v4, %v9613_v1 }
 0x212   : > { %v10300_v29 = vadd.f32 %v3109_v46, %v1542_v14  ;;  %v3113_v51 = vadd.f32 %v3112_v49, %v10086_v21  ;;  %v4206_v2 = vpop.f32.mrf.mxu1  ;;  %v3407_v33 = vadd.f32 %v9637_v42, %v3267_v56  ;;  %v4215_v56 = vadd.f32 %v8018_v6, %v10310_v5 }
 0x213   : > { %v3114_v53 = vpop.f32.mrf.mxu0  ;;  %v4207_v14 = vadd.f32 %v10310_v5, %v4206_v2 }
 0x214   : > { %12982 = vst [vmem:[#allocation26_spill] sm:$0xff] %v10300_v29  ;;  %v3269_v30 = vadd.f32 %v3113_v51, %v1546_v25  ;;  %v3115_v8 = vadd.f32 %v3114_v53, %v10098_v3  ;;  %v8019_v47 = vpop.f32.mrf.mxu1  ;;  %v3482_v21 = vmax.f32 %v3407_v33, 0.0  ;;  %v1558_v3 = vrot.slane %v1060_v4, %v9619_v28  ;;  %v12985_v4 = vld [vmem:[#allocation28_spill] sm:$0xff] }
 0x215   : > { %v4218_v15 = vadd.f32 %v8019_v47, %v10310_v5  ;;  %v3116_v46 = vpop.f32.mrf.mxu0  ;;  %v4461_v6 = vmax.f32 %v4207_v14, 0.0 }
 0x216   : > { %v10317_v49 = vadd.f32 %v3115_v8, %v1550_v57  ;;  %v3117_v25 = vadd.f32 %v3116_v46, %v10108_v55  ;;  %v4209_v51 = vpop.f32.mrf.mxu1  ;;  %v4095_v33 = vpack.c.bf16 %v3482_v21, %v3481_v10  ;;  %v3409_v2 = vadd.f32 %v9637_v42, %v3269_v30 }
 0x217   : > { %v4210_v18 = vadd.f32 %v10310_v5, %v4209_v51  ;;  %v3118_v54 = vpop.f32.mrf.mxu0  ;;  %v4464_v53 = vmax.f32 %v4218_v15, 0.0  ;;  %v1562_v10 = vrot.slane %v12985_v4, %v9613_v1  ;;  %v1566_v30 = vrot.slane %v12985_v4, %v9619_v28 }
 0x218   : > { %12983 = vst [vmem:[#allocation102_spill] sm:$0xff] %v10317_v49  ;;  %v3271_v47 = vadd.f32 %v3117_v25, %v1554_v38  ;;  %v3119_v29 = vadd.f32 %v3118_v54, %v10117_v44  ;;  %8068 = vmatprep.mubr.bf16.mxu1 %v4095_v33  ;;  %v4463_v49 = vmax.f32 %v4215_v56, 0.0  ;;  %v3483_v44 = vmax.f32 %v3409_v2, 0.0  ;;  %v12987_v54 = vld [vmem:[#allocation37_spill] sm:$0xff] }
 0x219   : > { %v4462_v57 = vmax.f32 %v4210_v18, 0.0  ;;  %v3122_v8 = vpop.f32.mrf.mxu0  ;;  %v1570_v33 = vrot.slane %v12987_v54, %v9613_v1 }
 0x21a   : > { %v3411_v55 = vadd.f32 %v9637_v42, %v3271_v47  ;;  %v10326_v46 = vadd.f32 %v3119_v29, %v1558_v3  ;;  %v3123_v51 = vadd.f32 %v3122_v8, %v10128_v27  ;;  %v4526_v14 = vpack.c.bf16 %v4464_v53, %v4463_v49 }
 0x21b   : > { %v3124_v38 = vpop.f32.mrf.mxu0  ;;  %v4525_v21 = vpack.c.bf16 %v4462_v57, %v4461_v6  ;;  %v1107_v27 = vcombine.high %v12985_v4, %v12985_v4  ;;  %v1574_v49 = vrot.slane %v12987_v54, %v9619_v28 }
 0x21c   : > { %12984 = vst [vmem:[#allocation103_spill] sm:$0xff] %v10326_v46  ;;  %v3484_v15 = vmax.f32 %v3411_v55, 0.0  ;;  %v3125_v25 = vadd.f32 %v3124_v38, %v10140_v35  ;;  %v3273_v56 = vadd.f32 %v3123_v51, %v1562_v10 }
 0x21d   : > { %v3126_v18 = vpop.f32.mrf.mxu0  ;;  %8096 = vmatprep.mubr.bf16.mxu0 %v4525_v21  ;;  %v1578_v51 = vrot.slane %v1107_v27, %v9613_v1  ;;  %v1582_v21 = vrot.slane %v1107_v27, %v9619_v28 }
 0x21e   : > { %v4096_v29 = vpack.c.bf16 %v3484_v15, %v3483_v44  ;;  %v10334_v3 = vadd.f32 %v3125_v25, %v1566_v30  ;;  %8097 = vmatmul.mubr.bf16.vlgmr.msra.gmra.mxu0 %v4526_v14  ;;  %v3127_v47 = vadd.f32 %v3126_v18, %v10150_v43  ;;  %v3413_v6 = vadd.f32 %v9637_v42, %v3273_v56 }
 0x21f   : > { %v3128_v2 = vpop.f32.mrf.mxu0  ;;  %v1109_v43 = vcombine.high %v12987_v54, %v12987_v54 }
 0x220   : > { %12986 = vst [vmem:[#allocation28_spill] sm:$0xff] %v10334_v3  ;;  %v3129_v35 = vadd.f32 %v3128_v2, %v10159_v19  ;;  %v8022_v53 = vpop.f32.mrf.mxu1  ;;  %8069 = vmatmul.mubr.bf16.gmra.mxu1 %v4096_v29  ;;  %v3275_v57 = vadd.f32 %v3127_v47, %v1570_v33  ;;  %v3485_v15 = vmax.f32 %v3413_v6, 0.0 }
 0x221   : > { %v3132_v8 = vpop.f32.mrf.mxu0  ;;  %v4231_v29 = vadd.f32 %v8022_v53, %v10310_v5  ;;  %v1586_v54 = vrot.slane %v1109_v43, %v9613_v1 }
 0x222   : > { %v10345_v55 = vadd.f32 %v3129_v35, %v1574_v49  ;;  %v3133_v4 = vadd.f32 %v3132_v8, %v10170_v11  ;;  %v4222_v10 = vpop.f32.mrf.mxu1  ;;  %v3415_v30 = vadd.f32 %v9637_v42, %v3275_v57 }
 0x223   : > { %v3134_v38 = vpop.f32.mrf.mxu0  ;;  %v4223_v56 = vadd.f32 %v10310_v5, %v4222_v10 }
 0x224   : > { %12988 = vst [vmem:[#allocation37_spill] sm:$0xff] %v10345_v55  ;;  %v3277_v19 = vadd.f32 %v3133_v4, %v1578_v51  ;;  %v3135_v44 = vadd.f32 %v3134_v38, %v10182_v58  ;;  %v8023_v14 = vpop.f32.mrf.mxu1  ;;  %v3486_v25 = vmax.f32 %v3415_v30, 0.0  ;;  %v1590_v58 = vrot.slane %v1109_v43, %v9619_v28  ;;  %v12991_v43 = vld [vmem:[#allocation29_spill] sm:$0xff] }
 0x225   : > { %v4234_v18 = vadd.f32 %v8023_v14, %v10310_v5  ;;  %v3136_v11 = vpop.f32.mrf.mxu0  ;;  %v4465_v53 = vmax.f32 %v4223_v56, 0.0  ;;  %v4467_v30 = vmax.f32 %v4231_v29, 0.0 }
 0x226   : > { %v10357_v33 = vadd.f32 %v3135_v44, %v1582_v21  ;;  %v3137_v47 = vadd.f32 %v3136_v11, %v10192_v39  ;;  %v4225_v2 = vpop.f32.mrf.mxu1  ;;  %v4097_v35 = vpack.c.bf16 %v3486_v25, %v3485_v15  ;;  %v3417_v6 = vadd.f32 %v9637_v42, %v3277_v19 }
 0x227   : > { %v4226_v27 = vadd.f32 %v10310_v5, %v4225_v2  ;;  %v3138_v49 = vpop.f32.mrf.mxu0  ;;  %v4468_v57 = vmax.f32 %v4234_v18, 0.0  ;;  %v1594_v44 = vrot.slane %v12991_v43, %v9613_v1  ;;  %v1598_v19 = vrot.slane %v12991_v43, %v9619_v28  ;;  %v12993_v2 = vld [vmem:[#allocation39_spill] sm:$0xff] }
 0x228   : > { %12989 = vst [vmem:[#allocation104_spill] sm:$0xff] %v10357_v33  ;;  %v3279_v8 = vadd.f32 %v3137_v47, %v1586_v54  ;;  %v3139_v51 = vadd.f32 %v3138_v49, %v10201_v63  ;;  %8072 = vmatprep.mubr.bf16.mxu1 %v4097_v35  ;;  %v3487_v63 = vmax.f32 %v3417_v6, 0.0  ;;  %v1606_v35 = vrot.slane %v12993_v2, %v9619_v28 }
 0x229   : > { %v4466_v4 = vmax.f32 %v4226_v27, 0.0  ;;  %v3142_v10 = vpop.f32.mrf.mxu0  ;;  %v4528_v25 = vpack.c.bf16 %v4468_v57, %v4467_v30  ;;  %v1602_v27 = vrot.slane %v12993_v2, %v9613_v1 }
 0x22a   : > { %v3419_v39 = vadd.f32 %v9637_v42, %v3279_v8  ;;  %v10366_v38 = vadd.f32 %v3139_v51, %v1590_v58  ;;  %v3143_v21 = vadd.f32 %v3142_v10, %v10212_v34  ;;  %v1108_v34 = vcombine.high %v12991_v43, %v12991_v43 }
 0x22b   : > { %v3144_v14 = vpop.f32.mrf.mxu0  ;;  %v4527_v15 = vpack.c.bf16 %v4466_v4, %v4465_v53 }
 0x22c   : > { %12990 = vst [vmem:[#allocation105_spill] sm:$0xff] %v10366_v38  ;;  %v3488_v56 = vmax.f32 %v3419_v39, 0.0  ;;  %v3145_v18 = vadd.f32 %v3144_v14, %v10224_v17  ;;  %v3281_v11 = vadd.f32 %v3143_v21, %v1594_v44  ;;  %v1610_v4 = vrot.slane %v1108_v34, %v9613_v1 }
 0x22d   : > { %v3146_v29 = vpop.f32.mrf.mxu0  ;;  %8100 = vmatprep.mubr.bf16.mxu0 %v4527_v15  ;;  %v1614_v43 = vrot.slane %v1108_v34, %v9619_v28 }
 0x22e   : > { %v4098_v54 = vpack.c.bf16 %v3488_v56, %v3487_v63  ;;  %v10374_v47 = vadd.f32 %v3145_v18, %v1598_v19  ;;  %8101 = vmatmul.mubr.bf16.gmra.mxu0 %v4528_v25  ;;  %v3147_v58 = vadd.f32 %v3146_v29, %v10234_v37  ;;  %v3421_v57 = vadd.f32 %v9637_v42, %v3281_v11 }
 0x22f   : > { %v3148_v49 = vpop.f32.mrf.mxu0  ;;  %v10391_v37 = vcombine.high %v12993_v2, %v12993_v2 }
 0x230   : > { %12992 = vst [vmem:[#allocation29_spill] sm:$0xff] %v10374_v47  ;;  %v3149_v17 = vadd.f32 %v3148_v49, %v10243_v48  ;;  %v8026_v6 = vpop.f32.mrf.mxu1  ;;  %8073 = vmatmul.mubr.bf16.gmra.mxu1 %v4098_v54  ;;  %v3283_v8 = vadd.f32 %v3147_v58, %v1602_v27  ;;  %v3489_v14 = vmax.f32 %v3421_v57, 0.0 }
 0x231   : > { %v3152_v51 = vpop.f32.mrf.mxu0  ;;  %12995 = vst [vmem:[#allocation106_spill] sm:$0xff] %v10391_v37  ;;  %v4247_v56 = vadd.f32 %v8026_v6, %v10310_v5  ;;  %v1618_v11 = vrot.slane %v10391_v37, %v9613_v1  ;;  %v13035_v37 = vld [vmem:[#allocation46_spill] sm:$0xff] }
 0x232   : > { %v10385_v53 = vadd.f32 %v3149_v17, %v1606_v35  ;;  %v3153_v10 = vadd.f32 %v3152_v51, %v10255_v0  ;;  %v4238_v30 = vpop.f32.mrf.mxu1  ;;  %v3423_v39 = vadd.f32 %v9637_v42, %v3283_v8 }
 0x233   : > { %v3154_v48 = vpop.f32.mrf.mxu0  ;;  %v4239_v63 = vadd.f32 %v10310_v5, %v4238_v30  ;;  %v4471_v17 = vmax.f32 %v4247_v56, 0.0 }
 0x234   : > { %12994 = vst [vmem:[#allocation39_spill] sm:$0xff] %v10385_v53  ;;  %v3285_v21 = vadd.f32 %v3153_v10, %v1610_v4  ;;  %v3155_v44 = vadd.f32 %v3154_v48, %v10267_v59  ;;  %v8027_v19 = vpop.f32.mrf.mxu1  ;;  %v3490_v15 = vmax.f32 %v3423_v39, 0.0 }
 0x235   : > { %v4250_v0 = vadd.f32 %v8027_v19, %v10310_v5  ;;  %v3156_v25 = vpop.f32.mrf.mxu0  ;;  %v4469_v49 = vmax.f32 %v4239_v63, 0.0 }
 0x236   : > { %v10399_v18 = vadd.f32 %v3155_v44, %v1614_v43  ;;  %v3157_v29 = vadd.f32 %v3156_v25, %v10276_v61  ;;  %v4241_v54 = vpop.f32.mrf.mxu1  ;;  %v4099_v34 = vpack.c.bf16 %v3490_v15, %v3489_v14  ;;  %v3425_v2 = vadd.f32 %v9637_v42, %v3285_v21 }
 0x237   : > { %v4242_v59 = vadd.f32 %v10310_v5, %v4241_v54  ;;  %v4472_v27 = vmax.f32 %v4250_v0, 0.0 }
 0x238   : > { %12996 = vst [vmem:[#allocation107_spill] sm:$0xff] %v10399_v18  ;;  %v3287_v58 = vadd.f32 %v3157_v29, %v1618_v11  ;;  %8076 = vmatprep.mubr.bf16.mxu1 %v4099_v34  ;;  %v3491_v8 = vmax.f32 %v3425_v2, 0.0  ;;  %v13015_v18 = vld [vmem:[#allocation55_spill] sm:$0xff] }
 0x239   : > { %v4470_v35 = vmax.f32 %v4242_v59, 0.0  ;;  %v4530_v51 = vpack.c.bf16 %v4472_v27, %v4471_v17 }
 0x23a   : > { %v3427_v6 = vadd.f32 %v9637_v42, %v3287_v58 }
 0x23b   : > { %v4529_v57 = vpack.c.bf16 %v4470_v35, %v4469_v49 }
 0x23c   : > { %v3492_v4 = vmax.f32 %v3427_v6, 0.0 }
 0x23d   : > { %8104 = vmatprep.mubr.bf16.mxu0 %v4529_v57 }
 0x23e   : > { %v4100_v61 = vpack.c.bf16 %v3492_v4, %v3491_v8  ;;  %8105 = vmatmul.mubr.bf16.gmra.mxu0 %v4530_v51  ;;  %v8878_v4 = vld [vmem:[%s12765_s6] sm:$0x3] }
 0x240   : > { %v8030_v10 = vpop.f32.mrf.mxu1  ;;  %8077 = vmatmul.mubr.bf16.gmra.mxu1 %v4100_v61  ;;  %v10419_v61 = vrot.slane %v8878_v4, %v9619_v28 }
 0x241   : > { %v4263_v43 = vadd.f32 %v8030_v10, %v10310_v5 }
 0x242   : > { %v4254_v30 = vpop.f32.mrf.mxu1  ;;  %12997 = vst [vmem:[#allocation108_spill] sm:$0xff] %v10419_v61 }
 0x243   : > { %v4255_v48 = vadd.f32 %v10310_v5, %v4254_v30  ;;  %v4475_v63 = vmax.f32 %v4263_v43, 0.0 }
 0x244   : > { %v8031_v39 = vpop.f32.mrf.mxu1 }
 0x245   : > { %v4266_v21 = vadd.f32 %v8031_v39, %v10310_v5  ;;  %v4473_v14 = vmax.f32 %v4255_v48, 0.0 }
 0x246   : > { %v4257_v44 = vpop.f32.mrf.mxu1 }
 0x247   : > { %v4258_v42 = vadd.f32 %v10310_v5, %v4257_v44  ;;  %v4476_v19 = vmax.f32 %v4266_v21, 0.0  ;;  %v12998_v44 = vld [vmem:[#allocation43_spill] sm:$0xff] }
 0x249   : > { %v4474_v15 = vmax.f32 %v4258_v42, 0.0  ;;  %v4532_v25 = vpack.c.bf16 %v4476_v19, %v4475_v63  ;;  %v10427_v42 = vadd.f32 %v10419_v61, %v12998_v44 }
 0x24b   : > { %v4531_v0 = vpack.c.bf16 %v4474_v15, %v4473_v14 }
 0x24d   : > { %8108 = vmatprep.mubr.bf16.mxu0 %v4531_v0 }
 0x24e   : > { %8109 = vmatmul.mubr.bf16.gmra.mxu0 %v4532_v25  ;;  %v3493_v25 = vmul.f32 %v10427_v42, %v10427_v42 }
 0x250   : > { %v8034_v56 = vpop.f32.mrf.mxu1 }
 0x251   : > { %v4279_v34 = vadd.f32 %v8034_v56, %v10310_v5 }
 0x252   : > { %v4270_v11 = vpop.f32.mrf.mxu1 }
 0x253   : > { %v4271_v54 = vadd.f32 %v10310_v5, %v4270_v11  ;;  %v4479_v17 = vmax.f32 %v4279_v34, 0.0  ;;  %v12999_v11 = vld [vmem:[#allocation45_spill] sm:$0xff]  ;;  %v10438_v34 = vadd.f32 %v10419_v61, %v9671_v40 }
 0x254   : > { %v8035_v29 = vpop.f32.mrf.mxu1 }
 0x255   : > { %v4282_v59 = vadd.f32 %v8035_v29, %v10310_v5  ;;  %v4477_v49 = vmax.f32 %v4271_v54, 0.0  ;;  %v10433_v29 = vadd.f32 %v10419_v61, %v12999_v11 }
 0x256   : > { %v4273_v2 = vpop.f32.mrf.mxu1 }
 0x257   : > { %v4274_v27 = vadd.f32 %v10310_v5, %v4273_v2  ;;  %v4480_v58 = vmax.f32 %v4282_v59, 0.0  ;;  %v3557_v59 = vmul.f32 %v3493_v25, %v10427_v42  ;;  %v3494_v2 = vmul.f32 %v10433_v29, %v10433_v29 }
 0x259   : > { %v4478_v35 = vmax.f32 %v4274_v27, 0.0  ;;  %v4534_v57 = vpack.c.bf16 %v4480_v58, %v4479_v17  ;;  %v10446_v17 = vadd.f32 %v10419_v61, %v9684_v12 }
 0x25b   : > { %v4533_v6 = vpack.c.bf16 %v4478_v35, %v4477_v49  ;;  %v3621_v49 = vmul.f32 0.044715, %v3557_v59  ;;  %v3495_v35 = vmul.f32 %v10438_v34, %v10438_v34 }
 0x25d   : > { %8112 = vmatprep.mubr.bf16.mxu0 %v4533_v6 }
 0x25e   : > { %8113 = vmatmul.mubr.bf16.gmra.mxu0 %v4534_v57 }
 0x260   : > { %v8038_v8 = vpop.f32.mrf.mxu1 }
 0x261   : > { %v4295_v48 = vadd.f32 %v8038_v8, %v10310_v5 }
 0x262   : > { %v4286_v51 = vpop.f32.mrf.mxu1 }
 0x263   : > { %v4287_v30 = vadd.f32 %v10310_v5, %v4286_v51  ;;  %v4483_v63 = vmax.f32 %v4295_v48, 0.0  ;;  %v3558_v51 = vmul.f32 %v3494_v2, %v10433_v29 }
 0x264   : > { %v8039_v10 = vpop.f32.mrf.mxu1 }
 0x265   : > { %v4298_v39 = vadd.f32 %v8039_v10, %v10310_v5  ;;  %v4481_v14 = vmax.f32 %v4287_v30, 0.0  ;;  %v3685_v30 = vadd.f32 %v3621_v49, %v10427_v42 }
 0x266   : > { %v4289_v21 = vpop.f32.mrf.mxu1 }
 0x267   : > { %v4290_v43 = vadd.f32 %v10310_v5, %v4289_v21  ;;  %v4484_v19 = vmax.f32 %v4298_v39, 0.0  ;;  %v3496_v39 = vmul.f32 %v10446_v17, %v10446_v17  ;;  %v3559_v21 = vmul.f32 %v3495_v35, %v10438_v34 }
 0x269   : > { %v4482_v15 = vmax.f32 %v4290_v43, 0.0  ;;  %v4536_v56 = vpack.c.bf16 %v4484_v19, %v4483_v63  ;;  %v10459_v43 = vadd.f32 %v10419_v61, %v9697_v41  ;;  %v3622_v19 = vmul.f32 0.044715, %v3558_v51 }
 0x26a   : > { %v3623_v63 = vmul.f32 0.044715, %v3559_v21  ;;  %v3560_v25 = vmul.f32 %v3496_v39, %v10446_v17 }
 0x26b   : > { %v4535_v0 = vpack.c.bf16 %v4482_v15, %v4481_v14  ;;  %v3686_v11 = vadd.f32 %v3622_v19, %v10433_v29 }
 0x26c   : > { %v3687_v59 = vadd.f32 %v3623_v63, %v10438_v34  ;;  %v3624_v41 = vmul.f32 0.044715, %v3560_v25  ;;  %v1190_v25 = vrot.slane %v9746_v20, %v9619_v28  ;;  %v13014_v20 = vld [vmem:[#allocation82_spill] sm:$0xff] }
 0x26d   : > { %8116 = vmatprep.mubr.bf16.mxu0 %v4535_v0  ;;  %v3749_v0 = vmul.f32 0.7978846, %v3685_v30 }
 0x26e   : > { %8117 = vmatmul.mubr.bf16.gmra.mxu0 %v4536_v56  ;;  %v3497_v56 = vmul.f32 %v10459_v43, %v10459_v43 }
 0x26f   : > { %8462 = vtanh.f32 %v3749_v0 }
 0x270   : > { %v8042_v54 = vpop.f32.mrf.mxu1 }
 0x271   : > { %v4311_v40 = vadd.f32 %v8042_v54, %v10310_v5 }
 0x272   : > { %v4302_v27 = vpop.f32.mrf.mxu1 }
 0x273   : > { %v4303_v6 = vadd.f32 %v10310_v5, %v4302_v27  ;;  %v4487_v44 = vmax.f32 %v4311_v40, 0.0  ;;  %v3750_v27 = vmul.f32 0.7978846, %v3686_v11  ;;  %v3688_v40 = vadd.f32 %v3624_v41, %v10446_v17 }
 0x274   : > { %v8043_v58 = vpop.f32.mrf.mxu1 }
 0x275   : > { %v4314_v57 = vadd.f32 %v8043_v58, %v10310_v5  ;;  %v4485_v48 = vmax.f32 %v4303_v6, 0.0  ;;  %v3561_v58 = vmul.f32 %v3497_v56, %v10459_v43  ;;  %8464 = vtanh.f32 %v3750_v27 }
 0x276   : > { %v4305_v8 = vpop.f32.mrf.mxu1  ;;  %v3752_v19 = vmul.f32 0.7978846, %v3688_v40  ;;  %v13006_v40 = vld [vmem:[#allocation53_spill] sm:$0xff] }
 0x277   : > { %v4306_v4 = vadd.f32 %v10310_v5, %v4305_v8  ;;  %v4488_v10 = vmax.f32 %v4314_v57, 0.0  ;;  %v3751_v57 = vmul.f32 0.7978846, %v3687_v59  ;;  %v13012_v59 = vld [vmem:[#allocation77_spill] sm:$0xff] }
 0x279   : > { %v4486_v12 = vmax.f32 %v4306_v4, 0.0  ;;  %v4538_v15 = vpack.c.bf16 %v4488_v10, %v4487_v44  ;;  %v3625_v4 = vmul.f32 0.044715, %v3561_v58  ;;  %v13000_v10 = vld [vmem:[#allocation49_spill] sm:$0xff]  ;;  %8466 = vtanh.f32 %v3751_v57  ;;  %v13003_v58 = vld [vmem:[#allocation67_spill] sm:$0xff] }
 0x27a   : > { %v10473_v30 = vadd.f32 %v10419_v61, %v13000_v10  ;;  %8468 = vtanh.f32 %v3752_v19  ;;  %v13005_v57 = vld [vmem:[#allocation13_spill] sm:$0xff]  ;;  %v13011_v19 = vld [vmem:[#allocation30_spill] sm:$0xff] }
 0x27b   : > { %v4537_v14 = vpack.c.bf16 %v4486_v12, %v4485_v48  ;;  %v10478_v48 = vadd.f32 %v10419_v61, %v9725_v32  ;;  %v3689_v63 = vadd.f32 %v3625_v4, %v10459_v43  ;;  %v1206_v32 = vrot.slane %v9772_v62, %v9619_v28 }
 0x27c   : > { %v3498_v0 = vmul.f32 %v10473_v30, %v10473_v30 }
 0x27d   : > { %8120 = vmatprep.mubr.bf16.mxu0 %v4537_v14  ;;  %v10482_v14 = vadd.f32 %v10419_v61, %v9738_v13  ;;  %v3499_v11 = vmul.f32 %v10478_v48, %v10478_v48  ;;  %v3753_v10 = vmul.f32 0.7978846, %v3689_v63 }
 0x27e   : > { %8121 = vmatmul.mubr.bf16.gmra.mxu0 %v4538_v15  ;;  %v3562_v62 = vmul.f32 %v3498_v0, %v10473_v30 }
 0x27f   : > { %8470 = vtanh.f32 %v3753_v10 }
 0x280   : > { %v8046_v54 = vpop.f32.mrf.mxu1  ;;  %v3626_v1 = vmul.f32 0.044715, %v3562_v62 }
 0x281   : > { %v4327_v8 = vadd.f32 %v8046_v54, %v10310_v5  ;;  %v13001_v54 = vld [vmem:[#allocation11_spill] sm:$0xff] }
 0x282   : > { %v4318_v2 = vpop.f32.mrf.mxu1  ;;  %v3690_v4 = vadd.f32 %v3626_v1, %v10473_v30 }
 0x283   : > { %v4319_v35 = vadd.f32 %v10310_v5, %v4318_v2  ;;  %v4491_v15 = vmax.f32 %v4327_v8, 0.0  ;;  %v13002_v2 = vld [vmem:[#allocation60_spill] sm:$0xff]  ;;  %v2889_v8 = vadd.f32 %v13006_v40, %v13005_v57 }
 0x284   : > { %v8047_v49 = vpop.f32.mrf.mxu1  ;;  %v13013_v40 = vld [vmem:[#allocation32_spill] sm:$0xff] }
 0x285   : > { %v4330_v6 = vadd.f32 %v8047_v49, %v10310_v5  ;;  %v4489_v21 = vmax.f32 %v4319_v35, 0.0  ;;  %v13004_v49 = vld [vmem:[#allocation12_spill] sm:$0xff]  ;;  %v8463_v35 = vpop.eup %8462  ;;  %v3180_v57 = vadd.f32 %v2889_v8, %v1190_v25 }
 0x286   : > { %v4321_v51 = vpop.f32.mrf.mxu1  ;;  %v8465_v27 = vpop.eup %8464 }
 0x287   : > { %v4322_v39 = vadd.f32 %v10310_v5, %v4321_v51  ;;  %v4492_v12 = vmax.f32 %v4330_v6, 0.0  ;;  %v3500_v6 = vmul.f32 %v10482_v14, %v10482_v14  ;;  %v13007_v51 = vld [vmem:[#allocation73_spill] sm:$0xff]  ;;  %v3878_v53 = vadd.f32 1.0, %v8465_v27  ;;  %v13018_v27 = vld [vmem:[#allocation27_spill] sm:$0xff] }
 0x289   : > { %v4490_v44 = vmax.f32 %v4322_v39, 0.0  ;;  %v4540_v41 = vpack.c.bf16 %v4492_v12, %v4491_v15  ;;  %v13008_v39 = vld [vmem:[#allocation52_spill] sm:$0xff]  ;;  %v3564_v63 = vmul.f32 %v3500_v6, %v10482_v14  ;;  %v3942_v16 = vmul.f32 0.5, %v3878_v53 }
 0x28a   : > { %v10511_v12 = vadd.f32 %v10419_v61, %v13008_v39  ;;  %v3563_v39 = vmul.f32 %v3499_v11, %v10478_v48 }
 0x28b   : > { %v4539_v56 = vpack.c.bf16 %v4490_v44, %v4489_v21  ;;  %v13009_v21 = vld [vmem:[#allocation20_spill] sm:$0xff]  ;;  %v3628_v47 = vmul.f32 0.044715, %v3564_v63  ;;  %v13019_v63 = vld [vmem:[#allocation59_spill] sm:$0xff] }
 0x28c   : > { %v13010_v44 = vld [vmem:[#allocation56_spill] sm:$0xff]  ;;  %v3501_v11 = vmul.f32 %v10511_v12, %v10511_v12  ;;  %v3627_v10 = vmul.f32 0.044715, %v3563_v39  ;;  %v2909_v55 = vadd.f32 %v13019_v63, %v13018_v27  ;;  %v13023_v63 = vrot.slane %v9807_v36, %v9619_v28 }
 0x28d   : > { %8124 = vmatprep.mubr.bf16.mxu0 %v4539_v56  ;;  %v2899_v15 = vadd.f32 %v13010_v44, %v13009_v21  ;;  %v3877_v56 = vadd.f32 1.0, %v8463_v35  ;;  %v10540_v35 = vadd.f32 %v10419_v61, %v13015_v18  ;;  %v8467_v44 = vpop.eup %8466  ;;  %v10551_v18 = vadd.f32 %v10419_v61, %v3180_v57  ;;  %v13017_v57 = vld [vmem:[#allocation63_spill] sm:$0xff] }
 0x28e   : > { %8125 = vmatmul.mubr.bf16.gmra.mxu0 %v4540_v41  ;;  %v3879_v46 = vadd.f32 1.0, %v8467_v44  ;;  %v3692_v24 = vadd.f32 %v3628_v47, %v10482_v14  ;;  %v3188_v60 = vadd.f32 %v2909_v55, %v13023_v63  ;;  %v10596_v36 = vmul.f32 %v3942_v16, %v10433_v29  ;;  %v13026_v29 = vld [vmem:[#allocation36_spill] sm:$0xff] }
 0x28f   : > { %v3184_v21 = vadd.f32 %v2899_v15, %v1206_v32  ;;  %v3941_v62 = vmul.f32 0.5, %v3877_v56  ;;  %v3503_v56 = vmul.f32 %v10540_v35, %v10540_v35  ;;  %v3502_v1 = vmul.f32 %v10551_v18, %v10551_v18 }
 0x290   : > { %v8050_v41 = vpop.f32.mrf.mxu1  ;;  %13025 = vst [vmem:[#allocation45_spill] sm:$0xff] %v10596_v36 }
 0x291   : > { %v4343_v0 = vadd.f32 %v8050_v41, %v10310_v5  ;;  %v10555_v8 = vadd.f32 %v10419_v61, %v3184_v21  ;;  %v3691_v41 = vadd.f32 %v3627_v10, %v10478_v48  ;;  %v3567_v47 = vmul.f32 %v3503_v56, %v10540_v35 }
 0x292   : > { %v4334_v13 = vpop.f32.mrf.mxu1 }
 0x293   : > { %v4335_v32 = vadd.f32 %v10310_v5, %v4334_v13  ;;  %v3565_v13 = vmul.f32 %v3501_v11, %v10511_v12  ;;  %v4495_v11 = vmax.f32 %v4343_v0, 0.0 }
 0x294   : > { %v8051_v6 = vpop.f32.mrf.mxu1 }
 0x295   : > { %v4346_v15 = vadd.f32 %v8051_v6, %v10310_v5  ;;  %v13016_v6 = vld [vmem:[#allocation31_spill] sm:$0xff]  ;;  %v4493_v21 = vmax.f32 %v4335_v32, 0.0  ;;  %v3629_v27 = vmul.f32 0.044715, %v3565_v13  ;;  %v13021_v32 = vld [vmem:[#allocation62_spill] sm:$0xff] }
 0x296   : > { %v4337_v25 = vpop.f32.mrf.mxu1  ;;  %v2919_v38 = vadd.f32 %v13017_v57, %v13016_v6  ;;  %v3504_v6 = vmul.f32 %v10555_v8, %v10555_v8  ;;  %v10578_v44 = vadd.f32 %v10419_v61, %v13021_v32 }
 0x297   : > { %v4338_v39 = vadd.f32 %v10310_v5, %v4337_v25  ;;  %v4496_v33 = vmax.f32 %v4346_v15, 0.0  ;;  %v8469_v25 = vpop.eup %8468  ;;  %v13020_v15 = vld [vmem:[#allocation58_spill] sm:$0xff] }
 0x298   : > { %v10574_v10 = vadd.f32 %v10419_v61, %v13020_v15  ;;  %v3943_v15 = vmul.f32 0.5, %v3879_v46  ;;  %v3880_v22 = vadd.f32 1.0, %v8469_v25  ;;  %v3754_v46 = vmul.f32 0.7978846, %v3690_v4  ;;  %v13027_v4 = vld [vmem:[#allocation70_spill] sm:$0xff] }
 0x299   : > { %v4494_v3 = vmax.f32 %v4338_v39, 0.0  ;;  %v13022_v39 = vrot.slane %v13002_v2, %v9619_v28  ;;  %v4542_v53 = vpack.c.bf16 %v4496_v33, %v4495_v11  ;;  %v3756_v2 = vmul.f32 0.7978846, %v3692_v24 }
 0x29a   : > { %v3566_v33 = vmul.f32 %v3502_v1, %v10551_v18  ;;  %v3505_v56 = vmul.f32 %v10574_v10, %v10574_v10  ;;  %v3568_v55 = vmul.f32 %v3504_v6, %v10555_v8  ;;  %v3631_v24 = vmul.f32 0.044715, %v3567_v47 }
 0x29b   : > { %v4541_v57 = vpack.c.bf16 %v4494_v3, %v4493_v21  ;;  %v3192_v0 = vadd.f32 %v2919_v38, %v13022_v39  ;;  %v3755_v3 = vmul.f32 0.7978846, %v3691_v41  ;;  %v10590_v21 = vmul.f32 %v3941_v62, %v10427_v42  ;;  %v8471_v38 = vpop.eup %8470 }
 0x29c   : > { %v3507_v41 = vmul.f32 %v10578_v44, %v10578_v44  ;;  %v3693_v62 = vadd.f32 %v3629_v27, %v10511_v12  ;;  %v10606_v1 = vadd.f32 %v10419_v61, %v3188_v60  ;;  %v10609_v11 = vmul.f32 %v3943_v15, %v10438_v34 }
 0x29d   : > { %8128 = vmatprep.mubr.bf16.mxu0 %v4541_v57  ;;  %13024 = vst [vmem:[#allocation43_spill] sm:$0xff] %v10590_v21  ;;  %v10602_v25 = vadd.f32 %v10419_v61, %v3192_v0  ;;  %v10611_v16 = vmul.f32 0.5, %v3880_v22  ;;  %8472 = vtanh.f32 %v3755_v3  ;;  %v2939_v6 = vadd.f32 %v13027_v4, %v13026_v29  ;;  %v13028_v0 = vld [vmem:[#allocation34_spill] sm:$0xff] }
 0x29e   : > { %8129 = vmatmul.mubr.bf16.gmra.mxu0 %v4542_v53  ;;  %v10615_v32 = vadd.f32 1.0, %v8471_v38  ;;  %8474 = vtanh.f32 %v3756_v2  ;;  %v3630_v39 = vmul.f32 0.044715, %v3566_v33  ;;  %v13029_v53 = vld [vmem:[#allocation66_spill] sm:$0xff]  ;;  %v3632_v60 = vmul.f32 0.044715, %v3568_v55 }
 0x29f   : > { %v2929_v27 = vadd.f32 %v13029_v53, %v13028_v0  ;;  %8476 = vtanh.f32 %v3754_v46  ;;  %v3569_v47 = vmul.f32 %v3505_v56, %v10574_v10  ;;  %v3508_v22 = vmul.f32 %v10602_v25, %v10602_v25  ;;  %v13030_v33 = vld [vmem:[#allocation65_spill] sm:$0xff] }
 0x2a0   : > { %v8054_v42 = vpop.f32.mrf.mxu1  ;;  %v3695_v63 = vadd.f32 %v3631_v24, %v10540_v35  ;;  %v3757_v15 = vmul.f32 0.7978846, %v3693_v62  ;;  %v3571_v3 = vmul.f32 %v3507_v41, %v10578_v44  ;;  %v3506_v2 = vmul.f32 %v10606_v1, %v10606_v1  ;;  %v13031_v55 = vld [vmem:[#allocation69_spill] sm:$0xff] }
 0x2a1   : > { %v10628_v38 = vadd.f32 %v10419_v61, %v13030_v33  ;;  %v10634_v29 = vadd.f32 %v10419_v61, %v13031_v55  ;;  %v13032_v24 = vrot.slane %v13003_v58, %v9619_v28  ;;  %v4359_v41 = vadd.f32 %v8054_v42, %v10310_v5  ;;  %v13034_v55 = vld [vmem:[#allocation47_spill] sm:$0xff] }
 0x2a2   : > { %v4350_v57 = vpop.f32.mrf.mxu1  ;;  %v3694_v0 = vadd.f32 %v3630_v39, %v10551_v18  ;;  %v13033_v53 = vrot.slane %v13001_v54, %v9619_v28  ;;  %v3633_v13 = vmul.f32 0.044715, %v3569_v47  ;;  %v2959_v50 = vadd.f32 %v13035_v37, %v13034_v55 }
 0x2a3   : > { %v4351_v46 = vadd.f32 %v10310_v5, %v4350_v57  ;;  %v3200_v62 = vadd.f32 %v2939_v6, %v13032_v24  ;;  %v3635_v58 = vmul.f32 0.044715, %v3571_v3  ;;  %v3572_v6 = vmul.f32 %v3508_v22, %v10602_v25  ;;  %v13036_v3 = vld [vmem:[#allocation74_spill] sm:$0xff] }
 0x2a4   : > { %v8055_v34 = vpop.f32.mrf.mxu1  ;;  %v3196_v33 = vadd.f32 %v2929_v27, %v13033_v53  ;;  %v3509_v42 = vmul.f32 %v10628_v38, %v10628_v38  ;;  %v3570_v54 = vmul.f32 %v3506_v2, %v10606_v1  ;;  %v3511_v27 = vmul.f32 %v10634_v29, %v10634_v29 }
 0x2a5   : > { %v4362_v56 = vadd.f32 %v8055_v34, %v10310_v5  ;;  %v3696_v34 = vadd.f32 %v3632_v60, %v10555_v8  ;;  %v4497_v39 = vmax.f32 %v4351_v46, 0.0  ;;  %v10655_v60 = vadd.f32 %v10419_v61, %v3200_v62 }
 0x2a6   : > { %v4353_v4 = vpop.f32.mrf.mxu1  ;;  %v4499_v47 = vmax.f32 %v4359_v41, 0.0  ;;  %v10658_v37 = vadd.f32 %v10419_v61, %v3196_v33  ;;  %v10662_v22 = vadd.f32 %v10419_v61, %v13036_v3  ;;  %v3697_v46 = vadd.f32 %v3633_v13, %v10574_v10  ;;  %v13039_v13 = vld [vmem:[#allocation41_spill] sm:$0xff] }
 0x2a7   : > { %v4354_v57 = vadd.f32 %v10310_v5, %v4353_v4  ;;  %v4500_v31 = vmax.f32 %v4362_v56, 0.0  ;;  %v3759_v4 = vmul.f32 0.7978846, %v3695_v63  ;;  %v13037_v2 = vrot.slane %v13007_v51, %v9619_v28 }
 0x2a8   : > { %v3699_v62 = vadd.f32 %v3635_v58, %v10578_v44  ;;  %v3636_v55 = vmul.f32 0.044715, %v3572_v6  ;;  %8478 = vtanh.f32 %v3757_v15  ;;  %v3760_v63 = vmul.f32 0.7978846, %v3696_v34  ;;  %v13040_v15 = vld [vmem:[#allocation72_spill] sm:$0xff] }
 0x2a9   : > { %v4498_v24 = vmax.f32 %v4354_v57, 0.0  ;;  %v3208_v53 = vadd.f32 %v2959_v50, %v13037_v2  ;;  %v4544_v57 = vpack.c.bf16 %v4500_v31, %v4499_v47  ;;  %v3634_v41 = vmul.f32 0.044715, %v3570_v54 }
 0x2aa   : > { %v3573_v33 = vmul.f32 %v3509_v42, %v10628_v38  ;;  %v8473_v9 = vpop.eup %8472  ;;  %v3758_v51 = vmul.f32 0.7978846, %v3694_v0  ;;  %v3575_v50 = vmul.f32 %v3511_v27, %v10634_v29  ;;  %v3510_v58 = vmul.f32 %v10658_v37, %v10658_v37 }
 0x2ab   : > { %v4543_v56 = vpack.c.bf16 %v4498_v24, %v4497_v39  ;;  %v3512_v39 = vmul.f32 %v10655_v60, %v10655_v60  ;;  %v13038_v24 = vld [vmem:[#allocation42_spill] sm:$0xff]  ;;  %v8475_v31 = vpop.eup %8474  ;;  %v10679_v34 = vadd.f32 %v10419_v61, %v13040_v15  ;;  %v3515_v6 = vmul.f32 %v10662_v22, %v10662_v22 }
 0x2ac   : > { %v2949_v3 = vadd.f32 %v13039_v13, %v13038_v24  ;;  %v3761_v42 = vmul.f32 0.7978846, %v3697_v46  ;;  %v8477_v54 = vpop.eup %8476  ;;  %v10684_v47 = vadd.f32 %v10419_v61, %v3208_v53  ;;  %8480 = vtanh.f32 %v3759_v4 }
 0x2ad   : > { %8132 = vmatprep.mubr.bf16.mxu0 %v4543_v56  ;;  %v3763_v0 = vmul.f32 0.7978846, %v3699_v62  ;;  %v3700_v27 = vadd.f32 %v3636_v55, %v10602_v25  ;;  %v3883_v2 = vadd.f32 1.0, %v8473_v9  ;;  %8482 = vtanh.f32 %v3760_v63 }
 0x2ae   : > { %8133 = vmatmul.mubr.bf16.gmra.mxu0 %v4544_v57  ;;  %v3698_v57 = vadd.f32 %v3634_v41, %v10606_v1  ;;  %v3637_v24 = vmul.f32 0.044715, %v3573_v33  ;;  %v13041_v13 = vrot.slane %v13004_v49, %v9619_v28  ;;  %8484 = vtanh.f32 %v3758_v51 }
 0x2af   : > { %v3639_v46 = vmul.f32 0.044715, %v3575_v50  ;;  %v3576_v53 = vmul.f32 %v3512_v39, %v10655_v60  ;;  %v3513_v4 = vmul.f32 %v10679_v34, %v10679_v34  ;;  %8486 = vtanh.f32 %v3761_v42 }
 0x2b0   : > { %v8058_v56 = vpop.f32.mrf.mxu1  ;;  %v3204_v15 = vadd.f32 %v2949_v3, %v13041_v13  ;;  %v3574_v62 = vmul.f32 %v3510_v58, %v10658_v37  ;;  %v3579_v9 = vmul.f32 %v3515_v6, %v10662_v22  ;;  %v3516_v55 = vmul.f32 %v10684_v47, %v10684_v47 }
 0x2b1   : > { %v3884_v41 = vadd.f32 1.0, %v8475_v31  ;;  %8488 = vtanh.f32 %v3763_v0  ;;  %v3764_v49 = vmul.f32 0.7978846, %v3700_v27  ;;  %v3762_v39 = vmul.f32 0.7978846, %v3698_v57 }
 0x2b2   : > { %v4366_v45 = vpop.f32.mrf.mxu1  ;;  %v3701_v51 = vadd.f32 %v3637_v24, %v10628_v38  ;;  %v10702_v50 = vadd.f32 %v10419_v61, %v3204_v15  ;;  %v4375_v58 = vadd.f32 %v8058_v56, %v10310_v5  ;;  %v3703_v42 = vadd.f32 %v3639_v46, %v10634_v29 }
 0x2b3   : > { %v4367_v33 = vadd.f32 %v10310_v5, %v4366_v45  ;;  %v3640_v13 = vmul.f32 0.044715, %v3576_v53  ;;  %v3638_v0 = vmul.f32 0.044715, %v3574_v62  ;;  %v3643_v27 = vmul.f32 0.044715, %v3579_v9 }
 0x2b4   : > { %v8059_v63 = vpop.f32.mrf.mxu1  ;;  %v3577_v45 = vmul.f32 %v3513_v4, %v10679_v34  ;;  %v10710_v57 = vadd.f32 %v10419_v61, %v13042_v26  ;;  %8490 = vtanh.f32 %v3764_v49  ;;  %v3580_v15 = vmul.f32 %v3516_v55, %v10684_v47 }
 0x2b5   : > { %v4378_v3 = vadd.f32 %v8059_v63, %v10310_v5  ;;  %v4501_v63 = vmax.f32 %v4367_v33, 0.0  ;;  %8492 = vtanh.f32 %v3762_v39  ;;  %v3765_v7 = vmul.f32 0.7978846, %v3701_v51  ;;  %v8479_v46 = vpop.eup %8478  ;;  %v13043_v33 = vld [vmem:[#allocation79_spill] sm:$0xff] }
 0x2b6   : > { %v4369_v6 = vpop.f32.mrf.mxu1  ;;  %v4503_v53 = vmax.f32 %v4375_v58, 0.0  ;;  %v3767_v62 = vmul.f32 0.7978846, %v3703_v42  ;;  %v3704_v4 = vadd.f32 %v3640_v13, %v10655_v60  ;;  %v3702_v26 = vadd.f32 %v3638_v0, %v10658_v37 }
 0x2b7   : > { %v4370_v31 = vadd.f32 %v10310_v5, %v4369_v6  ;;  %v4504_v24 = vmax.f32 %v4378_v3, 0.0  ;;  %v3514_v5 = vmul.f32 %v10702_v50, %v10702_v50  ;;  %v3707_v3 = vadd.f32 %v3643_v27, %v10662_v22  ;;  %v6230_v27 = vld [vmem:[%s12770_s11] sm:$0x3] }
 0x2b8   : > { %v3641_v49 = vmul.f32 0.044715, %v3577_v45  ;;  %v3517_v55 = vmul.f32 %v10710_v57, %v10710_v57  ;;  %v10722_v39 = vadd.f32 %v10419_v61, %v13043_v33  ;;  %v3644_v6 = vmul.f32 0.044715, %v3580_v15  ;;  %8242 = vmatprep.subr.msk.bf16.mxu1 %vm6327_vm0, %v6230_v27 }
 0x2b9   : > { %v4502_v56 = vmax.f32 %v4370_v31, 0.0  ;;  %v4546_v51 = vpack.c.bf16 %v4504_v24, %v4503_v53  ;;  %v8481_v31 = vpop.eup %8480  ;;  %v3947_v58 = vmul.f32 0.5, %v3883_v2  ;;  %v3945_v42 = vmul.f32 0.5, %v10615_v32 }
 0x2ba   : > { %v3948_v13 = vmul.f32 0.5, %v3884_v41  ;;  %v8483_v0 = vpop.eup %8482  ;;  %8494 = vtanh.f32 %v3765_v7  ;;  %v3768_v45 = vmul.f32 0.7978846, %v3704_v4  ;;  %v6329_v15 = vsel %vm6327_vm0, %v6230_v27, 0  ;;  %v13048_v27 = vld [vmem:[#allocation48_spill] sm:$0xff] }
 0x2bb   : > { %v4545_v9 = vpack.c.bf16 %v4502_v56, %v4501_v63  ;;  %v3882_v63 = vadd.f32 1.0, %v8477_v54  ;;  %v3578_v56 = vmul.f32 %v3514_v5, %v10702_v50  ;;  %v8485_v24 = vpop.eup %8484  ;;  %8496 = vtanh.f32 %v3767_v62  ;;  %8161 = vmatpush3.bf16.msra.mxu1 %v6329_v15  ;;  %v13044_v5 = vld [vmem:[#allocation50_spill] sm:$0xff] }
 0x2bc   : > { %v3766_v2 = vmul.f32 0.7978846, %v3702_v26  ;;  %v3705_v32 = vadd.f32 %v3641_v49, %v10679_v34  ;;  %v8487_v41 = vpop.eup %8486  ;;  %v3519_v54 = vmul.f32 %v10722_v39, %v10722_v39  ;;  %v3708_v33 = vadd.f32 %v3644_v6, %v10684_v47 }
 0x2bd   : > { %8136 = vmatprep.mubr.bf16.mxu0 %v4545_v9  ;;  %v3771_v9 = vmul.f32 0.7978846, %v3707_v3  ;;  %v3581_v7 = vmul.f32 %v3517_v55, %v10710_v57  ;;  %v10738_v62 = vmul.f32 %v10611_v16, %v10446_v17  ;;  %v10741_v26 = vmul.f32 %v3947_v58, %v10478_v48  ;;  %v13049_v3 = vld [vmem:[#allocation76_spill] sm:$0xff] }
 0x2be   : > { %8137 = vmatmul.mubr.bf16.gmra.mxu0 %v4546_v51  ;;  %v8489_v4 = vpop.eup %8488  ;;  %v13045_v51 = vld [vmem:[#allocation80_spill] sm:$0xff]  ;;  %v10744_v49 = vmul.f32 %v3945_v42, %v10459_v43  ;;  %v2969_v15 = vadd.f32 %v13049_v3, %v13048_v27  ;;  %v10749_v55 = vmul.f32 %v3948_v13, %v10482_v14  ;;  %8498 = vtanh.f32 %v3768_v45  ;;  %v10758_v14 = vld [vmem:[%s12767_s8] ss:$0 sm:$0xff] }
 0x2bf   : > { %v2979_v36 = vadd.f32 %v13045_v51, %v13044_v5  ;;  %13046 = vst [vmem:[#allocation49_spill] sm:$0xff] %v10741_v26  ;;  %v3642_v21 = vmul.f32 0.044715, %v3578_v56  ;;  %v3946_v5 = vmul.f32 0.5, %v3882_v63  ;;  %v3885_v51 = vadd.f32 1.0, %v8479_v46 }
 0x2c0   : > { %v8062_v53 = vpop.f32.mrf.mxu1  ;;  %13047 = vst [vmem:[#allocation11_spill] sm:$0xff] %v10744_v49  ;;  %13050 = vst [vmem:[#allocation60_spill] sm:$0xff] %v10749_v55  ;;  %8500 = vtanh.f32 %v3766_v2  ;;  %v3769_v17 = vmul.f32 0.7978846, %v3705_v32  ;;  %v3772_v48 = vmul.f32 0.7978846, %v3708_v33  ;;  %v3583_v58 = vmul.f32 %v3519_v54, %v10722_v39 }
 0x2c1   : > { %8502 = vtanh.f32 %v3771_v9  ;;  %v3645_v43 = vmul.f32 0.044715, %v3581_v7  ;;  %v8491_v42 = vpop.eup %8490  ;;  %v13051_v27 = vrot.slane %v13012_v59, %v9619_v28  ;;  %v3887_v63 = vadd.f32 1.0, %v8481_v31 }
 0x2c2   : > { %v4382_v6 = vpop.f32.mrf.mxu1  ;;  %v8493_v45 = vpop.eup %8492  ;;  %v13052_v56 = vrot.slane %v13011_v19, %v9619_v28  ;;  %v4391_v32 = vadd.f32 %v10758_v14, %v8062_v53  ;;  %v3888_v59 = vadd.f32 1.0, %v8483_v0  ;;  %v3886_v33 = vadd.f32 1.0, %v8485_v24 }
 0x2c3   : > { %v3216_v3 = vadd.f32 %v2979_v36, %v13051_v27  ;;  %v4383_v46 = vadd.f32 %v10758_v14, %v4382_v6  ;;  %v3706_v36 = vadd.f32 %v3642_v21, %v10702_v50  ;;  %v3889_v7 = vadd.f32 1.0, %v8487_v41 }
 0x2c4   : > { %v8063_v16 = vpop.f32.mrf.mxu1  ;;  %v3212_v2 = vadd.f32 %v2969_v15, %v13052_v56  ;;  %8504 = vtanh.f32 %v3769_v17  ;;  %v3709_v31 = vadd.f32 %v3645_v43, %v10710_v57  ;;  %v3891_v53 = vadd.f32 1.0, %v8489_v4 }
 0x2c5   : > { %v4394_v13 = vadd.f32 %v10758_v14, %v8063_v16  ;;  %8506 = vtanh.f32 %v3772_v48  ;;  %v3647_v16 = vmul.f32 0.044715, %v3583_v58  ;;  %v10770_v27 = vadd.f32 %v10419_v61, %v3216_v3 }
 0x2c6   : > { %v4385_v54 = vpop.f32.mrf.mxu1  ;;  %v4505_v19 = vmax.f32 %v4383_v46, 0.0  ;;  %v10773_v0 = vadd.f32 %v10419_v61, %v3212_v2  ;;  %v4507_v21 = vmax.f32 %v4391_v32, 0.0  ;;  %v3892_v56 = vadd.f32 1.0, %v8491_v42 }
 0x2c7   : > { %v4386_v9 = vadd.f32 %v10758_v14, %v4385_v54  ;;  %v4508_v6 = vmax.f32 %v4394_v13, 0.0  ;;  %13053 = vst [vmem:[#allocation67_spill] sm:$0xff] %v10770_v27  ;;  %v3770_v54 = vmul.f32 0.7978846, %v3706_v36  ;;  %v8495_v24 = vpop.eup %8494  ;;  %v3951_v17 = vmul.f32 0.5, %v3887_v63 }
 0x2c8   : > { %13054 = vst [vmem:[#allocation12_spill] sm:$0xff] %v10773_v0  ;;  %v3949_v13 = vmul.f32 0.5, %v3885_v51  ;;  %v3890_v48 = vadd.f32 1.0, %v8493_v45  ;;  %v8497_v58 = vpop.eup %8496  ;;  %v10776_v43 = vmul.f32 %v3946_v5, %v10473_v30  ;;  %v3711_v3 = vadd.f32 %v3647_v16, %v10722_v39 }
 0x2c9   : > { %v4506_v15 = vmax.f32 %v4386_v9, 0.0  ;;  %v4548_v55 = vpack.c.bf16 %v4508_v6, %v4507_v21  ;;  %v3773_v46 = vmul.f32 0.7978846, %v3709_v31  ;;  %v3520_v4 = vmul.f32 %v10770_v27, %v10770_v27 }
 0x2ca   : > { %13055 = vst [vmem:[#allocation13_spill] sm:$0xff] %v10776_v43  ;;  %v3952_v2 = vmul.f32 0.5, %v3888_v59  ;;  %v3950_v42 = vmul.f32 0.5, %v3886_v33  ;;  %v3953_v32 = vmul.f32 0.5, %v3889_v7  ;;  %v3518_v63 = vmul.f32 %v10773_v0, %v10773_v0  ;;  %v13058_v59 = vld [vmem:[#allocation51_spill] sm:$0xff]  ;;  %v13059_v33 = vld [vmem:[#allocation81_spill] sm:$0xff] }
 0x2cb   : > { %v4547_v41 = vpack.c.bf16 %v4506_v15, %v4505_v19  ;;  %v3955_v51 = vmul.f32 0.5, %v3891_v53  ;;  %v3956_v45 = vmul.f32 0.5, %v3892_v56  ;;  %8508 = vtanh.f32 %v3770_v54  ;;  %v8499_v36 = vpop.eup %8498 }
 0x2cc   : > { %v10784_v30 = vmul.f32 %v3951_v17, %v10540_v35  ;;  %v10787_v5 = vmul.f32 %v3949_v13, %v10511_v12  ;;  %v3954_v9 = vmul.f32 0.5, %v3890_v48  ;;  %v3893_v6 = vadd.f32 1.0, %v8495_v24 }
 0x2cd   : > { %8140 = vmatprep.mubr.bf16.mxu0 %v4547_v41  ;;  %v8501_v16 = vpop.eup %8500  ;;  %v2989_v7 = vadd.f32 %v13059_v33, %v13058_v59  ;;  %v3895_v19 = vadd.f32 1.0, %v8497_v58  ;;  %v3775_v15 = vmul.f32 0.7978846, %v3711_v3  ;;  %8510 = vtanh.f32 %v3773_v46 }
 0x2ce   : > { %8141 = vmatmul.mubr.bf16.gmra.mxu0 %v4548_v55  ;;  %13056 = vst [vmem:[#allocation53_spill] sm:$0xff] %v10784_v30  ;;  %13057 = vst [vmem:[#allocation73_spill] sm:$0xff] %v10787_v5  ;;  %v8503_v55 = vpop.eup %8502  ;;  %v10792_v53 = vmul.f32 %v3952_v2, %v10555_v8  ;;  %v10795_v35 = vmul.f32 %v3950_v42, %v10551_v18  ;;  %v10798_v12 = vmul.f32 %v3953_v32, %v10574_v10  ;;  %v13065_v8 = vld [vmem:[#allocation83_spill] sm:$0xff]  ;;  %v13069_v42 = vld [vmem:[#allocation54_spill] sm:$0xff] }
 0x2cf   : > { %v3584_v21 = vmul.f32 %v3520_v4, %v10770_v27  ;;  %v10802_v54 = vmul.f32 %v3955_v51, %v10578_v44  ;;  %v10805_v24 = vmul.f32 %v3956_v45, %v10602_v25  ;;  %v3896_v41 = vadd.f32 1.0, %v8499_v36  ;;  %v13070_v32 = vld [vmem:[#allocation84_spill] sm:$0xff]  ;;  %v13071_v36 = vld [vmem:[#allocation15_spill] sm:$0xff] }
 0x2d0   : > { %v8066_v31 = vpop.f32.mrf.mxu1  ;;  %13060 = vst [vmem:[#allocation52_spill] sm:$0xff] %v10792_v53  ;;  %13061 = vst [vmem:[#allocation20_spill] sm:$0xff] %v10795_v35  ;;  %v3582_v17 = vmul.f32 %v3518_v63, %v10773_v0  ;;  %v10810_v13 = vadd.f32 %v10419_v61, %v13065_v8  ;;  %v10813_v18 = vmul.f32 %v3954_v9, %v10606_v1  ;;  %v3957_v10 = vmul.f32 0.5, %v3893_v6 }
 0x2d1   : > { %13062 = vst [vmem:[#allocation56_spill] sm:$0xff] %v10798_v12  ;;  %13063 = vst [vmem:[#allocation30_spill] sm:$0xff] %v10802_v54  ;;  %v3894_v48 = vadd.f32 1.0, %v8501_v16  ;;  %v8505_v58 = vpop.eup %8504  ;;  %v13068_v44 = vrot.slane %v13013_v40, %v9619_v28  ;;  %v3959_v25 = vmul.f32 0.5, %v3895_v19  ;;  %v3899_v4 = vadd.f32 1.0, %v8503_v55 }
 0x2d2   : > { %v4398_v56 = vpop.f32.mrf.mxu1  ;;  %13064 = vst [vmem:[#allocation77_spill] sm:$0xff] %v10805_v24  ;;  %13066 = vst [vmem:[#allocation32_spill] sm:$0xff] %v10810_v13  ;;  %8512 = vtanh.f32 %v3775_v15  ;;  %v8507_v2 = vpop.eup %8506  ;;  %v2999_v63 = vadd.f32 %v13070_v32, %v13069_v42  ;;  %v3648_v45 = vmul.f32 0.044715, %v3584_v21  ;;  %v10824_v9 = vadd.f32 %v10419_v61, %v13071_v36 }
 0x2d3   : > { %13067 = vst [vmem:[#allocation82_spill] sm:$0xff] %v10813_v18  ;;  %v3220_v3 = vadd.f32 %v2989_v7, %v13068_v44  ;;  %v4399_v51 = vadd.f32 %v10758_v14, %v4398_v56  ;;  %v4407_v40 = vadd.f32 %v10758_v14, %v8066_v31  ;;  %v3960_v16 = vmul.f32 0.5, %v3896_v41 }
 0x2d4   : > { %v8067_v46 = vpop.f32.mrf.mxu1  ;;  %13072 = vst [vmem:[#allocation55_spill] sm:$0xff] %v10824_v9  ;;  %v3646_v59 = vmul.f32 0.044715, %v3582_v17  ;;  %v3523_v33 = vmul.f32 %v10810_v13, %v10810_v13  ;;  %v3958_v19 = vmul.f32 0.5, %v3894_v48  ;;  %v3897_v15 = vadd.f32 1.0, %v8505_v58 }
 0x2d5   : > { %v4410_v1 = vadd.f32 %v10758_v14, %v8067_v46  ;;  %v10831_v55 = vadd.f32 %v10419_v61, %v3220_v3  ;;  %v3963_v56 = vmul.f32 0.5, %v3899_v4  ;;  %v3900_v8 = vadd.f32 1.0, %v8507_v2 }
 0x2d6   : > { %v4401_v6 = vpop.f32.mrf.mxu1  ;;  %v13074_v44 = vrot.slane %v13014_v20, %v9619_v28  ;;  %v4509_v46 = vmax.f32 %v4399_v51, 0.0  ;;  %v3712_v17 = vadd.f32 %v3648_v45, %v10770_v27  ;;  %v3521_v42 = vmul.f32 %v10824_v9, %v10824_v9 }
 0x2d7   : > { %v4402_v7 = vadd.f32 %v10758_v14, %v4401_v6  ;;  %13073 = vst [vmem:[#allocation31_spill] sm:$0xff] %v10831_v55  ;;  %v4512_v21 = vmax.f32 %v4410_v1, 0.0  ;;  %v4511_v32 = vmax.f32 %v4407_v40, 0.0  ;;  %v10840_v48 = vmul.f32 %v3957_v10, %v10628_v38  ;;  %v10849_v1 = vpop.f32.mrf.mxu0  ;;  %v10854_v38 = vld [vmem:[%s12769_s10] ss:$0 sm:$0xff] }
 0x2d8   : > { %v3224_v31 = vadd.f32 %v2999_v63, %v13074_v44  ;;  %v3710_v58 = vadd.f32 %v3646_v59, %v10773_v0  ;;  %v8509_v3 = vpop.eup %8508  ;;  %v10844_v2 = vmul.f32 %v3959_v25, %v10634_v29  ;;  %v3961_v20 = vmul.f32 0.5, %v3897_v15  ;;  %13077 = vst [vmem:[#allocation59_spill] sm:$0xff] %v10849_v1  ;;  %v13085_v44 = vld [vmem:[#allocation18_spill] sm:$0xff] }
 0x2d9   : > { %v4510_v41 = vmax.f32 %v4402_v7, 0.0  ;;  %13075 = vst [vmem:[#allocation63_spill] sm:$0xff] %v10840_v48  ;;  %v3587_v63 = vmul.f32 %v3523_v33, %v10810_v13  ;;  %v3522_v51 = vmul.f32 %v10831_v55, %v10831_v55  ;;  %v4550_v45 = vpack.c.bf16 %v4512_v21, %v4511_v32  ;;  %v13082_v33 = vld [vmem:[#allocation16_spill] sm:$0xff] }
 0x2da   : > { %13076 = vst [vmem:[#allocation27_spill] sm:$0xff] %v10844_v2  ;;  %v10857_v10 = vmul.f32 %v3960_v16, %v10655_v60  ;;  %v3964_v36 = vmul.f32 0.5, %v3900_v8  ;;  %v8511_v29 = vpop.eup %8510  ;;  %v10860_v25 = vadd.f32 %v10419_v61, %v3224_v31  ;;  %v10863_v40 = vmul.f32 %v3958_v19, %v10658_v37  ;;  %v13084_v8 = vld [vmem:[#allocation57_spill] sm:$0xff] }
 0x2db   : > { %v4549_v4 = vpack.c.bf16 %v4510_v41, %v4509_v46  ;;  %v10866_v6 = vmul.f32 %v3963_v56, %v10662_v22  ;;  %v3776_v59 = vmul.f32 0.7978846, %v3712_v17  ;;  %v10870_v7 = vadd.f32 %v10419_v61, %v13082_v33 }
 0x2dc   : > { %13078 = vst [vmem:[#allocation58_spill] sm:$0xff] %v10857_v10  ;;  %13079 = vst [vmem:[#allocation62_spill] sm:$0xff] %v10860_v25  ;;  %v3898_v60 = vadd.f32 1.0, %v8509_v3  ;;  %v3774_v16 = vmul.f32 0.7978846, %v3710_v58  ;;  %v3585_v21 = vmul.f32 %v3521_v42, %v10824_v9  ;;  %v3009_v31 = vadd.f32 %v13085_v44, %v13084_v8 }
 0x2dd   : > { %8144 = vmatprep.mubr.bf16.mxu0 %v4549_v4  ;;  %13080 = vst [vmem:[#allocation36_spill] sm:$0xff] %v10863_v40  ;;  %13081 = vst [vmem:[#allocation70_spill] sm:$0xff] %v10866_v6  ;;  %v10877_v19 = vmul.f32 %v3961_v20, %v10679_v34  ;;  %v3651_v22 = vmul.f32 0.044715, %v3587_v63  ;;  %v10880_v41 = vmul.f32 %v3964_v36, %v10684_v47  ;;  %v3901_v17 = vadd.f32 1.0, %v8511_v29 }
 0x2de   : > { %13083 = vst [vmem:[#allocation34_spill] sm:$0xff] %v10870_v7  ;;  %v8098_v15 = vpop.f32.mrf.mxu0  ;;  %8145 = vmatmul.mubr.bf16.gmra.mxu0 %v4550_v45  ;;  %v10883_v32 = vmul.f32 %v3522_v51, %v10831_v55  ;;  %v10887_v58 = vmul.f32 %v10860_v25, %v10860_v25  ;;  %8514 = vtanh.f32 %v3776_v59  ;;  %v10894_v4 = vmul.f32 %v10870_v7, %v10870_v7 }
 0x2df   : > { %v4671_v37 = vadd.f32 %v8098_v15, %v10854_v38  ;;  %13086 = vst [vmem:[#allocation66_spill] sm:$0xff] %v10877_v19  ;;  %13087 = vst [vmem:[#allocation65_spill] sm:$0xff] %v10880_v41  ;;  %v8513_v42 = vpop.eup %8512  ;;  %v3962_v63 = vmul.f32 0.5, %v3898_v60  ;;  %8516 = vtanh.f32 %v3774_v16  ;;  %v3649_v51 = vmul.f32 0.044715, %v3585_v21 }
 0x2e0   : > { %v8070_v56 = vpop.f32.mrf.mxu1  ;;  %v4662_v46 = vpop.f32.mrf.mxu0  ;;  %v13088_v45 = vrot.slane %v12947_v52, %v9619_v28  ;;  %v3715_v59 = vadd.f32 %v3651_v22, %v10810_v13  ;;  %v3965_v60 = vmul.f32 0.5, %v3901_v17 }
 0x2e1   : > { %v10889_v3 = vmul.f32 0.17677669, %v4671_v37  ;;  %v4663_v34 = vadd.f32 %v10854_v38, %v4662_v46  ;;  %v3903_v46 = vadd.f32 1.0, %v8513_v42 }
 0x2e2   : > { %v4414_v47 = vpop.f32.mrf.mxu1  ;;  %v8099_v20 = vpop.f32.mrf.mxu0  ;;  %v3228_v36 = vadd.f32 %v3009_v31, %v13088_v45  ;;  %v4423_v45 = vadd.f32 %v10758_v14, %v8070_v56 }
 0x2e3   : > { %v4996_v29 = vsel %vm4981_vm1, %v10889_v3, -inf  ;;  %v10901_v33 = vmul.f32 0.17677669, %v4663_v34  ;;  %v4674_v8 = vadd.f32 %v8099_v20, %v10854_v38  ;;  %v4415_v52 = vadd.f32 %v10758_v14, %v4414_v47 }
 0x2e4   : > { %v4997_v15 = vrot.slane %v4996_v29, 4  ;;  %v8071_v44 = vpop.f32.mrf.mxu1  ;;  %v4665_v37 = vpop.f32.mrf.mxu0  ;;  %v10914_v13 = vadd.f32 %v10419_v61, %v3228_v36  ;;  %v3713_v47 = vadd.f32 %v3649_v51, %v10824_v9  ;;  %v4515_v19 = vmax.f32 %v4423_v45, 0.0 }
 0x2e5   : > { %v4982_v16 = vsel %vm4981_vm1, %v10901_v33, -inf  ;;  %v4426_v21 = vadd.f32 %v10758_v14, %v8071_v44  ;;  %v4666_v31 = vadd.f32 %v10854_v38, %v4665_v37  ;;  %v10911_v1 = vmul.f32 0.17677669, %v4674_v8 }
 0x2e6   : > { %v4998_v34 = vmax.f32 %v4996_v29, %v4997_v15  ;;  %v4983_v22 = vrot.slane %v4982_v16, 4  ;;  %v4417_v20 = vpop.f32.mrf.mxu1  ;;  %13089 = vst [vmem:[#allocation69_spill] sm:$0xff] %v10914_v13  ;;  %v4513_v56 = vmax.f32 %v4415_v52, 0.0  ;;  %v3967_v10 = vmul.f32 0.5, %v3903_v46 }
 0x2e7   : > { %v10916_v17 = vmul.f32 0.17677669, %v4666_v31  ;;  %v4418_v42 = vadd.f32 %v10758_v14, %v4417_v20  ;;  %v5003_v29 = vsel %vm4981_vm1, %v10911_v1, -inf  ;;  %v4516_v15 = vmax.f32 %v4426_v21, 0.0 }
 0x2e8   : > { %v4999_v0 = vrot.slane %v4998_v34, 2  ;;  %v4984_v44 = vmax.f32 %v4982_v16, %v4983_v22  ;;  %v5004_v37 = vrot.slane %v5003_v29, 4  ;;  %v3779_v51 = vmul.f32 0.7978846, %v3715_v59 }
 0x2e9   : > { %v4989_v8 = vsel %vm4981_vm1, %v10916_v17, -inf  ;;  %v4514_v41 = vmax.f32 %v4418_v42, 0.0  ;;  %v4552_v22 = vpack.c.bf16 %v4516_v15, %v4515_v19  ;;  %v10926_v52 = vmul.f32 %v10914_v13, %v10914_v13 }
 0x2ea   : > { %v5000_v36 = vmax.f32 %v4998_v34, %v4999_v0  ;;  %v4985_v31 = vrot.slane %v4984_v44, 2  ;;  %v4990_v6 = vrot.slane %v4989_v8, 4  ;;  %v5005_v40 = vmax.f32 %v5003_v29, %v5004_v37 }
 0x2eb   : > { %v4551_v20 = vpack.c.bf16 %v4514_v41, %v4513_v56  ;;  %13090 = vst [vmem:[#allocation47_spill] sm:$0xff] %v10926_v52  ;;  %v10929_v42 = vmul.f32 %v3962_v63, %v10702_v50  ;;  %v10932_v0 = vmul.f32 %v3965_v60, %v10710_v57  ;;  %v10934_v34 = vpop.eup %8514  ;;  %v10940_v15 = vmul.f32 %v3967_v10, %v10722_v39  ;;  %v13095_v50 = vld [vmem:[#allocation85_spill] sm:$0xff] }
 0x2ec   : > { %v5001_v9 = vrot.slane %v5000_v36, 1  ;;  %v4986_v16 = vmax.f32 %v4984_v44, %v4985_v31  ;;  %v4991_v48 = vmax.f32 %v4989_v8, %v4990_v6  ;;  %v5006_v21 = vrot.slane %v5005_v40, 2  ;;  %v10936_v19 = vpop.eup %8516  ;;  %v13098_v8 = vld [vmem:[#allocation86_spill] sm:$0xff] }
 0x2ed   : > { %8148 = vmatprep.mubr.bf16.mxu0 %v4551_v20  ;;  %13091 = vst [vmem:[#allocation46_spill] sm:$0xff] %v10929_v42  ;;  %13092 = vst [vmem:[#allocation74_spill] sm:$0xff] %v10932_v0  ;;  %v3777_v6 = vmul.f32 0.7978846, %v3713_v47  ;;  %8518 = vtanh.f32 %v3779_v51  ;;  %v10944_v57 = vadd.f32 %v10419_v61, %v13095_v50  ;;  %v13097_v47 = vld [vmem:[#allocation61_spill] sm:$0xff] }
 0x2ee   : > { %v5002_v41 = vmax.f32 %v5000_v36, %v5001_v9  ;;  %v4987_v59 = vrot.slane %v4986_v16, 1  ;;  %v4992_v46 = vrot.slane %v4991_v48, 2  ;;  %v8102_v45 = vpop.f32.mrf.mxu0  ;;  %8149 = vmatmul.mubr.bf16.gmra.mxu0 %v4552_v22  ;;  %13093 = vst [vmem:[#allocation42_spill] sm:$0xff] %v10936_v19  ;;  %v5007_v44 = vmax.f32 %v5005_v40, %v5006_v21  ;;  %13094 = vst [vmem:[#allocation41_spill] sm:$0xff] %v10940_v15 }
 0x2ef   : > { %v4687_v29 = vadd.f32 %v8102_v45, %v10854_v38  ;;  %13096 = vst [vmem:[#allocation72_spill] sm:$0xff] %v10944_v57  ;;  %v10949_v36 = vadd.f32 %v13098_v8, %v13097_v47  ;;  %8520 = vtanh.f32 %v3777_v6 }
 0x2f0   : > { %v5432_v9 = vsub.f32 %v10889_v3, %v5002_v41  ;;  %v4988_v63 = vmax.f32 %v4986_v16, %v4987_v59  ;;  %v4993_v60 = vmax.f32 %v4991_v48, %v4992_v46  ;;  %v8074_v56 = vpop.f32.mrf.mxu1  ;;  %v4678_v37 = vpop.f32.mrf.mxu0  ;;  %v5008_v40 = vrot.slane %v5007_v44, 1 }
 0x2f1   : > { %v10951_v31 = vmul.f32 0.17677669, %v4687_v29  ;;  %v4679_v39 = vadd.f32 %v10854_v38, %v4678_v37  ;;  %v10961_v41 = vmul.f32 %v10887_v58, %v10860_v25  ;;  %v4439_v50 = vadd.f32 %v10758_v14, %v8074_v56 }
 0x2f2   : > { %v5498_v10 = vmul.f32 1.442695, %v5432_v9  ;;  %v5430_v20 = vsub.f32 %v10901_v33, %v4988_v63  ;;  %v4994_v51 = vrot.slane %v4993_v60, 1  ;;  %v4430_v22 = vpop.f32.mrf.mxu1  ;;  %v8103_v21 = vpop.f32.mrf.mxu0  ;;  %v5009_v3 = vmax.f32 %v5007_v44, %v5008_v40 }
 0x2f3   : > { %v5024_v48 = vsel %vm4981_vm1, %v10951_v31, -inf  ;;  %v10957_v16 = vmul.f32 0.17677669, %v4679_v39  ;;  %v4690_v44 = vadd.f32 %v8103_v21, %v10854_v38 }
 0x2f4   : > { %8522 = vpow2.f32 %v5498_v10  ;;  %v5494_v59 = vmul.f32 1.442695, %v5430_v20  ;;  %v4995_v46 = vmax.f32 %v4993_v60, %v4994_v51  ;;  %v5025_v45 = vrot.slane %v5024_v48, 4  ;;  %v8075_v29 = vpop.f32.mrf.mxu1  ;;  %v4681_v9 = vpop.f32.mrf.mxu0 }
 0x2f5   : > { %v5433_v33 = vsub.f32 %v10911_v1, %v5009_v3  ;;  %v5010_v6 = vsel %vm4981_vm1, %v10957_v16, -inf  ;;  %v4431_v60 = vadd.f32 %v10758_v14, %v4430_v22  ;;  %v10970_v40 = vmul.f32 0.17677669, %v4690_v44 }
 0x2f6   : > { %8524 = vpow2.f32 %v5494_v59  ;;  %v5431_v63 = vsub.f32 %v10916_v17, %v4995_v46  ;;  %v5026_v58 = vmax.f32 %v5024_v48, %v5025_v45  ;;  %v5011_v37 = vrot.slane %v5010_v6, 4  ;;  %v4433_v47 = vpop.f32.mrf.mxu1 }
 0x2f7   : > { %v5500_v8 = vmul.f32 1.442695, %v5433_v33  ;;  %v4442_v1 = vadd.f32 %v10758_v14, %v8075_v29  ;;  %v4682_v20 = vadd.f32 %v10854_v38, %v4681_v9  ;;  %v5031_v51 = vsel %vm4981_vm1, %v10970_v40, -inf }
 0x2f8   : > { %v5496_v56 = vmul.f32 1.442695, %v5431_v63  ;;  %v5027_v39 = vrot.slane %v5026_v58, 2  ;;  %v5012_v10 = vmax.f32 %v5010_v6, %v5011_v37  ;;  %v4434_v21 = vadd.f32 %v10758_v14, %v4433_v47 }
 0x2f9   : > { %8526 = vpow2.f32 %v5500_v8  ;;  %v4520_v17 = vmax.f32 %v4442_v1, 0.0  ;;  %v5032_v22 = vrot.slane %v5031_v51, 4  ;;  %v4519_v59 = vmax.f32 %v4439_v50, 0.0 }
 0x2fa   : > { %8528 = vpow2.f32 %v5496_v56  ;;  %v5028_v3 = vmax.f32 %v5026_v58, %v5027_v39  ;;  %v5013_v48 = vrot.slane %v5012_v10, 2  ;;  %v4517_v46 = vmax.f32 %v4431_v60, 0.0  ;;  %v10979_v33 = vpop.eup %8518 }
 0x2fb   : > { %v10977_v45 = vmul.f32 0.17677669, %v4682_v20  ;;  %v4518_v29 = vmax.f32 %v4434_v21, 0.0  ;;  %13099 = vst [vmem:[#allocation75_spill] sm:$0xff] %v10979_v33  ;;  %v5033_v9 = vmax.f32 %v5031_v51, %v5032_v22  ;;  %v3650_v63 = vmul.f32 0.044715, %v10883_v32 }
 0x2fc   : > { %v5029_v6 = vrot.slane %v5028_v3, 1  ;;  %v5014_v44 = vmax.f32 %v5012_v10, %v5013_v48  ;;  %v4554_v37 = vpack.c.bf16 %v4520_v17, %v4519_v59  ;;  %v3589_v58 = vmul.f32 %v10894_v4, %v10870_v7  ;;  %v10986_v20 = vpop.eup %8520 }
 0x2fd   : > { %v5017_v47 = vsel %vm4981_vm1, %v10977_v45, -inf  ;;  %v4553_v8 = vpack.c.bf16 %v4518_v29, %v4517_v46  ;;  %v5034_v1 = vrot.slane %v5033_v9, 2  ;;  %13100 = vst [vmem:[#allocation79_spill] sm:$0xff] %v10986_v20  ;;  %v10990_v10 = vmul.f32 %v10944_v57, %v10944_v57 }
 0x2fe   : > { %v5030_v50 = vmax.f32 %v5028_v3, %v5029_v6  ;;  %v5015_v60 = vrot.slane %v5014_v44, 1  ;;  %v5018_v56 = vrot.slane %v5017_v47, 4  ;;  %v8106_v39 = vpop.f32.mrf.mxu0  ;;  %v13102_v32 = vrot.slane %v10093_v23, %v9619_v28 }
 0x2ff   : > { %13101 = vst [vmem:[#allocation50_spill] sm:$0xff] %v10990_v10  ;;  %8152 = vmatprep.mubr.bf16.mxu0 %v4553_v8  ;;  %v4703_v17 = vadd.f32 %v8106_v39, %v10854_v38  ;;  %v10998_v4 = vadd.f32 1.0, %v10934_v34  ;;  %v5035_v48 = vmax.f32 %v5033_v9, %v5034_v1  ;;  %v11010_v6 = vadd.f32 %v3650_v63, %v10831_v55 }
 0x300   : > { %v3232_v51 = vadd.f32 %v10949_v36, %v13102_v32  ;;  %v5436_v21 = vsub.f32 %v10951_v31, %v5030_v50  ;;  %v5016_v3 = vmax.f32 %v5014_v44, %v5015_v60  ;;  %v5019_v22 = vmax.f32 %v5017_v47, %v5018_v56  ;;  %8153 = vmatmul.mubr.bf16.gmra.mxu0 %v4554_v37  ;;  %v4694_v59 = vpop.f32.mrf.mxu0  ;;  %v8078_v60 = vpop.f32.mrf.mxu1 }
 0x301   : > { %v11001_v46 = vpop.eup %8522  ;;  %v11003_v29 = vmul.f32 0.17677669, %v4703_v17  ;;  %v4695_v23 = vadd.f32 %v10854_v38, %v4694_v59  ;;  %v11007_v36 = vmul.f32 0.044715, %v10961_v41  ;;  %v5036_v9 = vrot.slane %v5035_v48, 1 }
 0x302   : > { %v5636_v34 = vsel %vm4981_vm1, %v11001_v46, 0.0  ;;  %v5506_v31 = vmul.f32 1.442695, %v5436_v21  ;;  %v5434_v44 = vsub.f32 %v10957_v16, %v5016_v3  ;;  %v5020_v8 = vrot.slane %v5019_v22, 2 }
 0x303   : > { %v11015_v37 = vpop.eup %8524  ;;  %v5637_v47 = vrot.slane %v5636_v34, 4  ;;  %v5052_v50 = vsel %vm4981_vm1, %v11003_v29, -inf  ;;  %v11019_v41 = vmul.f32 0.044715, %v3589_v58  ;;  %v5037_v56 = vmax.f32 %v5035_v48, %v5036_v9 }
 0x304   : > { %v5622_v63 = vsel %vm4981_vm1, %v11015_v37, 0.0  ;;  %8530 = vpow2.f32 %v5506_v31  ;;  %v5502_v1 = vmul.f32 1.442695, %v5434_v44  ;;  %v5021_v16 = vmax.f32 %v5019_v22, %v5020_v8 }
 0x305   : > { %13103 = vst [vmem:[#allocation80_spill] sm:$0xff] %v11019_v41  ;;  %v5638_v39 = vadd.f32 %v5637_v47, %v5636_v34  ;;  %v5623_v32 = vrot.slane %v5622_v63, 4  ;;  %v5053_v17 = vrot.slane %v5052_v50, 4  ;;  %v5437_v3 = vsub.f32 %v10970_v40, %v5037_v56  ;;  %v4446_v40 = vpop.f32.mrf.mxu1 }
 0x306   : > { %v11023_v21 = vpop.eup %8526  ;;  %8532 = vpow2.f32 %v5502_v1  ;;  %v11027_v59 = vadd.f32 %v10758_v14, %v8078_v60  ;;  %v11029_v58 = vmul.f32 0.17677669, %v4695_v23  ;;  %v5022_v34 = vrot.slane %v5021_v16, 1 }
 0x307   : > { %v11031_v55 = vpop.eup %8528  ;;  %v5639_v0 = vrot.slane %v5638_v39, 2  ;;  %v5624_v31 = vadd.f32 %v5623_v32, %v5622_v63  ;;  %v5643_v48 = vsel %vm4981_vm1, %v11023_v21, 0.0  ;;  %v5508_v9 = vmul.f32 1.442695, %v5437_v3  ;;  %v8107_v32 = vpop.f32.mrf.mxu0 }
 0x308   : > { %v5644_v22 = vrot.slane %v5643_v48, 4  ;;  %v5629_v44 = vsel %vm4981_vm1, %v11031_v55, 0.0  ;;  %v5054_v47 = vmax.f32 %v5052_v50, %v5053_v17  ;;  %v5023_v23 = vmax.f32 %v5021_v16, %v5022_v34  ;;  %v8079_v17 = vpop.f32.mrf.mxu1 }
 0x309   : > { %v5640_v8 = vadd.f32 %v5639_v0, %v5638_v39  ;;  %v5625_v60 = vrot.slane %v5624_v31, 2  ;;  %v5630_v1 = vrot.slane %v5629_v44, 4  ;;  %8534 = vpow2.f32 %v5508_v9 }
 0x30a   : > { %v5645_v56 = vadd.f32 %v5644_v22, %v5643_v48  ;;  %v5055_v15 = vrot.slane %v5054_v47, 2  ;;  %v5038_v63 = vsel %vm4981_vm1, %v11029_v58, -inf  ;;  %v5435_v52 = vsub.f32 %v10977_v45, %v5023_v23 }
 0x30b   : > { %v5641_v20 = vrot.slane %v5640_v8, 1  ;;  %v5631_v42 = vadd.f32 %v5630_v1, %v5629_v44  ;;  %v11041_v13 = vadd.f32 %v10758_v14, %v4446_v40  ;;  %v11044_v50 = vadd.f32 %v10419_v61, %v3232_v51  ;;  %v4697_v1 = vpop.f32.mrf.mxu0 }
 0x30c   : > { %v5646_v0 = vrot.slane %v5645_v56, 2  ;;  %v5056_v39 = vmax.f32 %v5054_v47, %v5055_v15  ;;  %v5039_v16 = vrot.slane %v5038_v63, 4  ;;  %v11046_v48 = vadd.f32 %v5625_v60, %v5624_v31 }
 0x30d   : > { %13104 = vst [vmem:[#allocation48_spill] sm:$0xff] %v11044_v50  ;;  %v5642_v3 = vadd.f32 %v5641_v20, %v5640_v8  ;;  %v5504_v34 = vmul.f32 1.442695, %v5435_v52  ;;  %v11049_v22 = vmul.f32 0.5, %v10998_v4  ;;  %v4706_v40 = vadd.f32 %v8107_v32, %v10854_v38 }
 0x30e   : > { %v5647_v44 = vadd.f32 %v5646_v0, %v5645_v56  ;;  %v5057_v9 = vrot.slane %v5056_v39, 1  ;;  %v5040_v45 = vmax.f32 %v5038_v63, %v5039_v16  ;;  %v5632_v23 = vrot.slane %v5631_v42, 2 }
 0x30f   : > { %13105 = vst [vmem:[#allocation76_spill] sm:$0xff] %v11049_v22  ;;  %v4523_v51 = vmax.f32 %v11027_v59, 0.0  ;;  %v4521_v15 = vmax.f32 %v11041_v13, 0.0  ;;  %v4458_v47 = vadd.f32 %v10758_v14, %v8079_v17  ;;  %8536 = vpow2.f32 %v5504_v34  ;;  %v4449_v34 = vpop.f32.mrf.mxu1 }
 0x310   : > { %v5648_v20 = vrot.slane %v5647_v44, 1  ;;  %v5058_v31 = vmax.f32 %v5056_v39, %v5057_v9  ;;  %v5041_v52 = vrot.slane %v5040_v45, 2  ;;  %8538 = vrcp.f32 %v5642_v3  ;;  %v8110_v9 = vpop.f32.mrf.mxu0 }
 0x311   : > { %v11055_v8 = vpop.eup %8530  ;;  %v11058_v60 = vmul.f32 0.17677669, %v4706_v40  ;;  %v4698_v56 = vadd.f32 %v10854_v38, %v4697_v1  ;;  %v11066_v39 = vadd.f32 %v5632_v23, %v5631_v42  ;;  %v4524_v3 = vmax.f32 %v4458_v47, 0.0 }
 0x312   : > { %v5649_v63 = vadd.f32 %v5648_v20, %v5647_v44  ;;  %v5664_v59 = vsel %vm4981_vm1, %v11055_v8, 0.0  ;;  %v5440_v13 = vsub.f32 %v11003_v29, %v5058_v31  ;;  %v5042_v32 = vmax.f32 %v5040_v45, %v5041_v52 }
 0x313   : > { %v11064_v0 = vpop.eup %8532  ;;  %v5665_v16 = vrot.slane %v5664_v59, 4  ;;  %v5059_v17 = vsel %vm4981_vm1, %v11058_v60, -inf  ;;  %v11072_v31 = vmul.f32 0.17677669, %v4698_v56  ;;  %v4450_v23 = vadd.f32 %v10758_v14, %v4449_v34 }
 0x314   : > { %8540 = vrcp.f32 %v5649_v63  ;;  %v5650_v44 = vsel %vm4981_vm1, %v11064_v0, 0.0  ;;  %v5514_v40 = vmul.f32 1.442695, %v5440_v13  ;;  %v5043_v1 = vrot.slane %v5042_v32, 1 }
 0x315   : > { %v5666_v20 = vadd.f32 %v5665_v16, %v5664_v59  ;;  %v5651_v29 = vrot.slane %v5650_v44, 4  ;;  %v5060_v45 = vrot.slane %v5059_v17, 4  ;;  %v4719_v52 = vadd.f32 %v8110_v9, %v10854_v38  ;;  %v4710_v9 = vpop.f32.mrf.mxu0 }
 0x316   : > { %8542 = vpow2.f32 %v5514_v40  ;;  %v5044_v42 = vmax.f32 %v5042_v32, %v5043_v1  ;;  %v11076_v47 = vpop.eup %8534  ;;  %v5045_v13 = vsel %vm4981_vm1, %v11072_v31, -inf  ;;  %v4522_v40 = vmax.f32 %v4450_v23, 0.0 }
 0x317   : > { %v5667_v4 = vrot.slane %v5666_v20, 2  ;;  %v5652_v63 = vadd.f32 %v5651_v29, %v5650_v44  ;;  %v5061_v33 = vmax.f32 %v5059_v17, %v5060_v45  ;;  %v5671_v59 = vsel %vm4981_vm1, %v11076_v47, 0.0 }
 0x318   : > { %v5438_v56 = vsub.f32 %v11029_v58, %v5044_v42  ;;  %v5046_v16 = vrot.slane %v5045_v13, 4  ;;  %v5672_v14 = vrot.slane %v5671_v59, 4  ;;  %v4555_v28 = vpack.c.bf16 %v4522_v40, %v4521_v15 }
 0x319   : > { %v5668_v32 = vadd.f32 %v5667_v4, %v5666_v20  ;;  %v5653_v1 = vrot.slane %v5652_v63, 2  ;;  %v5062_v34 = vrot.slane %v5061_v33, 2  ;;  %v11083_v44 = vmul.f32 0.17677669, %v4719_v52  ;;  %v8111_v52 = vpop.f32.mrf.mxu0 }
 0x31a   : > { %v5510_v41 = vmul.f32 1.442695, %v5438_v56  ;;  %v5047_v7 = vmax.f32 %v5045_v13, %v5046_v16  ;;  %v5673_v29 = vadd.f32 %v5672_v14, %v5671_v59  ;;  %v4556_v61 = vpack.c.bf16 %v4524_v3, %v4523_v51  ;;  %8156 = vmatprep.mubr.bf16.mxu0 %v4555_v28 }
 0x31b   : > { %v5669_v17 = vrot.slane %v5668_v32, 1  ;;  %v5063_v45 = vmax.f32 %v5061_v33, %v5062_v34  ;;  %v5080_v58 = vsel %vm4981_vm1, %v11083_v44, -inf  ;;  %v4711_v4 = vadd.f32 %v10854_v38, %v4710_v9 }
 0x31c   : > { %8544 = vpow2.f32 %v5510_v41  ;;  %v5048_v19 = vrot.slane %v5047_v7, 2  ;;  %v11088_v20 = vpop.eup %8536  ;;  %v5634_v42 = vrot.slane %v11066_v39, 1  ;;  %v11091_v23 = vadd.f32 %v5653_v1, %v5652_v63  ;;  %8157 = vmatmul.mubr.bf16.gmra.mxu0 %v4556_v61 }
 0x31d   : > { %v5674_v15 = vrot.slane %v5673_v29, 2  ;;  %v11095_v33 = vadd.f32 %v11007_v36, %v10860_v25  ;;  %v8539_v41 = vpop.eup %8538  ;;  %v5657_v28 = vsel %vm4981_vm1, %v11088_v20, 0.0  ;;  %v5064_v51 = vrot.slane %v5063_v45, 1 }
 0x31e   : > { %v5049_v3 = vmax.f32 %v5047_v7, %v5048_v19  ;;  %v5081_v13 = vrot.slane %v5080_v58, 4  ;;  %v13107_v59 = vmov 0   ;;  %v13108_v63 = vrot.slane %v11046_v48, 1 }
 0x31f   : > { %13106 = vst [vmem:[#allocation51_spill] sm:$0xff] %v11095_v33  ;;  %7471 = vmatprep.mubr.bf16.mxu0 %v13107_v59  ;;  %v5670_v61 = vadd.f32 %v5669_v17, %v5668_v32  ;;  %v5675_v16 = vadd.f32 %v5674_v15, %v5673_v29  ;;  %v5658_v40 = vrot.slane %v5657_v28, 4  ;;  %v5065_v1 = vmax.f32 %v5063_v45, %v5064_v51 }
 0x320   : > { %v11103_v56 = vadd.f32 %v13108_v63, %v11046_v48  ;;  %v5050_v36 = vrot.slane %v5049_v3, 1  ;;  %v5082_v14 = vmax.f32 %v5080_v58, %v5081_v13  ;;  %v11105_v34 = vmul.f32 0.17677669, %v4711_v4  ;;  %v4713_v48 = vpop.f32.mrf.mxu0 }
 0x321   : > { %v8541_v9 = vpop.eup %8540  ;;  %v11108_v25 = vmul.f32 %v8539_v41, %v11001_v46  ;;  %v11111_v7 = vadd.f32 %v5634_v42, %v11066_v39  ;;  %v5676_v19 = vrot.slane %v5675_v16, 1  ;;  %v4722_v59 = vadd.f32 %v8111_v52, %v10854_v38 }
 0x322   : > { %v5655_v32 = vrot.slane %v11091_v23, 1  ;;  %v5441_v17 = vsub.f32 %v11058_v60, %v5065_v1  ;;  %v5051_v29 = vmax.f32 %v5049_v3, %v5050_v36  ;;  %v5083_v45 = vrot.slane %v5082_v14, 2  ;;  %v8114_v60 = vpop.f32.mrf.mxu0 }
 0x323   : > { %v11116_v58 = vpop.eup %8542  ;;  %8546 = vrcp.f32 %v5670_v61  ;;  %v5659_v4 = vadd.f32 %v5658_v40, %v5657_v28  ;;  %v5066_v46 = vsel %vm4981_vm1, %v11105_v34, -inf  ;;  %v11120_v15 = vmul.f32 0.17677669, %v4722_v59 }
 0x324   : > { %v5692_v39 = vsel %vm4981_vm1, %v11116_v58, 0.0  ;;  %v5516_v42 = vmul.f32 1.442695, %v5441_v17  ;;  %v5439_v52 = vsub.f32 %v11072_v31, %v5051_v29  ;;  %v4714_v41 = vadd.f32 %v10854_v38, %v4713_v48 }
 0x325   : > { %v11127_v51 = vmul.f32 %v8541_v9, %v11023_v21  ;;  %v5677_v3 = vadd.f32 %v5676_v19, %v5675_v16  ;;  %v5693_v13 = vrot.slane %v5692_v39, 4  ;;  %v5084_v28 = vmax.f32 %v5082_v14, %v5083_v45  ;;  %v4726_v9 = vpop.f32.mrf.mxu0 }
 0x326   : > { %8548 = vpow2.f32 %v5516_v42  ;;  %v5512_v63 = vmul.f32 1.442695, %v5439_v52  ;;  %v5067_v61 = vrot.slane %v5066_v46, 4  ;;  %v5087_v59 = vsel %vm4981_vm1, %v11120_v15, -inf }
 0x327   : > { %v5660_v40 = vrot.slane %v5659_v4, 2  ;;  %v5694_v1 = vadd.f32 %v5693_v13, %v5692_v39  ;;  %v5085_v36 = vrot.slane %v5084_v28, 1  ;;  %v5088_v17 = vrot.slane %v5087_v59, 4 }
 0x328   : > { %8550 = vpow2.f32 %v5512_v63  ;;  %v5068_v31 = vmax.f32 %v5066_v46, %v5067_v61  ;;  %v11131_v48 = vmul.f32 0.17677669, %v4714_v41  ;;  %v4735_v21 = vadd.f32 %v8114_v60, %v10854_v38 }
 0x329   : > { %v11134_v16 = vpop.eup %8544  ;;  %8552 = vrcp.f32 %v5677_v3  ;;  %v5695_v14 = vrot.slane %v5694_v1, 2  ;;  %v5086_v19 = vmax.f32 %v5084_v28, %v5085_v36  ;;  %v5089_v29 = vmax.f32 %v5087_v59, %v5088_v17  ;;  %v8115_v59 = vpop.f32.mrf.mxu0 }
 0x32a   : > { %v5678_v45 = vsel %vm4981_vm1, %v11134_v16, 0.0  ;;  %v5069_v42 = vrot.slane %v5068_v31, 2  ;;  %v5073_v39 = vsel %vm4981_vm1, %v11131_v48, -inf  ;;  %v11140_v52 = vmul.f32 0.17677669, %v4735_v21 }
 0x32b   : > { %v11142_v46 = vadd.f32 %v5660_v40, %v5659_v4  ;;  %v5696_v41 = vadd.f32 %v5695_v14, %v5694_v1  ;;  %v5444_v60 = vsub.f32 %v11083_v44, %v5086_v19  ;;  %v5090_v13 = vrot.slane %v5089_v29, 2 }
 0x32c   : > { %v5070_v63 = vmax.f32 %v5068_v31, %v5069_v42  ;;  %v5074_v3 = vrot.slane %v5073_v39, 4  ;;  %v5108_v28 = vsel %vm4981_vm1, %v11140_v52, -inf  ;;  %v4727_v61 = vadd.f32 %v10854_v38, %v4726_v9 }
 0x32d   : > { %v5697_v36 = vrot.slane %v5696_v41, 1  ;;  %v5679_v17 = vrot.slane %v5678_v45, 4  ;;  %v5522_v33 = vmul.f32 1.442695, %v5444_v60  ;;  %v5091_v2 = vmax.f32 %v5089_v29, %v5090_v13 }
 0x32e   : > { %v5071_v21 = vrot.slane %v5070_v63, 1  ;;  %v5075_v18 = vmax.f32 %v5073_v39, %v5074_v3  ;;  %v5109_v4 = vrot.slane %v5108_v28, 4  ;;  %v11148_v40 = vmul.f32 0.17677669, %v4727_v61  ;;  %v4729_v39 = vpop.f32.mrf.mxu0 }
 0x32f   : > { %v11153_v1 = vadd.f32 %v5655_v32, %v11091_v23  ;;  %8554 = vpow2.f32 %v5522_v33  ;;  %v5092_v31 = vrot.slane %v5091_v2, 1  ;;  %v5662_v60 = vrot.slane %v11142_v46, 1 }
 0x330   : > { %v11155_v14 = vpop.eup %8546  ;;  %v5072_v9 = vmax.f32 %v5070_v63, %v5071_v21  ;;  %v5076_v19 = vrot.slane %v5075_v18, 2  ;;  %v5110_v42 = vmax.f32 %v5108_v28, %v5109_v4  ;;  %v5094_v29 = vsel %vm4981_vm1, %v11148_v40, -inf }
 0x331   : > { %v5680_v13 = vadd.f32 %v5679_v17, %v5678_v45  ;;  %v5093_v3 = vmax.f32 %v5091_v2, %v5092_v31  ;;  %v5095_v61 = vrot.slane %v5094_v29, 4  ;;  %v11160_v44 = vadd.f32 %v5697_v36, %v5696_v41 }
 0x332   : > { %v5442_v23 = vsub.f32 %v11105_v34, %v5072_v9  ;;  %v5077_v33 = vmax.f32 %v5075_v18, %v5076_v19  ;;  %v5111_v32 = vrot.slane %v5110_v42, 2  ;;  %v4738_v21 = vadd.f32 %v8115_v59, %v10854_v38 }
 0x333   : > { %v11163_v24 = vpop.eup %8548  ;;  %v5445_v63 = vsub.f32 %v11120_v15, %v5093_v3  ;;  %v5096_v28 = vmax.f32 %v5094_v29, %v5095_v61  ;;  %v4730_v4 = vadd.f32 %v10854_v38, %v4729_v39  ;;  %v5681_v34 = vrot.slane %v5680_v13, 2 }
 0x334   : > { %v5699_v45 = vsel %vm4981_vm1, %v11163_v24, 0.0  ;;  %v5518_v2 = vmul.f32 1.442695, %v5442_v23  ;;  %v5078_v17 = vrot.slane %v5077_v33, 1  ;;  %v5112_v41 = vmax.f32 %v5110_v42, %v5111_v32 }
 0x335   : > { %v11170_v36 = vpop.eup %8550  ;;  %v5700_v18 = vrot.slane %v5699_v45, 4  ;;  %v5524_v31 = vmul.f32 1.442695, %v5445_v63  ;;  %v5097_v9 = vrot.slane %v5096_v28, 2  ;;  %v11177_v32 = vmul.f32 0.17677669, %v4738_v21  ;;  %v8118_v63 = vpop.f32.mrf.mxu0 }
 0x336   : > { %v11172_v19 = vpop.eup %8552  ;;  %v5685_v15 = vsel %vm4981_vm1, %v11170_v36, 0.0  ;;  %8556 = vpow2.f32 %v5518_v2  ;;  %v5079_v59 = vmax.f32 %v5077_v33, %v5078_v17  ;;  %v5113_v29 = vrot.slane %v5112_v41, 1 }
 0x337   : > { %v5701_v39 = vadd.f32 %v5700_v18, %v5699_v45  ;;  %v5686_v3 = vrot.slane %v5685_v15, 4  ;;  %8558 = vpow2.f32 %v5524_v31  ;;  %v5098_v61 = vmax.f32 %v5096_v28, %v5097_v9  ;;  %v4742_v9 = vpop.f32.mrf.mxu0 }
 0x338   : > { %v5443_v42 = vsub.f32 %v11131_v48, %v5079_v59  ;;  %v5114_v23 = vmax.f32 %v5112_v41, %v5113_v29  ;;  %v11179_v22 = vmul.f32 0.17677669, %v4730_v4  ;;  %8560 = vrcp.f32 %v11103_v56 }
 0x339   : > { %v5702_v27 = vrot.slane %v5701_v39, 2  ;;  %v5687_v12 = vadd.f32 %v5686_v3, %v5685_v15  ;;  %v5099_v54 = vrot.slane %v5098_v61, 1  ;;  %v5115_v45 = vsel %vm4981_vm1, %v11177_v32, -inf }
 0x33a   : > { %v5520_v2 = vmul.f32 1.442695, %v5443_v42  ;;  %v5448_v33 = vsub.f32 %v11140_v52, %v5114_v23  ;;  %v5101_v48 = vsel %vm4981_vm1, %v11179_v22, -inf  ;;  %v5116_v4 = vrot.slane %v5115_v45, 4 }
 0x33b   : > { %v5703_v28 = vadd.f32 %v5702_v27, %v5701_v39  ;;  %v5688_v21 = vrot.slane %v5687_v12, 2  ;;  %v5100_v17 = vmax.f32 %v5098_v61, %v5099_v54  ;;  %v5102_v31 = vrot.slane %v5101_v48, 4 }
 0x33c   : > { %v11187_v41 = vpop.eup %8554  ;;  %8562 = vpow2.f32 %v5520_v2  ;;  %v5530_v18 = vmul.f32 1.442695, %v5448_v33  ;;  %v4751_v56 = vadd.f32 %v8118_v63, %v10854_v38  ;;  %v11190_v15 = vadd.f32 %v5681_v34, %v5680_v13  ;;  %v8119_v2 = vpop.f32.mrf.mxu0 }
 0x33d   : > { %v5704_v52 = vrot.slane %v5703_v28, 1  ;;  %v5720_v59 = vsel %vm4981_vm1, %v11187_v41, 0.0  ;;  %v5446_v29 = vsub.f32 %v11148_v40, %v5100_v17  ;;  %v5117_v54 = vmax.f32 %v5115_v45, %v5116_v4 }
 0x33e   : > { %v5721_v27 = vrot.slane %v5720_v59, 4  ;;  %8564 = vpow2.f32 %v5530_v18  ;;  %v5103_v39 = vmax.f32 %v5101_v48, %v5102_v31  ;;  %v11196_v3 = vadd.f32 %v5662_v60, %v11142_v46 }
 0x33f   : > { %v11198_v61 = vadd.f32 %v5688_v21, %v5687_v12  ;;  %v5526_v42 = vmul.f32 1.442695, %v5446_v29  ;;  %8566 = vrcp.f32 %v11111_v7  ;;  %v5118_v34 = vrot.slane %v5117_v54, 2 }
 0x340   : > { %v5722_v13 = vadd.f32 %v5721_v27, %v5720_v59  ;;  %v5104_v23 = vrot.slane %v5103_v39, 2  ;;  %v11201_v63 = vmul.f32 0.17677669, %v4751_v56  ;;  %8568 = vrcp.f32 %v11160_v44  ;;  %v4745_v27 = vpop.f32.mrf.mxu0 }
 0x341   : > { %v5705_v33 = vadd.f32 %v5704_v52, %v5703_v28  ;;  %v4743_v45 = vadd.f32 %v10854_v38, %v4742_v9  ;;  %8570 = vpow2.f32 %v5526_v42  ;;  %v5119_v12 = vmax.f32 %v5117_v54, %v5118_v34 }
 0x342   : > { %v5723_v46 = vrot.slane %v5722_v13, 2  ;;  %v5105_v60 = vmax.f32 %v5103_v39, %v5104_v23  ;;  %v5136_v21 = vsel %vm4981_vm1, %v11201_v63, -inf  ;;  %v4754_v44 = vadd.f32 %v8119_v2, %v10854_v38 }
 0x343   : > { %v11206_v48 = vpop.eup %8556  ;;  %v11211_v17 = vmul.f32 0.17677669, %v4743_v45  ;;  %v5120_v31 = vrot.slane %v5119_v12, 1  ;;  %v5137_v59 = vrot.slane %v5136_v21, 4  ;;  %8572 = vrcp.f32 %v5705_v33 }
 0x344   : > { %v11214_v4 = vpop.eup %8558  ;;  %v5724_v28 = vadd.f32 %v5723_v46, %v5722_v13  ;;  %v5706_v18 = vsel %vm4981_vm1, %v11206_v48, 0.0  ;;  %v5106_v56 = vrot.slane %v5105_v60, 1  ;;  %v11222_v45 = vmul.f32 0.17677669, %v4754_v44 }
 0x345   : > { %v5707_v9 = vrot.slane %v5706_v18, 4  ;;  %v5727_v52 = vsel %vm4981_vm1, %v11214_v4, 0.0  ;;  %v5122_v29 = vsel %vm4981_vm1, %v11211_v17, -inf  ;;  %v8561_v54 = vpop.eup %8560  ;;  %v5121_v42 = vmax.f32 %v5119_v12, %v5120_v31 }
 0x346   : > { %v5728_v39 = vrot.slane %v5727_v52, 4  ;;  %v5107_v34 = vmax.f32 %v5105_v60, %v5106_v56  ;;  %v5138_v23 = vmax.f32 %v5136_v21, %v5137_v59  ;;  %v5123_v2 = vrot.slane %v5122_v29, 4 }
 0x347   : > { %v5708_v13 = vadd.f32 %v5707_v9, %v5706_v18  ;;  %v5449_v7 = vsub.f32 %v11177_v32, %v5121_v42  ;;  %v4746_v35 = vadd.f32 %v10854_v38, %v4745_v27  ;;  %v5725_v5 = vrot.slane %v5724_v28, 1 }
 0x348   : > { %v5729_v46 = vadd.f32 %v5728_v39, %v5727_v52  ;;  %v5447_v40 = vsub.f32 %v11179_v22, %v5107_v34  ;;  %v6134_v33 = vmul.f32 %v8561_v54, %v11015_v37  ;;  %v5139_v30 = vrot.slane %v5138_v23, 2  ;;  %v8122_v34 = vpop.f32.mrf.mxu0 }
 0x349   : > { %v11227_v53 = vpop.eup %8562  ;;  %v5124_v12 = vmax.f32 %v5122_v29, %v5123_v2  ;;  %v5709_v60 = vrot.slane %v5708_v13, 2  ;;  %v5532_v44 = vmul.f32 1.442695, %v5449_v7  ;;  %v5143_v38 = vsel %vm4981_vm1, %v11222_v45, -inf }
 0x34a   : > { %v5730_v18 = vrot.slane %v5729_v46, 2  ;;  %v5713_v21 = vsel %vm4981_vm1, %v11227_v53, 0.0  ;;  %v5528_v56 = vmul.f32 1.442695, %v5447_v40  ;;  %v5140_v22 = vmax.f32 %v5138_v23, %v5139_v30 }
 0x34b   : > { %v11232_v31 = vpop.eup %8564  ;;  %v5714_v32 = vrot.slane %v5713_v21, 4  ;;  %8574 = vpow2.f32 %v5532_v44  ;;  %v5125_v59 = vrot.slane %v5124_v12, 2  ;;  %v5726_v29 = vadd.f32 %v5725_v5, %v5724_v28 }
 0x34c   : > { %v8567_v9 = vpop.eup %8566  ;;  %v5731_v52 = vadd.f32 %v5730_v18, %v5729_v46  ;;  %v5748_v37 = vsel %vm4981_vm1, %v11232_v31, 0.0  ;;  %8576 = vpow2.f32 %v5528_v56  ;;  %v5141_v30 = vrot.slane %v5140_v22, 1 }
 0x34d   : > { %v5715_v27 = vadd.f32 %v5714_v32, %v5713_v21  ;;  %v5749_v54 = vrot.slane %v5748_v37, 4  ;;  %v11238_v7 = vpop.eup %8568  ;;  %v6135_v40 = vmul.f32 %v8567_v9, %v11031_v55  ;;  %v5126_v42 = vmax.f32 %v5124_v12, %v5125_v59 }
 0x34e   : > { %v5732_v39 = vrot.slane %v5731_v52, 1  ;;  %v11241_v23 = vpop.eup %8570  ;;  %v5710_v2 = vadd.f32 %v5709_v60, %v5708_v13  ;;  %v5144_v50 = vrot.slane %v5143_v38, 4  ;;  %v5142_v21 = vmax.f32 %v5140_v22, %v5141_v30  ;;  %v4758_v60 = vpop.f32.mrf.mxu0 }
 0x34f   : > { %v5716_v46 = vrot.slane %v5715_v27, 2  ;;  %v5750_v18 = vadd.f32 %v5749_v54, %v5748_v37  ;;  %v5734_v5 = vsel %vm4981_vm1, %v11241_v23, 0.0  ;;  %v6198_v28 = vpack.c.bf16 %v6135_v40, %v6134_v33 }
 0x350   : > { %v5733_v44 = vadd.f32 %v5732_v39, %v5731_v52  ;;  %v5735_v43 = vrot.slane %v5734_v5, 4  ;;  %v5127_v49 = vrot.slane %v5126_v42, 1  ;;  %8578 = vrcp.f32 %v5726_v29  ;;  %v11249_v9 = vpop.eup %8572  ;;  %v8123_v40 = vpop.f32.mrf.mxu0 }
 0x351   : > { %v5717_v32 = vadd.f32 %v5716_v46, %v5715_v27  ;;  %v5751_v56 = vrot.slane %v5750_v18, 2  ;;  %8162 = vmatprep.mubr.msk.bf16.mxu1 %vm4981_vm1, %v6198_v28  ;;  %v5452_v55 = vsub.f32 %v11201_v63, %v5142_v21  ;;  %v5145_v12 = vmax.f32 %v5143_v38, %v5144_v50 }
 0x352   : > { %v11247_v13 = vmul.f32 0.17677669, %v4746_v35  ;;  %v5711_v52 = vrot.slane %v5710_v2, 1  ;;  %v13109_v33 = vpack.c.bf16 %v11127_v51, %v11108_v25  ;;  %v5128_v22 = vmax.f32 %v5126_v42, %v5127_v49 }
 0x353   : > { %v5718_v37 = vrot.slane %v5717_v32, 1  ;;  %v5752_v59 = vadd.f32 %v5751_v56, %v5750_v18  ;;  %v5538_v29 = vmul.f32 1.442695, %v5452_v55  ;;  %v5146_v27 = vrot.slane %v5145_v12, 2 }
 0x354   : > { %8163 = vmatmul.mubr.msk.bf16.vlgmr.msra.gmra.mxu1 %vm4981_vm1, %v13109_v33  ;;  %v5129_v63 = vsel %vm4981_vm1, %v11247_v13, -inf  ;;  %8580 = vrcp.f32 %v11153_v1  ;;  %v13110_v35 = vrot.slane %v11190_v15, 1  ;;  %v5736_v38 = vadd.f32 %v5735_v43, %v5734_v5 }
 0x355   : > { %8582 = vrcp.f32 %v5733_v44  ;;  %v5450_v54 = vsub.f32 %v11211_v17, %v5128_v22  ;;  %v13111_v25 = vrot.slane %v11198_v61, 1  ;;  %v5147_v51 = vmax.f32 %v5145_v12, %v5146_v27  ;;  %v11277_v17 = vld [vmem:[%s12769_s10] ss:$0 sm:$0xff] }
 0x356   : > { %v11261_v50 = vadd.f32 %v13110_v35, %v11190_v15  ;;  %8584 = vpow2.f32 %v5538_v29  ;;  %v5130_v39 = vrot.slane %v5129_v63, 4  ;;  %v11269_v30 = vadd.f32 %v5711_v52, %v5710_v2 }
 0x357   : > { %v11267_v49 = vadd.f32 %v13111_v25, %v11198_v61  ;;  %v5753_v1 = vrot.slane %v5752_v59, 1  ;;  %v5534_v42 = vmul.f32 1.442695, %v5450_v54  ;;  %8586 = vrcp.f32 %v11196_v3 }
 0x358   : > { %v11272_v15 = vadd.f32 %v5718_v37, %v5717_v32  ;;  %v5148_v43 = vrot.slane %v5147_v51, 1  ;;  %v5131_v46 = vmax.f32 %v5129_v63, %v5130_v39  ;;  %v4767_v61 = vadd.f32 %v11277_v17, %v8122_v34  ;;  %v11280_v18 = vpop.eup %8574  ;;  %v4761_v34 = vpop.f32.mrf.mxu0 }
 0x359   : > { %v5737_v44 = vrot.slane %v5736_v38, 2  ;;  %v11284_v2 = vmul.f32 %v11155_v14, %v11055_v8  ;;  %v4759_v3 = vadd.f32 %v11277_v17, %v4758_v60  ;;  %v4770_v5 = vadd.f32 %v11277_v17, %v8123_v40  ;;  %v11288_v28 = vpop.eup %8576 }
 0x35a   : > { %v5755_v21 = vsel %vm4981_vm1, %v11280_v18, 0.0  ;;  %8588 = vpow2.f32 %v5534_v42  ;;  %v5149_v32 = vmax.f32 %v5147_v51, %v5148_v43  ;;  %v5132_v56 = vrot.slane %v5131_v46, 2 }
 0x35b   : > { %v5754_v55 = vadd.f32 %v5753_v1, %v5752_v59  ;;  %v5756_v12 = vrot.slane %v5755_v21, 4  ;;  %v5741_v52 = vsel %vm4981_vm1, %v11288_v28, 0.0  ;;  %v11296_v8 = vmul.f32 %v11172_v19, %v11076_v47 }
 0x35c   : > { %v5742_v14 = vrot.slane %v5741_v52, 4  ;;  %v5453_v60 = vsub.f32 %v11222_v45, %v5149_v32  ;;  %v5133_v37 = vmax.f32 %v5131_v46, %v5132_v56  ;;  %v11299_v33 = vmul.f32 0.17677669, %v4767_v61 }
 0x35d   : > { %v5757_v22 = vadd.f32 %v5756_v12, %v5755_v21  ;;  %v11301_v29 = vmul.f32 0.17677669, %v4759_v3  ;;  %v11303_v27 = vmul.f32 0.17677669, %v4770_v5  ;;  %v4762_v59 = vadd.f32 %v11277_v17, %v4761_v34  ;;  %v11308_v19 = vpop.eup %8578 }
 0x35e   : > { %v5743_v63 = vadd.f32 %v5742_v14, %v5741_v52  ;;  %v5540_v35 = vmul.f32 1.442695, %v5453_v60  ;;  %v5134_v54 = vrot.slane %v5133_v37, 1  ;;  %v5164_v47 = vsel %vm4981_vm1, %v11299_v33, -inf }
 0x35f   : > { %v5758_v25 = vrot.slane %v5757_v22, 2  ;;  %v5165_v45 = vrot.slane %v5164_v47, 4  ;;  %v5150_v51 = vsel %vm4981_vm1, %v11301_v29, -inf  ;;  %v5171_v39 = vsel %vm4981_vm1, %v11303_v27, -inf }
 0x360   : > { %v11314_v40 = vadd.f32 %v5737_v44, %v5736_v38  ;;  %8590 = vpow2.f32 %v5540_v35  ;;  %v5135_v1 = vmax.f32 %v5133_v37, %v5134_v54  ;;  %v5151_v42 = vrot.slane %v5150_v51, 4  ;;  %v8126_v35 = vpop.f32.mrf.mxu0 }
 0x361   : > { %v8581_v43 = vpop.eup %8580  ;;  %v5759_v46 = vadd.f32 %v5758_v25, %v5757_v22  ;;  %v5166_v61 = vmax.f32 %v5164_v47, %v5165_v45  ;;  %v5172_v3 = vrot.slane %v5171_v39, 4  ;;  %v11316_v5 = vmul.f32 0.17677669, %v4762_v59 }
 0x362   : > { %v11318_v21 = vpop.eup %8582  ;;  %8592 = vrcp.f32 %v5754_v55  ;;  %v5744_v32 = vrot.slane %v5743_v63, 2  ;;  %v5451_v56 = vsub.f32 %v11247_v13, %v5135_v1  ;;  %v5152_v34 = vmax.f32 %v5150_v51, %v5151_v42 }
 0x363   : > { %v11321_v12 = vpop.eup %8584  ;;  %v5760_v38 = vrot.slane %v5759_v46, 1  ;;  %v6201_v44 = vpack.c.bf16 %v11296_v8, %v11284_v2  ;;  %v5167_v52 = vrot.slane %v5166_v61, 2  ;;  %v5173_v14 = vmax.f32 %v5171_v39, %v5172_v3 }
 0x364   : > { %v8587_v60 = vpop.eup %8586  ;;  %v5776_v37 = vsel %vm4981_vm1, %v11321_v12, 0.0  ;;  %v5536_v22 = vmul.f32 1.442695, %v5451_v56  ;;  %v6138_v59 = vmul.f32 %v8581_v43, %v11064_v0  ;;  %v5153_v55 = vrot.slane %v5152_v34, 2 }
 0x365   : > { %v5777_v54 = vrot.slane %v5776_v37, 4  ;;  %v6139_v13 = vmul.f32 %v8587_v60, %v11088_v20  ;;  %v5168_v47 = vmax.f32 %v5166_v61, %v5167_v52  ;;  %v5157_v25 = vsel %vm4981_vm1, %v11316_v5, -inf  ;;  %v4774_v61 = vpop.f32.mrf.mxu0 }
 0x366   : > { %v5745_v45 = vadd.f32 %v5744_v32, %v5743_v63  ;;  %8594 = vpow2.f32 %v5536_v22  ;;  %v5154_v2 = vmax.f32 %v5152_v34, %v5153_v55  ;;  %v5174_v8 = vrot.slane %v5173_v14, 2 }
 0x367   : > { %v11331_v51 = vpop.eup %8588  ;;  %v5761_v39 = vadd.f32 %v5760_v38, %v5759_v46  ;;  %v5778_v1 = vadd.f32 %v5777_v54, %v5776_v37  ;;  %v6200_v42 = vpack.c.bf16 %v6139_v13, %v6138_v59  ;;  %v5169_v3 = vrot.slane %v5168_v47, 1 }
 0x368   : > { %v5762_v0 = vsel %vm4981_vm1, %v11331_v51, 0.0  ;;  %v5155_v43 = vrot.slane %v5154_v2, 1  ;;  %v5175_v56 = vmax.f32 %v5173_v14, %v5174_v8  ;;  %v5158_v20 = vrot.slane %v5157_v25, 4 }
 0x369   : > { %v5779_v52 = vrot.slane %v5778_v1, 2  ;;  %v5763_v60 = vrot.slane %v5762_v0, 4  ;;  %8166 = vmatprep.mubr.msk.bf16.mxu1 %vm4981_vm1, %v6200_v42  ;;  %v5170_v63 = vmax.f32 %v5168_v47, %v5169_v3  ;;  %8596 = vrcp.f32 %v11261_v50  ;;  %v8127_v47 = vpop.f32.mrf.mxu0 }
 0x36a   : > { %8167 = vmatmul.mubr.msk.bf16.gmra.mxu1 %vm4981_vm1, %v6201_v44  ;;  %v5156_v46 = vmax.f32 %v5154_v2, %v5155_v43  ;;  %v5176_v32 = vrot.slane %v5175_v56, 1  ;;  %v5159_v34 = vmax.f32 %v5157_v25, %v5158_v20  ;;  %8598 = vrcp.f32 %v11267_v49 }
 0x36b   : > { %v5739_v38 = vrot.slane %v11314_v40, 1  ;;  %v5780_v37 = vadd.f32 %v5779_v52, %v5778_v1  ;;  %v5764_v14 = vadd.f32 %v5763_v60, %v5762_v0  ;;  %v5456_v22 = vsub.f32 %v11299_v33, %v5170_v63 }
 0x36c   : > { %v5746_v59 = vrot.slane %v5745_v45, 1  ;;  %v5454_v55 = vsub.f32 %v11301_v29, %v5156_v46  ;;  %v5177_v54 = vmax.f32 %v5175_v56, %v5176_v32  ;;  %v5160_v13 = vrot.slane %v5159_v34, 2  ;;  %v4777_v56 = vpop.f32.mrf.mxu0 }
 0x36d   : > { %v11342_v50 = vpop.eup %8590  ;;  %8600 = vrcp.f32 %v5761_v39  ;;  %v5765_v44 = vrot.slane %v5764_v14, 2  ;;  %v5546_v2 = vmul.f32 1.442695, %v5456_v22  ;;  %v4783_v25 = vadd.f32 %v11277_v17, %v8126_v35 }
 0x36e   : > { %v5783_v49 = vsel %vm4981_vm1, %v11342_v50, 0.0  ;;  %v5542_v8 = vmul.f32 1.442695, %v5454_v55  ;;  %v5457_v1 = vsub.f32 %v11303_v27, %v5177_v54  ;;  %v5161_v33 = vmax.f32 %v5159_v34, %v5160_v13 }
 0x36f   : > { %v11348_v42 = vpop.eup %8592  ;;  %v11351_v29 = vadd.f32 %v5739_v38, %v11314_v40  ;;  %v5781_v3 = vrot.slane %v5780_v37, 1  ;;  %v5784_v0 = vrot.slane %v5783_v49, 4  ;;  %8602 = vpow2.f32 %v5546_v2 }
 0x370   : > { %v11353_v39 = vadd.f32 %v5746_v59, %v5745_v45  ;;  %8604 = vpow2.f32 %v5542_v8  ;;  %v5548_v43 = vmul.f32 1.442695, %v5457_v1  ;;  %v5162_v35 = vrot.slane %v5161_v33, 1 }
 0x371   : > { %v5766_v20 = vadd.f32 %v5765_v44, %v5764_v14  ;;  %v5785_v52 = vadd.f32 %v5784_v0, %v5783_v49  ;;  %v6145_v27 = vmul.f32 %v11249_v9, %v11163_v24  ;;  %v11357_v60 = vmul.f32 0.17677669, %v4783_v25 }
 0x372   : > { %8606 = vpow2.f32 %v5548_v43  ;;  %v5163_v63 = vmax.f32 %v5161_v33, %v5162_v35  ;;  %v4775_v40 = vadd.f32 %v11277_v17, %v4774_v61  ;;  %v4786_v46 = vadd.f32 %v11277_v17, %v8127_v47 }
 0x373   : > { %v11361_v32 = vpop.eup %8594  ;;  %v5782_v45 = vadd.f32 %v5781_v3, %v5780_v37  ;;  %v5786_v34 = vrot.slane %v5785_v52, 2  ;;  %v5192_v38 = vsel %vm4981_vm1, %v11357_v60, -inf  ;;  %v4778_v14 = vadd.f32 %v11277_v17, %v4777_v56 }
 0x374   : > { %v5769_v24 = vsel %vm4981_vm1, %v11361_v32, 0.0  ;;  %v5455_v9 = vsub.f32 %v11316_v5, %v5163_v63  ;;  %v5193_v22 = vrot.slane %v5192_v38, 4  ;;  %v11369_v59 = vmul.f32 0.17677669, %v4775_v40 }
 0x375   : > { %v5767_v61 = vrot.slane %v5766_v20, 1  ;;  %v5787_v55 = vadd.f32 %v5786_v34, %v5785_v52  ;;  %v5770_v54 = vrot.slane %v5769_v24, 4  ;;  %v11371_v13 = vmul.f32 0.17677669, %v4786_v46 }
 0x376   : > { %v8597_v37 = vpop.eup %8596  ;;  %v5544_v47 = vmul.f32 1.442695, %v5455_v9  ;;  %v5194_v44 = vmax.f32 %v5192_v38, %v5193_v22  ;;  %v5178_v2 = vsel %vm4981_vm1, %v11369_v59, -inf  ;;  %v11375_v25 = vmul.f32 0.17677669, %v4778_v14 }
 0x377   : > { %v8599_v49 = vpop.eup %8598  ;;  %v5788_v8 = vrot.slane %v5787_v55, 1  ;;  %v6142_v5 = vmul.f32 %v8597_v37, %v11134_v16  ;;  %v5179_v1 = vrot.slane %v5178_v2, 4  ;;  %8608 = vrcp.f32 %v11269_v30  ;;  %v8130_v37 = vpop.f32.mrf.mxu0 }
 0x378   : > { %8610 = vpow2.f32 %v5544_v47  ;;  %v6143_v33 = vmul.f32 %v8599_v49, %v11170_v36  ;;  %v5195_v3 = vrot.slane %v5194_v44, 2  ;;  %v5199_v0 = vsel %vm4981_vm1, %v11371_v13, -inf }
 0x379   : > { %v5771_v43 = vadd.f32 %v5770_v54, %v5769_v24  ;;  %v6144_v35 = vmul.f32 %v11238_v7, %v11116_v58  ;;  %v5180_v56 = vmax.f32 %v5178_v2, %v5179_v1  ;;  %v5200_v52 = vrot.slane %v5199_v0, 4 }
 0x37a   : > { %v11384_v63 = vpop.eup %8600  ;;  %v6202_v40 = vpack.c.bf16 %v6143_v33, %v6142_v5  ;;  %v5196_v16 = vmax.f32 %v5194_v44, %v5195_v3  ;;  %v5185_v30 = vsel %vm4981_vm1, %v11375_v25, -inf  ;;  %8612 = vrcp.f32 %v11272_v15 }
 0x37b   : > { %v5789_v36 = vadd.f32 %v5788_v8, %v5787_v55  ;;  %v6203_v46 = vpack.c.bf16 %v6145_v27, %v6144_v35  ;;  %v5181_v34 = vrot.slane %v5180_v56, 2  ;;  %v5201_v38 = vmax.f32 %v5199_v0, %v5200_v52 }
 0x37c   : > { %v11389_v14 = vpop.eup %8602  ;;  %8614 = vrcp.f32 %v5782_v45  ;;  %v11391_v24 = vadd.f32 %v5767_v61, %v5766_v20  ;;  %8170 = vmatprep.mubr.msk.bf16.mxu1 %vm4981_vm1, %v6202_v40  ;;  %v5197_v58 = vrot.slane %v5196_v16, 1  ;;  %v5186_v7 = vrot.slane %v5185_v30, 4 }
 0x37d   : > { %v11394_v9 = vpop.eup %8604  ;;  %v5772_v22 = vrot.slane %v5771_v43, 2  ;;  %v5804_v54 = vsel %vm4981_vm1, %v11389_v14, 0.0  ;;  %8171 = vmatmul.mubr.msk.bf16.gmra.mxu1 %vm4981_vm1, %v6203_v46  ;;  %v5182_v15 = vmax.f32 %v5180_v56, %v5181_v34  ;;  %v5202_v27 = vrot.slane %v5201_v38, 2  ;;  %v4790_v46 = vpop.f32.mrf.mxu0 }
 0x37e   : > { %v5805_v55 = vrot.slane %v5804_v54, 4  ;;  %v5790_v45 = vsel %vm4981_vm1, %v11394_v9, 0.0  ;;  %v5198_v20 = vmax.f32 %v5196_v16, %v5197_v58  ;;  %v5187_v61 = vmax.f32 %v5185_v30, %v5186_v7 }
 0x37f   : > { %v11401_v47 = vpop.eup %8606  ;;  %8616 = vrcp.f32 %v5789_v36  ;;  %v5791_v44 = vrot.slane %v5790_v45, 4  ;;  %v5183_v2 = vrot.slane %v5182_v15, 1  ;;  %v5203_v49 = vmax.f32 %v5201_v38, %v5202_v27 }
 0x380   : > { %v5806_v8 = vadd.f32 %v5805_v55, %v5804_v54  ;;  %v5811_v5 = vsel %vm4981_vm1, %v11401_v47, 0.0  ;;  %v5460_v1 = vsub.f32 %v11357_v60, %v5198_v20  ;;  %v5188_v33 = vrot.slane %v5187_v61, 2 }
 0x381   : > { %v5792_v3 = vadd.f32 %v5791_v44, %v5790_v45  ;;  %v5812_v0 = vrot.slane %v5811_v5, 4  ;;  %v5184_v35 = vmax.f32 %v5182_v15, %v5183_v2  ;;  %v5204_v56 = vrot.slane %v5203_v49, 1  ;;  %v8131_v2 = vpop.f32.mrf.mxu0 }
 0x382   : > { %v5773_v52 = vadd.f32 %v5772_v22, %v5771_v43  ;;  %v5807_v40 = vrot.slane %v5806_v8, 2  ;;  %v5554_v16 = vmul.f32 1.442695, %v5460_v1  ;;  %v5189_v30 = vmax.f32 %v5187_v61, %v5188_v33 }
 0x383   : > { %v5793_v36 = vrot.slane %v5792_v3, 2  ;;  %v5813_v34 = vadd.f32 %v5812_v0, %v5811_v5  ;;  %v5458_v38 = vsub.f32 %v11369_v59, %v5184_v35  ;;  %v5205_v58 = vmax.f32 %v5203_v49, %v5204_v56 }
 0x384   : > { %v8609_v7 = vpop.eup %8608  ;;  %v5808_v54 = vadd.f32 %v5807_v40, %v5806_v8  ;;  %8618 = vpow2.f32 %v5554_v16  ;;  %v5190_v27 = vrot.slane %v5189_v30, 1  ;;  %v6148_v60 = vmul.f32 %v11308_v19, %v11187_v41 }
 0x385   : > { %v11409_v55 = vpop.eup %8610  ;;  %v5814_v15 = vrot.slane %v5813_v34, 2  ;;  %v5550_v43 = vmul.f32 1.442695, %v5458_v38  ;;  %v5461_v22 = vsub.f32 %v11371_v13, %v5205_v58  ;;  %v6149_v45 = vmul.f32 %v11318_v21, %v11214_v4 }
 0x386   : > { %v5809_v20 = vrot.slane %v5808_v54, 1  ;;  %v5797_v59 = vsel %vm4981_vm1, %v11409_v55, 0.0  ;;  %v5191_v61 = vmax.f32 %v5189_v30, %v5190_v27  ;;  %v4799_v44 = vadd.f32 %v11277_v17, %v8130_v37  ;;  %v4793_v30 = vpop.f32.mrf.mxu0 }
 0x387   : > { %v8613_v49 = vpop.eup %8612  ;;  %v5774_v8 = vrot.slane %v5773_v52, 1  ;;  %v5794_v41 = vadd.f32 %v5793_v36, %v5792_v3  ;;  %v5798_v19 = vrot.slane %v5797_v59, 4  ;;  %8620 = vpow2.f32 %v5550_v43 }
 0x388   : > { %v5556_v5 = vmul.f32 1.442695, %v5461_v22  ;;  %v5459_v1 = vsub.f32 %v11375_v25, %v5191_v61  ;;  %v6146_v13 = vmul.f32 %v8609_v7, %v11206_v48  ;;  %v6147_v4 = vmul.f32 %v8613_v49, %v11227_v53  ;;  %v8134_v27 = vpop.f32.mrf.mxu0 }
 0x389   : > { %v11420_v21 = vpop.eup %8614  ;;  %v5810_v33 = vadd.f32 %v5809_v20, %v5808_v54  ;;  %v5815_v0 = vadd.f32 %v5814_v15, %v5813_v34  ;;  %v5799_v35 = vadd.f32 %v5798_v19, %v5797_v59  ;;  %v11422_v56 = vmul.f32 0.17677669, %v4799_v44 }
 0x38a   : > { %v5552_v37 = vmul.f32 1.442695, %v5459_v1  ;;  %v6204_v40 = vpack.c.bf16 %v6147_v4, %v6146_v13  ;;  %v6205_v16 = vpack.c.bf16 %v6149_v45, %v6148_v60  ;;  %v4791_v3 = vadd.f32 %v11277_v17, %v4790_v46 }
 0x38b   : > { %v5795_v36 = vrot.slane %v5794_v41, 1  ;;  %v5800_v38 = vrot.slane %v5799_v35, 2  ;;  %8622 = vpow2.f32 %v5556_v5  ;;  %v5220_v48 = vsel %vm4981_vm1, %v11422_v56, -inf }
 0x38c   : > { %v11427_v53 = vpop.eup %8616  ;;  %8624 = vpow2.f32 %v5552_v37  ;;  %8174 = vmatprep.mubr.msk.bf16.mxu1 %vm4981_vm1, %v6204_v40  ;;  %v5221_v25 = vrot.slane %v5220_v48, 4  ;;  %v11430_v34 = vmul.f32 0.17677669, %v4791_v3  ;;  %v4802_v58 = vadd.f32 %v11277_v17, %v8131_v2 }
 0x38d   : > { %v11433_v7 = vadd.f32 %v5774_v8, %v5773_v52  ;;  %8626 = vrcp.f32 %v5810_v33  ;;  %v5816_v46 = vrot.slane %v5815_v0, 1  ;;  %8175 = vmatmul.mubr.msk.bf16.gmra.mxu1 %vm4981_vm1, %v6205_v16  ;;  %v4794_v54 = vadd.f32 %v11277_v17, %v4793_v30  ;;  %v4806_v30 = vpop.f32.mrf.mxu0 }
 0x38e   : > { %v5222_v60 = vmax.f32 %v5220_v48, %v5221_v25  ;;  %v5206_v15 = vsel %vm4981_vm1, %v11430_v34, -inf  ;;  %v11439_v43 = vmul.f32 0.17677669, %v4802_v58  ;;  %8628 = vrcp.f32 %v11351_v29 }
 0x38f   : > { %v11442_v22 = vadd.f32 %v5795_v36, %v5794_v41  ;;  %v5207_v45 = vrot.slane %v5206_v15, 4  ;;  %v11444_v52 = vmul.f32 0.17677669, %v4794_v54  ;;  %8630 = vrcp.f32 %v11353_v39 }
 0x390   : > { %v11447_v20 = vadd.f32 %v5800_v38, %v5799_v35  ;;  %v5223_v59 = vrot.slane %v5222_v60, 2  ;;  %v5227_v61 = vsel %vm4981_vm1, %v11439_v43, -inf  ;;  %v4815_v44 = vadd.f32 %v11277_v17, %v8134_v27 }
 0x391   : > { %v11452_v2 = vpop.eup %8618  ;;  %v11454_v49 = vadd.f32 %v5816_v46, %v5815_v0  ;;  %v5208_v29 = vmax.f32 %v5206_v15, %v5207_v45  ;;  %v5228_v8 = vrot.slane %v5227_v61, 4  ;;  %v5213_v41 = vsel %vm4981_vm1, %v11444_v52, -inf }
 0x392   : > { %v5832_v39 = vsel %vm4981_vm1, %v11452_v2, 0.0  ;;  %v5224_v19 = vmax.f32 %v5222_v60, %v5223_v59  ;;  %v5214_v5 = vrot.slane %v5213_v41, 4  ;;  %v11462_v1 = vmul.f32 %v11384_v63, %v11280_v18 }
 0x393   : > { %v5833_v13 = vrot.slane %v5832_v39, 4  ;;  %v5209_v4 = vrot.slane %v5208_v29, 2  ;;  %v5229_v33 = vmax.f32 %v5227_v61, %v5228_v8  ;;  %v11466_v0 = vmul.f32 %v11348_v42, %v11232_v31 }
 0x394   : > { %v11468_v35 = vpop.eup %8620  ;;  %v5225_v40 = vrot.slane %v5224_v19, 1  ;;  %v5215_v16 = vmax.f32 %v5213_v41, %v5214_v5  ;;  %v11471_v3 = vmul.f32 0.17677669, %v4815_v44  ;;  %v4807_v27 = vadd.f32 %v11277_v17, %v4806_v30 }
 0x395   : > { %v5834_v36 = vadd.f32 %v5833_v13, %v5832_v39  ;;  %v5818_v18 = vsel %vm4981_vm1, %v11468_v35, 0.0  ;;  %v5210_v63 = vmax.f32 %v5208_v29, %v5209_v4  ;;  %v5230_v38 = vrot.slane %v5229_v33, 2 }
 0x396   : > { %v5819_v48 = vrot.slane %v5818_v18, 4  ;;  %v5226_v25 = vmax.f32 %v5224_v19, %v5225_v40  ;;  %v5216_v58 = vrot.slane %v5215_v16, 2  ;;  %v5248_v61 = vsel %vm4981_vm1, %v11471_v3, -inf }
 0x397   : > { %v5835_v42 = vrot.slane %v5834_v36, 2  ;;  %v5211_v46 = vrot.slane %v5210_v63, 1  ;;  %v5231_v54 = vmax.f32 %v5229_v33, %v5230_v38 }
 0x398   : > { %v11478_v60 = vpop.eup %8622  ;;  %v5820_v15 = vadd.f32 %v5819_v48, %v5818_v18  ;;  %v5464_v45 = vsub.f32 %v11422_v56, %v5226_v25  ;;  %v5217_v59 = vmax.f32 %v5215_v16, %v5216_v58  ;;  %v5249_v18 = vrot.slane %v5248_v61, 4 }
 0x399   : > { %v11483_v44 = vpop.eup %8624  ;;  %v5836_v29 = vadd.f32 %v5835_v42, %v5834_v36  ;;  %v5839_v8 = vsel %vm4981_vm1, %v11478_v60, 0.0  ;;  %v5212_v41 = vmax.f32 %v5210_v63, %v5211_v46  ;;  %v5232_v39 = vrot.slane %v5231_v54, 1  ;;  %v8135_v36 = vpop.f32.mrf.mxu0 }
 0x39a   : > { %v11487_v19 = vpop.eup %8626  ;;  %v5821_v5 = vrot.slane %v5820_v15, 2  ;;  %v5840_v13 = vrot.slane %v5839_v8, 4  ;;  %v5825_v4 = vsel %vm4981_vm1, %v11483_v44, 0.0  ;;  %v5562_v56 = vmul.f32 1.442695, %v5464_v45 }
 0x39b   : > { %v8629_v33 = vpop.eup %8628  ;;  %v5826_v40 = vrot.slane %v5825_v4, 4  ;;  %v5462_v16 = vsub.f32 %v11430_v34, %v5212_v41  ;;  %v5233_v30 = vmax.f32 %v5231_v54, %v5232_v39  ;;  %v5837_v48 = vrot.slane %v5836_v29, 1 }
 0x39c   : > { %v8631_v38 = vpop.eup %8630  ;;  %v5841_v25 = vadd.f32 %v5840_v13, %v5839_v8  ;;  %8632 = vpow2.f32 %v5562_v56  ;;  %v5218_v63 = vrot.slane %v5217_v59, 1  ;;  %v5822_v58 = vadd.f32 %v5821_v5, %v5820_v15  ;;  %v4809_v8 = vpop.f32.mrf.mxu0 }
 0x39d   : > { %v5827_v42 = vadd.f32 %v5826_v40, %v5825_v4  ;;  %v5558_v46 = vmul.f32 1.442695, %v5462_v16  ;;  %v5465_v31 = vsub.f32 %v11439_v43, %v5233_v30  ;;  %v11493_v45 = vmul.f32 0.17677669, %v4807_v27 }
 0x39e   : > { %v5842_v37 = vrot.slane %v5841_v25, 2  ;;  %v5219_v26 = vmax.f32 %v5217_v59, %v5218_v63  ;;  %v4818_v10 = vadd.f32 %v11277_v17, %v8135_v36  ;;  %v6150_v41 = vmul.f32 %v8629_v33, %v11241_v23  ;;  %v8138_v27 = vpop.f32.mrf.mxu0 }
 0x39f   : > { %v5828_v34 = vrot.slane %v5827_v42, 2  ;;  %v5564_v54 = vmul.f32 1.442695, %v5465_v31  ;;  %v6151_v39 = vmul.f32 %v8631_v38, %v11288_v28  ;;  %v5838_v13 = vadd.f32 %v5837_v48, %v5836_v29 }
 0x3a0   : > { %v5843_v56 = vadd.f32 %v5842_v37, %v5841_v25  ;;  %8634 = vpow2.f32 %v5558_v46  ;;  %v5463_v15 = vsub.f32 %v11444_v52, %v5219_v26  ;;  %v5823_v5 = vrot.slane %v5822_v58, 1 }
 0x3a1   : > { %8636 = vpow2.f32 %v5564_v54  ;;  %v6206_v43 = vpack.c.bf16 %v6151_v39, %v6150_v41  ;;  %v5250_v59 = vmax.f32 %v5248_v61, %v5249_v18  ;;  %v11499_v4 = vadd.f32 %v5828_v34, %v5827_v42  ;;  %v4822_v18 = vpop.f32.mrf.mxu0 }
 0x3a2   : > { %v5560_v40 = vmul.f32 1.442695, %v5463_v15  ;;  %v5234_v31 = vsel %vm4981_vm1, %v11493_v45, -inf  ;;  %v11503_v23 = vmul.f32 0.17677669, %v4818_v10  ;;  %8638 = vrcp.f32 %v11454_v49 }
 0x3a3   : > { %8178 = vmatprep.mubr.msk.bf16.mxu1 %vm4981_vm1, %v6206_v43  ;;  %v5251_v28 = vrot.slane %v5250_v59, 2  ;;  %v5235_v37 = vrot.slane %v5234_v31, 4  ;;  %v4810_v26 = vadd.f32 %v11277_v17, %v4809_v8  ;;  %v13112_v52 = vrot.slane %v11447_v20, 1  ;;  %v8139_v8 = vpop.f32.mrf.mxu0 }
 0x3a4   : > { %v5844_v29 = vrot.slane %v5843_v56, 1  ;;  %8640 = vpow2.f32 %v5560_v40  ;;  %v13113_v33 = vpack.c.bf16 %v11462_v1, %v11466_v0  ;;  %v5255_v10 = vsel %vm4981_vm1, %v11503_v23, -inf }
 0x3a5   : > { %v11511_v61 = vadd.f32 %v13112_v52, %v11447_v20  ;;  %8642 = vrcp.f32 %v5838_v13  ;;  %v5252_v49 = vmax.f32 %v5250_v59, %v5251_v28  ;;  %v5236_v16 = vmax.f32 %v5234_v31, %v5235_v37 }
 0x3a6   : > { %8179 = vmatmul.mubr.msk.bf16.gmra.mxu1 %vm4981_vm1, %v13113_v33  ;;  %v5256_v30 = vrot.slane %v5255_v10, 4  ;;  %v11519_v36 = vadd.f32 %v5823_v5, %v5822_v58  ;;  %v5830_v20 = vrot.slane %v11499_v4, 1  ;;  %v11522_v38 = vmul.f32 0.17677669, %v4810_v26 }
 0x3a7   : > { %v4831_v48 = vadd.f32 %v11277_v17, %v8138_v27  ;;  %v5253_v25 = vrot.slane %v5252_v49, 1  ;;  %v5237_v1 = vrot.slane %v5236_v16, 2  ;;  %8644 = vrcp.f32 %v11391_v24 }
 0x3a8   : > { %v5257_v0 = vmax.f32 %v5255_v10, %v5256_v30  ;;  %v11526_v63 = vadd.f32 %v5844_v29, %v5843_v56  ;;  %v5241_v42 = vsel %vm4981_vm1, %v11522_v38, -inf  ;;  %8646 = vrcp.f32 %v11433_v7 }
 0x3a9   : > { %v11531_v58 = vmul.f32 0.17677669, %v4831_v48  ;;  %v11533_v46 = vpop.eup %8632  ;;  %v5254_v34 = vmax.f32 %v5252_v49, %v5253_v25  ;;  %v5238_v54 = vmax.f32 %v5236_v16, %v5237_v1  ;;  %v5242_v39 = vrot.slane %v5241_v42, 4 }
 0x3aa   : > { %v5258_v41 = vrot.slane %v5257_v0, 2  ;;  %v5860_v13 = vsel %vm4981_vm1, %v11533_v46, 0.0  ;;  %v11539_v24 = vmul.f32 %v11427_v53, %v11342_v50  ;;  %v4823_v7 = vadd.f32 %v11277_v17, %v4822_v18 }
 0x3ab   : > { %v5276_v56 = vsel %vm4981_vm1, %v11531_v58, -inf  ;;  %v5861_v15 = vrot.slane %v5860_v13, 4  ;;  %v5468_v5 = vsub.f32 %v11471_v3, %v5254_v34  ;;  %v5239_v43 = vrot.slane %v5238_v54, 1 }
 0x3ac   : > { %v5259_v59 = vmax.f32 %v5257_v0, %v5258_v41  ;;  %v5243_v27 = vmax.f32 %v5241_v42, %v5242_v39  ;;  %v5277_v40 = vrot.slane %v5276_v56, 4  ;;  %v11545_v31 = vmul.f32 0.17677669, %v4823_v7 }
 0x3ad   : > { %v4834_v28 = vadd.f32 %v11277_v17, %v8139_v8  ;;  %v11548_v37 = vpop.eup %8634  ;;  %v5862_v50 = vadd.f32 %v5861_v15, %v5860_v13  ;;  %v5570_v53 = vmul.f32 1.442695, %v5468_v5  ;;  %v5240_v26 = vmax.f32 %v5238_v54, %v5239_v43 }
 0x3ae   : > { %v5260_v52 = vrot.slane %v5259_v59, 1  ;;  %v11550_v29 = vpop.eup %8636  ;;  %v5846_v33 = vsel %vm4981_vm1, %v11548_v37, 0.0  ;;  %v5244_v3 = vrot.slane %v5243_v27, 2  ;;  %v5278_v10 = vmax.f32 %v5276_v56, %v5277_v40 }
 0x3af   : > { %v5262_v49 = vsel %vm4981_vm1, %v11545_v31, -inf  ;;  %v5863_v16 = vrot.slane %v5862_v50, 2  ;;  %v5847_v30 = vrot.slane %v5846_v33, 4  ;;  %v5867_v18 = vsel %vm4981_vm1, %v11550_v29, 0.0  ;;  %v11558_v48 = vpop.eup %8638 }
 0x3b0   : > { %8648 = vpow2.f32 %v5570_v53  ;;  %v5868_v25 = vrot.slane %v5867_v18, 4  ;;  %v5466_v1 = vsub.f32 %v11493_v45, %v5240_v26  ;;  %v5261_v0 = vmax.f32 %v5259_v59, %v5260_v52 }
 0x3b1   : > { %v5245_v42 = vmax.f32 %v5243_v27, %v5244_v3  ;;  %v11561_v34 = vpop.eup %8640  ;;  %v5864_v54 = vadd.f32 %v5863_v16, %v5862_v50  ;;  %v5848_v41 = vadd.f32 %v5847_v30, %v5846_v33  ;;  %v5279_v39 = vrot.slane %v5278_v10, 2 }
 0x3b2   : > { %v5263_v8 = vrot.slane %v5262_v49, 4  ;;  %v11563_v13 = vpop.eup %8642  ;;  %v5869_v56 = vadd.f32 %v5868_v25, %v5867_v18  ;;  %v5853_v7 = vsel %vm4981_vm1, %v11561_v34, 0.0  ;;  %v5566_v15 = vmul.f32 1.442695, %v5466_v1 }
 0x3b3   : > { %v5469_v5 = vsub.f32 %v11503_v23, %v5261_v0  ;;  %v5865_v43 = vrot.slane %v5864_v54, 1  ;;  %v5849_v40 = vrot.slane %v5848_v41, 2  ;;  %v5854_v45 = vrot.slane %v5853_v7, 4 }
 0x3b4   : > { %v5246_v59 = vrot.slane %v5245_v42, 1  ;;  %v8645_v27 = vpop.eup %8644  ;;  %v5870_v53 = vrot.slane %v5869_v56, 2  ;;  %8650 = vpow2.f32 %v5566_v15  ;;  %v5280_v26 = vmax.f32 %v5278_v10, %v5279_v39 }
 0x3b5   : > { %v5572_v50 = vmul.f32 1.442695, %v5469_v5  ;;  %v8647_v52 = vpop.eup %8646  ;;  %v5850_v33 = vadd.f32 %v5849_v40, %v5848_v41  ;;  %v5855_v3 = vadd.f32 %v5854_v45, %v5853_v7  ;;  %v11568_v30 = vmul.f32 0.17677669, %v4834_v28  ;;  %v4825_v28 = vpop.f32.mrf.mxu0 }
 0x3b6   : > { %v5247_v16 = vmax.f32 %v5245_v42, %v5246_v59  ;;  %v5866_v18 = vadd.f32 %v5865_v43, %v5864_v54  ;;  %v6154_v25 = vmul.f32 %v8645_v27, %v11331_v51  ;;  %v6155_v23 = vmul.f32 %v8647_v52, %v11361_v32 }
 0x3b7   : > { %8652 = vpow2.f32 %v5572_v50  ;;  %v5871_v1 = vadd.f32 %v5870_v53, %v5869_v56  ;;  %v6156_v10 = vmul.f32 %v11420_v21, %v11321_v12  ;;  %v5851_v39 = vrot.slane %v5850_v33, 1  ;;  %v8142_v56 = vpop.f32.mrf.mxu0 }
 0x3b8   : > { %8654 = vrcp.f32 %v11526_v63  ;;  %v5467_v0 = vsub.f32 %v11522_v38, %v5247_v16  ;;  %v6208_v41 = vpack.c.bf16 %v6155_v23, %v6154_v25  ;;  %v5281_v7 = vrot.slane %v5280_v26, 1 }
 0x3b9   : > { %v5264_v42 = vmax.f32 %v5262_v49, %v5263_v8  ;;  %v5856_v15 = vrot.slane %v5855_v3, 2  ;;  %v6209_v5 = vpack.c.bf16 %v11539_v24, %v6156_v10  ;;  %v5283_v51 = vsel %vm4981_vm1, %v11568_v30, -inf  ;;  %v4838_v52 = vpop.f32.mrf.mxu0 }
 0x3ba   : > { %v5568_v54 = vmul.f32 1.442695, %v5467_v0  ;;  %8656 = vrcp.f32 %v5866_v18  ;;  %8182 = vmatprep.mubr.msk.bf16.mxu1 %vm4981_vm1, %v6208_v41  ;;  %v5282_v32 = vmax.f32 %v5280_v26, %v5281_v7  ;;  %v5284_v63 = vrot.slane %v5283_v51, 4 }
 0x3bb   : > { %v5265_v38 = vrot.slane %v5264_v42, 2  ;;  %v11583_v12 = vadd.f32 %v5830_v20, %v11499_v4  ;;  %v5872_v21 = vrot.slane %v5871_v1, 1  ;;  %8183 = vmatmul.mubr.msk.bf16.gmra.mxu1 %vm4981_vm1, %v6209_v5  ;;  %v4826_v24 = vadd.f32 %v11277_v17, %v4825_v28 }
 0x3bc   : > { %8658 = vpow2.f32 %v5568_v54  ;;  %v11589_v8 = vadd.f32 %v5851_v39, %v5850_v33  ;;  %v5472_v43 = vsub.f32 %v11531_v58, %v5282_v32  ;;  %v5285_v45 = vmax.f32 %v5283_v51, %v5284_v63 }
 0x3bd   : > { %v11587_v49 = vpop.eup %8648  ;;  %v5266_v40 = vmax.f32 %v5264_v42, %v5265_v38  ;;  %v5857_v59 = vadd.f32 %v5856_v15, %v5855_v3  ;;  %v11594_v4 = vmul.f32 0.17677669, %v4826_v24  ;;  %8660 = vrcp.f32 %v11442_v22 }
 0x3be   : > { %v5888_v27 = vsel %vm4981_vm1, %v11587_v49, 0.0  ;;  %v5578_v53 = vmul.f32 1.442695, %v5472_v43  ;;  %v5286_v26 = vrot.slane %v5285_v45, 2  ;;  %v5873_v16 = vadd.f32 %v5872_v21, %v5871_v1 }
 0x3bf   : > { %v5889_v20 = vrot.slane %v5888_v27, 4  ;;  %v5267_v50 = vrot.slane %v5266_v40, 1  ;;  %v5269_v33 = vsel %vm4981_vm1, %v11594_v4, -inf  ;;  %8662 = vrcp.f32 %v11511_v61 }
 0x3c0   : > { %v4847_v58 = vadd.f32 %v11277_v17, %v8142_v56  ;;  %8664 = vpow2.f32 %v5578_v53  ;;  %v5287_v25 = vmax.f32 %v5285_v45, %v5286_v26  ;;  %v5858_v22 = vrot.slane %v5857_v59, 1 }
 0x3c1   : > { %v5890_v3 = vadd.f32 %v5889_v20, %v5888_v27  ;;  %v5268_v18 = vmax.f32 %v5266_v40, %v5267_v50  ;;  %v11601_v23 = vpop.eup %8650  ;;  %v5270_v0 = vrot.slane %v5269_v33, 4  ;;  %v4839_v39 = vadd.f32 %v11277_v17, %v4838_v52 }
 0x3c2   : > { %v11603_v10 = vmul.f32 0.17677669, %v4847_v58  ;;  %v5874_v41 = vsel %vm4981_vm1, %v11601_v23, 0.0  ;;  %v5288_v7 = vrot.slane %v5287_v25, 1  ;;  %v6160_v40 = vmul.f32 %v11487_v19, %v11389_v14 }
 0x3c3   : > { %v5891_v1 = vrot.slane %v5890_v3, 2  ;;  %v5470_v61 = vsub.f32 %v11545_v31, %v5268_v18  ;;  %v5875_v28 = vrot.slane %v5874_v41, 4  ;;  %v5271_v15 = vmax.f32 %v5269_v33, %v5270_v0 }
 0x3c4   : > { %v11609_v42 = vpop.eup %8652  ;;  %v5304_v54 = vsel %vm4981_vm1, %v11603_v10, -inf  ;;  %v11613_v5 = vmul.f32 0.17677669, %v4839_v39  ;;  %v5289_v63 = vmax.f32 %v5287_v25, %v5288_v7  ;;  %v11628_v18 = vadd.f32 %v5858_v22, %v5857_v59  ;;  %v8143_v25 = vpop.f32.mrf.mxu0 }
 0x3c5   : > { %v11615_v51 = vpop.eup %8654  ;;  %v5892_v32 = vadd.f32 %v5891_v1, %v5890_v3  ;;  %v5895_v17 = vsel %vm4981_vm1, %v11609_v42, 0.0  ;;  %v5574_v38 = vmul.f32 1.442695, %v5470_v61  ;;  %v5876_v56 = vadd.f32 %v5875_v28, %v5874_v41 }
 0x3c6   : > { %v5896_v31 = vrot.slane %v5895_v17, 4  ;;  %v5272_v21 = vrot.slane %v5271_v15, 2  ;;  %v5305_v24 = vrot.slane %v5304_v54, 4  ;;  %v5473_v43 = vsub.f32 %v11568_v30, %v5289_v63 }
 0x3c7   : > { %8666 = vpow2.f32 %v5574_v38  ;;  %v5290_v45 = vsel %vm4981_vm1, %v11613_v5, -inf  ;;  %v11624_v27 = vpop.eup %8656  ;;  %v5893_v20 = vrot.slane %v5892_v32, 1  ;;  %v5877_v33 = vrot.slane %v5876_v56, 2 }
 0x3c8   : > { %v5897_v53 = vadd.f32 %v5896_v31, %v5895_v17  ;;  %v5273_v50 = vmax.f32 %v5271_v15, %v5272_v21  ;;  %v5306_v26 = vmax.f32 %v5304_v54, %v5305_v24  ;;  %8668 = vrcp.f32 %v5873_v16  ;;  %v11637_v17 = vld [vmem:[%s12769_s10] ss:$0 sm:$0xff] }
 0x3c9   : > { %v11626_v52 = vpop.eup %8658  ;;  %v5580_v58 = vmul.f32 1.442695, %v5473_v43  ;;  %v5291_v3 = vrot.slane %v5290_v45, 4  ;;  %v6161_v1 = vmul.f32 %v11558_v48, %v11401_v47  ;;  %v5894_v7 = vadd.f32 %v5893_v20, %v5892_v32 }
 0x3ca   : > { %v5898_v30 = vrot.slane %v5897_v53, 2  ;;  %v5881_v14 = vsel %vm4981_vm1, %v11626_v52, 0.0  ;;  %v5274_v19 = vrot.slane %v5273_v50, 1  ;;  %v8661_v0 = vpop.eup %8660  ;;  %v5307_v41 = vrot.slane %v5306_v26, 2 }
 0x3cb   : > { %v5882_v39 = vrot.slane %v5881_v14, 4  ;;  %v5292_v61 = vmax.f32 %v5290_v45, %v5291_v3  ;;  %8670 = vpow2.f32 %v5580_v58  ;;  %v5878_v59 = vadd.f32 %v5877_v33, %v5876_v56  ;;  %v4841_v45 = vpop.f32.mrf.mxu0 }
 0x3cc   : > { %v5899_v16 = vadd.f32 %v5898_v30, %v5897_v53  ;;  %v5275_v28 = vmax.f32 %v5273_v50, %v5274_v19  ;;  %v8663_v15 = vpop.eup %8662  ;;  %v5308_v22 = vmax.f32 %v5306_v26, %v5307_v41  ;;  %v4850_v38 = vadd.f32 %v11637_v17, %v8143_v25 }
 0x3cd   : > { %v5293_v54 = vrot.slane %v5292_v61, 2  ;;  %v11640_v63 = vpop.eup %8664  ;;  %v6158_v32 = vmul.f32 %v8661_v0, %v11394_v9  ;;  %v6159_v31 = vmul.f32 %v8663_v15, %v11409_v55  ;;  %v5883_v21 = vadd.f32 %v5882_v39, %v5881_v14 }
 0x3ce   : > { %v5900_v47 = vrot.slane %v5899_v16, 1  ;;  %v5471_v48 = vsub.f32 %v11594_v4, %v5275_v28  ;;  %v5916_v56 = vsel %vm4981_vm1, %v11640_v63, 0.0  ;;  %v5309_v24 = vrot.slane %v5308_v22, 1  ;;  %v8146_v4 = vpop.f32.mrf.mxu0 }
 0x3cf   : > { %v5294_v43 = vmax.f32 %v5292_v61, %v5293_v54  ;;  %v5917_v20 = vrot.slane %v5916_v56, 4  ;;  %v6210_v50 = vpack.c.bf16 %v6159_v31, %v6158_v32  ;;  %v6211_v26 = vpack.c.bf16 %v6161_v1, %v6160_v40 }
 0x3d0   : > { %v5576_v53 = vmul.f32 1.442695, %v5471_v48  ;;  %v5901_v33 = vadd.f32 %v5900_v47, %v5899_v16  ;;  %v5310_v58 = vmax.f32 %v5308_v22, %v5309_v24  ;;  %v11647_v30 = vmul.f32 0.17677669, %v4850_v38  ;;  %v4854_v28 = vpop.f32.mrf.mxu0 }
 0x3d1   : > { %v5295_v3 = vrot.slane %v5294_v43, 1  ;;  %8672 = vrcp.f32 %v5894_v7  ;;  %v5879_v9 = vrot.slane %v5878_v59, 1  ;;  %v5918_v55 = vadd.f32 %v5917_v20, %v5916_v56  ;;  %8186 = vmatprep.mubr.msk.bf16.mxu1 %vm4981_vm1, %v6210_v50 }
 0x3d2   : > { %v4842_v14 = vadd.f32 %v11637_v17, %v4841_v45  ;;  %v5884_v19 = vrot.slane %v5883_v21, 2  ;;  %8674 = vpow2.f32 %v5576_v53  ;;  %8187 = vmatmul.mubr.msk.bf16.gmra.mxu1 %vm4981_vm1, %v6211_v26  ;;  %v5476_v25 = vsub.f32 %v11603_v10, %v5310_v58  ;;  %v8147_v45 = vpop.f32.mrf.mxu0 }
 0x3d3   : > { %v5296_v40 = vmax.f32 %v5294_v43, %v5295_v3  ;;  %v5919_v39 = vrot.slane %v5918_v55, 2  ;;  %v5311_v1 = vsel %vm4981_vm1, %v11647_v30, -inf  ;;  %8676 = vrcp.f32 %v11519_v36 }
 0x3d4   : > { %v11653_v0 = vpop.eup %8666  ;;  %v11657_v41 = vmul.f32 0.17677669, %v4842_v14  ;;  %8678 = vrcp.f32 %v5901_v33  ;;  %v5586_v7 = vmul.f32 1.442695, %v5476_v25  ;;  %v5312_v54 = vrot.slane %v5311_v1, 4 }
 0x3d5   : > { %v5902_v61 = vsel %vm4981_vm1, %v11653_v0, 0.0  ;;  %v5474_v16 = vsub.f32 %v11613_v5, %v5296_v40  ;;  %v11663_v10 = vpop.eup %8668  ;;  %v5920_v15 = vadd.f32 %v5919_v39, %v5918_v55  ;;  %v11667_v47 = vadd.f32 %v5879_v9, %v5878_v59  ;;  %v4857_v39 = vpop.f32.mrf.mxu0 }
 0x3d6   : > { %v5903_v22 = vrot.slane %v5902_v61, 4  ;;  %v5297_v38 = vsel %vm4981_vm1, %v11657_v41, -inf  ;;  %8680 = vpow2.f32 %v5586_v7  ;;  %v11669_v32 = vadd.f32 %v5884_v19, %v5883_v21 }
 0x3d7   : > { %v5582_v36 = vmul.f32 1.442695, %v5474_v16  ;;  %v5298_v48 = vrot.slane %v5297_v38, 4  ;;  %v5921_v31 = vrot.slane %v5920_v15, 1  ;;  %v5313_v56 = vmax.f32 %v5311_v1, %v5312_v54 }
 0x3d8   : > { %8682 = vrcp.f32 %v11583_v12  ;;  %v11672_v5 = vpop.eup %8670  ;;  %v11676_v43 = vmul.f32 %v11563_v13, %v11452_v2  ;;  %v4863_v59 = vadd.f32 %v11637_v17, %v8146_v4  ;;  %v5904_v20 = vadd.f32 %v5903_v22, %v5902_v61 }
 0x3d9   : > { %8684 = vpow2.f32 %v5582_v36  ;;  %v5299_v24 = vmax.f32 %v5297_v38, %v5298_v48  ;;  %v5923_v21 = vsel %vm4981_vm1, %v11672_v5, 0.0  ;;  %v5314_v53 = vrot.slane %v5313_v56, 2 }
 0x3da   : > { %v11683_v50 = vmul.f32 %v11615_v51, %v11478_v60  ;;  %v5924_v12 = vrot.slane %v5923_v21, 4  ;;  %v11685_v33 = vmul.f32 0.17677669, %v4863_v59  ;;  %v4855_v58 = vadd.f32 %v11637_v17, %v4854_v28 }
 0x3db   : > { %v5300_v26 = vrot.slane %v5299_v24, 2  ;;  %v5922_v13 = vadd.f32 %v5921_v31, %v5920_v15  ;;  %v5315_v3 = vmax.f32 %v5313_v56, %v5314_v53  ;;  %v4866_v4 = vadd.f32 %v11637_v17, %v8147_v45 }
 0x3dc   : > { %v5925_v9 = vadd.f32 %v5924_v12, %v5923_v21  ;;  %v5332_v14 = vsel %vm4981_vm1, %v11685_v33, -inf  ;;  %v11692_v19 = vmul.f32 0.17677669, %v4855_v58  ;;  %v5905_v60 = vrot.slane %v5904_v20, 2 }
 0x3dd   : > { %v5301_v55 = vmax.f32 %v5299_v24, %v5300_v26  ;;  %v5316_v51 = vrot.slane %v5315_v3, 1  ;;  %v5333_v25 = vrot.slane %v5332_v14, 4  ;;  %v11694_v40 = vmul.f32 0.17677669, %v4866_v4 }
 0x3de   : > { %v11696_v1 = vpop.eup %8672  ;;  %v5926_v61 = vrot.slane %v5925_v9, 2  ;;  %v5318_v28 = vsel %vm4981_vm1, %v11692_v19, -inf  ;;  %8686 = vrcp.f32 %v5922_v13  ;;  %v4858_v24 = vadd.f32 %v11637_v17, %v4857_v39 }
 0x3df   : > { %v5302_v7 = vrot.slane %v5301_v55, 1  ;;  %v11702_v15 = vpop.eup %8674  ;;  %v5317_v22 = vmax.f32 %v5315_v3, %v5316_v51  ;;  %v5334_v54 = vmax.f32 %v5332_v14, %v5333_v25  ;;  %v5319_v38 = vrot.slane %v5318_v28, 4 }
 0x3e0   : > { %v8677_v36 = vpop.eup %8676  ;;  %v5909_v48 = vsel %vm4981_vm1, %v11702_v15, 0.0  ;;  %v5339_v56 = vsel %vm4981_vm1, %v11694_v40, -inf  ;;  %v5906_v45 = vadd.f32 %v5905_v60, %v5904_v20  ;;  %v5927_v26 = vadd.f32 %v5926_v61, %v5925_v9  ;;  %v8150_v9 = vpop.f32.mrf.mxu0 }
 0x3e1   : > { %v5303_v31 = vmax.f32 %v5301_v55, %v5302_v7  ;;  %v11709_v59 = vpop.eup %8678  ;;  %v5910_v21 = vrot.slane %v5909_v48, 4  ;;  %v5477_v53 = vsub.f32 %v11647_v30, %v5317_v22  ;;  %v5335_v12 = vrot.slane %v5334_v54, 2 }
 0x3e2   : > { %v6162_v13 = vmul.f32 %v8677_v36, %v11468_v35  ;;  %v5320_v3 = vmax.f32 %v5318_v28, %v5319_v38  ;;  %v5340_v25 = vrot.slane %v5339_v56, 4  ;;  %v11718_v30 = vmul.f32 0.17677669, %v4858_v24  ;;  %v4870_v2 = vpop.f32.mrf.mxu0 }
 0x3e3   : > { %v5475_v58 = vsub.f32 %v11657_v41, %v5303_v31  ;;  %v11714_v4 = vpop.eup %8680  ;;  %v5911_v55 = vadd.f32 %v5910_v21, %v5909_v48  ;;  %v5588_v14 = vmul.f32 1.442695, %v5477_v53  ;;  %v5336_v51 = vmax.f32 %v5334_v54, %v5335_v12 }
 0x3e4   : > { %v5944_v20 = vsel %vm4981_vm1, %v11714_v4, 0.0  ;;  %v5321_v7 = vrot.slane %v5320_v3, 2  ;;  %v5928_v22 = vrot.slane %v5927_v26, 1  ;;  %v5907_v16 = vrot.slane %v5906_v45, 1 }
 0x3e5   : > { %v8683_v39 = vpop.eup %8682  ;;  %v5584_v60 = vmul.f32 1.442695, %v5475_v58  ;;  %v5912_v41 = vrot.slane %v5911_v55, 2  ;;  %v5945_v35 = vrot.slane %v5944_v20, 4  ;;  %8688 = vpow2.f32 %v5588_v14 }
 0x3e6   : > { %v11720_v61 = vpop.eup %8684  ;;  %v6163_v28 = vmul.f32 %v8683_v39, %v11483_v44  ;;  %v5337_v38 = vrot.slane %v5336_v51, 1  ;;  %v5322_v36 = vmax.f32 %v5320_v3, %v5321_v7  ;;  %v5341_v58 = vmax.f32 %v5339_v56, %v5340_v25  ;;  %v8440_v56 = vld [vmem:[%s12771_s12 + $0x74] ss:$8 sps:$4 sm:$0xff]  }
 0x3e7   : > { %v5930_v54 = vsel %vm4981_vm1, %v11720_v61, 0.0  ;;  %v5913_v48 = vadd.f32 %v5912_v41, %v5911_v55  ;;  %v5946_v31 = vadd.f32 %v5945_v35, %v5944_v20  ;;  %8690 = vpow2.f32 %v5584_v60  ;;  %7439 = vmatprep.subr.bf16.mxu0 %v8440_v56 }
 0x3e8   : > { %v5931_v21 = vrot.slane %v5930_v54, 4  ;;  %v6212_v24 = vpack.c.bf16 %v6163_v28, %v6162_v13  ;;  %v5338_v53 = vmax.f32 %v5336_v51, %v5337_v38  ;;  %v5323_v12 = vrot.slane %v5322_v36, 1  ;;  %v8438_v13 = vld [vmem:[%s12771_s12 + $0x70] ss:$8 sps:$4 sm:$0xff]   ;;  %v8151_v38 = vpop.f32.mrf.mxu0 }
 0x3e9   : > { %v5947_v57 = vrot.slane %v5946_v31, 2  ;;  %v5325_v44 = vsel %vm4981_vm1, %v11718_v30, -inf  ;;  %v5342_v55 = vrot.slane %v5341_v58, 2  ;;  %v5929_v51 = vadd.f32 %v5928_v22, %v5927_v26  ;;  %7440 = vmatpush1.bf16.msra.mxu0 %v8438_v13 }
 0x3ea   : > { %v5932_v14 = vadd.f32 %v5931_v21, %v5930_v54  ;;  %8190 = vmatprep.mubr.msk.bf16.mxu1 %vm4981_vm1, %v6212_v24  ;;  %v5480_v39 = vsub.f32 %v11685_v33, %v5338_v53  ;;  %v5324_v3 = vmax.f32 %v5322_v36, %v5323_v12  ;;  %v5326_v20 = vrot.slane %v5325_v44, 4 }
 0x3eb   : > { %v5914_v25 = vrot.slane %v5913_v48, 1  ;;  %v11735_v60 = vadd.f32 %v5947_v57, %v5946_v31  ;;  %v13114_v7 = vpack.c.bf16 %v11683_v50, %v11676_v43  ;;  %8692 = vrcp.f32 %v11589_v8  ;;  %v11742_v33 = vpop.eup %8686 }
 0x3ec   : > { %v5594_v41 = vmul.f32 1.442695, %v5480_v39  ;;  %v5478_v35 = vsub.f32 %v11692_v19, %v5324_v3  ;;  %v5343_v28 = vmax.f32 %v5341_v58, %v5342_v55  ;;  %v5327_v54 = vmax.f32 %v5325_v44, %v5326_v20 }
 0x3ed   : > { %8191 = vmatmul.mubr.msk.bf16.gmra.mxu1 %vm4981_vm1, %v13114_v7  ;;  %v13115_v57 = vrot.slane %v11669_v32, 1  ;;  %v11750_v22 = vadd.f32 %v5907_v16, %v5906_v45  ;;  %v5933_v43 = vrot.slane %v5932_v14, 2  ;;  %8694 = vrcp.f32 %v11628_v18  ;;  %v4873_v45 = vpop.f32.mrf.mxu0 }
 0x3ee   : > { %8696 = vpow2.f32 %v5594_v41  ;;  %v5590_v8 = vmul.f32 1.442695, %v5478_v35  ;;  %v5344_v50 = vrot.slane %v5343_v28, 1  ;;  %v5328_v36 = vrot.slane %v5327_v54, 2  ;;  %v8441_v41 = vld [vmem:[%s12771_s12 + $0x60] ss:$8 sps:$4 sm:$0xff]  }
 0x3ef   : > { %v11748_v26 = vadd.f32 %v13115_v57, %v11669_v32  ;;  %8698 = vrcp.f32 %v5929_v51  ;;  %v11753_v19 = vadd.f32 %v5914_v25, %v5913_v48  ;;  %v5949_v31 = vrot.slane %v11735_v60, 1  ;;  %v8443_v35 = vld [vmem:[%s12771_s12 + $0x64] ss:$8 sps:$4 sm:$0xff]  }
 0x3f0   : > { %v4879_v21 = vadd.f32 %v11637_v17, %v8150_v9  ;;  %8700 = vpow2.f32 %v5590_v8  ;;  %v5345_v32 = vmax.f32 %v5343_v28, %v5344_v50  ;;  %v5329_v24 = vmax.f32 %v5327_v54, %v5328_v36  ;;  %7441 = vmatprep.subr.bf16.mxu0 %v8443_v35 }
 0x3f1   : > { %v4871_v16 = vadd.f32 %v11637_v17, %v4870_v2  ;;  %v11758_v53 = vadd.f32 %v5933_v43, %v5932_v14  ;;  %v11762_v18 = vmul.f32 %v11624_v27, %v11533_v46  ;;  %v11766_v48 = vmul.f32 %v11663_v10, %v11550_v29  ;;  %7442 = vmatpush1.bf16.msra.mxu0 %v8441_v41 }
 0x3f2   : > { %v11768_v12 = vmul.f32 0.17677669, %v4879_v21  ;;  %v11770_v58 = vpop.eup %8688  ;;  %v5481_v9 = vsub.f32 %v11694_v40, %v5345_v32  ;;  %v5330_v44 = vrot.slane %v5329_v24, 1  ;;  %v4882_v2 = vadd.f32 %v11637_v17, %v8151_v38 }
 0x3f3   : > { %v11773_v39 = vmul.f32 0.17677669, %v4871_v16  ;;  %v5951_v14 = vsel %vm4981_vm1, %v11770_v58, 0.0  ;;  %v4874_v29 = vadd.f32 %v11637_v17, %v4873_v45  ;;  %8702 = vrcp.f32 %v11667_v47 }
 0x3f4   : > { %v5360_v46 = vsel %vm4981_vm1, %v11768_v12, -inf  ;;  %v11782_v27 = vpop.eup %8690  ;;  %v5952_v10 = vrot.slane %v5951_v14, 4  ;;  %v5596_v3 = vmul.f32 1.442695, %v5481_v9  ;;  %v5331_v40 = vmax.f32 %v5329_v24, %v5330_v44 }
 0x3f5   : > { %v5361_v55 = vrot.slane %v5360_v46, 4  ;;  %v5937_v20 = vsel %vm4981_vm1, %v11782_v27, 0.0  ;;  %v5346_v13 = vsel %vm4981_vm1, %v11773_v39, -inf  ;;  %v11788_v56 = vmul.f32 0.17677669, %v4882_v2 }
 0x3f6   : > { %v11790_v51 = vmul.f32 0.17677669, %v4874_v29  ;;  %v5953_v25 = vadd.f32 %v5952_v10, %v5951_v14  ;;  %v5938_v7 = vrot.slane %v5937_v20, 4  ;;  %8704 = vpow2.f32 %v5596_v3 }
 0x3f7   : > { %v5479_v47 = vsub.f32 %v11718_v30, %v5331_v40  ;;  %v5362_v28 = vmax.f32 %v5360_v46, %v5361_v55  ;;  %v5347_v54 = vrot.slane %v5346_v13, 4  ;;  %v5367_v38 = vsel %vm4981_vm1, %v11788_v56, -inf }
 0x3f8   : > { %v5353_v57 = vsel %vm4981_vm1, %v11790_v51, -inf  ;;  %v8693_v43 = vpop.eup %8692  ;;  %v5954_v8 = vrot.slane %v5953_v25, 2  ;;  %v5939_v50 = vadd.f32 %v5938_v7, %v5937_v20  ;;  %v5368_v36 = vrot.slane %v5367_v38, 4 }
 0x3f9   : > { %v5592_v30 = vmul.f32 1.442695, %v5479_v47  ;;  %v5950_v21 = vadd.f32 %v5949_v31, %v11735_v60  ;;  %v5363_v32 = vrot.slane %v5362_v28, 2  ;;  %v5348_v24 = vmax.f32 %v5346_v13, %v5347_v54  ;;  %v8444_v60 = vld [vmem:[%s12771_s12 + $0x50] ss:$8 sps:$4 sm:$0xff]   ;;  %v11820_v13 = vpop.f32.mrf.mxu0 }
 0x3fa   : > { %v5354_v16 = vrot.slane %v5353_v57, 4  ;;  %v8695_v45 = vpop.eup %8694  ;;  %v5955_v9 = vadd.f32 %v5954_v8, %v5953_v25  ;;  %v5940_v44 = vrot.slane %v5939_v50, 2  ;;  %v5369_v2 = vmax.f32 %v5367_v38, %v5368_v36  ;;  %v8446_v31 = vld [vmem:[%s12771_s12 + $0x54] ss:$8 sps:$4 sm:$0xff]  }
 0x3fb   : > { %8706 = vpow2.f32 %v5592_v30  ;;  %v11804_v14 = vpop.eup %8696  ;;  %v6166_v46 = vmul.f32 %v8693_v43, %v11548_v37  ;;  %v6167_v29 = vmul.f32 %v8695_v45, %v11561_v34  ;;  %v5364_v10 = vmax.f32 %v5362_v28, %v5363_v32  ;;  %7443 = vmatprep.subr.bf16.mxu0 %v8446_v31  ;;  %v8449_v28 = vld [vmem:[%s12771_s12 + $0x44] ss:$8 sps:$4 sm:$0xff]  }
 0x3fc   : > { %v5349_v3 = vrot.slane %v5348_v24, 2  ;;  %v11814_v40 = vpop.eup %8698  ;;  %v5972_v55 = vsel %vm4981_vm1, %v11804_v14, 0.0  ;;  %v6215_v37 = vpack.c.bf16 %v11766_v48, %v11762_v18  ;;  %v5370_v20 = vrot.slane %v5369_v2, 2  ;;  %7444 = vmatpush1.bf16.msra.mxu0 %v8444_v60 }
 0x3fd   : > { %v5355_v34 = vmax.f32 %v5353_v57, %v5354_v16  ;;  %v11822_v25 = vpop.eup %8700  ;;  %v5973_v7 = vrot.slane %v5972_v55, 4  ;;  %v6214_v47 = vpack.c.bf16 %v6167_v29, %v6166_v46  ;;  %v5365_v41 = vrot.slane %v5364_v10, 1  ;;  %v8447_v57 = vld [vmem:[%s12771_s12 + $0x40] ss:$8 sps:$4 sm:$0xff]   ;;  %7445 = vmatprep.subr.bf16.mxu0 %v8449_v28 }
 0x3fe   : > { %v5350_v35 = vmax.f32 %v5348_v24, %v5349_v3  ;;  %v5956_v54 = vrot.slane %v5955_v9, 1  ;;  %v5941_v38 = vadd.f32 %v5940_v44, %v5939_v50  ;;  %v5958_v18 = vsel %vm4981_vm1, %v11822_v25, 0.0  ;;  %v8452_v50 = vld [vmem:[%s12771_s12 + $0x34] ss:$8 sps:$4 sm:$0xff]   ;;  %v4886_v44 = vpop.f32.mrf.mxu0 }
 0x3ff   : > { %v5371_v48 = vmax.f32 %v5369_v2, %v5370_v20  ;;  %v5974_v43 = vadd.f32 %v5973_v7, %v5972_v55  ;;  %v5959_v8 = vrot.slane %v5958_v18, 4  ;;  %8194 = vmatprep.mubr.msk.bf16.mxu1 %vm4981_vm1, %v6214_v47  ;;  %v5366_v30 = vmax.f32 %v5364_v10, %v5365_v41 }
 0x400   : > { %v5351_v36 = vrot.slane %v5350_v35, 1  ;;  %v8703_v32 = vpop.eup %8702  ;;  %8708 = vrcp.f32 %v5950_v21  ;;  %v5935_v24 = vrot.slane %v11758_v53, 1  ;;  %8195 = vmatmul.mubr.msk.bf16.gmra.mxu1 %vm4981_vm1, %v6215_v37  ;;  %v5356_v45 = vrot.slane %v5355_v34, 2  ;;  %7446 = vmatpush1.bf16.msra.mxu0 %v8447_v57  ;;  %v8450_v21 = vld [vmem:[%s12771_s12 + $0x30] ss:$8 sps:$4 sm:$0xff]  }
 0x401   : > { %v5372_v16 = vrot.slane %v5371_v48, 1  ;;  %v5975_v2 = vrot.slane %v5974_v43, 2  ;;  %v5960_v46 = vadd.f32 %v5959_v8, %v5958_v18  ;;  %v5484_v29 = vsub.f32 %v11768_v12, %v5366_v30  ;;  %7447 = vmatprep.subr.bf16.mxu0 %v8452_v50  ;;  %v8455_v12 = vld [vmem:[%s12771_s12 + $0x24] ss:$8 sps:$4 sm:$0xff]   ;;  %v8458_v50 = vld [vmem:[%s12771_s12 + $0x14] ss:$8 sps:$4 sm:$0xff]  }
 0x402   : > { %v5352_v10 = vmax.f32 %v5350_v35, %v5351_v36  ;;  %v5957_v3 = vadd.f32 %v5956_v54, %v5955_v9  ;;  %v5357_v31 = vmax.f32 %v5355_v34, %v5356_v45  ;;  %8710 = vrcp.f32 %v11748_v26  ;;  %v8155_v35 = vpop.f32.mrf.mxu0 }
 0x403   : > { %v5373_v60 = vmax.f32 %v5371_v48, %v5372_v16  ;;  %v11843_v55 = vpop.eup %8704  ;;  %v5942_v37 = vrot.slane %v5941_v38, 1  ;;  %v5976_v20 = vadd.f32 %v5975_v2, %v5974_v43  ;;  %v5602_v7 = vmul.f32 1.442695, %v5484_v29  ;;  %v8453_v43 = vld [vmem:[%s12771_s12 + $0x20] ss:$8 sps:$4 sm:$0xff]  }
 0x404   : > { %v5482_v47 = vsub.f32 %v11773_v39, %v5352_v10  ;;  %v5961_v9 = vrot.slane %v5960_v46, 2  ;;  %v5979_v26 = vsel %vm4981_vm1, %v11843_v55, 0.0  ;;  %v5358_v41 = vrot.slane %v5357_v31, 1  ;;  %7448 = vmatpush1.bf16.msra.mxu0 %v8450_v21  ;;  %v4889_v45 = vpop.f32.mrf.mxu0 }
 0x405   : > { %v5485_v34 = vsub.f32 %v11788_v56, %v5373_v60  ;;  %v11853_v28 = vadd.f32 %v5935_v24, %v11758_v53  ;;  %v5977_v54 = vrot.slane %v5976_v20, 1  ;;  %v5980_v18 = vrot.slane %v5979_v26, 4  ;;  %7449 = vmatprep.subr.bf16.mxu0 %v8455_v12 }
 0x406   : > { %8712 = vpow2.f32 %v5602_v7  ;;  %v5598_v39 = vmul.f32 1.442695, %v5482_v47  ;;  %v5359_v57 = vmax.f32 %v5357_v31, %v5358_v41  ;;  %v11860_v56 = vadd.f32 %v5942_v37, %v5941_v38 }
 0x407   : > { %8714 = vrcp.f32 %v5957_v3  ;;  %v5604_v48 = vmul.f32 1.442695, %v5485_v34  ;;  %v5981_v30 = vadd.f32 %v5980_v18, %v5979_v26  ;;  %v11863_v53 = vmul.f32 %v8703_v32, %v11601_v23  ;;  %v8456_v3 = vld [vmem:[%s12771_s12 + $0x10] ss:$8 sps:$4 sm:$0xff]  }
 0x408   : > { %v11858_v8 = vpop.eup %8706  ;;  %v4895_v36 = vadd.f32 %v11637_v17, %v11820_v13  ;;  %v5962_v24 = vadd.f32 %v5961_v9, %v5960_v46  ;;  %8716 = vpow2.f32 %v5598_v39  ;;  %v5483_v38 = vsub.f32 %v11790_v51, %v5359_v57  ;;  %7450 = vmatpush1.bf16.msra.mxu0 %v8453_v43  ;;  %v8158_v43 = vpop.f32.mrf.mxu0 }
 0x409   : > { %v5965_v16 = vsel %vm4981_vm1, %v11858_v8, 0.0  ;;  %v5978_v2 = vadd.f32 %v5977_v54, %v5976_v20  ;;  %v5982_v29 = vrot.slane %v5981_v30, 2  ;;  %v11875_v32 = vmul.f32 %v11709_v59, %v11609_v42  ;;  %7451 = vmatprep.subr.bf16.mxu0 %v8458_v50  ;;  %v8461_v42 = vld [vmem:[%s12771_s12 + $0x4] ss:$8 sps:$4 sm:$0xff]  }
 0x40a   : > { %v5966_v23 = vrot.slane %v5965_v16, 4  ;;  %8718 = vpow2.f32 %v5604_v48  ;;  %v5600_v13 = vmul.f32 1.442695, %v5483_v38  ;;  %v11877_v10 = vmul.f32 0.17677669, %v4895_v36 }
 0x40b   : > { %v4887_v46 = vadd.f32 %v11637_v17, %v4886_v44  ;;  %v5983_v51 = vadd.f32 %v5982_v29, %v5981_v30  ;;  %v4898_v31 = vadd.f32 %v11637_v17, %v8155_v35  ;;  %v4890_v21 = vadd.f32 %v11637_v17, %v4889_v45 }
 0x40c   : > { %v5967_v60 = vadd.f32 %v5966_v23, %v5965_v16  ;;  %8720 = vpow2.f32 %v5600_v13  ;;  %v6172_v59 = vmul.f32 %v11696_v1, %v11587_v49  ;;  %v5388_v44 = vsel %vm4981_vm1, %v11877_v10, -inf  ;;  %7452 = vmatpush1.bf16.msra.mxu0 %v8456_v3  ;;  %v8459_v49 = vld [vmem:[%s12771_s12] ss:$8 sps:$4 sm:$0xff]  }
 0x40d   : > { %v11892_v37 = vmul.f32 0.17677669, %v4887_v46  ;;  %v11894_v20 = vpop.eup %8708  ;;  %v5963_v7 = vrot.slane %v5962_v24, 1  ;;  %v5984_v47 = vrot.slane %v5983_v51, 1  ;;  %v5389_v12 = vrot.slane %v5388_v44, 4  ;;  %7453 = vmatprep.subr.bf16.mxu0 %v8461_v42 }
 0x40e   : > { %v11896_v9 = vmul.f32 0.17677669, %v4898_v31  ;;  %8722 = vrcp.f32 %v5978_v2  ;;  %v6217_v26 = vpack.c.bf16 %v11875_v32, %v6172_v59  ;;  %v11901_v41 = vmul.f32 0.17677669, %v4890_v21 }
 0x40f   : > { %v5374_v34 = vsel %vm4981_vm1, %v11892_v37, -inf  ;;  %v8711_v1 = vpop.eup %8710  ;;  %v5968_v35 = vrot.slane %v5967_v60, 2  ;;  %v5390_v54 = vmax.f32 %v5388_v44, %v5389_v12  ;;  %8724 = vrcp.f32 %v11750_v22 }
 0x410   : > { %v5375_v18 = vrot.slane %v5374_v34, 4  ;;  %v6171_v39 = vmul.f32 %v8711_v1, %v11626_v52  ;;  %v5395_v48 = vsel %vm4981_vm1, %v11896_v9, -inf  ;;  %v5381_v57 = vsel %vm4981_vm1, %v11901_v41, -inf  ;;  %7454 = vmatpush1.bf16.msra.mxu0 %v8459_v49 }
 0x411   : > { %8726 = vrcp.f32 %v11753_v19  ;;  %v11913_v30 = vadd.f32 %v5963_v7, %v5962_v24  ;;  %v5985_v36 = vadd.f32 %v5984_v47, %v5983_v51  ;;  %v5391_v50 = vrot.slane %v5390_v54, 2 }
 0x412   : > { %v5376_v16 = vmax.f32 %v5374_v34, %v5375_v18  ;;  %v6216_v22 = vpack.c.bf16 %v6171_v39, %v11863_v53  ;;  %v5396_v45 = vrot.slane %v5395_v48, 4  ;;  %v5382_v52 = vrot.slane %v5381_v57, 4 }
 0x413   : > { %v11915_v38 = vpop.eup %8712  ;;  %v11920_v2 = vmul.f32 %v11742_v33, %v11640_v63  ;;  %v5392_v24 = vmax.f32 %v5390_v54, %v5391_v50  ;;  %v11928_v32 = vmul.f32 %v11814_v40, %v11672_v5  ;;  %v11930_v13 = vadd.f32 %v5968_v35, %v5967_v60  ;;  %v4902_v33 = vpop.f32.mrf.mxu0 }
 0x414   : > { %v11922_v29 = vpop.eup %8714  ;;  %v6000_v19 = vsel %vm4981_vm1, %v11915_v38, 0.0  ;;  %v5377_v23 = vrot.slane %v5376_v16, 2  ;;  %8198 = vmatprep.mubr.msk.bf16.mxu1 %vm4981_vm1, %v6216_v22  ;;  %v5397_v46 = vmax.f32 %v5395_v48, %v5396_v45  ;;  %v5383_v63 = vmax.f32 %v5381_v57, %v5382_v52 }
 0x415   : > { %v6001_v53 = vrot.slane %v6000_v19, 4  ;;  %v11933_v3 = vpop.eup %8716  ;;  %8728 = vrcp.f32 %v5985_v36  ;;  %8199 = vmatmul.mubr.msk.bf16.gmra.mxu1 %vm4981_vm1, %v6217_v26  ;;  %v5393_v51 = vrot.slane %v5392_v24, 1  ;;  %v4911_v21 = vadd.f32 %v11637_v17, %v8158_v43 }
 0x416   : > { %v5378_v31 = vmax.f32 %v5376_v16, %v5377_v23  ;;  %v5986_v5 = vsel %vm4981_vm1, %v11933_v3, 0.0  ;;  %v5398_v40 = vrot.slane %v5397_v46, 2  ;;  %v5384_v60 = vrot.slane %v5383_v63, 2 }
 0x417   : > { %v6002_v42 = vadd.f32 %v6001_v53, %v6000_v19  ;;  %v11939_v59 = vpop.eup %8718  ;;  %v5987_v44 = vrot.slane %v5986_v5, 4  ;;  %v5394_v7 = vmax.f32 %v5392_v24, %v5393_v51  ;;  %v4903_v12 = vadd.f32 %v11637_v17, %v4902_v33 }
 0x418   : > { %v5379_v47 = vrot.slane %v5378_v31, 1  ;;  %v6007_v26 = vsel %vm4981_vm1, %v11939_v59, 0.0  ;;  %v5399_v49 = vmax.f32 %v5397_v46, %v5398_v40  ;;  %v5385_v1 = vmax.f32 %v5383_v63, %v5384_v60  ;;  %v8159_v63 = vpop.f32.mrf.mxu0 }
 0x419   : > { %v6003_v34 = vrot.slane %v6002_v42, 2  ;;  %v11944_v35 = vpop.eup %8720  ;;  %v5988_v54 = vadd.f32 %v5987_v44, %v5986_v5  ;;  %v6008_v18 = vrot.slane %v6007_v26, 4  ;;  %v5488_v39 = vsub.f32 %v11877_v10, %v5394_v7 }
 0x41a   : > { %v5380_v48 = vmax.f32 %v5378_v31, %v5379_v47  ;;  %v5993_v43 = vsel %vm4981_vm1, %v11944_v35, 0.0  ;;  %v5400_v36 = vrot.slane %v5399_v49, 1  ;;  %v5386_v50 = vrot.slane %v5385_v1, 1 }
 0x41b   : > { %v6004_v57 = vadd.f32 %v6003_v34, %v6002_v42  ;;  %v11949_v16 = vpop.eup %8722  ;;  %v6009_v22 = vadd.f32 %v6008_v18, %v6007_v26  ;;  %v5994_v45 = vrot.slane %v5993_v43, 4  ;;  %v5610_v52 = vmul.f32 1.442695, %v5488_v39 }
 0x41c   : > { %v11951_v19 = vmul.f32 0.17677669, %v4911_v21  ;;  %v8725_v24 = vpop.eup %8724  ;;  %v5486_v53 = vsub.f32 %v11892_v37, %v5380_v48  ;;  %v5401_v46 = vmax.f32 %v5399_v49, %v5400_v36  ;;  %v5387_v10 = vmax.f32 %v5385_v1, %v5386_v50  ;;  %v4905_v48 = vpop.f32.mrf.mxu0 }
 0x41d   : > { %v6005_v23 = vrot.slane %v6004_v57, 1  ;;  %v5989_v51 = vrot.slane %v5988_v54, 2  ;;  %v6010_v31 = vrot.slane %v6009_v22, 2  ;;  %v5995_v42 = vadd.f32 %v5994_v45, %v5993_v43 }
 0x41e   : > { %v8727_v33 = vpop.eup %8726  ;;  %8730 = vpow2.f32 %v5610_v52  ;;  %v5606_v40 = vmul.f32 1.442695, %v5486_v53  ;;  %v5489_v60 = vsub.f32 %v11896_v9, %v5401_v46  ;;  %v5487_v44 = vsub.f32 %v11901_v41, %v5387_v10 }
 0x41f   : > { %v6006_v5 = vadd.f32 %v6005_v23, %v6004_v57  ;;  %v6011_v21 = vadd.f32 %v6010_v31, %v6009_v22  ;;  %v5996_v7 = vrot.slane %v5995_v42, 2  ;;  %v6174_v47 = vmul.f32 %v8725_v24, %v11653_v0 }
 0x420   : > { %v4914_v37 = vadd.f32 %v11637_v17, %v8159_v63  ;;  %v5612_v34 = vmul.f32 1.442695, %v5489_v60  ;;  %v5608_v26 = vmul.f32 1.442695, %v5487_v44  ;;  %v6175_v49 = vmul.f32 %v8727_v33, %v11702_v15 }
 0x421   : > { %8732 = vrcp.f32 %v6006_v5  ;;  %v5970_v1 = vrot.slane %v11930_v13, 1  ;;  %v5990_v18 = vadd.f32 %v5989_v51, %v5988_v54  ;;  %v6012_v39 = vrot.slane %v6011_v21, 1 }
 0x422   : > { %8734 = vpow2.f32 %v5606_v40  ;;  %v11960_v9 = vpop.eup %8728  ;;  %v6218_v41 = vpack.c.bf16 %v6175_v49, %v6174_v47  ;;  %v5416_v0 = vsel %vm4981_vm1, %v11951_v19, -inf  ;;  %v11964_v57 = vmul.f32 0.17677669, %v4903_v12 }
 0x423   : > { %8736 = vpow2.f32 %v5612_v34  ;;  %v6013_v43 = vadd.f32 %v6012_v39, %v6011_v21  ;;  %v6219_v15 = vpack.c.bf16 %v11928_v32, %v11920_v2  ;;  %v5417_v36 = vrot.slane %v5416_v0, 4  ;;  %v8164_v2 = vpop.f32.mrf.mxu1 }
 0x424   : > { %8738 = vpow2.f32 %v5608_v26  ;;  %v5997_v50 = vadd.f32 %v5996_v7, %v5995_v42  ;;  %8202 = vmatprep.mubr.msk.bf16.mxu1 %vm4981_vm1, %v6218_v41  ;;  %v5402_v54 = vsel %vm4981_vm1, %v11964_v57, -inf  ;;  %v11971_v22 = vmul.f32 0.17677669, %v4914_v37 }
 0x425   : > { %v4906_v45 = vadd.f32 %v11637_v17, %v4905_v48  ;;  %v5971_v52 = vadd.f32 %v5970_v1, %v11930_v13  ;;  %8203 = vmatmul.mubr.msk.bf16.gmra.mxu1 %vm4981_vm1, %v6219_v15  ;;  %v5418_v12 = vmax.f32 %v5416_v0, %v5417_v36  ;;  %v5403_v24 = vrot.slane %v5402_v54, 4 }
 0x426   : > { %8740 = vrcp.f32 %v11853_v28  ;;  %v5991_v32 = vrot.slane %v5990_v18, 1  ;;  %v5423_v23 = vsel %vm4981_vm1, %v11971_v22, -inf  ;;  %v5998_v17 = vrot.slane %v5997_v50, 1 }
 0x427   : > { %8742 = vrcp.f32 %v6013_v43  ;;  %v11979_v53 = vmul.f32 0.17677669, %v4906_v45  ;;  %v5419_v46 = vrot.slane %v5418_v12, 2  ;;  %v5404_v10 = vmax.f32 %v5402_v54, %v5403_v24 }
 0x428   : > { %v5424_v63 = vrot.slane %v5423_v23, 4  ;;  %8744 = vrcp.f32 %v11860_v56  ;;  %v6622_v28 = vmul.f32 %v8164_v2, %v10609_v11  ;;  %v11988_v40 = vadd.f32 %v5991_v32, %v5990_v18 }
 0x429   : > { %v5409_v13 = vsel %vm4981_vm1, %v11979_v53, -inf  ;;  %8746 = vrcp.f32 %v11913_v30  ;;  %v5420_v33 = vmax.f32 %v5418_v12, %v5419_v46  ;;  %v5405_v51 = vrot.slane %v5404_v10, 2 }
 0x42a   : > { %v5425_v31 = vmax.f32 %v5423_v23, %v5424_v63  ;;  %v5410_v42 = vrot.slane %v5409_v13, 4  ;;  %8748 = vrcp.f32 %v5971_v52  ;;  %v6696_v60 = vrot.slane %v6622_v28, 4 }
 0x42b   : > { %v11986_v5 = vpop.eup %8730  ;;  %v11991_v56 = vmul.f32 0.7978846, %v11010_v6  ;;  %v5421_v21 = vrot.slane %v5420_v33, 1  ;;  %v5406_v30 = vmax.f32 %v5404_v10, %v5405_v51  ;;  %v11995_v11 = vadd.f32 %v5998_v17, %v5997_v50 }
 0x42c   : > { %v6028_v44 = vsel %vm4981_vm1, %v11986_v5, 0.0  ;;  %v5426_v7 = vrot.slane %v5425_v31, 2  ;;  %v5411_v37 = vmax.f32 %v5409_v13, %v5410_v42  ;;  %v11999_v34 = vmul.f32 %v11894_v20, %v11714_v4 }
 0x42d   : > { %v6029_v47 = vrot.slane %v6028_v44, 4  ;;  %v5422_v49 = vmax.f32 %v5420_v33, %v5421_v21  ;;  %v5407_v1 = vrot.slane %v5406_v30, 1  ;;  %v12005_v18 = vmul.f32 %v11922_v29, %v11770_v58  ;;  %v6365_v58 = vpop.f32.mrf.mxu1 }
 0x42e   : > { %v12001_v26 = vpop.eup %8732  ;;  %v5427_v6 = vmax.f32 %v5425_v31, %v5426_v7  ;;  %v5412_v41 = vrot.slane %v5411_v37, 2  ;;  %v6697_v0 = vadd.f32 %v6696_v60, %v6622_v28  ;;  %v12011_v43 = vmul.f32 %v11949_v16, %v11804_v14 }
 0x42f   : > { %v12007_v39 = vpop.eup %8734  ;;  %v6030_v48 = vadd.f32 %v6029_v47, %v6028_v44  ;;  %v5492_v15 = vsub.f32 %v11951_v19, %v5422_v49  ;;  %v5408_v36 = vmax.f32 %v5406_v30, %v5407_v1  ;;  %v8165_v33 = vpop.f32.mrf.mxu1  ;;  %v13116_v44 = vld [vmem:[#allocation43_spill] sm:$0xff] }
 0x430   : > { %v12013_v4 = vpop.eup %8736  ;;  %v6014_v20 = vsel %vm4981_vm1, %v12007_v39, 0.0  ;;  %v5428_v50 = vrot.slane %v5427_v6, 1  ;;  %v5413_v12 = vmax.f32 %v5411_v37, %v5412_v41  ;;  %v6620_v21 = vmul.f32 %v6365_v58, %v13116_v44 }
 0x431   : > { %v12018_v29 = vpop.eup %8738  ;;  %v6031_v54 = vrot.slane %v6030_v48, 2  ;;  %v6015_v45 = vrot.slane %v6014_v20, 4  ;;  %v6035_v52 = vsel %vm4981_vm1, %v12013_v4, 0.0  ;;  %v5618_v24 = vmul.f32 1.442695, %v5492_v15 }
 0x432   : > { %v6036_v14 = vrot.slane %v6035_v52, 4  ;;  %v6021_v16 = vsel %vm4981_vm1, %v12018_v29, 0.0  ;;  %v5490_v2 = vsub.f32 %v11964_v57, %v5408_v36  ;;  %v5429_v10 = vmax.f32 %v5427_v6, %v5428_v50 }
 0x433   : > { %v8741_v32 = vpop.eup %8740  ;;  %v6032_v19 = vadd.f32 %v6031_v54, %v6030_v48  ;;  %v6016_v23 = vadd.f32 %v6015_v45, %v6014_v20  ;;  %v6022_v46 = vrot.slane %v6021_v16, 4  ;;  %8750 = vpow2.f32 %v5618_v24  ;;  %v6368_v45 = vpop.f32.mrf.mxu1 }
 0x434   : > { %v12025_v63 = vpop.eup %8742  ;;  %v6037_v17 = vadd.f32 %v6036_v14, %v6035_v52  ;;  %v5614_v13 = vmul.f32 1.442695, %v5490_v2  ;;  %v5414_v28 = vrot.slane %v5413_v12, 1  ;;  %v5493_v60 = vsub.f32 %v11971_v22, %v5429_v10 }
 0x435   : > { %v8745_v51 = vpop.eup %8744  ;;  %v6017_v31 = vrot.slane %v6016_v23, 2  ;;  %v6023_v42 = vadd.f32 %v6022_v46, %v6021_v16  ;;  %v6033_v30 = vrot.slane %v6032_v19, 1  ;;  %v6698_v1 = vrot.slane %v6697_v0, 2 }
 0x436   : > { %v8747_v57 = vpop.eup %8746  ;;  %v6038_v7 = vrot.slane %v6037_v17, 2  ;;  %8752 = vpow2.f32 %v5614_v13  ;;  %v5415_v47 = vmax.f32 %v5413_v12, %v5414_v28  ;;  %v5620_v49 = vmul.f32 1.442695, %v5493_v60  ;;  %v13120_v13 = vld [vmem:[#allocation49_spill] sm:$0xff] }
 0x437   : > { %v6024_v37 = vrot.slane %v6023_v42, 2  ;;  %v6623_v6 = vmul.f32 %v8165_v33, %v10738_v62  ;;  %v8749_v48 = vpop.eup %8748  ;;  %v6178_v15 = vmul.f32 %v8741_v32, %v11720_v61  ;;  %v6179_v22 = vmul.f32 %v8745_v51, %v11782_v27  ;;  %v8168_v27 = vpop.f32.mrf.mxu1 }
 0x438   : > { %v6039_v41 = vadd.f32 %v6038_v7, %v6037_v17  ;;  %v5491_v20 = vsub.f32 %v11979_v53, %v5415_v47  ;;  %v6018_v36 = vadd.f32 %v6017_v31, %v6016_v23  ;;  %v6182_v50 = vmul.f32 %v8747_v57, %v11822_v25  ;;  %v13119_v23 = vld [vmem:[#allocation50_spill] sm:$0xff]  ;;  %v13121_v47 = vld [vmem:[#allocation11_spill] sm:$0xff] }
 0x439   : > { %v6183_v58 = vmul.f32 %v8749_v48, %v11858_v8  ;;  %v6185_v54 = vmul.f32 %v11960_v9, %v11843_v55  ;;  %v6034_v52 = vadd.f32 %v6033_v30, %v6032_v19  ;;  %8754 = vpow2.f32 %v5620_v49  ;;  %v13117_v9 = vld [vmem:[#allocation45_spill] sm:$0xff]  ;;  %v13118_v19 = vld [vmem:[#allocation72_spill] sm:$0xff]  ;;  %v6381_v33 = vpop.f32.mrf.mxu1 }
 0x43a   : > { %v5616_v62 = vmul.f32 1.442695, %v5491_v20  ;;  %v6220_v12 = vpack.c.bf16 %v6179_v22, %v6178_v15  ;;  %v6025_v14 = vadd.f32 %v6024_v37, %v6023_v42  ;;  %v6221_v53 = vpack.c.bf16 %v12005_v18, %v11999_v34 }
 0x43b   : > { %v6222_v61 = vpack.c.bf16 %v6183_v58, %v6182_v50  ;;  %v6699_v16 = vadd.f32 %v6698_v1, %v6697_v0  ;;  %v6040_v24 = vrot.slane %v6039_v41, 1  ;;  %v6684_v25 = vrot.slane %v6620_v21, 4 }
 0x43c   : > { %8756 = vpow2.f32 %v5616_v62  ;;  %8206 = vmatprep.mubr.msk.bf16.mxu1 %vm4981_vm1, %v6220_v12  ;;  %v6702_v8 = vrot.slane %v6623_v6, 4  ;;  %v6019_v2 = vrot.slane %v6018_v36, 1  ;;  %v6621_v32 = vmul.f32 %v6368_v45, %v13117_v9 }
 0x43d   : > { %8207 = vmatmul.mubr.msk.bf16.gmra.mxu1 %vm4981_vm1, %v6221_v53  ;;  %v6700_v55 = vrot.slane %v6699_v16, 1  ;;  %v12044_v46 = vmul.f32 %v13119_v23, %v13118_v19  ;;  %8758 = vrcp.f32 %v6034_v52  ;;  %v6223_v34 = vpack.c.bf16 %v6185_v54, %v12011_v43 }
 0x43e   : > { %8210 = vmatprep.mubr.msk.bf16.mxu1 %vm4981_vm1, %v6222_v61  ;;  %v6685_v18 = vadd.f32 %v6684_v25, %v6620_v21  ;;  %v6703_v0 = vadd.f32 %v6702_v8, %v6623_v6  ;;  %v6026_v10 = vrot.slane %v6025_v14, 1  ;;  %v6690_v17 = vrot.slane %v6621_v32, 4 }
 0x43f   : > { %8760 = vrcp.f32 %v11988_v40  ;;  %v6626_v28 = vmul.f32 %v8168_v27, %v13120_v13  ;;  %v6041_v51 = vadd.f32 %v6040_v24, %v6039_v41  ;;  %v12053_v44 = vadd.f32 %v6019_v2, %v6018_v36  ;;  %v12062_v41 = vpop.f32.mrf.mxu1 }
 0x440   : > { %v6686_v31 = vrot.slane %v6685_v18, 2  ;;  %v6704_v42 = vrot.slane %v6703_v0, 2  ;;  %8762 = vrcp.f32 %v11995_v11  ;;  %v12051_v60 = vpop.eup %8750  ;;  %v6701_v57 = vadd.f32 %v6700_v55, %v6699_v16 }
 0x441   : > { %v6691_v43 = vadd.f32 %v6690_v17, %v6621_v32  ;;  %v6720_v21 = vrot.slane %v6626_v28, 4  ;;  %v6056_v30 = vsel %vm4981_vm1, %v12051_v60, 0.0  ;;  %v6624_v37 = vmul.f32 %v6381_v33, %v13121_v47  ;;  %v6384_v24 = vpop.f32.mrf.mxu1 }
 0x442   : > { %v6687_v7 = vadd.f32 %v6686_v31, %v6685_v18  ;;  %v6705_v40 = vadd.f32 %v6704_v42, %v6703_v0  ;;  %v12060_v1 = vadd.f32 %v6026_v10, %v6025_v14  ;;  %v6057_v6 = vrot.slane %v6056_v30, 4 }
 0x443   : > { %v12058_v49 = vpop.eup %8752  ;;  %v6692_v11 = vrot.slane %v6691_v43, 2  ;;  %v6721_v48 = vadd.f32 %v6720_v21, %v6626_v28  ;;  %8764 = vrcp.f32 %v6041_v51  ;;  %v7070_v45 = vpack.c.bf16 %v6701_v57, %v6701_v57  ;;  %v8172_v0 = vpop.f32.mrf.mxu1 }
 0x444   : > { %v6042_v20 = vsel %vm4981_vm1, %v12058_v49, 0.0  ;;  %v6688_v15 = vrot.slane %v6687_v7, 1  ;;  %v6706_v22 = vrot.slane %v6705_v40, 1  ;;  %v6058_v36 = vadd.f32 %v6057_v6, %v6056_v30 }
 0x445   : > { %v6043_v50 = vrot.slane %v6042_v20, 4  ;;  %8211 = vmatmul.mubr.msk.bf16.gmra.mxu1 %vm4981_vm1, %v6223_v34  ;;  %v6693_v58 = vadd.f32 %v6692_v11, %v6691_v43  ;;  %v6722_v54 = vrot.slane %v6721_v48, 2  ;;  %v6708_v12 = vrot.slane %v6624_v37, 4  ;;  %v6397_v6 = vpop.f32.mrf.mxu1 }
 0x446   : > { %v6689_v52 = vadd.f32 %v6688_v15, %v6687_v7  ;;  %v6707_v62 = vadd.f32 %v6706_v22, %v6705_v40  ;;  %v12067_v14 = vpop.eup %8754  ;;  %v6059_v53 = vrot.slane %v6058_v36, 2  ;;  %v6189_v2 = vmul.f32 %v12025_v63, %v11939_v59 }
 0x447   : > { %v6044_v61 = vadd.f32 %v6043_v50, %v6042_v20  ;;  %v6694_v16 = vrot.slane %v6693_v58, 1  ;;  %v6723_v27 = vadd.f32 %v6722_v54, %v6721_v48  ;;  %v6063_v25 = vsel %vm4981_vm1, %v12067_v14, 0.0 }
 0x448   : > { %v7068_v8 = vpack.c.bf16 %v6689_v52, %v6689_v52  ;;  %v6709_v55 = vadd.f32 %v6708_v12, %v6624_v37  ;;  %v6060_v32 = vadd.f32 %v6059_v53, %v6058_v36  ;;  %v6064_v34 = vrot.slane %v6063_v25, 4 }
 0x449   : > { %v12073_v9 = vpop.eup %8756  ;;  %v6045_v23 = vrot.slane %v6044_v61, 2  ;;  %v6695_v18 = vadd.f32 %v6694_v16, %v6693_v58  ;;  %v7226_v17 = vunpack.c.l.b16 %v7070_v45  ;;  %v6724_v13 = vrot.slane %v6723_v27, 1 }
 0x44a   : > { %v6049_v10 = vsel %vm4981_vm1, %v12073_v9, 0.0  ;;  %v6188_v28 = vmul.f32 %v12001_v26, %v11915_v38  ;;  %v12079_v33 = vpop.eup %8758  ;;  %v6061_v51 = vrot.slane %v6060_v32, 1  ;;  %v6065_v59 = vadd.f32 %v6064_v34, %v6063_v25 }
 0x44b   : > { %v6050_v63 = vrot.slane %v6049_v10, 4  ;;  %v7071_v31 = vpack.c.bf16 %v6707_v62, %v6707_v62  ;;  %v6046_v57 = vadd.f32 %v6045_v23, %v6044_v61  ;;  %v7069_v43 = vpack.c.bf16 %v6695_v18, %v6695_v18  ;;  %v13122_v61 = vld [vmem:[#allocation60_spill] sm:$0xff] }
 0x44c   : > { %v8761_v42 = vpop.eup %8760  ;;  %v6225_v21 = vpack.c.bf16 %v6189_v2, %v6188_v28  ;;  %v6710_v30 = vrot.slane %v6709_v55, 2  ;;  %v6066_v40 = vrot.slane %v6065_v59, 2  ;;  %v7224_v37 = vunpack.c.l.b16 %v7068_v8  ;;  %v13123_v8 = vld [vmem:[#allocation13_spill] sm:$0xff] }
 0x44d   : > { %v8763_v7 = vpop.eup %8762  ;;  %v6051_v47 = vadd.f32 %v6050_v63, %v6049_v10  ;;  %v7225_v11 = vunpack.c.l.b16 %v7069_v43  ;;  %v6186_v38 = vmul.f32 %v8761_v42, %v11933_v3  ;;  %v6725_v48 = vadd.f32 %v6724_v13, %v6723_v27  ;;  %v13125_v28 = vld [vmem:[#allocation53_spill] sm:$0xff] }
 0x44e   : > { %v6187_v26 = vmul.f32 %v8763_v7, %v11944_v35  ;;  %v6062_v20 = vadd.f32 %v6061_v51, %v6060_v32  ;;  %v6067_v15 = vadd.f32 %v6066_v40, %v6065_v59  ;;  %v7227_v36 = vunpack.c.l.b16 %v7071_v31  ;;  %v8173_v35 = vpop.f32.mrf.mxu1  ;;  %v13124_v32 = vld [vmem:[#allocation48_spill] sm:$0xff] }
 0x44f   : > { %v6052_v22 = vrot.slane %v6051_v47, 2  ;;  %v6047_v50 = vrot.slane %v6046_v57, 1  ;;  %v7289_v58 = vsel %vm7288_vm2, %v7225_v11, %v7224_v37  ;;  %v6711_v45 = vadd.f32 %v6710_v30, %v6709_v55  ;;  %v13126_v30 = vld [vmem:[#allocation73_spill] sm:$0xff]  ;;  %v13128_v11 = vld [vmem:[#allocation20_spill] sm:$0xff] }
 0x450   : > { %v6224_v54 = vpack.c.bf16 %v6187_v26, %v6186_v38  ;;  %v12084_v52 = vpop.eup %8764  ;;  %v6068_v62 = vrot.slane %v6067_v15, 1  ;;  %v7291_v53 = vsel %vm7290_vm3, %v7226_v17, %v7289_v58  ;;  %v6627_v3 = vmul.f32 %v12062_v41, %v13122_v61 }
 0x451   : > { %v6053_v12 = vadd.f32 %v6052_v22, %v6051_v47  ;;  %v7074_v16 = vpack.c.bf16 %v6725_v48, %v6725_v48  ;;  %v6712_v27 = vrot.slane %v6711_v45, 1  ;;  %v7293_v25 = vsel %vm7292_vm4, %v7227_v36, %v7291_v53 }
 0x452   : > { %8214 = vmatprep.mubr.msk.bf16.mxu1 %vm4981_vm1, %v6224_v54  ;;  %v6625_v2 = vmul.f32 %v6384_v24, %v13123_v8  ;;  %v12094_v55 = vmul.f32 %v13124_v32, %v13124_v32  ;;  %8766 = vrcp.f32 %v6062_v20  ;;  %v6726_v34 = vrot.slane %v6627_v3, 4  ;;  %v6400_v24 = vpop.f32.mrf.mxu1 }
 0x453   : > { %v6054_v23 = vrot.slane %v6053_v12, 1  ;;  %8215 = vmatmul.mubr.msk.bf16.gmra.mxu1 %vm4981_vm1, %v6225_v21  ;;  %v6713_v18 = vadd.f32 %v6712_v27, %v6711_v45  ;;  %8768 = vrcp.f32 %v12053_v44  ;;  %v6048_v10 = vadd.f32 %v6047_v50, %v6046_v57  ;;  %v13127_v57 = vld [vmem:[#allocation52_spill] sm:$0xff] }
 0x454   : > { %v6714_v41 = vrot.slane %v6625_v2, 4  ;;  %v6069_v17 = vadd.f32 %v6068_v62, %v6067_v15  ;;  %v6727_v13 = vadd.f32 %v6726_v34, %v6627_v3  ;;  %v6630_v51 = vmul.f32 %v8172_v0, %v13125_v28  ;;  %v8176_v40 = vpop.f32.mrf.mxu1  ;;  %v13129_v3 = vld [vmem:[#allocation30_spill] sm:$0xff] }
 0x455   : > { %v12099_v59 = vunpack.c.l.b16 %v7074_v16  ;;  %v7072_v63 = vpack.c.bf16 %v6713_v18, %v6713_v18  ;;  %8770 = vrcp.f32 %v12060_v1  ;;  %v6055_v42 = vadd.f32 %v6054_v23, %v6053_v12 }
 0x456   : > { %v6715_v31 = vadd.f32 %v6714_v41, %v6625_v2  ;;  %v6728_v43 = vrot.slane %v6727_v13, 2  ;;  %v6744_v21 = vrot.slane %v6630_v51, 4  ;;  %v6628_v7 = vmul.f32 %v6397_v6, %v13126_v30  ;;  %v6413_v58 = vpop.f32.mrf.mxu1 }
 0x457   : > { %v7228_v47 = vunpack.c.l.b16 %v7072_v63  ;;  %v6631_v37 = vmul.f32 %v8173_v35, %v13127_v57  ;;  %v6629_v38 = vmul.f32 %v6400_v24, %v13128_v11  ;;  %8772 = vrcp.f32 %v6069_v17 }
 0x458   : > { %v6716_v44 = vrot.slane %v6715_v31, 2  ;;  %v6729_v0 = vadd.f32 %v6728_v43, %v6727_v13  ;;  %v6745_v26 = vadd.f32 %v6744_v21, %v6630_v51  ;;  %v6732_v48 = vrot.slane %v6628_v7, 4  ;;  %v8177_v41 = vpop.f32.mrf.mxu1  ;;  %v13130_v43 = vld [vmem:[#allocation56_spill] sm:$0xff] }
 0x459   : > { %v7295_v20 = vsel %vm7294_vm5, %v7228_v47, %v7293_v25  ;;  %v6750_v15 = vrot.slane %v6631_v37, 4  ;;  %v6738_v22 = vrot.slane %v6629_v38, 4  ;;  %8774 = vrcp.f32 %v6048_v10 }
 0x45a   : > { %v6717_v1 = vadd.f32 %v6716_v44, %v6715_v31  ;;  %v6730_v36 = vrot.slane %v6729_v0, 1  ;;  %v6746_v6 = vrot.slane %v6745_v26, 2  ;;  %v6733_v50 = vadd.f32 %v6732_v48, %v6628_v7  ;;  %v6416_v11 = vpop.f32.mrf.mxu1 }
 0x45b   : > { %v6751_v45 = vadd.f32 %v6750_v15, %v6631_v37  ;;  %v6739_v62 = vadd.f32 %v6738_v22, %v6629_v38  ;;  %8776 = vrcp.f32 %v6055_v42  ;;  %v6634_v35 = vmul.f32 %v8176_v40, %v13129_v3  ;;  %v13131_v22 = vld [vmem:[#allocation67_spill] sm:$0xff] }
 0x45c   : > { %v6718_v54 = vrot.slane %v6717_v1, 1  ;;  %v6731_v12 = vadd.f32 %v6730_v36, %v6729_v0  ;;  %v6747_v53 = vadd.f32 %v6746_v6, %v6745_v26  ;;  %v6734_v61 = vrot.slane %v6733_v50, 2  ;;  %v13132_v36 = vld [vmem:[#allocation76_spill] sm:$0xff] }
 0x45d   : > { %v6192_v27 = vmul.f32 %v12079_v33, %v11986_v5  ;;  %v6752_v25 = vrot.slane %v6751_v45, 2  ;;  %v6740_v8 = vrot.slane %v6739_v62, 2  ;;  %v6768_v18 = vrot.slane %v6634_v35, 4 }
 0x45e   : > { %v6719_v16 = vadd.f32 %v6718_v54, %v6717_v1  ;;  %v7075_v2 = vpack.c.bf16 %v6731_v12, %v6731_v12  ;;  %v6748_v23 = vrot.slane %v6747_v53, 1  ;;  %v6735_v34 = vadd.f32 %v6734_v61, %v6733_v50 }
 0x45f   : > { %v8767_v10 = vpop.eup %8766  ;;  %v6193_v13 = vmul.f32 %v12084_v52, %v12013_v4  ;;  %v6753_v28 = vadd.f32 %v6752_v25, %v6751_v45  ;;  %v6741_v51 = vadd.f32 %v6740_v8, %v6739_v62  ;;  %v6769_v42 = vadd.f32 %v6768_v18, %v6634_v35  ;;  %v13133_v35 = vld [vmem:[#allocation77_spill] sm:$0xff]  ;;  %v13135_v18 = vld [vmem:[#allocation27_spill] sm:$0xff] }
 0x460   : > { %v7073_v17 = vpack.c.bf16 %v6719_v16, %v6719_v16  ;;  %v8769_v24 = vpop.eup %8768  ;;  %v6749_v63 = vadd.f32 %v6748_v23, %v6747_v53  ;;  %v6736_v31 = vrot.slane %v6735_v34, 1  ;;  %v6632_v5 = vmul.f32 %v6413_v58, %v13130_v43 }
 0x461   : > { %v7231_v33 = vunpack.c.l.b16 %v7075_v2  ;;  %v6754_v30 = vrot.slane %v6753_v28, 1  ;;  %v6742_v7 = vrot.slane %v6741_v51, 1  ;;  %v6190_v47 = vmul.f32 %v8769_v24, %v12007_v39 }
 0x462   : > { %v7229_v21 = vunpack.c.l.b16 %v7073_v17  ;;  %v8771_v40 = vpop.eup %8770  ;;  %v7078_v44 = vpack.c.bf16 %v6749_v63, %v6749_v63  ;;  %v6737_v57 = vadd.f32 %v6736_v31, %v6735_v34  ;;  %v6770_v37 = vrot.slane %v6769_v42, 2 }
 0x463   : > { %v6191_v52 = vmul.f32 %v8771_v40, %v12018_v29  ;;  %v6755_v38 = vadd.f32 %v6754_v30, %v6753_v28  ;;  %v6743_v0 = vadd.f32 %v6742_v7, %v6741_v51  ;;  %v6227_v48 = vpack.c.bf16 %v6193_v13, %v6192_v27  ;;  %v13134_v27 = vld [vmem:[#allocation82_spill] sm:$0xff]  ;;  %v13136_v40 = vld [vmem:[#allocation63_spill] sm:$0xff] }
 0x464   : > { %v7297_v4 = vsel %vm7296_vm6, %v7229_v21, %v7295_v20  ;;  %v7076_v1 = vpack.c.bf16 %v6737_v57, %v6737_v57  ;;  %v12119_v6 = vmul.f32 %v13132_v36, %v13131_v22  ;;  %v8773_v39 = vpop.eup %8772  ;;  %v7234_v29 = vunpack.c.l.b16 %v7078_v44  ;;  %v13137_v57 = vld [vmem:[#allocation58_spill] sm:$0xff] }
 0x465   : > { %v7299_v26 = vsel %vm7298_vm7, %v12099_v59, %v7297_v4  ;;  %v6226_v58 = vpack.c.bf16 %v6191_v52, %v6190_v47  ;;  %v7079_v20 = vpack.c.bf16 %v6755_v38, %v6755_v38  ;;  %v7077_v54 = vpack.c.bf16 %v6743_v0, %v6743_v0 }
 0x466   : > { %v8180_v15 = vpop.f32.mrf.mxu1  ;;  %v12122_v50 = vsel %vm7300_vm8, %v7231_v33, %v7299_v26  ;;  %v6771_v45 = vadd.f32 %v6770_v37, %v6769_v42  ;;  %v6196_v62 = vmul.f32 %v8767_v10, %v12051_v60  ;;  %v6756_v12 = vrot.slane %v6632_v5, 4  ;;  %v8775_v53 = vpop.eup %8774 }
 0x467   : > { %8218 = vmatprep.mubr.msk.bf16.mxu1 %vm4981_vm1, %v6226_v58  ;;  %v7232_v61 = vunpack.c.l.b16 %v7076_v1  ;;  %v7233_v3 = vunpack.c.l.b16 %v7077_v54  ;;  %v6635_v16 = vmul.f32 %v8177_v41, %v13133_v35  ;;  %v6633_v25 = vmul.f32 %v6416_v11, %v13134_v27 }
 0x468   : > { %v6429_v59 = vpop.f32.mrf.mxu1  ;;  %v8777_v8 = vpop.eup %8776  ;;  %8219 = vmatmul.mubr.msk.bf16.gmra.mxu1 %vm4981_vm1, %v6227_v48  ;;  %v7235_v2 = vunpack.c.l.b16 %v7079_v20  ;;  %v6194_v23 = vmul.f32 %v8775_v53, %v12058_v49  ;;  %v6757_v34 = vadd.f32 %v6756_v12, %v6632_v5  ;;  %v6638_v60 = vmul.f32 %v8180_v15, %v13135_v18 }
 0x469   : > { %v7302_v17 = vsel %vm7288_vm2, %v7233_v3, %v7232_v61  ;;  %v6195_v13 = vmul.f32 %v8777_v8, %v12073_v9  ;;  %v6774_v28 = vrot.slane %v6635_v16, 4  ;;  %v6762_v51 = vrot.slane %v6633_v25, 4  ;;  %v13139_v61 = vld [vmem:[#allocation42_spill] sm:$0xff] }
 0x46a   : > { %v8181_v10 = vpop.f32.mrf.mxu1  ;;  %v7303_v41 = vsel %vm7290_vm3, %v7234_v29, %v7302_v17  ;;  %v6197_v24 = vmul.f32 %v8773_v39, %v12067_v14  ;;  %v6758_v63 = vrot.slane %v6757_v34, 2  ;;  %v6792_v31 = vrot.slane %v6638_v60, 4  ;;  %v13138_v14 = vld [vmem:[#allocation36_spill] sm:$0xff] }
 0x46b   : > { %v6228_v43 = vpack.c.bf16 %v6195_v13, %v6194_v23  ;;  %v7304_v49 = vsel %vm7292_vm4, %v7235_v2, %v7303_v41  ;;  %v6775_v5 = vadd.f32 %v6774_v28, %v6635_v16  ;;  %v6763_v33 = vadd.f32 %v6762_v51, %v6633_v25  ;;  %v13140_v23 = vld [vmem:[#allocation51_spill] sm:$0xff]  ;;  %v13141_v13 = vld [vmem:[#allocation64_spill] sm:$0xff] }
 0x46c   : > { %v6432_v42 = vpop.f32.mrf.mxu1  ;;  %v6772_v21 = vrot.slane %v6771_v45, 1  ;;  %v6759_v30 = vadd.f32 %v6758_v63, %v6757_v34  ;;  %v6793_v7 = vadd.f32 %v6792_v31, %v6638_v60  ;;  %v6636_v47 = vmul.f32 %v6429_v59, %v13136_v40  ;;  %v13142_v28 = vld [vmem:[#allocation87_spill] sm:$0xff] }
 0x46d   : > { %8222 = vmatprep.mubr.msk.bf16.mxu1 %vm4981_vm1, %v6228_v43  ;;  %v6776_v9 = vrot.slane %v6775_v5, 2  ;;  %v6764_v44 = vrot.slane %v6763_v33, 2  ;;  %v6639_v37 = vmul.f32 %v8181_v10, %v13137_v57  ;;  %v6637_v11 = vmul.f32 %v6432_v42, %v13138_v14 }
 0x46e   : > { %v6229_v4 = vpack.c.bf16 %v6197_v24, %v6196_v62  ;;  %v6760_v52 = vrot.slane %v6759_v30, 1  ;;  %v6794_v38 = vrot.slane %v6793_v7, 2  ;;  %v6780_v0 = vrot.slane %v6636_v47, 4 }
 0x46f   : > { %v6777_v26 = vadd.f32 %v6776_v9, %v6775_v5  ;;  %v6765_v48 = vadd.f32 %v6764_v44, %v6763_v33  ;;  %v6798_v1 = vrot.slane %v6639_v37, 4  ;;  %v6786_v15 = vrot.slane %v6637_v11, 4  ;;  %v13143_v33 = vld [vmem:[#allocation17_spill] sm:$0xff] }
 0x470   : > { %v6773_v22 = vadd.f32 %v6772_v21, %v6771_v45  ;;  %8223 = vmatmul.mubr.msk.bf16.gmra.mxu1 %vm4981_vm1, %v6229_v4  ;;  %v6761_v36 = vadd.f32 %v6760_v52, %v6759_v30  ;;  %v6795_v39 = vadd.f32 %v6794_v38, %v6793_v7  ;;  %v6781_v58 = vadd.f32 %v6780_v0, %v6636_v47  ;;  %v13144_v21 = vld [vmem:[#allocation108_spill] sm:$0xff] }
 0x471   : > { %v6778_v20 = vrot.slane %v6777_v26, 1  ;;  %v6766_v54 = vrot.slane %v6765_v48, 1  ;;  %v6799_v29 = vadd.f32 %v6798_v1, %v6639_v37  ;;  %v6787_v12 = vadd.f32 %v6786_v15, %v6637_v11  ;;  %v13146_v37 = vld [vmem:[#allocation40_spill] sm:$0xff] }
 0x472   : > { %v7080_v59 = vpack.c.bf16 %v6761_v36, %v6761_v36  ;;  %v6796_v53 = vrot.slane %v6795_v39, 1  ;;  %v6782_v62 = vrot.slane %v6781_v58, 2  ;;  %v3902_v3 = vadd.f32 1.0, %v13139_v61 }
 0x473   : > { %v6779_v35 = vadd.f32 %v6778_v20, %v6777_v26  ;;  %v6767_v16 = vadd.f32 %v6766_v54, %v6765_v48  ;;  %v6800_v27 = vrot.slane %v6799_v29, 2  ;;  %v6788_v25 = vrot.slane %v6787_v12, 2 }
 0x474   : > { %v7082_v8 = vpack.c.bf16 %v6773_v22, %v6773_v22  ;;  %v7236_v45 = vunpack.c.l.b16 %v7080_v59  ;;  %v6783_v2 = vadd.f32 %v6782_v62, %v6781_v58  ;;  %v3780_v34 = vmul.f32 0.7978846, %v13140_v23  ;;  %v13148_v22 = vld [vmem:[#allocation70_spill] sm:$0xff]  ;;  %v13150_v59 = vld [vmem:[#allocation80_spill] sm:$0xff] }
 0x475   : > { %v7083_v18 = vpack.c.bf16 %v6779_v35, %v6779_v35  ;;  %v7081_v60 = vpack.c.bf16 %v6767_v16, %v6767_v16  ;;  %v6801_v10 = vadd.f32 %v6800_v27, %v6799_v29  ;;  %v6789_v17 = vadd.f32 %v6788_v25, %v6787_v12  ;;  %v13149_v12 = vld [vmem:[#allocation34_spill] sm:$0xff] }
 0x476   : > { %v3029_v51 = vadd.f32 %v13142_v28, %v13141_v13  ;;  %v7305_v41 = vsel %vm7294_vm5, %v7236_v45, %v7304_v49  ;;  %v6797_v24 = vadd.f32 %v6796_v53, %v6795_v39  ;;  %v6784_v63 = vrot.slane %v6783_v2, 1  ;;  %v13145_v49 = vld [vmem:[#allocation19_spill] sm:$0xff]  ;;  %v13151_v35 = vld [vmem:[#allocation66_spill] sm:$0xff] }
 0x477   : > { %v7237_v31 = vunpack.c.l.b16 %v7081_v60  ;;  %v6802_v42 = vrot.slane %v6801_v10, 1  ;;  %v6790_v43 = vrot.slane %v6789_v17, 1  ;;  %v3655_v5 = vmul.f32 0.044715, %v12044_v46  ;;  %v13155_v28 = vld [vmem:[#allocation75_spill] sm:$0xff] }
 0x478   : > { %v12149_v30 = vadd.f32 %v13144_v21, %v13143_v33  ;;  %v7238_v7 = vunpack.c.l.b16 %v7082_v8  ;;  %v6785_v40 = vadd.f32 %v6784_v63, %v6783_v2  ;;  %8778 = vtanh.f32 %v3780_v34 }
 0x479   : > { %v7239_v47 = vunpack.c.l.b16 %v7083_v18  ;;  %v7306_v9 = vsel %vm7296_vm6, %v7237_v31, %v7305_v41  ;;  %v6803_v44 = vadd.f32 %v6802_v42, %v6801_v10  ;;  %v6791_v57 = vadd.f32 %v6790_v43, %v6789_v17  ;;  %v13153_v18 = vld [vmem:[#allocation65_spill] sm:$0xff] }
 0x47a   : > { %v13147_v14 = vrot.slane %v13145_v49, %v13146_v37  ;;  %v7307_v4 = vsel %vm7298_vm7, %v7238_v7, %v7306_v9  ;;  %v7086_v52 = vpack.c.bf16 %v6797_v24, %v6797_v24  ;;  %v7084_v46 = vpack.c.bf16 %v6785_v40, %v6785_v40  ;;  %v13154_v10 = vld [vmem:[#allocation89_spill] sm:$0xff]  ;;  %v13157_v24 = vld [vmem:[#allocation47_spill] sm:$0xff]  ;;  %v13159_v7 = vld [vmem:[#allocation68_spill] sm:$0xff] }
 0x47b   : > { %v7308_v38 = vsel %vm7300_vm8, %v7239_v47, %v7307_v4  ;;  %v7087_v0 = vpack.c.bf16 %v6803_v44, %v6803_v44  ;;  %v7085_v26 = vpack.c.bf16 %v6791_v57, %v6791_v57  ;;  %v8184_v48 = vpop.f32.mrf.mxu1  ;;  %v3719_v1 = vadd.f32 %v3655_v5, %v13118_v19  ;;  %v13156_v41 = vld [vmem:[#allocation69_spill] sm:$0xff]  ;;  %v13158_v5 = vld [vmem:[#allocation46_spill] sm:$0xff]  ;;  %v13161_v9 = vld [vmem:[#allocation79_spill] sm:$0xff] }
 0x47c   : > { %v3236_v11 = vadd.f32 %v3029_v51, %v13147_v14  ;;  %v7351_v15 = vpack.c.b16 %v7308_v38, %v12122_v50  ;;  %v6642_v36 = vmul.f32 %v8184_v48, %v13148_v22  ;;  %v3966_v39 = vmul.f32 0.5, %v3902_v3  ;;  %v13160_v40 = vld [vmem:[#allocation90_spill] sm:$0xff]  ;;  %v13162_v38 = vld [vmem:[#allocation12_spill] sm:$0xff] }
 0x47d   : > { %8780 = vtanh.f32 %v11991_v56  ;;  %v12163_v58 = vmul.f32 %v12149_v30, %v12149_v30  ;;  %v7240_v20 = vunpack.c.l.b16 %v7084_v46  ;;  %v7241_v54 = vunpack.c.l.b16 %v7085_v26  ;;  %v6445_v29 = vpop.f32.mrf.mxu1 }
 0x47e   : > { %v3717_v53 = vadd.f32 %v13150_v59, %v13149_v12  ;;  %v7242_v62 = vunpack.c.l.b16 %v7086_v52  ;;  %7472 = vmatmul.mubr.bf16.vlgmr.msra.gmra.mxu0 %v7351_v15  ;;  %v6816_v61 = vrot.slane %v6642_v36, 4  ;;  %v6640_v50 = vmul.f32 %v6445_v29, %v13151_v35 }
 0x47f   : > { %v3592_v3 = vmul.f32 %v12094_v55, %v13124_v32  ;;  %v12171_v56 = vadd.f32 %v13144_v21, %v3236_v11  ;;  %v7243_v16 = vunpack.c.l.b16 %v7087_v0  ;;  %v7309_v27 = vsel %vm7288_vm2, %v7241_v54, %v7240_v20  ;;  %v8185_v25 = vpop.f32.mrf.mxu1  ;;  %v13163_v54 = vld [vmem:[#allocation88_spill] sm:$0xff] }
 0x480   : > { %v3783_v8 = vmul.f32 0.7978846, %v3719_v1  ;;  %v13152_v45 = vmov 0   ;;  %v7310_v2 = vsel %vm7290_vm3, %v7242_v62, %v7309_v27  ;;  %v6817_v23 = vadd.f32 %v6816_v61, %v6642_v36 }
 0x481   : > { %7481 = vmatprep.mubr.bf16.mxu0 %v13152_v45  ;;  %v6804_v34 = vrot.slane %v6640_v50, 4  ;;  %v6643_v60 = vmul.f32 %v8185_v25, %v13153_v18  ;;  %v12179_v17 = vadd.f32 %v13144_v21, %v13154_v10  ;;  %v12182_v55 = vsel %vm7292_vm4, %v7243_v16, %v7310_v2  ;;  %v6448_v13 = vpop.f32.mrf.mxu1  ;;  %v13165_v16 = vld [vmem:[#allocation32_spill] sm:$0xff] }
 0x482   : > { %v3907_v51 = vadd.f32 1.0, %v13155_v28  ;;  %v3590_v63 = vmul.f32 %v13157_v24, %v13156_v41  ;;  %v6818_v31 = vrot.slane %v6817_v23, 2  ;;  %v6641_v33 = vmul.f32 %v6448_v13, %v13158_v5 }
 0x483   : > { %v6805_v42 = vadd.f32 %v6804_v34, %v6640_v50  ;;  %v6822_v43 = vrot.slane %v6643_v60, 4  ;;  %v3039_v47 = vadd.f32 %v13160_v40, %v13159_v7  ;;  %v3905_v44 = vadd.f32 1.0, %v13161_v9  ;;  %v13169_v7 = vld [vmem:[#allocation91_spill] sm:$0xff] }
 0x484   : > { %8782 = vtanh.f32 %v3783_v8  ;;  %v3656_v57 = vmul.f32 0.044715, %v3592_v3  ;;  %v6819_v49 = vadd.f32 %v6818_v31, %v6817_v23  ;;  %v6810_v4 = vrot.slane %v6641_v33, 4  ;;  %v13166_v31 = vld [vmem:[#allocation55_spill] sm:$0xff] }
 0x485   : > { %v6806_v14 = vrot.slane %v6805_v42, 2  ;;  %v6823_v11 = vadd.f32 %v6822_v43, %v6643_v60  ;;  %v8779_v52 = vpop.eup %8778  ;;  %v3531_v46 = vmul.f32 %v12179_v17, %v12179_v17  ;;  %v12194_v0 = vmul.f32 %v3966_v39, %v13162_v38  ;;  %v13167_v43 = vld [vmem:[#allocation21_spill] sm:$0xff] }
 0x486   : > { %v3971_v26 = vmul.f32 0.5, %v3907_v51  ;;  %v3781_v48 = vmul.f32 0.7978846, %v3717_v53  ;;  %v6811_v22 = vadd.f32 %v6810_v4, %v6641_v33  ;;  %v3654_v36 = vmul.f32 0.044715, %v3590_v63  ;;  %v13168_v33 = vld [vmem:[#allocation71_spill] sm:$0xff] }
 0x487   : > { %v6807_v1 = vadd.f32 %v6806_v14, %v6805_v42  ;;  %v6824_v15 = vrot.slane %v6823_v11, 2  ;;  %v12198_v20 = vmul.f32 %v12171_v56, %v12171_v56  ;;  %v13164_v29 = vrot.slane %v13163_v54, %v13146_v37 }
 0x488   : > { %v6820_v62 = vrot.slane %v6819_v49, 1  ;;  %v3720_v61 = vadd.f32 %v3656_v57, %v13124_v32  ;;  %v6812_v50 = vrot.slane %v6811_v22, 2  ;;  %v3969_v3 = vmul.f32 0.5, %v3905_v44 }
 0x489   : > { %v3240_v59 = vadd.f32 %v3039_v47, %v13164_v29  ;;  %v6808_v35 = vrot.slane %v6807_v1, 1  ;;  %v6825_v39 = vadd.f32 %v6824_v15, %v6823_v11  ;;  %v12205_v27 = vmul.f32 %v3971_v26, %v13165_v16  ;;  %v13176_v16 = vld [vmem:[#allocation41_spill] sm:$0xff] }
 0x48a   : > { %v8781_v53 = vpop.eup %8780  ;;  %v3908_v25 = vadd.f32 1.0, %v8779_v52  ;;  %8784 = vtanh.f32 %v3781_v48  ;;  %v3595_v8 = vmul.f32 %v3531_v46, %v12179_v17  ;;  %v6813_v34 = vadd.f32 %v6812_v50, %v6811_v22  ;;  %v13170_v46 = vld [vmem:[#allocation93_spill] sm:$0xff] }
 0x48b   : > { %v6809_v2 = vadd.f32 %v6808_v35, %v6807_v1  ;;  %v6826_v23 = vrot.slane %v6825_v39, 1  ;;  %v3718_v18 = vadd.f32 %v3654_v36, %v13156_v41  ;;  %v12210_v60 = vadd.f32 %v13144_v21, %v3240_v59  ;;  %v13171_v22 = vld [vmem:[#allocation33_spill] sm:$0xff] }
 0x48c   : > { %v6821_v10 = vadd.f32 %v6820_v62, %v6819_v49  ;;  %v3784_v13 = vmul.f32 0.7978846, %v3720_v61  ;;  %v3593_v28 = vmul.f32 %v12163_v58, %v12149_v30  ;;  %v6814_v63 = vrot.slane %v6813_v34, 1  ;;  %v13173_v62 = vld [vmem:[#allocation44_spill] sm:$0xff]  ;;  %v13174_v61 = vld [vmem:[#allocation94_spill] sm:$0xff] }
 0x48d   : > { %v7088_v51 = vpack.c.bf16 %v6809_v2, %v6809_v2  ;;  %v6827_v24 = vadd.f32 %v6826_v23, %v6825_v39  ;;  %v12215_v42 = vmul.f32 %v3969_v3, %v13166_v31  ;;  %v12219_v5 = vadd.f32 %v13144_v21, %v13167_v43  ;;  %v13175_v3 = vld [vmem:[#allocation62_spill] sm:$0xff] }
 0x48e   : > { %v3049_v40 = vadd.f32 %v13169_v7, %v13168_v33  ;;  %v3906_v47 = vadd.f32 1.0, %v8781_v53  ;;  %v3659_v9 = vmul.f32 0.044715, %v3595_v8  ;;  %v6815_v57 = vadd.f32 %v6814_v63, %v6813_v34  ;;  %v13178_v63 = vld [vmem:[#allocation31_spill] sm:$0xff]  ;;  %v13179_v7 = vld [vmem:[#allocation92_spill] sm:$0xff] }
 0x48f   : > { %v7244_v44 = vunpack.c.l.b16 %v7088_v51  ;;  %v3972_v49 = vmul.f32 0.5, %v3908_v25  ;;  %v3782_v14 = vmul.f32 0.7978846, %v3718_v18  ;;  %v3532_v58 = vmul.f32 %v12210_v60, %v12210_v60  ;;  %v13177_v51 = vld [vmem:[#allocation74_spill] sm:$0xff] }
 0x490   : > { %v7090_v11 = vpack.c.bf16 %v6821_v10, %v6821_v10  ;;  %8786 = vtanh.f32 %v3784_v13  ;;  %v3657_v4 = vmul.f32 0.044715, %v3593_v28  ;;  %v12227_v38 = vadd.f32 %v13144_v21, %v13170_v46 }
 0x491   : > { %v8783_v52 = vpop.eup %8782  ;;  %v7312_v26 = vsel %vm7294_vm5, %v7244_v44, %v12182_v55  ;;  %v7091_v48 = vpack.c.bf16 %v6827_v24, %v6827_v24  ;;  %v7089_v1 = vpack.c.bf16 %v6815_v57, %v6815_v57  ;;  %v3533_v15 = vmul.f32 %v12219_v5, %v12219_v5 }
 0x492   : > { %v13172_v36 = vrot.slane %v13171_v22, %v13146_v37  ;;  %v3970_v29 = vmul.f32 0.5, %v3906_v47  ;;  %v3723_v59 = vadd.f32 %v3659_v9, %v12179_v17  ;;  %v3059_v35 = vadd.f32 %v13174_v61, %v13173_v62  ;;  %v8188_v50 = vpop.f32.mrf.mxu1 }
 0x493   : > { %v7245_v39 = vunpack.c.l.b16 %v7089_v1  ;;  %v12240_v53 = vmul.f32 %v3972_v49, %v13175_v3  ;;  %8788 = vtanh.f32 %v3782_v14  ;;  %v7246_v55 = vunpack.c.l.b16 %v7090_v11 }
 0x494   : > { %v3244_v54 = vadd.f32 %v3049_v40, %v13172_v36  ;;  %v6646_v25 = vmul.f32 %v8188_v50, %v13176_v16  ;;  %v3911_v8 = vadd.f32 1.0, %v8783_v52  ;;  %v3721_v2 = vadd.f32 %v3657_v4, %v12149_v30  ;;  %v6461_v10 = vpop.f32.mrf.mxu1 }
 0x495   : > { %v3535_v23 = vmul.f32 %v12227_v38, %v12227_v38  ;;  %v7247_v34 = vunpack.c.l.b16 %v7091_v48  ;;  %v7313_v18 = vsel %vm7296_vm6, %v7245_v39, %v7312_v26  ;;  %v3596_v13 = vmul.f32 %v3532_v58, %v12210_v60 }
 0x496   : > { %v6840_v28 = vrot.slane %v6646_v25, 4  ;;  %v6644_v24 = vmul.f32 %v6461_v10, %v13177_v51  ;;  %v12250_v31 = vmul.f32 %v3970_v29, %v13178_v63  ;;  %v7314_v43 = vsel %vm7298_vm7, %v7246_v55, %v7313_v18  ;;  %v8189_v9 = vpop.f32.mrf.mxu1 }
 0x497   : > { %v8785_v33 = vpop.eup %8784  ;;  %v13180_v40 = vrot.slane %v13179_v7, %v13146_v37  ;;  %v12257_v44 = vsel %vm7300_vm8, %v7247_v34, %v7314_v43  ;;  %v3787_v57 = vmul.f32 0.7978846, %v3723_v59  ;;  %v3594_v49 = vmul.f32 %v12198_v20, %v12171_v56  ;;  %v13181_v43 = vld [vmem:[#allocation78_spill] sm:$0xff] }
 0x498   : > { %v12262_v14 = vadd.f32 %v13144_v21, %v3244_v54  ;;  %v6841_v58 = vadd.f32 %v6840_v28, %v6646_v25  ;;  %v6828_v11 = vrot.slane %v6644_v24, 4  ;;  %v6647_v4 = vmul.f32 %v8189_v9, %v12119_v6  ;;  %v6464_v52 = vpop.f32.mrf.mxu1  ;;  %v13183_v9 = vld [vmem:[#allocation97_spill] sm:$0xff] }
 0x499   : > { %v3248_v47 = vadd.f32 %v3059_v35, %v13180_v40  ;;  %v3975_v46 = vmul.f32 0.5, %v3911_v8  ;;  %v3785_v26 = vmul.f32 0.7978846, %v3721_v2  ;;  %v3660_v48 = vmul.f32 0.044715, %v3596_v13 }
 0x49a   : > { %v3599_v1 = vmul.f32 %v3535_v23, %v12227_v38  ;;  %v6842_v22 = vrot.slane %v6841_v58, 2  ;;  %v6829_v36 = vadd.f32 %v6828_v11, %v6644_v24  ;;  %v6846_v29 = vrot.slane %v6647_v4, 4  ;;  %v13184_v11 = vld [vmem:[#allocation22_spill] sm:$0xff] }
 0x49b   : > { %v6645_v59 = vmul.f32 %v6464_v52, %v12194_v0  ;;  %v12268_v20 = vadd.f32 %v13144_v21, %v3248_v47  ;;  %v3909_v54 = vadd.f32 1.0, %v8785_v33  ;;  %8790 = vtanh.f32 %v3787_v57  ;;  %v13182_v33 = vld [vmem:[#allocation98_spill] sm:$0xff] }
 0x49c   : > { %v3658_v62 = vmul.f32 0.044715, %v3594_v49  ;;  %v6843_v61 = vadd.f32 %v6842_v22, %v6841_v58  ;;  %v6830_v35 = vrot.slane %v6829_v36, 2  ;;  %v6847_v6 = vadd.f32 %v6846_v29, %v6647_v4  ;;  %v13185_v52 = vld [vmem:[#allocation14_spill] sm:$0xff] }
 0x49d   : > { %v6834_v39 = vrot.slane %v6645_v59, 4  ;;  %v8787_v50 = vpop.eup %8786  ;;  %v3534_v3 = vmul.f32 %v12262_v14, %v12262_v14  ;;  %8792 = vtanh.f32 %v3785_v26  ;;  %v3724_v55 = vadd.f32 %v3660_v48, %v12210_v60 }
 0x49e   : > { %v3663_v16 = vmul.f32 0.044715, %v3599_v1  ;;  %v6831_v25 = vadd.f32 %v6830_v35, %v6829_v36  ;;  %v6848_v0 = vrot.slane %v6847_v6, 2  ;;  %v12274_v2 = vmul.f32 %v3975_v46, %v13118_v19  ;;  %v13186_v46 = vld [vmem:[#allocation95_spill] sm:$0xff] }
 0x49f   : > { %v6835_v8 = vadd.f32 %v6834_v39, %v6645_v59  ;;  %v3536_v23 = vmul.f32 %v12268_v20, %v12268_v20  ;;  %v6844_v34 = vrot.slane %v6843_v61, 1  ;;  %v3973_v18 = vmul.f32 0.5, %v3909_v54  ;;  %v13187_v54 = vld [vmem:[#allocation96_spill] sm:$0xff] }
 0x4a0   : > { %v3597_v10 = vmul.f32 %v3533_v15, %v12219_v5  ;;  %v8789_v13 = vpop.eup %8788  ;;  %v6832_v28 = vrot.slane %v6831_v25, 1  ;;  %v6849_v51 = vadd.f32 %v6848_v0, %v6847_v6  ;;  %v3722_v63 = vadd.f32 %v3658_v62, %v12171_v56  ;;  %v13189_v0 = vld [vmem:[#allocation35_spill] sm:$0xff] }
 0x4a1   : > { %v6836_v24 = vrot.slane %v6835_v8, 2  ;;  %v3079_v7 = vadd.f32 %v13182_v33, %v13181_v43  ;;  %v3912_v40 = vadd.f32 1.0, %v8787_v50  ;;  %v3788_v47 = vmul.f32 0.7978846, %v3724_v55 }
 0x4a2   : > { %v3727_v19 = vadd.f32 %v3663_v16, %v12227_v38  ;;  %v12285_v57 = vadd.f32 %v13144_v21, %v13183_v9  ;;  %v6833_v49 = vadd.f32 %v6832_v28, %v6831_v25  ;;  %v6850_v58 = vrot.slane %v6849_v51, 1 }
 0x4a3   : > { %v6837_v15 = vadd.f32 %v6836_v24, %v6835_v8  ;;  %v12289_v4 = vadd.f32 %v13144_v21, %v13184_v11  ;;  %v3069_v26 = vadd.f32 %v13186_v46, %v13185_v52  ;;  %v6845_v48 = vadd.f32 %v6844_v34, %v6843_v61 }
 0x4a4   : > { %v3661_v1 = vmul.f32 0.044715, %v3597_v10  ;;  %v6851_v22 = vadd.f32 %v6850_v58, %v6849_v51  ;;  %v3786_v29 = vmul.f32 0.7978846, %v3722_v63  ;;  %v3600_v59 = vmul.f32 %v3536_v23, %v12268_v20 }
 0x4a5   : > { %v6838_v36 = vrot.slane %v6837_v15, 1  ;;  %v13188_v62 = vrot.slane %v13187_v54, %v13146_v37  ;;  %v3910_v6 = vadd.f32 1.0, %v8789_v13  ;;  %8794 = vtanh.f32 %v3788_v47 }
 0x4a6   : > { %v3791_v39 = vmul.f32 0.7978846, %v3727_v19  ;;  %v3539_v50 = vmul.f32 %v12285_v57, %v12285_v57  ;;  %v7092_v55 = vpack.c.bf16 %v6833_v49, %v6833_v49  ;;  %v3598_v61 = vmul.f32 %v3534_v3, %v12262_v14 }
 0x4a7   : > { %v3256_v35 = vadd.f32 %v3079_v7, %v13188_v62  ;;  %v6839_v16 = vadd.f32 %v6838_v36, %v6837_v15  ;;  %v3537_v25 = vmul.f32 %v12289_v4, %v12289_v4  ;;  %v13190_v8 = vrot.slane %v13189_v0, %v13146_v37 }
 0x4a8   : > { %v7094_v34 = vpack.c.bf16 %v6845_v48, %v6845_v48  ;;  %v3725_v10 = vadd.f32 %v3661_v1, %v12219_v5  ;;  %v8791_v13 = vpop.eup %8790  ;;  %v7095_v28 = vpack.c.bf16 %v6851_v22, %v6851_v22  ;;  %8796 = vtanh.f32 %v3786_v29 }
 0x4a9   : > { %v3252_v23 = vadd.f32 %v3069_v26, %v13190_v8  ;;  %v7093_v51 = vpack.c.bf16 %v6839_v16, %v6839_v16  ;;  %v3664_v24 = vmul.f32 0.044715, %v3600_v59  ;;  %v12307_v63 = vadd.f32 %v13144_v21, %v3256_v35 }
 0x4aa   : > { %v12310_v3 = vmul.f32 %v3973_v18, %v13149_v12  ;;  %v3976_v43 = vmul.f32 0.5, %v3912_v40  ;;  %8798 = vtanh.f32 %v3791_v39  ;;  %v8793_v33 = vpop.eup %8792  ;;  %v7248_v7 = vunpack.c.l.b16 %v7092_v55 }
 0x4ab   : > { %v7249_v47 = vunpack.c.l.b16 %v7093_v51  ;;  %v3662_v19 = vmul.f32 0.044715, %v3598_v61  ;;  %v3603_v9 = vmul.f32 %v3539_v50, %v12285_v57  ;;  %v12314_v49 = vadd.f32 %v13144_v21, %v3252_v23 }
 0x4ac   : > { %v7250_v58 = vunpack.c.l.b16 %v7094_v34  ;;  %v3974_v15 = vmul.f32 0.5, %v3910_v6  ;;  %v3789_v11 = vmul.f32 0.7978846, %v3725_v10  ;;  %v7251_v52 = vunpack.c.l.b16 %v7095_v28 }
 0x4ad   : > { %v7316_v46 = vsel %vm7288_vm2, %v7249_v47, %v7248_v7  ;;  %v8192_v26 = vpop.f32.mrf.mxu1  ;;  %v3728_v12 = vadd.f32 %v3664_v24, %v12268_v20  ;;  %v3601_v18 = vmul.f32 %v3537_v25, %v12289_v4  ;;  %v3915_v1 = vadd.f32 1.0, %v8791_v13 }
 0x4ae   : > { %v7317_v40 = vsel %vm7290_vm3, %v7250_v58, %v7316_v46  ;;  %v6650_v48 = vmul.f32 %v8192_v26, %v12205_v27  ;;  %v3913_v22 = vadd.f32 1.0, %v8793_v33  ;;  %v3540_v36 = vmul.f32 %v12307_v63, %v12307_v63  ;;  %v13191_v33 = vld [vmem:[#allocation99_spill] sm:$0xff] }
 0x4af   : > { %v6477_v29 = vpop.f32.mrf.mxu1  ;;  %v12324_v59 = vsel %vm7292_vm4, %v7251_v52, %v7317_v40  ;;  %v3726_v54 = vadd.f32 %v3662_v19, %v12262_v14  ;;  %v3667_v62 = vmul.f32 0.044715, %v3603_v9  ;;  %v12329_v39 = vmul.f32 %v3976_v43, %v13124_v32 }
 0x4b0   : > { %v6864_v35 = vrot.slane %v6650_v48, 4  ;;  %v6648_v6 = vmul.f32 %v6477_v29, %v12215_v42  ;;  %8800 = vtanh.f32 %v3789_v11  ;;  %v3538_v27 = vmul.f32 %v12314_v49, %v12314_v49 }
 0x4b1   : > { %v8193_v50 = vpop.f32.mrf.mxu1  ;;  %v12334_v55 = vmul.f32 %v3974_v15, %v13156_v41  ;;  %v3792_v16 = vmul.f32 0.7978846, %v3728_v12  ;;  %v3665_v61 = vmul.f32 0.044715, %v3601_v18  ;;  %v3979_v23 = vmul.f32 0.5, %v3915_v1 }
 0x4b2   : > { %v6865_v25 = vadd.f32 %v6864_v35, %v6650_v48  ;;  %v6852_v0 = vrot.slane %v6648_v6, 4  ;;  %v6651_v8 = vmul.f32 %v8193_v50, %v12240_v53  ;;  %v8795_v34 = vpop.eup %8794  ;;  %v3977_v10 = vmul.f32 0.5, %v3913_v22 }
 0x4b3   : > { %v6480_v42 = vpop.f32.mrf.mxu1  ;;  %v3790_v32 = vmul.f32 0.7978846, %v3726_v54  ;;  %v3731_v13 = vadd.f32 %v3667_v62, %v12285_v57  ;;  %v3604_v28 = vmul.f32 %v3540_v36, %v12307_v63  ;;  %v12342_v7 = vadd.f32 %v13144_v21, %v13191_v33 }
 0x4b4   : > { %v6866_v51 = vrot.slane %v6865_v25, 2  ;;  %v6853_v24 = vadd.f32 %v6852_v0, %v6648_v6  ;;  %v6870_v43 = vrot.slane %v6651_v8, 4  ;;  %v6649_v41 = vmul.f32 %v6480_v42, %v12250_v31  ;;  %v13192_v6 = vld [vmem:[#allocation23_spill] sm:$0xff] }
 0x4b5   : > { %8802 = vtanh.f32 %v3792_v16  ;;  %v3729_v53 = vadd.f32 %v3665_v61, %v12289_v4  ;;  %v3602_v47 = vmul.f32 %v3538_v27, %v12314_v49  ;;  %v8797_v19 = vpop.eup %8796  ;;  %v12347_v46 = vmul.f32 %v3979_v23, %v12179_v17 }
 0x4b6   : > { %v6867_v9 = vadd.f32 %v6866_v51, %v6865_v25  ;;  %v6854_v58 = vrot.slane %v6853_v24, 2  ;;  %v6871_v15 = vadd.f32 %v6870_v43, %v6651_v8  ;;  %v6858_v11 = vrot.slane %v6649_v41, 4 }
 0x4b7   : > { %v8799_v52 = vpop.eup %8798  ;;  %v12350_v31 = vmul.f32 %v3977_v10, %v12149_v30  ;;  %8804 = vtanh.f32 %v3790_v32  ;;  %v3795_v26 = vmul.f32 0.7978846, %v3731_v13  ;;  %v3668_v48 = vmul.f32 0.044715, %v3604_v28 }
 0x4b8   : > { %v6855_v12 = vadd.f32 %v6854_v58, %v6853_v24  ;;  %v6872_v18 = vrot.slane %v6871_v15, 2  ;;  %v6859_v40 = vadd.f32 %v6858_v11, %v6649_v41  ;;  %v6868_v1 = vrot.slane %v6867_v9, 1  ;;  %v13193_v24 = vld [vmem:[#allocation25_spill] sm:$0xff]  ;;  %v13194_v58 = vld [vmem:[#allocation100_spill] sm:$0xff] }
 0x4b9   : > { %v3916_v22 = vadd.f32 1.0, %v8795_v34  ;;  %v3793_v36 = vmul.f32 0.7978846, %v3729_v53  ;;  %v3666_v29 = vmul.f32 0.044715, %v3602_v47  ;;  %v3543_v54 = vmul.f32 %v12342_v7, %v12342_v7 }
 0x4ba   : > { %v6856_v62 = vrot.slane %v6855_v12, 1  ;;  %v6873_v35 = vadd.f32 %v6872_v18, %v6871_v15  ;;  %v6860_v17 = vrot.slane %v6859_v40, 2  ;;  %v12356_v30 = vadd.f32 %v13144_v21, %v13192_v6 }
 0x4bb   : > { %v3914_v27 = vadd.f32 1.0, %v8797_v19  ;;  %v3919_v50 = vadd.f32 1.0, %v8799_v52  ;;  %8806 = vtanh.f32 %v3795_v26  ;;  %v3732_v0 = vadd.f32 %v3668_v48, %v12307_v63 }
 0x4bc   : > { %v6857_v16 = vadd.f32 %v6856_v62, %v6855_v12  ;;  %v6874_v61 = vrot.slane %v6873_v35, 1  ;;  %v6861_v25 = vadd.f32 %v6860_v17, %v6859_v40  ;;  %v6869_v23 = vadd.f32 %v6868_v1, %v6867_v9 }
 0x4bd   : > { %v8801_v8 = vpop.eup %8800  ;;  %v3980_v34 = vmul.f32 0.5, %v3916_v22  ;;  %8808 = vtanh.f32 %v3793_v36  ;;  %v3730_v42 = vadd.f32 %v3666_v29, %v12314_v49  ;;  %v3607_v28 = vmul.f32 %v3543_v54, %v12342_v7 }
 0x4be   : > { %v7096_v10 = vpack.c.bf16 %v6857_v16, %v6857_v16  ;;  %v6875_v32 = vadd.f32 %v6874_v61, %v6873_v35  ;;  %v6862_v13 = vrot.slane %v6861_v25, 1  ;;  %v3541_v51 = vmul.f32 %v12356_v30, %v12356_v30 }
 0x4bf   : > { %v12365_v43 = vadd.f32 %v13144_v21, %v13193_v24  ;;  %v3978_v41 = vmul.f32 0.5, %v3914_v27  ;;  %v3983_v33 = vmul.f32 0.5, %v3919_v50  ;;  %v3917_v19 = vadd.f32 1.0, %v8801_v8 }
 0x4c0   : > { %v7252_v53 = vunpack.c.l.b16 %v7096_v10  ;;  %v6863_v47 = vadd.f32 %v6862_v13, %v6861_v25  ;;  %v3796_v9 = vmul.f32 0.7978846, %v3732_v0  ;;  %v12369_v15 = vadd.f32 %v13144_v21, %v13194_v58  ;;  %v8196_v1 = vpop.f32.mrf.mxu1 }
 0x4c1   : > { %v7098_v11 = vpack.c.bf16 %v6869_v23, %v6869_v23  ;;  %v12372_v52 = vmul.f32 %v3980_v34, %v12210_v60  ;;  %v3794_v26 = vmul.f32 0.7978846, %v3730_v42  ;;  %v7099_v40 = vpack.c.bf16 %v6875_v32, %v6875_v32 }
 0x4c2   : > { %v8803_v12 = vpop.eup %8802  ;;  %v7319_v18 = vsel %vm7294_vm5, %v7252_v53, %v12324_v59  ;;  %v7097_v48 = vpack.c.bf16 %v6863_v47, %v6863_v47  ;;  %v3671_v22 = vmul.f32 0.044715, %v3607_v28  ;;  %v12378_v36 = vmul.f32 %v12365_v43, %v12365_v43  ;;  %v6493_v17 = vpop.f32.mrf.mxu1 }
 0x4c3   : > { %v6654_v29 = vmul.f32 %v8196_v1, %v12274_v2  ;;  %v12382_v54 = vmul.f32 %v3978_v41, %v12171_v56  ;;  %v12385_v60 = vmul.f32 %v3983_v33, %v12227_v38  ;;  %v3981_v59 = vmul.f32 0.5, %v3917_v19 }
 0x4c4   : > { %v8805_v62 = vpop.eup %8804  ;;  %v7253_v35 = vunpack.c.l.b16 %v7097_v48  ;;  %8810 = vtanh.f32 %v3796_v9  ;;  %v3605_v6 = vmul.f32 %v3541_v51, %v12356_v30  ;;  %v3544_v27 = vmul.f32 %v12369_v15, %v12369_v15  ;;  %v8197_v25 = vpop.f32.mrf.mxu1  ;;  %v13196_v48 = vld [vmem:[#allocation26_spill] sm:$0xff] }
 0x4c5   : > { %v7254_v50 = vunpack.c.l.b16 %v7098_v11  ;;  %v6888_v16 = vrot.slane %v6654_v29, 4  ;;  %v6652_v2 = vmul.f32 %v6493_v17, %v12310_v3  ;;  %v7255_v61 = vunpack.c.l.b16 %v7099_v40 }
 0x4c6   : > { %v7320_v56 = vsel %vm7296_vm6, %v7253_v35, %v7319_v18  ;;  %8812 = vtanh.f32 %v3794_v26  ;;  %v3735_v38 = vadd.f32 %v3671_v22, %v12342_v7  ;;  %v6655_v23 = vmul.f32 %v8197_v25, %v12329_v39  ;;  %v6496_v10 = vpop.f32.mrf.mxu1  ;;  %v13195_v18 = vld [vmem:[#allocation101_spill] sm:$0xff] }
 0x4c7   : > { %v6889_v0 = vadd.f32 %v6888_v16, %v6654_v29  ;;  %v6876_v8 = vrot.slane %v6652_v2, 4  ;;  %v7321_v34 = vsel %vm7298_vm7, %v7254_v50, %v7320_v56  ;;  %v3920_v13 = vadd.f32 1.0, %v8803_v12  ;;  %v13197_v56 = vld [vmem:[#allocation102_spill] sm:$0xff] }
 0x4c8   : > { %v8807_v42 = vpop.eup %8806  ;;  %v7322_v32 = vsel %vm7300_vm8, %v7255_v61, %v7321_v34  ;;  %v3918_v28 = vadd.f32 1.0, %v8805_v62  ;;  %v3669_v3 = vmul.f32 0.044715, %v3605_v6  ;;  %v6894_v41 = vrot.slane %v6655_v23, 4 }
 0x4c9   : > { %v6890_v51 = vrot.slane %v6889_v0, 2  ;;  %v6877_v24 = vadd.f32 %v6876_v8, %v6652_v2  ;;  %v6653_v33 = vmul.f32 %v6496_v10, %v12334_v55  ;;  %v7352_v47 = vpack.c.b16 %v7322_v32, %v12257_v44  ;;  %v13198_v10 = vld [vmem:[#allocation103_spill] sm:$0xff] }
 0x4ca   : > { %v8809_v53 = vpop.eup %8808  ;;  %v12399_v19 = vmul.f32 %v3981_v59, %v12219_v5  ;;  %v3799_v39 = vmul.f32 0.7978846, %v3735_v38  ;;  %v3608_v9 = vmul.f32 %v3544_v27, %v12369_v15  ;;  %v6895_v26 = vadd.f32 %v6894_v41, %v6655_v23 }
 0x4cb   : > { %v6891_v58 = vadd.f32 %v6890_v51, %v6889_v0  ;;  %v6878_v11 = vrot.slane %v6877_v24, 2  ;;  %v6882_v12 = vrot.slane %v6653_v33, 4  ;;  %v12404_v40 = vadd.f32 %v13144_v21, %v13195_v18  ;;  %7482 = vmatmul.mubr.bf16.gmra.mxu0 %v7352_v47  ;;  %v13199_v47 = vld [vmem:[#allocation28_spill] sm:$0xff] }
 0x4cc   : > { %v12408_v55 = vadd.f32 %v13144_v21, %v13196_v48  ;;  %v3984_v44 = vmul.f32 0.5, %v3920_v13  ;;  %v3982_v1 = vmul.f32 0.5, %v3918_v28  ;;  %v6896_v22 = vrot.slane %v6895_v26, 2  ;;  %7491 = vmatprep.mubr.bf16.mxu0 %v13152_v45 }
 0x4cd   : > { %v6879_v5 = vadd.f32 %v6878_v11, %v6877_v24  ;;  %v6883_v29 = vadd.f32 %v6882_v12, %v6653_v33  ;;  %v3733_v62 = vadd.f32 %v3669_v3, %v12356_v30  ;;  %v6892_v35 = vrot.slane %v6891_v58, 1 }
 0x4ce   : > { %v3923_v17 = vadd.f32 1.0, %v8807_v42  ;;  %v3921_v59 = vadd.f32 1.0, %v8809_v53  ;;  %v3672_v6 = vmul.f32 0.044715, %v3608_v9  ;;  %v6897_v50 = vadd.f32 %v6896_v22, %v6895_v26  ;;  %v13200_v9 = vld [vmem:[#allocation37_spill] sm:$0xff] }
 0x4cf   : > { %v6880_v27 = vrot.slane %v6879_v5, 1  ;;  %v6884_v16 = vrot.slane %v6883_v29, 2  ;;  %8814 = vtanh.f32 %v3799_v39  ;;  %v12414_v2 = vmul.f32 %v12404_v40, %v12404_v40 }
 0x4d0   : > { %v12418_v61 = vmul.f32 %v12408_v55, %v12408_v55  ;;  %v12422_v25 = vadd.f32 %v13144_v21, %v13197_v56  ;;  %v12425_v38 = vmul.f32 %v3984_v44, %v12268_v20  ;;  %v6898_v23 = vrot.slane %v6897_v50, 1  ;;  %v13201_v56 = vld [vmem:[#allocation104_spill] sm:$0xff] }
 0x4d1   : > { %v8811_v0 = vpop.eup %8810  ;;  %v6881_v8 = vadd.f32 %v6880_v27, %v6879_v5  ;;  %v6885_v34 = vadd.f32 %v6884_v16, %v6883_v29  ;;  %v3797_v42 = vmul.f32 0.7978846, %v3733_v62  ;;  %v12429_v32 = vadd.f32 %v13144_v21, %v13198_v10 }
 0x4d2   : > { %v6893_v13 = vadd.f32 %v6892_v35, %v6891_v58  ;;  %v3987_v28 = vmul.f32 0.5, %v3923_v17  ;;  %v3985_v3 = vmul.f32 0.5, %v3921_v59  ;;  %v6899_v24 = vadd.f32 %v6898_v23, %v6897_v50 }
 0x4d3   : > { %v8813_v51 = vpop.eup %8812  ;;  %v6886_v41 = vrot.slane %v6885_v34, 1  ;;  %v12432_v33 = vmul.f32 %v3982_v1, %v12262_v14  ;;  %v3736_v20 = vadd.f32 %v3672_v6, %v12369_v15  ;;  %v3547_v53 = vmul.f32 %v12422_v25, %v12422_v25 }
 0x4d4   : > { %v12439_v39 = vadd.f32 %v13144_v21, %v13199_v47  ;;  %v12443_v58 = vadd.f32 %v13144_v21, %v13200_v9  ;;  %v3924_v11 = vadd.f32 1.0, %v8811_v0  ;;  %v7100_v26 = vpack.c.bf16 %v6881_v8, %v6881_v8 }
 0x4d5   : > { %v6887_v12 = vadd.f32 %v6886_v41, %v6885_v34  ;;  %8816 = vtanh.f32 %v3797_v42  ;;  %v3606_v14 = vmul.f32 %v12378_v36, %v12365_v43  ;;  %v12449_v18 = vmul.f32 %v12429_v32, %v12429_v32  ;;  %v8200_v29 = vpop.f32.mrf.mxu1 }
 0x4d6   : > { %v7102_v48 = vpack.c.bf16 %v6893_v13, %v6893_v13  ;;  %v12452_v44 = vmul.f32 %v3987_v28, %v12285_v57  ;;  %v12455_v1 = vmul.f32 %v3985_v3, %v12289_v4  ;;  %v7103_v5 = vpack.c.bf16 %v6899_v24, %v6899_v24 }
 0x4d7   : > { %v7101_v22 = vpack.c.bf16 %v6887_v12, %v6887_v12  ;;  %v3922_v62 = vadd.f32 1.0, %v8813_v51  ;;  %v3800_v35 = vmul.f32 0.7978846, %v3736_v20  ;;  %v12459_v17 = vmul.f32 %v12439_v39, %v12439_v39  ;;  %v6509_v4 = vpop.f32.mrf.mxu1  ;;  %v13202_v20 = vld [vmem:[#allocation105_spill] sm:$0xff] }
 0x4d8   : > { %v12463_v36 = vmul.f32 %v12443_v58, %v12443_v58  ;;  %v6658_v59 = vmul.f32 %v8200_v29, %v12347_v46  ;;  %v3988_v57 = vmul.f32 0.5, %v3924_v11  ;;  %v7256_v6 = vunpack.c.l.b16 %v7100_v26 }
 0x4d9   : > { %v7257_v27 = vunpack.c.l.b16 %v7101_v22  ;;  %v3670_v50 = vmul.f32 0.044715, %v3606_v14  ;;  %v3611_v16 = vmul.f32 %v3547_v53, %v12422_v25  ;;  %v12469_v0 = vadd.f32 %v13144_v21, %v13201_v56  ;;  %v8201_v13 = vpop.f32.mrf.mxu1 }
 0x4da   : > { %v7258_v8 = vunpack.c.l.b16 %v7102_v48  ;;  %v6912_v23 = vrot.slane %v6658_v59, 4  ;;  %v6656_v34 = vmul.f32 %v6509_v4, %v12350_v31  ;;  %v7259_v42 = vunpack.c.l.b16 %v7103_v5 }
 0x4db   : > { %v7323_v10 = vsel %vm7288_vm2, %v7257_v27, %v7256_v6  ;;  %v3986_v46 = vmul.f32 0.5, %v3922_v62  ;;  %8818 = vtanh.f32 %v3800_v35  ;;  %v6659_v41 = vmul.f32 %v8201_v13, %v12372_v52  ;;  %v6512_v31 = vpop.f32.mrf.mxu1 }
 0x4dc   : > { %v8815_v28 = vpop.eup %8814  ;;  %v7324_v3 = vsel %vm7290_vm3, %v7258_v8, %v7323_v10  ;;  %v6913_v51 = vadd.f32 %v6912_v23, %v6658_v59  ;;  %v6900_v24 = vrot.slane %v6656_v34, 4  ;;  %v12477_v53 = vadd.f32 %v13144_v21, %v13202_v20 }
 0x4dd   : > { %v12480_v47 = vsel %vm7292_vm4, %v7259_v42, %v7324_v3  ;;  %v3734_v9 = vadd.f32 %v3670_v50, %v12365_v43  ;;  %v3675_v11 = vmul.f32 0.044715, %v3611_v16  ;;  %v6918_v14 = vrot.slane %v6659_v41, 4  ;;  %v13204_v16 = vld [vmem:[#allocation39_spill] sm:$0xff] }
 0x4de   : > { %v6914_v26 = vrot.slane %v6913_v51, 2  ;;  %v6901_v12 = vadd.f32 %v6900_v24, %v6656_v34  ;;  %v6657_v48 = vmul.f32 %v6512_v31, %v12382_v54  ;;  %v12486_v5 = vmul.f32 %v12469_v0, %v12469_v0  ;;  %v13203_v54 = vld [vmem:[#allocation29_spill] sm:$0xff]  ;;  %v13205_v34 = vld [vmem:[#allocation107_spill] sm:$0xff] }
 0x4df   : > { %v12489_v52 = vmul.f32 %v3988_v57, %v12307_v63  ;;  %v12492_v22 = vmul.f32 %v3986_v46, %v12314_v49  ;;  %v3927_v29 = vadd.f32 1.0, %v8815_v28  ;;  %v6919_v59 = vadd.f32 %v6918_v14, %v6659_v41  ;;  %v13206_v28 = vld [vmem:[#allocation24_spill] sm:$0xff]  ;;  %v13207_v3 = vld [vmem:[#allocation59_spill] sm:$0xff] }
 0x4e0   : > { %v6915_v62 = vadd.f32 %v6914_v26, %v6913_v51  ;;  %v6902_v35 = vrot.slane %v6901_v12, 2  ;;  %v6906_v6 = vrot.slane %v6657_v48, 4  ;;  %v12496_v27 = vmul.f32 %v12477_v53, %v12477_v53 }
 0x4e1   : > { %v12500_v4 = vadd.f32 %v13144_v21, %v13203_v54  ;;  %v3798_v50 = vmul.f32 0.7978846, %v3734_v9  ;;  %v3739_v63 = vadd.f32 %v3675_v11, %v12422_v25  ;;  %v12505_v49 = vadd.f32 %v13144_v21, %v13204_v16 }
 0x4e2   : > { %v8817_v57 = vpop.eup %8816  ;;  %v6903_v56 = vadd.f32 %v6902_v35, %v6901_v12  ;;  %v6920_v8 = vrot.slane %v6919_v59, 2  ;;  %v6907_v23 = vadd.f32 %v6906_v6, %v6657_v48  ;;  %v12509_v42 = vadd.f32 %v13144_v21, %v13205_v34 }
 0x4e3   : > { %v6916_v10 = vrot.slane %v6915_v62, 1  ;;  %v3991_v13 = vmul.f32 0.5, %v3927_v29  ;;  %v3609_v46 = vmul.f32 %v12414_v2, %v12404_v40  ;;  %v3159_v51 = vadd.f32 %v13207_v3, %v13206_v28 }
 0x4e4   : > { %v6904_v24 = vrot.slane %v6903_v56, 1  ;;  %v6921_v41 = vadd.f32 %v6920_v8, %v6919_v59  ;;  %v6908_v20 = vrot.slane %v6907_v23, 2  ;;  %v12517_v31 = vmul.f32 %v12500_v4, %v12500_v4 }
 0x4e5   : > { %v3925_v9 = vadd.f32 1.0, %v8817_v57  ;;  %8820 = vtanh.f32 %v3798_v50  ;;  %v3803_v11 = vmul.f32 0.7978846, %v3739_v63  ;;  %v12521_v26 = vmul.f32 %v12505_v49, %v12505_v49  ;;  %v8204_v35 = vpop.f32.mrf.mxu1  ;;  %v13208_v50 = vld [vmem:[#allocation106_spill] sm:$0xff] }
 0x4e6   : > { %v6905_v12 = vadd.f32 %v6904_v24, %v6903_v56  ;;  %v6922_v14 = vrot.slane %v6921_v41, 1  ;;  %v6909_v2 = vadd.f32 %v6908_v20, %v6907_v23  ;;  %v12525_v48 = vmul.f32 %v12509_v42, %v12509_v42 }
 0x4e7   : > { %v6917_v29 = vadd.f32 %v6916_v10, %v6915_v62  ;;  %v12528_v59 = vmul.f32 %v3991_v13, %v12342_v7  ;;  %v3673_v6 = vmul.f32 0.044715, %v3609_v46  ;;  %v13209_v63 = vrot.slane %v13208_v50, %v13146_v37  ;;  %v6525_v34 = vpop.f32.mrf.mxu1 }
 0x4e8   : > { %v8819_v54 = vpop.eup %8818  ;;  %v7104_v16 = vpack.c.bf16 %v6905_v12, %v6905_v12  ;;  %v6923_v8 = vadd.f32 %v6922_v14, %v6921_v41  ;;  %v6910_v56 = vrot.slane %v6909_v2, 1  ;;  %v6662_v23 = vmul.f32 %v8204_v35, %v12385_v60 }
 0x4e9   : > { %v3288_v57 = vadd.f32 %v3159_v51, %v13209_v63  ;;  %v12534_v28 = vmul.f32 0.5, %v3925_v9  ;;  %8822 = vtanh.f32 %v3803_v11  ;;  %v3612_v62 = vmul.f32 %v12449_v18, %v12429_v32  ;;  %v8205_v24 = vpop.f32.mrf.mxu1 }
 0x4ea   : > { %v7260_v7 = vunpack.c.l.b16 %v7104_v16  ;;  %v6911_v10 = vadd.f32 %v6910_v56, %v6909_v2  ;;  %v6660_v13 = vmul.f32 %v6525_v34, %v12399_v19  ;;  %v3610_v46 = vmul.f32 %v12418_v61, %v12408_v55 }
 0x4eb   : > { %v7106_v3 = vpack.c.bf16 %v6917_v29, %v6917_v29  ;;  %v6936_v51 = vrot.slane %v6662_v23, 4  ;;  %v3928_v41 = vadd.f32 1.0, %v8819_v54  ;;  %v3737_v60 = vadd.f32 %v3673_v6, %v12404_v40  ;;  %v6528_v2 = vpop.f32.mrf.mxu1 }
 0x4ec   : > { %v7326_v20 = vsel %vm7294_vm5, %v7260_v7, %v12480_v47  ;;  %v7107_v9 = vpack.c.bf16 %v6923_v8, %v6923_v8  ;;  %v7105_v11 = vpack.c.bf16 %v6911_v10, %v6911_v10  ;;  %v6924_v12 = vrot.slane %v6660_v13, 4 }
 0x4ed   : > { %v6937_v18 = vadd.f32 %v6936_v51, %v6662_v23  ;;  %v6663_v14 = vmul.f32 %v8205_v24, %v12425_v38  ;;  %v3676_v19 = vmul.f32 0.044715, %v3612_v62  ;;  %v3615_v61 = vmul.f32 %v12486_v5, %v12469_v0 }
 0x4ee   : > { %v7261_v29 = vunpack.c.l.b16 %v7105_v11  ;;  %v6925_v35 = vadd.f32 %v6924_v12, %v6660_v13  ;;  %v6661_v54 = vmul.f32 %v6528_v2, %v12432_v33  ;;  %v3674_v50 = vmul.f32 0.044715, %v3610_v46 }
 0x4ef   : > { %v7262_v6 = vunpack.c.l.b16 %v7106_v3  ;;  %v6938_v63 = vrot.slane %v6937_v18, 2  ;;  %v6942_v16 = vrot.slane %v6663_v14, 4  ;;  %v3613_v47 = vmul.f32 %v12459_v17, %v12439_v39 }
 0x4f0   : > { %v7263_v8 = vunpack.c.l.b16 %v7107_v9  ;;  %v7327_v56 = vsel %vm7296_vm6, %v7261_v29, %v7326_v20  ;;  %v6926_v38 = vrot.slane %v6925_v35, 2  ;;  %v6930_v23 = vrot.slane %v6661_v54, 4 }
 0x4f1   : > { %v6939_v34 = vadd.f32 %v6938_v63, %v6937_v18  ;;  %v6943_v62 = vadd.f32 %v6942_v16, %v6663_v14  ;;  %v7328_v5 = vsel %vm7298_vm7, %v7262_v6, %v7327_v56  ;;  %v3616_v7 = vmul.f32 %v12496_v27, %v12477_v53 }
 0x4f2   : > { %v8821_v33 = vpop.eup %8820  ;;  %v6927_v10 = vadd.f32 %v6926_v38, %v6925_v35  ;;  %v6931_v13 = vadd.f32 %v6930_v23, %v6661_v54  ;;  %v12555_v46 = vsel %vm7300_vm8, %v7263_v8, %v7328_v5  ;;  %v3801_v3 = vmul.f32 0.7978846, %v3737_v60 }
 0x4f3   : > { %v12558_v17 = vadd.f32 %v13144_v21, %v3288_v57  ;;  %v6940_v51 = vrot.slane %v6939_v34, 1  ;;  %v6944_v24 = vrot.slane %v6943_v62, 2  ;;  %v3740_v20 = vadd.f32 %v3676_v19, %v12429_v32 }
 0x4f4   : > { %v6928_v9 = vrot.slane %v6927_v10, 1  ;;  %v6932_v11 = vrot.slane %v6931_v13, 2  ;;  %v3738_v12 = vadd.f32 %v3674_v50, %v12408_v55  ;;  %v3679_v18 = vmul.f32 0.044715, %v3615_v61 }
 0x4f5   : > { %v6945_v27 = vadd.f32 %v6944_v24, %v6943_v62  ;;  %v3992_v14 = vmul.f32 0.5, %v3928_v41  ;;  %v3677_v2 = vmul.f32 0.044715, %v3613_v47  ;;  %v3680_v29 = vmul.f32 0.044715, %v3616_v7 }
 0x4f6   : > { %v8823_v35 = vpop.eup %8822  ;;  %v6929_v54 = vadd.f32 %v6928_v9, %v6927_v10  ;;  %v6933_v6 = vadd.f32 %v6932_v11, %v6931_v13  ;;  %8824 = vtanh.f32 %v3801_v3  ;;  %v3614_v21 = vmul.f32 %v12463_v36, %v12443_v58 }
 0x4f7   : > { %v6941_v57 = vadd.f32 %v6940_v51, %v6939_v34  ;;  %v6946_v60 = vrot.slane %v6945_v27, 1  ;;  %v3804_v63 = vmul.f32 0.7978846, %v3740_v20  ;;  %v3619_v19 = vmul.f32 %v12525_v48, %v12509_v42 }
 0x4f8   : > { %v6934_v16 = vrot.slane %v6933_v6, 1  ;;  %v12568_v61 = vmul.f32 %v12534_v28, %v12356_v30  ;;  %v3802_v41 = vmul.f32 0.7978846, %v3738_v12  ;;  %v3743_v50 = vadd.f32 %v3679_v18, %v12469_v0 }
 0x4f9   : > { %v6947_v47 = vadd.f32 %v6946_v60, %v6945_v27  ;;  %v3926_v8 = vadd.f32 1.0, %v8821_v33  ;;  %v3741_v56 = vadd.f32 %v3677_v2, %v12439_v39  ;;  %v3744_v36 = vadd.f32 %v3680_v29, %v12477_v53 }
 0x4fa   : > { %v3556_v38 = vmul.f32 %v12558_v17, %v12558_v17  ;;  %v7108_v23 = vpack.c.bf16 %v6929_v54, %v6929_v54  ;;  %v6935_v34 = vadd.f32 %v6934_v16, %v6933_v6  ;;  %v3678_v48 = vmul.f32 0.044715, %v3614_v21 }
 0x4fb   : > { %v7110_v62 = vpack.c.bf16 %v6941_v57, %v6941_v57  ;;  %v12576_v5 = vmul.f32 %v3992_v14, %v12369_v15  ;;  %8826 = vtanh.f32 %v3804_v63  ;;  %v3683_v30 = vmul.f32 0.044715, %v3619_v19 }
 0x4fc   : > { %v7111_v28 = vpack.c.bf16 %v6947_v47, %v6947_v47  ;;  %v7109_v7 = vpack.c.bf16 %v6935_v34, %v6935_v34  ;;  %v3807_v10 = vmul.f32 0.7978846, %v3743_v50  ;;  %v3617_v33 = vmul.f32 %v12517_v31, %v12500_v4 }
 0x4fd   : > { %v3990_v13 = vmul.f32 0.5, %v3926_v8  ;;  %8828 = vtanh.f32 %v3802_v41  ;;  %v3805_v3 = vmul.f32 0.7978846, %v3741_v56  ;;  %v3808_v51 = vmul.f32 0.7978846, %v3744_v36  ;;  %v8208_v9 = vpop.f32.mrf.mxu1 }
 0x4fe   : > { %v7264_v24 = vunpack.c.l.b16 %v7108_v23  ;;  %v7265_v20 = vunpack.c.l.b16 %v7109_v7  ;;  %v3742_v11 = vadd.f32 %v3678_v48, %v12443_v58  ;;  %v3620_v15 = vmul.f32 %v3556_v38, %v12558_v17 }
 0x4ff   : > { %v7266_v12 = vunpack.c.l.b16 %v7110_v62  ;;  %v6666_v18 = vmul.f32 %v8208_v9, %v12452_v44  ;;  %v3931_v27 = vadd.f32 1.0, %v8823_v35  ;;  %v3747_v14 = vadd.f32 %v3683_v30, %v12509_v42  ;;  %v6541_v29 = vpop.f32.mrf.mxu1 }
 0x500   : > { %v7267_v2 = vunpack.c.l.b16 %v7111_v28  ;;  %v7330_v31 = vsel %vm7288_vm2, %v7265_v20, %v7264_v24  ;;  %v3681_v54 = vmul.f32 0.044715, %v3617_v33  ;;  %v3618_v6 = vmul.f32 %v12521_v26, %v12505_v49 }
 0x501   : > { %v7331_v21 = vsel %vm7290_vm3, %v7266_v12, %v7330_v31  ;;  %v6960_v57 = vrot.slane %v6666_v18, 4  ;;  %v6664_v60 = vmul.f32 %v6541_v29, %v12455_v1  ;;  %8830 = vtanh.f32 %v3807_v10  ;;  %v8209_v44 = vpop.f32.mrf.mxu1 }
 0x502   : > { %v12590_v63 = vsel %vm7292_vm4, %v7267_v2, %v7331_v21  ;;  %8832 = vtanh.f32 %v3805_v3  ;;  %v3806_v35 = vmul.f32 0.7978846, %v3742_v11  ;;  %v3684_v19 = vmul.f32 0.044715, %v3620_v15 }
 0x503   : > { %v8825_v16 = vpop.eup %8824  ;;  %v6961_v41 = vadd.f32 %v6960_v57, %v6666_v18  ;;  %v6948_v50 = vrot.slane %v6664_v60, 4  ;;  %v6667_v47 = vmul.f32 %v8209_v44, %v12489_v52  ;;  %8834 = vtanh.f32 %v3808_v51  ;;  %v6544_v26 = vpop.f32.mrf.mxu1 }
 0x504   : > { %v3995_v8 = vmul.f32 0.5, %v3931_v27  ;;  %v3811_v56 = vmul.f32 0.7978846, %v3747_v14  ;;  %v3745_v36 = vadd.f32 %v3681_v54, %v12500_v4  ;;  %v3682_v1 = vmul.f32 0.044715, %v3618_v6 }
 0x505   : > { %v6962_v38 = vrot.slane %v6961_v41, 2  ;;  %v6949_v23 = vadd.f32 %v6948_v50, %v6664_v60  ;;  %v6966_v34 = vrot.slane %v6667_v47, 4  ;;  %v6665_v48 = vmul.f32 %v6544_v26, %v12492_v22  ;;  %v8212_v62 = vpop.f32.mrf.mxu1 }
 0x506   : > { %v4054_v30 = vmul.f32 %v3990_v13, %v12365_v43  ;;  %v3929_v28 = vadd.f32 1.0, %v8825_v16  ;;  %8836 = vtanh.f32 %v3806_v35  ;;  %v3748_v7 = vadd.f32 %v3684_v19, %v12558_v17 }
 0x507   : > { %v6963_v52 = vadd.f32 %v6962_v38, %v6961_v41  ;;  %v6950_v10 = vrot.slane %v6949_v23, 2  ;;  %v6967_v33 = vadd.f32 %v6966_v34, %v6667_v47  ;;  %v6954_v3 = vrot.slane %v6665_v48, 4  ;;  %v6557_v20 = vpop.f32.mrf.mxu1 }
 0x508   : > { %v8827_v51 = vpop.eup %8826  ;;  %v6670_v24 = vmul.f32 %v8212_v62, %v12528_v59  ;;  %v4059_v9 = vmul.f32 %v3995_v8, %v12422_v25  ;;  %8838 = vtanh.f32 %v3811_v56  ;;  %v12599_v11 = vmul.f32 0.7978846, %v3745_v36 }
 0x509   : > { %v6951_v22 = vadd.f32 %v6950_v10, %v6949_v23  ;;  %v6968_v15 = vrot.slane %v6967_v33, 2  ;;  %v6955_v43 = vadd.f32 %v6954_v3, %v6665_v48  ;;  %v3746_v13 = vadd.f32 %v3682_v1, %v12505_v49  ;;  %v8213_v14 = vpop.f32.mrf.mxu1 }
 0x50a   : > { %v8829_v12 = vpop.eup %8828  ;;  %v6984_v18 = vrot.slane %v6670_v24, 4  ;;  %v6668_v27 = vmul.f32 %v6557_v20, %v12568_v61  ;;  %v3993_v2 = vmul.f32 0.5, %v3929_v28  ;;  %v12603_v31 = vmul.f32 0.7978846, %v3748_v7 }
 0x50b   : > { %v6964_v59 = vrot.slane %v6963_v52, 1  ;;  %v6952_v29 = vrot.slane %v6951_v22, 1  ;;  %v6969_v54 = vadd.f32 %v6968_v15, %v6967_v33  ;;  %v6956_v25 = vrot.slane %v6955_v43, 2  ;;  %v6560_v60 = vpop.f32.mrf.mxu1 }
 0x50c   : > { %v6985_v6 = vadd.f32 %v6984_v18, %v6670_v24  ;;  %v6972_v21 = vrot.slane %v6668_v27, 4  ;;  %v6671_v57 = vmul.f32 %v8213_v14, %v12576_v5  ;;  %v3932_v44 = vadd.f32 1.0, %v8827_v51 }
 0x50d   : > { %v6953_v35 = vadd.f32 %v6952_v29, %v6951_v22  ;;  %v6970_v19 = vrot.slane %v6969_v54, 1  ;;  %v6957_v16 = vadd.f32 %v6956_v25, %v6955_v43  ;;  %v3930_v41 = vadd.f32 1.0, %v8829_v12 }
 0x50e   : > { %v12606_v50 = vpop.eup %8830  ;;  %v6986_v61 = vrot.slane %v6985_v6, 2  ;;  %v6973_v47 = vadd.f32 %v6972_v21, %v6668_v27  ;;  %v6990_v26 = vrot.slane %v6671_v57, 4  ;;  %v6669_v8 = vmul.f32 %v6560_v60, %v4054_v30 }
 0x50f   : > { %v12608_v56 = vpop.eup %8832  ;;  %v6965_v36 = vadd.f32 %v6964_v59, %v6963_v52  ;;  %v7112_v1 = vpack.c.bf16 %v6953_v35, %v6953_v35  ;;  %v6971_v38 = vadd.f32 %v6970_v19, %v6969_v54  ;;  %v6958_v23 = vrot.slane %v6957_v16, 1 }
 0x510   : > { %v12610_v34 = vpop.eup %8834  ;;  %v6987_v5 = vadd.f32 %v6986_v61, %v6985_v6  ;;  %v6974_v48 = vrot.slane %v6973_v47, 2  ;;  %v6991_v62 = vadd.f32 %v6990_v26, %v6671_v57  ;;  %v6978_v28 = vrot.slane %v6669_v8, 4 }
 0x511   : > { %v7268_v7 = vunpack.c.l.b16 %v7112_v1  ;;  %v6959_v10 = vadd.f32 %v6958_v23, %v6957_v16  ;;  %v3996_v33 = vmul.f32 0.5, %v3932_v44  ;;  %v3810_v3 = vmul.f32 0.7978846, %v3746_v13 }
 0x512   : > { %v6988_v51 = vrot.slane %v6987_v5, 1  ;;  %v6975_v24 = vadd.f32 %v6974_v48, %v6973_v47  ;;  %v6992_v20 = vrot.slane %v6991_v62, 2  ;;  %v6979_v30 = vadd.f32 %v6978_v28, %v6669_v8 }
 0x513   : > { %v12612_v22 = vpop.eup %8836  ;;  %v7114_v52 = vpack.c.bf16 %v6965_v36, %v6965_v36  ;;  %v7333_v15 = vsel %vm7294_vm5, %v7268_v7, %v12590_v63  ;;  %v7113_v43 = vpack.c.bf16 %v6959_v10, %v6959_v10  ;;  %v3994_v12 = vmul.f32 0.5, %v3930_v41  ;;  %v8216_v29 = vpop.f32.mrf.mxu1 }
 0x514   : > { %v7115_v18 = vpack.c.bf16 %v6971_v38, %v6971_v38  ;;  %v6976_v27 = vrot.slane %v6975_v24, 1  ;;  %v6993_v14 = vadd.f32 %v6992_v20, %v6991_v62  ;;  %v6980_v59 = vrot.slane %v6979_v30, 2 }
 0x515   : > { %v12616_v54 = vpop.eup %8838  ;;  %v7269_v13 = vunpack.c.l.b16 %v7113_v43  ;;  %v6674_v25 = vmul.f32 %v8216_v29, %v4059_v9  ;;  %v4057_v6 = vmul.f32 %v3993_v2, %v12404_v40  ;;  %v4060_v21 = vmul.f32 %v3996_v33, %v12429_v32  ;;  %v6573_v63 = vpop.f32.mrf.mxu1 }
 0x516   : > { %v6989_v57 = vadd.f32 %v6988_v51, %v6987_v5  ;;  %v6977_v60 = vadd.f32 %v6976_v27, %v6975_v24  ;;  %v6994_v44 = vrot.slane %v6993_v14, 1  ;;  %v6981_v35 = vadd.f32 %v6980_v59, %v6979_v30 }
 0x517   : > { %v7270_v19 = vunpack.c.l.b16 %v7114_v52  ;;  %v7334_v16 = vsel %vm7296_vm6, %v7269_v13, %v7333_v15  ;;  %v7008_v41 = vrot.slane %v6674_v25, 4  ;;  %v6672_v61 = vmul.f32 %v6573_v63, %v4057_v6  ;;  %v8217_v36 = vpop.f32.mrf.mxu1 }
 0x518   : > { %v7271_v47 = vunpack.c.l.b16 %v7115_v18  ;;  %v6995_v26 = vadd.f32 %v6994_v44, %v6993_v14  ;;  %v6982_v8 = vrot.slane %v6981_v35, 1  ;;  %v4058_v9 = vmul.f32 %v3994_v12, %v12408_v55 }
 0x519   : > { %v7335_v40 = vsel %vm7298_vm7, %v7270_v19, %v7334_v16  ;;  %v7009_v2 = vadd.f32 %v7008_v41, %v6674_v25  ;;  %v6996_v32 = vrot.slane %v6672_v61, 4  ;;  %v6675_v1 = vmul.f32 %v8217_v36, %v4060_v21  ;;  %v6576_v62 = vpop.f32.mrf.mxu1 }
 0x51a   : > { %v7118_v38 = vpack.c.bf16 %v6989_v57, %v6989_v57  ;;  %v7116_v23 = vpack.c.bf16 %v6977_v60, %v6977_v60  ;;  %v6983_v5 = vadd.f32 %v6982_v8, %v6981_v35  ;;  %v7336_v48 = vsel %vm7300_vm8, %v7271_v47, %v7335_v40 }
 0x51b   : > { %v7353_v28 = vpack.c.b16 %v7336_v48, %v12555_v46  ;;  %v7010_v7 = vrot.slane %v7009_v2, 2  ;;  %v6997_v10 = vadd.f32 %v6996_v32, %v6672_v61  ;;  %v7014_v33 = vrot.slane %v6675_v1, 4 }
 0x51c   : > { %v7119_v51 = vpack.c.bf16 %v6995_v26, %v6995_v26  ;;  %v7117_v24 = vpack.c.bf16 %v6983_v5, %v6983_v5  ;;  %v6673_v20 = vmul.f32 %v6576_v62, %v4058_v9  ;;  %8840 = vtanh.f32 %v12599_v11 }
 0x51d   : > { %7492 = vmatmul.mubr.bf16.gmra.mxu0 %v7353_v28  ;;  %v7011_v55 = vadd.f32 %v7010_v7, %v7009_v2  ;;  %v6998_v30 = vrot.slane %v6997_v10, 2  ;;  %v7015_v52 = vadd.f32 %v7014_v33, %v6675_v1  ;;  %v7272_v15 = vunpack.c.l.b16 %v7116_v23 }
 0x51e   : > { %v7273_v43 = vunpack.c.l.b16 %v7117_v24  ;;  %v7002_v12 = vrot.slane %v6673_v20, 4  ;;  %8842 = vtanh.f32 %v12603_v31  ;;  %7501 = vmatprep.mubr.bf16.mxu0 %v13152_v45  ;;  %v7274_v46 = vunpack.c.l.b16 %v7118_v38 }
 0x51f   : > { %v6999_v18 = vadd.f32 %v6998_v30, %v6997_v10  ;;  %v7016_v27 = vrot.slane %v7015_v52, 2  ;;  %8844 = vtanh.f32 %v3810_v3  ;;  %v7275_v14 = vunpack.c.l.b16 %v7119_v51 }
 0x520   : > { %v7337_v59 = vsel %vm7288_vm2, %v7273_v43, %v7272_v15  ;;  %v7003_v29 = vadd.f32 %v7002_v12, %v6673_v20  ;;  %v3935_v11 = vadd.f32 1.0, %v12606_v50  ;;  %v7012_v25 = vrot.slane %v7011_v55, 1 }
 0x521   : > { %v7338_v13 = vsel %vm7290_vm3, %v7274_v46, %v7337_v59  ;;  %v7000_v6 = vrot.slane %v6999_v18, 1  ;;  %v7017_v21 = vadd.f32 %v7016_v27, %v7015_v52  ;;  %v3933_v44 = vadd.f32 1.0, %v12608_v56 }
 0x522   : > { %v7339_v57 = vsel %vm7292_vm4, %v7275_v14, %v7338_v13  ;;  %v7004_v31 = vrot.slane %v7003_v29, 2  ;;  %v3936_v3 = vadd.f32 1.0, %v12610_v34  ;;  %v7013_v63 = vadd.f32 %v7012_v25, %v7011_v55 }
 0x523   : > { %v7001_v60 = vadd.f32 %v7000_v6, %v6999_v18  ;;  %v7018_v45 = vrot.slane %v7017_v21, 1  ;;  %v3999_v16 = vmul.f32 0.5, %v3935_v11  ;;  %v3934_v61 = vadd.f32 1.0, %v12612_v22 }
 0x524   : > { %v7005_v35 = vadd.f32 %v7004_v31, %v7003_v29  ;;  %v3997_v26 = vmul.f32 0.5, %v3933_v44  ;;  %v4000_v36 = vmul.f32 0.5, %v3936_v3  ;;  %v7122_v40 = vpack.c.bf16 %v7013_v63, %v7013_v63 }
 0x525   : > { %v7120_v19 = vpack.c.bf16 %v7001_v60, %v7001_v60  ;;  %v7019_v41 = vadd.f32 %v7018_v45, %v7017_v21  ;;  %v4063_v56 = vmul.f32 %v3999_v16, %v12469_v0  ;;  %v3939_v32 = vadd.f32 1.0, %v12616_v54 }
 0x526   : > { %v7006_v50 = vrot.slane %v7005_v35, 1  ;;  %v3998_v23 = vmul.f32 0.5, %v3934_v61  ;;  %v4061_v22 = vmul.f32 %v3997_v26, %v12439_v39  ;;  %v4064_v10 = vmul.f32 %v4000_v36, %v12477_v53 }
 0x527   : > { %v7276_v47 = vunpack.c.l.b16 %v7120_v19  ;;  %v7123_v34 = vpack.c.bf16 %v7019_v41, %v7019_v41  ;;  %v7278_v51 = vunpack.c.l.b16 %v7122_v40  ;;  %v4003_v0 = vmul.f32 0.5, %v3939_v32 }
 0x528   : > { %v7007_v8 = vadd.f32 %v7006_v50, %v7005_v35  ;;  %v8220_v38 = vpop.f32.mrf.mxu1  ;;  %v4062_v52 = vmul.f32 %v3998_v23, %v12443_v58 }
 0x529   : > { %v8841_v9 = vpop.eup %8840  ;;  %v7340_v2 = vsel %vm7294_vm5, %v7276_v47, %v7339_v57  ;;  %v6678_v48 = vmul.f32 %v8220_v38, %v4063_v56  ;;  %v7279_v55 = vunpack.c.l.b16 %v7123_v34  ;;  %v4067_v25 = vmul.f32 %v4003_v0, %v12509_v42 }
 0x52a   : > { %v7121_v1 = vpack.c.bf16 %v7007_v8, %v7007_v8  ;;  %v6589_v7 = vpop.f32.mrf.mxu1  ;;  %v3937_v33 = vadd.f32 1.0, %v8841_v9 }
 0x52b   : > { %v8843_v5 = vpop.eup %8842  ;;  %v7032_v24 = vrot.slane %v6678_v48, 4  ;;  %v6676_v20 = vmul.f32 %v6589_v7, %v4061_v22 }
 0x52c   : > { %v8845_v62 = vpop.eup %8844  ;;  %v7277_v28 = vunpack.c.l.b16 %v7121_v1  ;;  %v8221_v30 = vpop.f32.mrf.mxu1  ;;  %v3940_v15 = vadd.f32 1.0, %v8843_v5  ;;  %v4001_v27 = vmul.f32 0.5, %v3937_v33 }
 0x52d   : > { %v7033_v43 = vadd.f32 %v7032_v24, %v6678_v48  ;;  %v7020_v12 = vrot.slane %v6676_v20, 4  ;;  %v6679_v39 = vmul.f32 %v8221_v30, %v4064_v10  ;;  %v3938_v53 = vadd.f32 1.0, %v8845_v62 }
 0x52e   : > { %v7341_v54 = vsel %vm7296_vm6, %v7277_v28, %v7340_v2  ;;  %v6592_v18 = vpop.f32.mrf.mxu1  ;;  %v4004_v58 = vmul.f32 0.5, %v3940_v15  ;;  %v4065_v44 = vmul.f32 %v4001_v27, %v12500_v4 }
 0x52f   : > { %v7342_v46 = vsel %vm7298_vm7, %v7278_v51, %v7341_v54  ;;  %v7034_v59 = vrot.slane %v7033_v43, 2  ;;  %v7021_v29 = vadd.f32 %v7020_v12, %v6676_v20  ;;  %v7038_v11 = vrot.slane %v6679_v39, 4  ;;  %v13210_v20 = vld [vmem:[#allocation38_spill] sm:$0xff] }
 0x530   : > { %v12644_v14 = vsel %vm7300_vm8, %v7279_v55, %v7342_v46  ;;  %v6677_v13 = vmul.f32 %v6592_v18, %v4062_v52  ;;  %v8224_v6 = vpop.f32.mrf.mxu1  ;;  %v4002_v3 = vmul.f32 0.5, %v3938_v53  ;;  %v4068_v47 = vmul.f32 %v4004_v58, %v12558_v17  ;;  %v12653_v17 = vld [vmem:[%s12772_s13] sm:$0x3] }
 0x531   : > { %v7035_v21 = vadd.f32 %v7034_v59, %v7033_v43  ;;  %v7022_v57 = vrot.slane %v7021_v29, 2  ;;  %v7039_v31 = vadd.f32 %v7038_v11, %v6679_v39  ;;  %v6682_v45 = vmul.f32 %v8224_v6, %v4067_v25 }
 0x532   : > { %v7026_v60 = vrot.slane %v6677_v13, 4  ;;  %v6605_v35 = vpop.f32.mrf.mxu1  ;;  %v4066_v56 = vmul.f32 %v4002_v3, %v12505_v49  ;;  %v12657_v0 = vrot.slane %v12653_v17, %v13210_v20 }
 0x533   : > { %v7036_v63 = vrot.slane %v7035_v21, 1  ;;  %v7023_v19 = vadd.f32 %v7022_v57, %v7021_v29  ;;  %v7040_v16 = vrot.slane %v7039_v31, 2  ;;  %v7056_v50 = vrot.slane %v6682_v45, 4 }
 0x534   : > { %v7027_v41 = vadd.f32 %v7026_v60, %v6677_v13  ;;  %v6680_v61 = vmul.f32 %v6605_v35, %v4065_v44  ;;  %v8225_v42 = vpop.f32.mrf.mxu1 }
 0x535   : > { %v7024_v26 = vrot.slane %v7023_v19, 1  ;;  %v7041_v8 = vadd.f32 %v7040_v16, %v7039_v31  ;;  %v7057_v9 = vadd.f32 %v7056_v50, %v6682_v45  ;;  %v6683_v2 = vmul.f32 %v8225_v42, %v4068_v47 }
 0x536   : > { %v7028_v36 = vrot.slane %v7027_v41, 2  ;;  %v7044_v40 = vrot.slane %v6680_v61, 4  ;;  %v6608_v4 = vpop.f32.mrf.mxu1  ;;  %v7037_v32 = vadd.f32 %v7036_v63, %v7035_v21 }
 0x537   : > { %v7025_v34 = vadd.f32 %v7024_v26, %v7023_v19  ;;  %v7042_v1 = vrot.slane %v7041_v8, 1  ;;  %v7058_v23 = vrot.slane %v7057_v9, 2  ;;  %v7062_v48 = vrot.slane %v6683_v2, 4 }
 0x538   : > { %v7029_v38 = vadd.f32 %v7028_v36, %v7027_v41  ;;  %v7045_v5 = vadd.f32 %v7044_v40, %v6680_v61  ;;  %v6681_v22 = vmul.f32 %v6608_v4, %v4066_v56  ;;  %v7126_v55 = vpack.c.bf16 %v7037_v32, %v7037_v32 }
 0x539   : > { %v7043_v62 = vadd.f32 %v7042_v1, %v7041_v8  ;;  %v7059_v7 = vadd.f32 %v7058_v23, %v7057_v9  ;;  %v7063_v33 = vadd.f32 %v7062_v48, %v6683_v2  ;;  %v7124_v51 = vpack.c.bf16 %v7025_v34, %v7025_v34 }
 0x53a   : > { %v7030_v28 = vrot.slane %v7029_v38, 1  ;;  %v7046_v10 = vrot.slane %v7045_v5, 2  ;;  %v7050_v49 = vrot.slane %v6681_v22, 4  ;;  %v7282_v11 = vunpack.c.l.b16 %v7126_v55 }
 0x53b   : > { %v7064_v30 = vrot.slane %v7063_v33, 2  ;;  %v7127_v15 = vpack.c.bf16 %v7043_v62, %v7043_v62  ;;  %v7060_v12 = vrot.slane %v7059_v7, 1  ;;  %v7280_v53 = vunpack.c.l.b16 %v7124_v51 }
 0x53c   : > { %v7031_v24 = vadd.f32 %v7030_v28, %v7029_v38  ;;  %v7047_v54 = vadd.f32 %v7046_v10, %v7045_v5  ;;  %v7051_v52 = vadd.f32 %v7050_v49, %v6681_v22  ;;  %v12671_v5 = vrot.slane %v12653_v17, %v13146_v37  ;;  %v8882_v28 = vld [vmem:[%s9163_s15] sm:$0xff]  ;;  %v8883_v17 = vld [vmem:[%s9163_s15 + $0x8] sm:$0xff] }
 0x53d   : > { %v7065_v46 = vadd.f32 %v7064_v30, %v7063_v33  ;;  %v7283_v21 = vunpack.c.l.b16 %v7127_v15  ;;  %v7061_v45 = vadd.f32 %v7060_v12, %v7059_v7 }
 0x53e   : > { %v7125_v43 = vpack.c.bf16 %v7031_v24, %v7031_v24  ;;  %v7048_v39 = vrot.slane %v7047_v54, 1  ;;  %v7052_v18 = vrot.slane %v7051_v52, 2  ;;  %v7473_v27 = vpop.f32.mrf.mxu0 }
 0x53f   : > { %v7474_v29 = vadd.f32 %v7473_v27, %v12657_v0  ;;  %v7066_v25 = vrot.slane %v7065_v46, 1  ;;  %v7130_v47 = vpack.c.bf16 %v7061_v45, %v7061_v45 }
 0x540   : > { %v7281_v59 = vunpack.c.l.b16 %v7125_v43  ;;  %v7049_v13 = vadd.f32 %v7048_v39, %v7047_v54  ;;  %v7053_v6 = vadd.f32 %v7052_v18, %v7051_v52  ;;  %v7475_v58 = vpop.f32.mrf.mxu0 }
 0x541   : > { %v7873_v31 = vmul.f32 -1.442695, %v7474_v29  ;;  %v7067_v35 = vadd.f32 %v7066_v25, %v7065_v46  ;;  %v7286_v9 = vunpack.c.l.b16 %v7130_v47  ;;  %v7476_v48 = vadd.f32 %v7475_v58, %v12671_v5 }
 0x542   : > { %v7344_v57 = vsel %vm7288_vm2, %v7281_v59, %v7280_v53  ;;  %v7128_v44 = vpack.c.bf16 %v7049_v13, %v7049_v13  ;;  %v7477_v3 = vpop.f32.mrf.mxu0  ;;  %v7054_v19 = vrot.slane %v7053_v6, 1  ;;  %v8884_v59 = vld [vmem:[%s9163_s15 + $0x10] sm:$0xff] }
 0x543   : > { %v7345_v60 = vsel %vm7290_vm3, %v7282_v11, %v7344_v57  ;;  %8846 = vpow2.f32 %v7873_v31  ;;  %v7478_v16 = vadd.f32 %v7477_v3, %v12657_v0  ;;  %v7131_v26 = vpack.c.bf16 %v7067_v35, %v7067_v35 }
 0x544   : > { %v7346_v63 = vsel %vm7292_vm4, %v7283_v21, %v7345_v60  ;;  %v7284_v41 = vunpack.c.l.b16 %v7128_v44  ;;  %v7055_v50 = vadd.f32 %v7054_v19, %v7053_v6  ;;  %v7479_v62 = vpop.f32.mrf.mxu0  ;;  %v8885_v6 = vld [vmem:[%s9163_s15 + $0x18] sm:$0xff] }
 0x545   : > { %v7874_v61 = vmul.f32 -1.442695, %v7478_v16  ;;  %v7287_v40 = vunpack.c.l.b16 %v7131_v26  ;;  %v7480_v10 = vadd.f32 %v7479_v62, %v12671_v5 }
 0x546   : > { %v7347_v42 = vsel %vm7294_vm5, %v7284_v41, %v7346_v63  ;;  %v7129_v8 = vpack.c.bf16 %v7055_v50, %v7055_v50 }
 0x547   : > { %8848 = vpow2.f32 %v7874_v61 }
 0x548   : > { %v7285_v36 = vunpack.c.l.b16 %v7129_v8 }
 0x54a   : > { %v7348_v2 = vsel %vm7296_vm6, %v7285_v36, %v7347_v42  ;;  %v8886_v42 = vld [vmem:[%s9163_s15 + $0x20] sm:$0xff] }
 0x54b   : > { %v7349_v56 = vsel %vm7298_vm7, %v7286_v9, %v7348_v2 }
 0x54c   : > { %v7350_v4 = vsel %vm7300_vm8, %v7287_v40, %v7349_v56  ;;  %v8887_v40 = vld [vmem:[%s9163_s15 + $0x28] sm:$0xff] }
 0x54d   : > { %v7354_v32 = vpack.c.b16 %v7350_v4, %v12644_v14 }
 0x54f   : > { %7502 = vmatmul.mubr.bf16.gmra.mxu0 %v7354_v32 }
 0x550   : > { %v8847_v34 = vpop.eup %8846 }
 0x551   : > { %v7536_v1 = vadd.f32 1.0, %v8847_v34 }
 0x553   : > { %8850 = vrcp.f32 %v7536_v1 }
 0x554   : > { %v8849_v38 = vpop.eup %8848 }
 0x555   : > { %v7537_v23 = vadd.f32 1.0, %v8849_v38 }
 0x557   : > { %8852 = vrcp.f32 %v7537_v23 }
 0x560   : > { %v8851_v22 = vpop.eup %8850 }
 0x561   : > { %v7560_v14 = vmul.f32 %v8851_v22, %v7476_v48 }
 0x563   : > { %v7568_v7 = vadd.f32 %v8882_v28, %v7560_v14 }
 0x564   : > { %v8853_v33 = vpop.eup %8852 }
 0x565   : > { %7576 = vst [vmem:[%s12679_s19] sm:$0xff] %v7568_v7  ;;  %v7561_v37 = vmul.f32 %v8853_v33, %v7480_v10 }
 0x567   : > { %v7569_v49 = vadd.f32 %v8883_v17, %v7561_v37 }
 0x569   : > { %7577 = vst [vmem:[%s12679_s19 + $0x8] sm:$0xff] %v7569_v49 }
 0x58b   : > { %v7483_v51 = vpop.f32.mrf.mxu0 }
 0x58c   : > { %v7484_v24 = vadd.f32 %v7483_v51, %v12657_v0 }
 0x58d   : > { %v7485_v20 = vpop.f32.mrf.mxu0 }
 0x58e   : > { %v7875_v55 = vmul.f32 -1.442695, %v7484_v24  ;;  %v7486_v46 = vadd.f32 %v7485_v20, %v12671_v5  ;;  %v8889_v24 = vld [vmem:[%s9163_s15 + $0x38] sm:$0xff] }
 0x58f   : > { %v7487_v54 = vpop.f32.mrf.mxu0 }
 0x590   : > { %8854 = vpow2.f32 %v7875_v55  ;;  %v7488_v30 = vadd.f32 %v7487_v54, %v12657_v0 }
 0x591   : > { %v7489_v27 = vpop.f32.mrf.mxu0 }
 0x592   : > { %v7876_v52 = vmul.f32 -1.442695, %v7488_v30  ;;  %v7490_v11 = vadd.f32 %v7489_v27, %v12671_v5 }
 0x594   : > { %8856 = vpow2.f32 %v7876_v52 }
 0x59d   : > { %v8855_v15 = vpop.eup %8854 }
 0x59e   : > { %v7538_v43 = vadd.f32 1.0, %v8855_v15 }
 0x5a0   : > { %8858 = vrcp.f32 %v7538_v43 }
 0x5a1   : > { %v8857_v12 = vpop.eup %8856 }
 0x5a2   : > { %v7539_v39 = vadd.f32 1.0, %v8857_v12 }
 0x5a4   : > { %8860 = vrcp.f32 %v7539_v39 }
 0x5ad   : > { %v8859_v18 = vpop.eup %8858 }
 0x5ae   : > { %v7562_v53 = vmul.f32 %v8859_v18, %v7486_v46 }
 0x5b0   : > { %v7570_v29 = vadd.f32 %v8884_v59, %v7562_v53 }
 0x5b1   : > { %v8861_v13 = vpop.eup %8860 }
 0x5b2   : > { %7578 = vst [vmem:[%s12679_s19 + $0x10] sm:$0xff] %v7570_v29  ;;  %v7563_v25 = vmul.f32 %v8861_v13, %v7490_v11 }
 0x5b4   : > { %v7571_v58 = vadd.f32 %v8885_v6, %v7563_v25 }
 0x5b6   : > { %7579 = vst [vmem:[%s12679_s19 + $0x18] sm:$0xff] %v7571_v58 }
 0x5dd   : > { %v7493_v21 = vpop.f32.mrf.mxu0 }
 0x5de   : > { %v7494_v57 = vadd.f32 %v7493_v21, %v12657_v0 }
 0x5df   : > { %v7495_v31 = vpop.f32.mrf.mxu0 }
 0x5e0   : > { %v7877_v60 = vmul.f32 -1.442695, %v7494_v57  ;;  %v7496_v41 = vadd.f32 %v7495_v31, %v12671_v5 }
 0x5e1   : > { %v7497_v45 = vpop.f32.mrf.mxu0 }
 0x5e2   : > { %8862 = vpow2.f32 %v7877_v60  ;;  %v7498_v44 = vadd.f32 %v7497_v45, %v12657_v0 }
 0x5e3   : > { %v7499_v61 = vpop.f32.mrf.mxu0 }
 0x5e4   : > { %v7878_v35 = vmul.f32 -1.442695, %v7498_v44  ;;  %v7500_v8 = vadd.f32 %v7499_v61, %v12671_v5 }
 0x5e6   : > { %8864 = vpow2.f32 %v7878_v35 }
 0x5ef   : > { %v8863_v3 = vpop.eup %8862 }
 0x5f0   : > { %v7540_v63 = vadd.f32 1.0, %v8863_v3 }
 0x5f2   : > { %8866 = vrcp.f32 %v7540_v63 }
 0x5f3   : > { %v8865_v19 = vpop.eup %8864 }
 0x5f4   : > { %v7541_v16 = vadd.f32 1.0, %v8865_v19 }
 0x5f6   : > { %8868 = vrcp.f32 %v7541_v16 }
 0x5ff   : > { %v8867_v50 = vpop.eup %8866 }
 0x600   : > { %v7564_v47 = vmul.f32 %v8867_v50, %v7496_v41 }
 0x602   : > { %v7572_v26 = vadd.f32 %v8886_v42, %v7564_v47 }
 0x603   : > { %v8869_v36 = vpop.eup %8868 }
 0x604   : > { %7580 = vst [vmem:[%s12679_s19 + $0x20] sm:$0xff] %v7572_v26  ;;  %v7565_v9 = vmul.f32 %v8869_v36, %v7500_v8 }
 0x606   : > { %v7573_v2 = vadd.f32 %v8887_v40, %v7565_v9 }
 0x608   : > { %7581 = vst [vmem:[%s12679_s19 + $0x28] sm:$0xff] %v7573_v2 }
 0x60f   : > { %v7503_v56 = vpop.f32.mrf.mxu0 }
 0x610   : > { %v7504_v4 = vadd.f32 %v7503_v56, %v12657_v0 }
 0x611   : > { %v7505_v32 = vpop.f32.mrf.mxu0 }
 0x612   : > { %v7879_v34 = vmul.f32 -1.442695, %v7504_v4  ;;  %v7506_v28 = vadd.f32 %v7505_v32, %v12671_v5 }
 0x613   : > { %v7507_v1 = vpop.f32.mrf.mxu0 }
 0x614   : > { %8870 = vpow2.f32 %v7879_v34  ;;  %v7508_v38 = vadd.f32 %v7507_v1, %v12657_v0  ;;  %v8888_v0 = vld [vmem:[%s9163_s15 + $0x30] sm:$0xff] }
 0x615   : > { %v7509_v10 = vpop.f32.mrf.mxu0 }
 0x616   : > { %v7880_v23 = vmul.f32 -1.442695, %v7508_v38  ;;  %v7510_v17 = vadd.f32 %v7509_v10, %v12671_v5 }
 0x618   : > { %8872 = vpow2.f32 %v7880_v23 }
 0x621   : > { %v8871_v48 = vpop.eup %8870 }
 0x622   : > { %v7542_v22 = vadd.f32 1.0, %v8871_v48 }
 0x624   : > { %8874 = vrcp.f32 %v7542_v22 }
 0x625   : > { %v8873_v62 = vpop.eup %8872 }
 0x626   : > { %v7543_v14 = vadd.f32 1.0, %v8873_v62 }
 0x628   : > { %8876 = vrcp.f32 %v7543_v14 }
 0x631   : > { %v8875_v7 = vpop.eup %8874 }
 0x632   : > { %v7566_v33 = vmul.f32 %v8875_v7, %v7506_v28 }
 0x634   : > { %v7574_v37 = vadd.f32 %v8888_v0, %v7566_v33 }
 0x635   : > { %v8877_v49 = vpop.eup %8876 }
 0x636   : > { %7582 = vst [vmem:[%s12679_s19 + $0x30] sm:$0xff] %v7574_v37  ;;  %v7567_v51 = vmul.f32 %v8877_v49, %v7510_v17 }
 0x638   : > { %v7575_v20 = vadd.f32 %v8889_v24, %v7567_v51 }
 0x63a   : > { %7583 = vst [vmem:[%s12679_s19 + $0x38] sm:$0xff] %v7575_v20 }
 0x63b   : > { %8903 = shalt.err (!%p8900_p4)
}
 0x63c   : > { %s8904_s15 = scalar_lea.hbm %s12711_s28, 1024  ;;  %s8908_s19 = scalar_lea.hbm %s12773_s14, 2048 }
 0x63d   : > { %p8905_p7 = scmp.ne.s32.totalorder %s12711_s28, %s8904_s15  ;;  %p8909_p10 = scmp.lt.s32.totalorder %s12711_s28, %s12773_s14 }
 0x63e   : > { %p8910_p11 = scmp.lt.s32.totalorder %s8908_s19, %s8904_s15 }
 0x63f   : > { %p8906_p8 = pnand %p8905_p7, %p9070_p5 }
 0x640   : > { %p8911_p12 = por %p8910_p11, %p8909_p10 }
 0x641   : > { %p8907_p9 = pneg %p8906_p8 }
 0x643   : > { %p8912_p13 = pnand %p8911_p12, %p8907_p9 }
 0x645   : > { %8915 = shalt.err (!%p8912_p13)
}
 0x646   : > { %s8955_s16 = smov 128   ;;  %s8956_s17 = smov 8  }
 0x647   : > { %8243 = dma.vmem_to_hbm [thread:$0]  (%p9070_p5), %s12713_s22, 1024, %s12711_s28, %s12719_s21, %s8955_s16, %s8955_s16, %s8956_s17  }
 0x648 PF: > { %s13211_s18 = sld [smem:[#allocation7_spill]] }
 0x649   : > { %s13212_s25 = sld [smem:[#allocation5_spill]] }
 0x64e   : > { %p8249_p0 = scmp.ge.s32.totalorder %s13211_s18, 2 }
 0x64f   : > { %s7613_s26 = sand.u32 1, %s13212_s25  }
 0x650   : > { %p8246_p1 = pnand %p8249_p0, %p9074_p6  ;;  %s7614_s15 = scalar_lea.sflag [#allocation3], %s7613_s26 }
 0x652   : > { %p8247_p2 = pneg %p8246_p1 }
 0x654   : > { %8933 = dma.done.wait (%p8247_p2), %s7614_s15, 1024  }
 0x655   : > { %8935 = vsyncadd (%p8247_p2), %s7614_s15, 4294966272  ;;  %s13214_s16 = sld [smem:[#allocation8_spill]]  ;;  %s13217_s29 = smov %s8942_s30 }
 0x656   : > { %s13215_s27 = sld [smem:[#allocation6_spill]] }
 0x657   : > { %s13216_s15 = sld [smem:[#allocation9_spill]] }
 0x65b   : > { %p24_p3 = scmp.ge.s32.totalorder %s13214_s16, 4  }
 0x65c   : > { %s13218_s30 = smov %s13215_s27 }
 0x65d   :  { %26 = sbr.rel (!%p24_p3) target bundleno = 3 (0x3), region = 117 }
 0x662   :  { %7619 = vsyncpa [#allocation3], 1 }
 0x663   :  { %7621 = vsyncpa [#allocation3 + $0x1], 1 }

</bundles_post_ra>
